<compile_context>
chip_gen: v7x
topology: tpu7x:2x2x1
jax: 0.10.0
libtpu: 0.0.40
codegen_flags: <defaults>
</compile_context>

<pallas_src>
import functools

import jax
import jax.numpy as jnp
from jax.experimental import pallas as pl
from jax.experimental.pallas import tpu as pltpu


# ----------------------------------------------------------------------------
# small helpers
# ----------------------------------------------------------------------------
def _round_up(x, m):
    return ((x + m - 1) // m) * m


def _pick_tm(m):
    # Bigger tiles amortize per-step overhead; keep >=2 grid steps at small M.
    return 512 if m >= 2048 else 256


def _pad_rows(a, mp):
    m = a.shape[0]
    return a if mp == m else jnp.pad(a, ((0, mp - m), (0, 0)))


# ----------------------------------------------------------------------------
# Pallas kernels
# ----------------------------------------------------------------------------
def _gemm_kernel(a_ref, w_ref, b_ref, o_ref, *, activation):
    # bf16 x bf16 -> f32 accumulation on the MXU, fused bias (+ReLU).
    acc = jnp.dot(a_ref[...], w_ref[...], preferred_element_type=jnp.float32)
    acc = acc + b_ref[...]
    if activation == "relu":
        acc = jnp.maximum(acc, 0.0)
    o_ref[...] = acc.astype(o_ref.dtype)


def _block_kernel(p_ref, w2_ref, b2_ref, w3_ref, b3_ref, r_ref, o_ref,
                  *, final_relu):
    # Fused ResnetBlock tail: relu(patches @ W2 + b2) @ W3 + b3 + residual.
    y = jnp.dot(p_ref[...], w2_ref[...], preferred_element_type=jnp.float32)
    y = jnp.maximum(y + b2_ref[...], 0.0)
    acc = jnp.dot(y.astype(w3_ref.dtype), w3_ref[...],
                  preferred_element_type=jnp.float32)
    acc = acc + b3_ref[...] + r_ref[...]
    if final_relu:                      # SimpleResnet's trailing ReLU (last block)
        acc = jnp.maximum(acc, 0.0)
    o_ref[...] = acc.astype(o_ref.dtype)


def _affine_kernel(scale_ref, shift_ref, on_ref, ls_ref, t_ref,
                   on_out_ref, ls_out_ref, *, reverse):
    scale = scale_ref[0]
    shift = shift_ref[0]
    log_s = scale * jnp.tanh(ls_ref[...]) + shift
    if reverse:
        on_out_ref[...] = (on_ref[...] - t_ref[...]) * jnp.exp(-log_s)
    else:
        on_out_ref[...] = on_ref[...] * jnp.exp(log_s) + t_ref[...]
    ls_out_ref[...] = log_s


# ----------------------------------------------------------------------------
# Pallas wrappers
# ----------------------------------------------------------------------------
def matmul_bias_act(a, w, b, *, activation="none", out_dtype=jnp.float32):
    """out = act(a @ w + b); a:(M,K) w:(K,N) b:(N,). bf16 MXU operands."""
    M, K = a.shape
    _, N = w.shape
    Np = _round_up(N, 128)              # lane-dense stores / MXU columns
    tm = _pick_tm(M)
    Mp = _round_up(M, tm)

    a_p = _pad_rows(a, Mp).astype(jnp.bfloat16)
    w_p = w.astype(jnp.bfloat16)
    b_p = b.astype(jnp.float32)
    if Np != N:
        w_p = jnp.pad(w_p, ((0, 0), (0, Np - N)))
        b_p = jnp.pad(b_p, (0, Np - N))
    b2 = b_p.reshape(1, Np)

    out = pl.pallas_call(
        functools.partial(_gemm_kernel, activation=activation),
        grid=(Mp // tm,),
        in_specs=[pl.BlockSpec((tm, K), lambda i: (i, 0)),
                  pl.BlockSpec((K, Np), lambda i: (0, 0)),     # resident weights
                  pl.BlockSpec((1, Np), lambda i: (0, 0))],
        out_specs=pl.BlockSpec((tm, Np), lambda i: (i, 0)),
        out_shape=jax.ShapeDtypeStruct((Mp, Np), out_dtype),
        compiler_params=pltpu.CompilerParams(
            dimension_semantics=("parallel",)),
    )(a_p, w_p, b2)
    return out[:M, :N]


def resblock_fused(patches, w2, b2, w3, b3, residual, *, final_relu):
    """h_new = [relu] (relu(patches @ W2 + b2) @ W3 + b3 + residual)."""
    M, K2 = patches.shape
    F = w2.shape[1]
    tm = _pick_tm(M)
    Mp = _round_up(M, tm)

    p_p = _pad_rows(patches, Mp).astype(jnp.bfloat16)
    r_p = _pad_rows(residual, Mp).astype(jnp.float32)

    out = pl.pallas_call(
        functools.partial(_block_kernel, final_relu=final_relu),
        grid=(Mp // tm,),
        in_specs=[pl.BlockSpec((tm, K2), lambda i: (i, 0)),
                  pl.BlockSpec((K2, F), lambda i: (0, 0)),     # resident W2
                  pl.BlockSpec((1, F), lambda i: (0, 0)),
                  pl.BlockSpec((F, F), lambda i: (0, 0)),      # resident W3
                  pl.BlockSpec((1, F), lambda i: (0, 0)),
                  pl.BlockSpec((tm, F), lambda i: (i, 0))],
        out_specs=pl.BlockSpec((tm, F), lambda i: (i, 0)),
        out_shape=jax.ShapeDtypeStruct((Mp, F), jnp.float32),
        compiler_params=pltpu.CompilerParams(
            dimension_semantics=("parallel",)),
    )(p_p, w2.astype(jnp.bfloat16), b2.reshape(1, F).astype(jnp.float32),
      w3.astype(jnp.bfloat16), b3.reshape(1, F).astype(jnp.float32), r_p)
    return out[:M]


def affine_couple(on, ls, t, scale, shift, *, reverse):
    """Affine coupling on matching-layout tensors, tiled as (rows, 128)."""
    shape = on.shape
    T = on.size
    L = 128
    Tp = _round_up(T, 8 * L)
    R = Tp // L
    tr = 256 if R >= 512 else R          # rows per tile (multiple of 8)
    Rp = _round_up(R, tr)
    Tp = Rp * L

    def prep(x):
        flat = jnp.pad(x.reshape(-1), (0, Tp - T))
        return flat.reshape(Rp, L).astype(jnp.float32)

    blk = pl.BlockSpec((tr, L), lambda i: (i, 0))
    smem = pl.BlockSpec(memory_space=pltpu.MemorySpace.SMEM)
    on_out, ls_out = pl.pallas_call(
        functools.partial(_affine_kernel, reverse=reverse),
        grid=(Rp // tr,),
        in_specs=[smem, smem, blk, blk, blk],
        out_specs=(blk, blk),
        out_shape=(jax.ShapeDtypeStruct((Rp, L), jnp.float32),
                   jax.ShapeDtypeStruct((Rp, L), jnp.float32)),
        compiler_params=pltpu.CompilerParams(
            dimension_semantics=("parallel",)),
    )(scale, shift, prep(on), prep(ls), prep(t))
    return (on_out.reshape(-1)[:T].reshape(shape),
            ls_out.reshape(-1)[:T].reshape(shape))


# ----------------------------------------------------------------------------
# Weight-norm conv glue (XLA side: weight prep + im2col only)
# ----------------------------------------------------------------------------
def _normalized_weight(p):
    v, g = p["v"], p["g"]                     # v: OIHW, g: (Cout,)
    norm = jnp.sqrt(jnp.sum(v * v, axis=(1, 2, 3), keepdims=True))
    return (g.reshape(-1, 1, 1, 1) / norm) * v


def _gemm_weight(p):
    """Weight-normed OIHW conv weight -> ((kh*kw*Cin), Cout) GEMM matrix, bias."""
    w = _normalized_weight(p)                 # (Cout, Cin, kh, kw)
    w_hwio = jnp.transpose(w, (2, 3, 1, 0))   # (kh, kw, Cin, Cout)
    kh, kw, cin, cout = w_hwio.shape
    return w_hwio.reshape(kh * kw * cin, cout), p["b"]


def im2col_3x3(x_nhwc):
    """3x3, stride 1, padding 1 patches: (N,H,W,C) -> (N*H*W, 9*C)."""
    N, H, W, C = x_nhwc.shape
    xp = jnp.pad(x_nhwc, ((0, 0), (1, 1), (1, 1), (0, 0)))
    cols = [xp[:, i:i + H, j:j + W, :] for i in range(3) for j in range(3)]
    return jnp.concatenate(cols, axis=-1).reshape(N * H * W, 9 * C)


def simple_resnet(off_nhwc, rp):
    N, H, W, _ = off_nhwc.shape

    # Hoist weight-norm + GEMM layout conversion (once per forward).
    w_in, b_in = _gemm_weight(rp["in_conv"])
    w_out, b_out = _gemm_weight(rp["out_conv"])
    blocks = [tuple(_gemm_weight(blk[k]) for k in ("c1", "c2", "c3"))
              for blk in rp["blocks"]]

    # in_conv (3x3) + ReLU ; residual stream h kept in f32 as (M, F).
    h = matmul_bias_act(im2col_3x3(off_nhwc.astype(jnp.bfloat16)),
                        w_in, b_in, activation="relu")
    F = h.shape[1]

    n_blocks = len(blocks)
    for bi, ((w1, b1), (w2, b2), (w3, b3)) in enumerate(blocks):
        last = bi == n_blocks - 1
        # c1 (1x1) + ReLU, emitted in bf16 so the im2col patches are bf16.
        y1 = matmul_bias_act(h, w1, b1, activation="relu",
                             out_dtype=jnp.bfloat16)
        p2 = im2col_3x3(y1.reshape(N, H, W, F))
        # Fused c2(3x3)+ReLU -> c3(1x1) -> +residual (+ trailing ReLU if last).
        h = resblock_fused(p2, w2, b2, w3, b3, h, final_relu=last)

    # out_conv (3x3); Cout (=chan) zero-padded to 128 lanes inside the wrapper.
    out = matmul_bias_act(
        im2col_3x3(h.astype(jnp.bfloat16).reshape(N, H, W, F)),
        w_out, b_out, activation="none")
    return out.reshape(N, H, W, -1)


# ----------------------------------------------------------------------------
# AffineChannelTransform forward
# ----------------------------------------------------------------------------
def affine_channel_transform(x, params, *, modify_top=True, reverse=False):
    N, C, H, W = x.shape
    half = C // 2
    if modify_top:
        on, off = x[:, :half], x[:, half:]
    else:
        off, on = x[:, :half], x[:, half:]

    off_nhwc = jnp.transpose(off, (0, 2, 3, 1))
    res = simple_resnet(off_nhwc, params["resnet"])            # (N, H, W, C)
    res_nchw = jnp.transpose(res, (0, 3, 1, 2))
    log_s_raw, t = res_nchw[:, :half], res_nchw[:, half:]

    on_out, log_s = affine_couple(on, log_s_raw, t,
                                  params["scale"], params["scale_shift"],
                                  reverse=reverse)
    zeros = jnp.zeros_like(log_s)
    if modify_top:
        return (jnp.concatenate([on_out, off], axis=1),
                jnp.concatenate([log_s, zeros], axis=1))
    return (jnp.concatenate([off, on_out], axis=1),
            jnp.concatenate([zeros, log_s], axis=1))


# ----------------------------------------------------------------------------
# Deterministic parameter init (shapes from the PyTorch __init__)
# ----------------------------------------------------------------------------
def init_conv_params(key, cin, cout, kh, kw):
    k1, k2 = jax.random.split(key)
    fan_in = cin * kh * kw
    v = jax.random.normal(k1, (cout, cin, kh, kw), jnp.float32) / jnp.sqrt(fan_in)
    g = jnp.sqrt(jnp.sum(v * v, axis=(1, 2, 3)))   # weight_norm init: g = ||v||
    b = 0.01 * jax.random.normal(k2, (cout,), jnp.float32)
    return {"v": v, "g": g, "b": b}


def init_params(key, chan, n_filters=128, n_blocks=8):
    half = chan // 2
    keys = jax.random.split(key, 2 + 3 * n_blocks)
    it = iter(keys)
    # PyTorch inits scale/scale_shift to zeros; use small nonzero values so the
    # tanh/exp coupling path is actually exercised.
    params = {
        "scale": jnp.array([0.5], jnp.float32),
        "scale_shift": jnp.array([0.1], jnp.float32),
    }
    resnet = {"in_conv": init_conv_params(next(it), half, n_filters, 3, 3)}
    blocks = []
    for _ in range(n_blocks):
        blocks.append({
            "c1": init_conv_params(next(it), n_filters, n_filters, 1, 1),
            "c2": init_conv_params(next(it), n_filters, n_filters, 3, 3),
            "c3": init_conv_params(next(it), n_filters, n_filters, 1, 1),
        })
    resnet["blocks"] = blocks
    resnet["out_conv"] = init_conv_params(jax.random.fold_in(key, 999),
                                          n_filters, chan, 3, 3)
    params["resnet"] = resnet
    return params


# ----------------------------------------------------------------------------
# Pure-JAX f32 reference (mirrors the PyTorch module, NCHW)
# ----------------------------------------------------------------------------
def reference_forward(x, params, modify_top, reverse):
    def conv_ref(xn, p, padding):
        w = _normalized_weight(p)
        y = jax.lax.conv_general_dilated(
            xn, w, (1, 1), [(padding, padding)] * 2,
            dimension_numbers=("NCHW", "OIHW", "NCHW"),
            precision=jax.lax.Precision.HIGHEST)
        return y + p["b"].reshape(1, -1, 1, 1)

    C = x.shape[1]
    half = C // 2
    if modify_top:
        on, off = x[:, :half], x[:, half:]
    else:
        off, on = x[:, :half], x[:, half:]
    rp = params["resnet"]
    h = jax.nn.relu(conv_ref(off, rp["in_conv"], 1))
    for blk in rp["blocks"]:
        y = jax.nn.relu(conv_ref(h, blk["c1"], 0))
        y = jax.nn.relu(conv_ref(y, blk["c2"], 1))
        h = h + conv_ref(y, blk["c3"], 0)
    h = jax.nn.relu(h)
    out = conv_ref(h, rp["out_conv"], 1)
    log_s_raw, t = out[:, :half], out[:, half:]
    log_s = params["scale"][0] * jnp.tanh(log_s_raw) + params["scale_shift"][0]
    if reverse:
        on = (on - t) * jnp.exp(-log_s)
    else:
        on = on * jnp.exp(log_s) + t
    zeros = jnp.zeros_like(log_s)
    if modify_top:
        return (jnp.concatenate([on, off], 1), jnp.concatenate([log_s, zeros], 1))
    return (jnp.concatenate([off, on], 1), jnp.concatenate([zeros, log_s], 1))


# ----------------------------------------------------------------------------
if __name__ == "__main__":
    key = jax.random.PRNGKey(0)
    kx, kp = jax.random.split(key)

    N, C, H, W = 2, 4, 16, 16            # x: (batch, channels, height, width)
    x = jax.random.normal(kx, (N, C, H, W), jnp.float32)
    params = init_params(kp, C)          # SimpleResnet defaults: 128 filters, 8 blocks

    fwd = jax.jit(affine_channel_transform,
                  static_argnames=("modify_top", "reverse"))
    y, log_det = fwd(x, params, modify_top=True, reverse=False)
    jax.block_until_ready((y, log_det))

    y_ref, ld_ref = reference_forward(x, params, True, False)
    assert y.shape == x.shape and log_det.shape == x.shape
    assert bool(jnp.all(jnp.isfinite(y))) and bool(jnp.all(jnp.isfinite(log_det)))
    err = max(float(jnp.max(jnp.abs(y - y_ref))),
              float(jnp.max(jnp.abs(log_det - ld_ref))))
    # bf16 MXU operands (f32 accumulation) vs the f32 HIGHEST-precision reference.
    assert err < 0.2, f"mismatch vs reference: {err}"

    print("KERNEL_OK")
</pallas_src>

<mosaic_0001>
module attributes {stable_mosaic.version = 11 : i64} {
  func.func @_gemm_kernel(%arg0: i32, %arg1: memref<256x18xbf16, #tpu.memory_space<vmem>>, %arg2: memref<18x128xbf16, #tpu.memory_space<vmem>>, %arg3: memref<1x128xf32, #tpu.memory_space<vmem>>, %arg4: memref<256x128xf32, #tpu.memory_space<vmem>>) attributes {dimension_semantics = [#tpu.dimension_semantics<parallel>], iteration_bounds = array<i64: 2>, scalar_prefetch = 0 : i64, scratch_operands = 0 : i64, tpu.core_type = #tpu.core_type<tc>, window_params = [{transform_indices = @transform_0, window_bounds = array<i64: 256, 18>}, {pipeline_mode = #tpu.pipeline_mode<synchronous>, transform_indices = @transform_1, window_bounds = array<i64: 18, 128>}, {pipeline_mode = #tpu.pipeline_mode<synchronous>, transform_indices = @transform_2, window_bounds = array<i64: 1, 128>}, {transform_indices = @transform_3, window_bounds = array<i64: 256, 128>}]} {
    %c0 = arith.constant 0 : index
    %c0_0 = arith.constant 0 : index
    %0 = vector.load %arg1[%c0, %c0_0] : memref<256x18xbf16, #tpu.memory_space<vmem>>, vector<256x18xbf16>
    %c0_1 = arith.constant 0 : index
    %c0_2 = arith.constant 0 : index
    %1 = vector.load %arg2[%c0_1, %c0_2] : memref<18x128xbf16, #tpu.memory_space<vmem>>, vector<18x128xbf16>
    %cst = arith.constant dense<0.000000e+00> : vector<256x128xf32>
    %2 = tpu.matmul %0, %1, %cst {dimension_numbers = #tpu.dot_dimension_numbers<[1], [0], [0], [1], [0, 0, 1, 1], [], []>} : vector<256x18xbf16>, vector<18x128xbf16>, vector<256x128xf32> -> vector<256x128xf32>
    %c0_3 = arith.constant 0 : index
    %c0_4 = arith.constant 0 : index
    %3 = vector.load %arg3[%c0_3, %c0_4] : memref<1x128xf32, #tpu.memory_space<vmem>>, vector<1x128xf32>
    %4 = vector.broadcast %3 : vector<1x128xf32> to vector<256x128xf32>
    %5 = arith.addf %2, %4 : vector<256x128xf32>
    %cst_5 = arith.constant 0.000000e+00 : f32
    %6 = vector.broadcast %cst_5 : f32 to vector<256x128xf32>
    %7 = arith.maximumf %5, %6 : vector<256x128xf32>
    %c0_6 = arith.constant 0 : index
    %c0_7 = arith.constant 0 : index
    %8 = vector.load %arg4[%c0_6, %c0_7] : memref<256x128xf32, #tpu.memory_space<vmem>>, vector<256x128xf32>
    tpu.vector_store %arg4[%c0_6, %c0_7], %7 {strides = array<i32>} : memref<256x128xf32, #tpu.memory_space<vmem>>, vector<256x128xf32>,
    return
  }
  func.func @transform_0(%arg0: i32) -> (i32, i32) {
    %c0_i32 = arith.constant 0 : i32
    %c0_i32_0 = arith.constant 0 : i32
    return %arg0, %c0_i32 : i32, i32
  }
  func.func @transform_1(%arg0: i32) -> (i32, i32) {
    %c0_i32 = arith.constant 0 : i32
    %c0_i32_0 = arith.constant 0 : i32
    %c0_i32_1 = arith.constant 0 : i32
    return %c0_i32, %c0_i32_0 : i32, i32
  }
  func.func @transform_2(%arg0: i32) -> (i32, i32) {
    %c0_i32 = arith.constant 0 : i32
    %c0_i32_0 = arith.constant 0 : i32
    %c0_i32_1 = arith.constant 0 : i32
    return %c0_i32, %c0_i32_0 : i32, i32
  }
  func.func @transform_3(%arg0: i32) -> (i32, i32) {
    %c0_i32 = arith.constant 0 : i32
    %c0_i32_0 = arith.constant 0 : i32
    return %arg0, %c0_i32 : i32, i32
  }
}

module attributes {stable_mosaic.version = 11 : i64} {
  func.func @_gemm_kernel(%arg0: i32, %arg1: memref<256x128xbf16, #tpu.memory_space<vmem>>, %arg2: memref<128x128xbf16, #tpu.memory_space<vmem>>, %arg3: memref<1x128xf32, #tpu.memory_space<vmem>>, %arg4: memref<256x128xbf16, #tpu.memory_space<vmem>>) attributes {dimension_semantics = [#tpu.dimension_semantics<parallel>], iteration_bounds = array<i64: 2>, scalar_prefetch = 0 : i64, scratch_operands = 0 : i64, tpu.core_type = #tpu.core_type<tc>, window_params = [{transform_indices = @transform_0, window_bounds = array<i64: 256, 128>}, {pipeline_mode = #tpu.pipeline_mode<synchronous>, transform_indices = @transform_1, window_bounds = array<i64: 128, 128>}, {pipeline_mode = #tpu.pipeline_mode<synchronous>, transform_indices = @transform_2, window_bounds = array<i64: 1, 128>}, {transform_indices = @transform_3, window_bounds = array<i64: 256, 128>}]} {
    %c0 = arith.constant 0 : index
    %c0_0 = arith.constant 0 : index
    %0 = vector.load %arg1[%c0, %c0_0] : memref<256x128xbf16, #tpu.memory_space<vmem>>, vector<256x128xbf16>
    %c0_1 = arith.constant 0 : index
    %c0_2 = arith.constant 0 : index
    %1 = vector.load %arg2[%c0_1, %c0_2] : memref<128x128xbf16, #tpu.memory_space<vmem>>, vector<128x128xbf16>
    %cst = arith.constant dense<0.000000e+00> : vector<256x128xf32>
    %2 = tpu.matmul %0, %1, %cst {dimension_numbers = #tpu.dot_dimension_numbers<[1], [0], [0], [1], [0, 0, 1, 1], [], []>} : vector<256x128xbf16>, vector<128x128xbf16>, vector<256x128xf32> -> vector<256x128xf32>
    %c0_3 = arith.constant 0 : index
    %c0_4 = arith.constant 0 : index
    %3 = vector.load %arg3[%c0_3, %c0_4] : memref<1x128xf32, #tpu.memory_space<vmem>>, vector<1x128xf32>
    %4 = vector.broadcast %3 : vector<1x128xf32> to vector<256x128xf32>
    %5 = arith.addf %2, %4 : vector<256x128xf32>
    %cst_5 = arith.constant 0.000000e+00 : f32
    %6 = vector.broadcast %cst_5 : f32 to vector<256x128xf32>
    %7 = arith.maximumf %5, %6 : vector<256x128xf32>
    %8 = arith.truncf %7 : vector<256x128xf32> to vector<256x128xbf16>
    %c0_6 = arith.constant 0 : index
    %c0_7 = arith.constant 0 : index
    %9 = vector.load %arg4[%c0_6, %c0_7] : memref<256x128xbf16, #tpu.memory_space<vmem>>, vector<256x128xbf16>
    tpu.vector_store %arg4[%c0_6, %c0_7], %8 {strides = array<i32>} : memref<256x128xbf16, #tpu.memory_space<vmem>>, vector<256x128xbf16>,
    return
  }
  func.func @transform_0(%arg0: i32) -> (i32, i32) {
    %c0_i32 = arith.constant 0 : i32
    %c0_i32_0 = arith.constant 0 : i32
    return %arg0, %c0_i32 : i32, i32
  }
  func.func @transform_1(%arg0: i32) -> (i32, i32) {
    %c0_i32 = arith.constant 0 : i32
    %c0_i32_0 = arith.constant 0 : i32
    %c0_i32_1 = arith.constant 0 : i32
    return %c0_i32, %c0_i32_0 : i32, i32
  }
  func.func @transform_2(%arg0: i32) -> (i32, i32) {
    %c0_i32 = arith.constant 0 : i32
    %c0_i32_0 = arith.constant 0 : i32
    %c0_i32_1 = arith.constant 0 : i32
    return %c0_i32, %c0_i32_0 : i32, i32
  }
  func.func @transform_3(%arg0: i32) -> (i32, i32) {
    %c0_i32 = arith.constant 0 : i32
    %c0_i32_0 = arith.constant 0 : i32
    return %arg0, %c0_i32 : i32, i32
  }
}

module attributes {stable_mosaic.version = 11 : i64} {
  func.func @_block_kernel(%arg0: i32, %arg1: memref<256x1152xbf16, #tpu.memory_space<vmem>>, %arg2: memref<1152x128xbf16, #tpu.memory_space<vmem>>, %arg3: memref<1x128xf32, #tpu.memory_space<vmem>>, %arg4: memref<128x128xbf16, #tpu.memory_space<vmem>>, %arg5: memref<1x128xf32, #tpu.memory_space<vmem>>, %arg6: memref<256x128xf32, #tpu.memory_space<vmem>>, %arg7: memref<256x128xf32, #tpu.memory_space<vmem>>) attributes {dimension_semantics = [#tpu.dimension_semantics<parallel>], iteration_bounds = array<i64: 2>, scalar_prefetch = 0 : i64, scratch_operands = 0 : i64, tpu.core_type = #tpu.core_type<tc>, window_params = [{transform_indices = @transform_0, window_bounds = array<i64: 256, 1152>}, {pipeline_mode = #tpu.pipeline_mode<synchronous>, transform_indices = @transform_1, window_bounds = array<i64: 1152, 128>}, {pipeline_mode = #tpu.pipeline_mode<synchronous>, transform_indices = @transform_2, window_bounds = array<i64: 1, 128>}, {pipeline_mode = #tpu.pipeline_mode<synchronous>, transform_indices = @transform_3, window_bounds = array<i64: 128, 128>}, {pipeline_mode = #tpu.pipeline_mode<synchronous>, transform_indices = @transform_4, window_bounds = array<i64: 1, 128>}, {transform_indices = @transform_5, window_bounds = array<i64: 256, 128>}, {transform_indices = @transform_6, window_bounds = array<i64: 256, 128>}]} {
    %c0 = arith.constant 0 : index
    %c0_0 = arith.constant 0 : index
    %0 = vector.load %arg1[%c0, %c0_0] : memref<256x1152xbf16, #tpu.memory_space<vmem>>, vector<256x1152xbf16>
    %c0_1 = arith.constant 0 : index
    %c0_2 = arith.constant 0 : index
    %1 = vector.load %arg2[%c0_1, %c0_2] : memref<1152x128xbf16, #tpu.memory_space<vmem>>, vector<1152x128xbf16>
    %cst = arith.constant dense<0.000000e+00> : vector<256x128xf32>
    %2 = tpu.matmul %0, %1, %cst {dimension_numbers = #tpu.dot_dimension_numbers<[1], [0], [0], [1], [0, 0, 1, 1], [], []>} : vector<256x1152xbf16>, vector<1152x128xbf16>, vector<256x128xf32> -> vector<256x128xf32>
    %c0_3 = arith.constant 0 : index
    %c0_4 = arith.constant 0 : index
    %3 = vector.load %arg3[%c0_3, %c0_4] : memref<1x128xf32, #tpu.memory_space<vmem>>, vector<1x128xf32>
    %4 = vector.broadcast %3 : vector<1x128xf32> to vector<256x128xf32>
    %5 = arith.addf %2, %4 : vector<256x128xf32>
    %cst_5 = arith.constant 0.000000e+00 : f32
    %6 = vector.broadcast %cst_5 : f32 to vector<256x128xf32>
    %7 = arith.maximumf %5, %6 : vector<256x128xf32>
    %8 = arith.truncf %7 : vector<256x128xf32> to vector<256x128xbf16>
    %c0_6 = arith.constant 0 : index
    %c0_7 = arith.constant 0 : index
    %9 = vector.load %arg4[%c0_6, %c0_7] : memref<128x128xbf16, #tpu.memory_space<vmem>>, vector<128x128xbf16>
    %cst_8 = arith.constant dense<0.000000e+00> : vector<256x128xf32>
    %10 = tpu.matmul %8, %9, %cst_8 {dimension_numbers = #tpu.dot_dimension_numbers<[1], [0], [0], [1], [0, 0, 1, 1], [], []>} : vector<256x128xbf16>, vector<128x128xbf16>, vector<256x128xf32> -> vector<256x128xf32>
    %c0_9 = arith.constant 0 : index
    %c0_10 = arith.constant 0 : index
    %11 = vector.load %arg5[%c0_9, %c0_10] : memref<1x128xf32, #tpu.memory_space<vmem>>, vector<1x128xf32>
    %12 = vector.broadcast %11 : vector<1x128xf32> to vector<256x128xf32>
    %13 = arith.addf %10, %12 : vector<256x128xf32>
    %c0_11 = arith.constant 0 : index
    %c0_12 = arith.constant 0 : index
    %14 = vector.load %arg6[%c0_11, %c0_12] : memref<256x128xf32, #tpu.memory_space<vmem>>, vector<256x128xf32>
    %15 = arith.addf %13, %14 : vector<256x128xf32>
    %cst_13 = arith.constant 0.000000e+00 : f32
    %16 = vector.broadcast %cst_13 : f32 to vector<256x128xf32>
    %17 = arith.maximumf %15, %16 : vector<256x128xf32>
    %c0_14 = arith.constant 0 : index
    %c0_15 = arith.constant 0 : index
    %18 = vector.load %arg7[%c0_14, %c0_15] : memref<256x128xf32, #tpu.memory_space<vmem>>, vector<256x128xf32>
    tpu.vector_store %arg7[%c0_14, %c0_15], %17 {strides = array<i32>} : memref<256x128xf32, #tpu.memory_space<vmem>>, vector<256x128xf32>,
    return
  }
  func.func @transform_0(%arg0: i32) -> (i32, i32) {
    %c0_i32 = arith.constant 0 : i32
    %c0_i32_0 = arith.constant 0 : i32
    return %arg0, %c0_i32 : i32, i32
  }
  func.func @transform_1(%arg0: i32) -> (i32, i32) {
    %c0_i32 = arith.constant 0 : i32
    %c0_i32_0 = arith.constant 0 : i32
    %c0_i32_1 = arith.constant 0 : i32
    return %c0_i32, %c0_i32_0 : i32, i32
  }
  func.func @transform_2(%arg0: i32) -> (i32, i32) {
    %c0_i32 = arith.constant 0 : i32
    %c0_i32_0 = arith.constant 0 : i32
    %c0_i32_1 = arith.constant 0 : i32
    return %c0_i32, %c0_i32_0 : i32, i32
  }
  func.func @transform_3(%arg0: i32) -> (i32, i32) {
    %c0_i32 = arith.constant 0 : i32
    %c0_i32_0 = arith.constant 0 : i32
    %c0_i32_1 = arith.constant 0 : i32
    return %c0_i32, %c0_i32_0 : i32, i32
  }
  func.func @transform_4(%arg0: i32) -> (i32, i32) {
    %c0_i32 = arith.constant 0 : i32
    %c0_i32_0 = arith.constant 0 : i32
    %c0_i32_1 = arith.constant 0 : i32
    return %c0_i32, %c0_i32_0 : i32, i32
  }
  func.func @transform_5(%arg0: i32) -> (i32, i32) {
    %c0_i32 = arith.constant 0 : i32
    %c0_i32_0 = arith.constant 0 : i32
    return %arg0, %c0_i32 : i32, i32
  }
  func.func @transform_6(%arg0: i32) -> (i32, i32) {
    %c0_i32 = arith.constant 0 : i32
    %c0_i32_0 = arith.constant 0 : i32
    return %arg0, %c0_i32 : i32, i32
  }
}

module attributes {stable_mosaic.version = 11 : i64} {
  func.func @_block_kernel(%arg0: i32, %arg1: memref<256x1152xbf16, #tpu.memory_space<vmem>>, %arg2: memref<1152x128xbf16, #tpu.memory_space<vmem>>, %arg3: memref<1x128xf32, #tpu.memory_space<vmem>>, %arg4: memref<128x128xbf16, #tpu.memory_space<vmem>>, %arg5: memref<1x128xf32, #tpu.memory_space<vmem>>, %arg6: memref<256x128xf32, #tpu.memory_space<vmem>>, %arg7: memref<256x128xf32, #tpu.memory_space<vmem>>) attributes {dimension_semantics = [#tpu.dimension_semantics<parallel>], iteration_bounds = array<i64: 2>, scalar_prefetch = 0 : i64, scratch_operands = 0 : i64, tpu.core_type = #tpu.core_type<tc>, window_params = [{transform_indices = @transform_0, window_bounds = array<i64: 256, 1152>}, {pipeline_mode = #tpu.pipeline_mode<synchronous>, transform_indices = @transform_1, window_bounds = array<i64: 1152, 128>}, {pipeline_mode = #tpu.pipeline_mode<synchronous>, transform_indices = @transform_2, window_bounds = array<i64: 1, 128>}, {pipeline_mode = #tpu.pipeline_mode<synchronous>, transform_indices = @transform_3, window_bounds = array<i64: 128, 128>}, {pipeline_mode = #tpu.pipeline_mode<synchronous>, transform_indices = @transform_4, window_bounds = array<i64: 1, 128>}, {transform_indices = @transform_5, window_bounds = array<i64: 256, 128>}, {transform_indices = @transform_6, window_bounds = array<i64: 256, 128>}]} {
    %c0 = arith.constant 0 : index
    %c0_0 = arith.constant 0 : index
    %0 = vector.load %arg1[%c0, %c0_0] : memref<256x1152xbf16, #tpu.memory_space<vmem>>, vector<256x1152xbf16>
    %c0_1 = arith.constant 0 : index
    %c0_2 = arith.constant 0 : index
    %1 = vector.load %arg2[%c0_1, %c0_2] : memref<1152x128xbf16, #tpu.memory_space<vmem>>, vector<1152x128xbf16>
    %cst = arith.constant dense<0.000000e+00> : vector<256x128xf32>
    %2 = tpu.matmul %0, %1, %cst {dimension_numbers = #tpu.dot_dimension_numbers<[1], [0], [0], [1], [0, 0, 1, 1], [], []>} : vector<256x1152xbf16>, vector<1152x128xbf16>, vector<256x128xf32> -> vector<256x128xf32>
    %c0_3 = arith.constant 0 : index
    %c0_4 = arith.constant 0 : index
    %3 = vector.load %arg3[%c0_3, %c0_4] : memref<1x128xf32, #tpu.memory_space<vmem>>, vector<1x128xf32>
    %4 = vector.broadcast %3 : vector<1x128xf32> to vector<256x128xf32>
    %5 = arith.addf %2, %4 : vector<256x128xf32>
    %cst_5 = arith.constant 0.000000e+00 : f32
    %6 = vector.broadcast %cst_5 : f32 to vector<256x128xf32>
    %7 = arith.maximumf %5, %6 : vector<256x128xf32>
    %8 = arith.truncf %7 : vector<256x128xf32> to vector<256x128xbf16>
    %c0_6 = arith.constant 0 : index
    %c0_7 = arith.constant 0 : index
    %9 = vector.load %arg4[%c0_6, %c0_7] : memref<128x128xbf16, #tpu.memory_space<vmem>>, vector<128x128xbf16>
    %cst_8 = arith.constant dense<0.000000e+00> : vector<256x128xf32>
    %10 = tpu.matmul %8, %9, %cst_8 {dimension_numbers = #tpu.dot_dimension_numbers<[1], [0], [0], [1], [0, 0, 1, 1], [], []>} : vector<256x128xbf16>, vector<128x128xbf16>, vector<256x128xf32> -> vector<256x128xf32>
    %c0_9 = arith.constant 0 : index
    %c0_10 = arith.constant 0 : index
    %11 = vector.load %arg5[%c0_9, %c0_10] : memref<1x128xf32, #tpu.memory_space<vmem>>, vector<1x128xf32>
    %12 = vector.broadcast %11 : vector<1x128xf32> to vector<256x128xf32>
    %13 = arith.addf %10, %12 : vector<256x128xf32>
    %c0_11 = arith.constant 0 : index
    %c0_12 = arith.constant 0 : index
    %14 = vector.load %arg6[%c0_11, %c0_12] : memref<256x128xf32, #tpu.memory_space<vmem>>, vector<256x128xf32>
    %15 = arith.addf %13, %14 : vector<256x128xf32>
    %c0_13 = arith.constant 0 : index
    %c0_14 = arith.constant 0 : index
    %16 = vector.load %arg7[%c0_13, %c0_14] : memref<256x128xf32, #tpu.memory_space<vmem>>, vector<256x128xf32>
    tpu.vector_store %arg7[%c0_13, %c0_14], %15 {strides = array<i32>} : memref<256x128xf32, #tpu.memory_space<vmem>>, vector<256x128xf32>,
    return
  }
  func.func @transform_0(%arg0: i32) -> (i32, i32) {
    %c0_i32 = arith.constant 0 : i32
    %c0_i32_0 = arith.constant 0 : i32
    return %arg0, %c0_i32 : i32, i32
  }
  func.func @transform_1(%arg0: i32) -> (i32, i32) {
    %c0_i32 = arith.constant 0 : i32
    %c0_i32_0 = arith.constant 0 : i32
    %c0_i32_1 = arith.constant 0 : i32
    return %c0_i32, %c0_i32_0 : i32, i32
  }
  func.func @transform_2(%arg0: i32) -> (i32, i32) {
    %c0_i32 = arith.constant 0 : i32
    %c0_i32_0 = arith.constant 0 : i32
    %c0_i32_1 = arith.constant 0 : i32
    return %c0_i32, %c0_i32_0 : i32, i32
  }
  func.func @transform_3(%arg0: i32) -> (i32, i32) {
    %c0_i32 = arith.constant 0 : i32
    %c0_i32_0 = arith.constant 0 : i32
    %c0_i32_1 = arith.constant 0 : i32
    return %c0_i32, %c0_i32_0 : i32, i32
  }
  func.func @transform_4(%arg0: i32) -> (i32, i32) {
    %c0_i32 = arith.constant 0 : i32
    %c0_i32_0 = arith.constant 0 : i32
    %c0_i32_1 = arith.constant 0 : i32
    return %c0_i32, %c0_i32_0 : i32, i32
  }
  func.func @transform_5(%arg0: i32) -> (i32, i32) {
    %c0_i32 = arith.constant 0 : i32
    %c0_i32_0 = arith.constant 0 : i32
    return %arg0, %c0_i32 : i32, i32
  }
  func.func @transform_6(%arg0: i32) -> (i32, i32) {
    %c0_i32 = arith.constant 0 : i32
    %c0_i32_0 = arith.constant 0 : i32
    return %arg0, %c0_i32 : i32, i32
  }
}

module attributes {stable_mosaic.version = 11 : i64} {
  func.func @_gemm_kernel(%arg0: i32, %arg1: memref<256x1152xbf16, #tpu.memory_space<vmem>>, %arg2: memref<1152x128xbf16, #tpu.memory_space<vmem>>, %arg3: memref<1x128xf32, #tpu.memory_space<vmem>>, %arg4: memref<256x128xf32, #tpu.memory_space<vmem>>) attributes {dimension_semantics = [#tpu.dimension_semantics<parallel>], iteration_bounds = array<i64: 2>, scalar_prefetch = 0 : i64, scratch_operands = 0 : i64, tpu.core_type = #tpu.core_type<tc>, window_params = [{transform_indices = @transform_0, window_bounds = array<i64: 256, 1152>}, {pipeline_mode = #tpu.pipeline_mode<synchronous>, transform_indices = @transform_1, window_bounds = array<i64: 1152, 128>}, {pipeline_mode = #tpu.pipeline_mode<synchronous>, transform_indices = @transform_2, window_bounds = array<i64: 1, 128>}, {transform_indices = @transform_3, window_bounds = array<i64: 256, 128>}]} {
    %c0 = arith.constant 0 : index
    %c0_0 = arith.constant 0 : index
    %0 = vector.load %arg1[%c0, %c0_0] : memref<256x1152xbf16, #tpu.memory_space<vmem>>, vector<256x1152xbf16>
    %c0_1 = arith.constant 0 : index
    %c0_2 = arith.constant 0 : index
    %1 = vector.load %arg2[%c0_1, %c0_2] : memref<1152x128xbf16, #tpu.memory_space<vmem>>, vector<1152x128xbf16>
    %cst = arith.constant dense<0.000000e+00> : vector<256x128xf32>
    %2 = tpu.matmul %0, %1, %cst {dimension_numbers = #tpu.dot_dimension_numbers<[1], [0], [0], [1], [0, 0, 1, 1], [], []>} : vector<256x1152xbf16>, vector<1152x128xbf16>, vector<256x128xf32> -> vector<256x128xf32>
    %c0_3 = arith.constant 0 : index
    %c0_4 = arith.constant 0 : index
    %3 = vector.load %arg3[%c0_3, %c0_4] : memref<1x128xf32, #tpu.memory_space<vmem>>, vector<1x128xf32>
    %4 = vector.broadcast %3 : vector<1x128xf32> to vector<256x128xf32>
    %5 = arith.addf %2, %4 : vector<256x128xf32>
    %c0_5 = arith.constant 0 : index
    %c0_6 = arith.constant 0 : index
    %6 = vector.load %arg4[%c0_5, %c0_6] : memref<256x128xf32, #tpu.memory_space<vmem>>, vector<256x128xf32>
    tpu.vector_store %arg4[%c0_5, %c0_6], %5 {strides = array<i32>} : memref<256x128xf32, #tpu.memory_space<vmem>>, vector<256x128xf32>,
    return
  }
  func.func @transform_0(%arg0: i32) -> (i32, i32) {
    %c0_i32 = arith.constant 0 : i32
    %c0_i32_0 = arith.constant 0 : i32
    return %arg0, %c0_i32 : i32, i32
  }
  func.func @transform_1(%arg0: i32) -> (i32, i32) {
    %c0_i32 = arith.constant 0 : i32
    %c0_i32_0 = arith.constant 0 : i32
    %c0_i32_1 = arith.constant 0 : i32
    return %c0_i32, %c0_i32_0 : i32, i32
  }
  func.func @transform_2(%arg0: i32) -> (i32, i32) {
    %c0_i32 = arith.constant 0 : i32
    %c0_i32_0 = arith.constant 0 : i32
    %c0_i32_1 = arith.constant 0 : i32
    return %c0_i32, %c0_i32_0 : i32, i32
  }
  func.func @transform_3(%arg0: i32) -> (i32, i32) {
    %c0_i32 = arith.constant 0 : i32
    %c0_i32_0 = arith.constant 0 : i32
    return %arg0, %c0_i32 : i32, i32
  }
}

module attributes {stable_mosaic.version = 11 : i64} {
  func.func @_affine_kernel(%arg0: i32, %arg1: memref<1xf32, #tpu.memory_space<smem>>, %arg2: memref<1xf32, #tpu.memory_space<smem>>, %arg3: memref<8x128xf32, #tpu.memory_space<vmem>>, %arg4: memref<8x128xf32, #tpu.memory_space<vmem>>, %arg5: memref<8x128xf32, #tpu.memory_space<vmem>>, %arg6: memref<8x128xf32, #tpu.memory_space<vmem>>, %arg7: memref<8x128xf32, #tpu.memory_space<vmem>>) attributes {dimension_semantics = [#tpu.dimension_semantics<parallel>], iteration_bounds = array<i64: 1>, scalar_prefetch = 0 : i64, scratch_operands = 0 : i64, tpu.core_type = #tpu.core_type<tc>, window_params = [{transform_indices = @transform_0, window_bounds = array<i64: 1>}, {transform_indices = @transform_1, window_bounds = array<i64: 1>}, {transform_indices = @transform_2, window_bounds = array<i64: 8, 128>}, {transform_indices = @transform_3, window_bounds = array<i64: 8, 128>}, {transform_indices = @transform_4, window_bounds = array<i64: 8, 128>}, {transform_indices = @transform_5, window_bounds = array<i64: 8, 128>}, {transform_indices = @transform_6, window_bounds = array<i64: 8, 128>}]} {
    %c0 = arith.constant 0 : index
    %0 = memref.load %arg1[%c0] : memref<1xf32, #tpu.memory_space<smem>>
    %c0_0 = arith.constant 0 : index
    %1 = memref.load %arg2[%c0_0] : memref<1xf32, #tpu.memory_space<smem>>
    %c0_1 = arith.constant 0 : index
    %c0_2 = arith.constant 0 : index
    %2 = vector.load %arg4[%c0_1, %c0_2] : memref<8x128xf32, #tpu.memory_space<vmem>>, vector<8x128xf32>
    %3 = math.tanh %2 : vector<8x128xf32>
    %4 = vector.broadcast %0 : f32 to vector<8x128xf32>
    %5 = arith.mulf %4, %3 : vector<8x128xf32>
    %6 = vector.broadcast %1 : f32 to vector<8x128xf32>
    %7 = arith.addf %5, %6 : vector<8x128xf32>
    %c0_3 = arith.constant 0 : index
    %c0_4 = arith.constant 0 : index
    %8 = vector.load %arg3[%c0_3, %c0_4] : memref<8x128xf32, #tpu.memory_space<vmem>>, vector<8x128xf32>
    %9 = math.exp %7 : vector<8x128xf32>
    %10 = arith.mulf %8, %9 : vector<8x128xf32>
    %c0_5 = arith.constant 0 : index
    %c0_6 = arith.constant 0 : index
    %11 = vector.load %arg5[%c0_5, %c0_6] : memref<8x128xf32, #tpu.memory_space<vmem>>, vector<8x128xf32>
    %12 = arith.addf %10, %11 : vector<8x128xf32>
    %c0_7 = arith.constant 0 : index
    %c0_8 = arith.constant 0 : index
    %13 = vector.load %arg6[%c0_7, %c0_8] : memref<8x128xf32, #tpu.memory_space<vmem>>, vector<8x128xf32>
    tpu.vector_store %arg6[%c0_7, %c0_8], %12 {strides = array<i32>} : memref<8x128xf32, #tpu.memory_space<vmem>>, vector<8x128xf32>,
    %c0_9 = arith.constant 0 : index
    %c0_10 = arith.constant 0 : index
    %14 = vector.load %arg7[%c0_9, %c0_10] : memref<8x128xf32, #tpu.memory_space<vmem>>, vector<8x128xf32>
    tpu.vector_store %arg7[%c0_9, %c0_10], %7 {strides = array<i32>} : memref<8x128xf32, #tpu.memory_space<vmem>>, vector<8x128xf32>,
    return
  }
  func.func @transform_0(%arg0: i32) -> i32 {
    %c0_i32 = arith.constant 0 : i32
    %c0_i32_0 = arith.constant 0 : i32
    return %c0_i32 : i32
  }
  func.func @transform_1(%arg0: i32) -> i32 {
    %c0_i32 = arith.constant 0 : i32
    %c0_i32_0 = arith.constant 0 : i32
    return %c0_i32 : i32
  }
  func.func @transform_2(%arg0: i32) -> (i32, i32) {
    %c0_i32 = arith.constant 0 : i32
    %c0_i32_0 = arith.constant 0 : i32
    return %arg0, %c0_i32 : i32, i32
  }
  func.func @transform_3(%arg0: i32) -> (i32, i32) {
    %c0_i32 = arith.constant 0 : i32
    %c0_i32_0 = arith.constant 0 : i32
    return %arg0, %c0_i32 : i32, i32
  }
  func.func @transform_4(%arg0: i32) -> (i32, i32) {
    %c0_i32 = arith.constant 0 : i32
    %c0_i32_0 = arith.constant 0 : i32
    return %arg0, %c0_i32 : i32, i32
  }
  func.func @transform_5(%arg0: i32) -> (i32, i32) {
    %c0_i32 = arith.constant 0 : i32
    %c0_i32_0 = arith.constant 0 : i32
    return %arg0, %c0_i32 : i32, i32
  }
  func.func @transform_6(%arg0: i32) -> (i32, i32) {
    %c0_i32 = arith.constant 0 : i32
    %c0_i32_0 = arith.constant 0 : i32
    return %arg0, %c0_i32 : i32, i32
  }
}

</mosaic_0001>

<bundles_post_ra>
// kernel: affine_channel_transform.20
= control target key start
LH: loop header
LB: loop body
LE: loop exit
PB: predicated region body
PF: predicated region fallthrough
CT: control target
= control target key end

     0   :  { %s1126_s12 = smov 0   ;;  %s1247_s0 = inlined_call_operand.vmem [shape: bf16[512,128], index: 0, kind: input, shape index: {}]   ;;  %s1248_s1 = inlined_call_operand.vmem [shape: bf16[128,128], index: 1, kind: input, shape index: {}]   ;;  %s1249_s2 = inlined_call_operand.vmem [shape: f32[1,128], index: 2, kind: input, shape index: {}]   ;;  %s1250_s3 = inlined_call_operand.vmem [shape: bf16[512,128], index: 3, kind: output, shape index: {}]  }
   0x1 LB: > { %s783_s13 = sadd.s32 4294967295, %s1104_s12   ;;  %p787_p0 = scmp.ge.s32.totalorder %s1104_s12, 1  ;;  %s1104_s12 = sphi %s1126_s12, %s13_s12  }
   0x2   : > { %p138_p1 = scmp.lt.s32.totalorder %s1104_s12, 3 }
   0x4   : > { %p139_p2 = pnand %p787_p0, %p138_p1 }
   0x5   : > { %v1074_v0 = vld [vmem:[%s1248_s1] sm:$0xff] (!%p139_p2)   ;;  %s788_s16 = sshll.u32 (!%p139_p2), %s783_s13, 5  ;;  %v1075_v1 = vld [vmem:[%s1248_s1 + $0x8] sm:$0xff] (!%p139_p2)   ;;  %v1076_v2 = vld [vmem:[%s1248_s1 + $0x10] sm:$0xff] (!%p139_p2)  }
   0x6   : > { %142 = sbr.rel (%p139_p2) target bundleno = 284 (0x11c), region = 32  ;;  %p163_p3 = scmp.lt.s32.totalorder (!%p139_p2), %s788_s16, 63  ;;  %1002 = vmatprep.subr.bf16.mxu0 (!%p139_p2), %v1074_v0  ;;  %1050 = vmatprep.subr.bf16.mxu1 (!%p139_p2), %v1074_v0  ;;  %v1077_v3 = vld [vmem:[%s1248_s1 + $0x18] sm:$0xff] (!%p139_p2)   ;;  %v1078_v6 = vld [vmem:[%s1248_s1 + $0x20] sm:$0xff] (!%p139_p2)   ;;  %v1079_v7 = vld [vmem:[%s1248_s1 + $0x28] sm:$0xff] (!%p139_p2)  }
   0x7   : > { %1003 = vmatpush3.bf16.msra.mxu0 (!%p139_p2), %v1074_v0  ;;  %1058 = vmatpush3.bf16.msra.mxu1 (!%p139_p2), %v1074_v0  ;;  %v1080_v8 = vld [vmem:[%s1248_s1 + $0x30] sm:$0xff] (!%p139_p2)   ;;  %v1081_v9 = vld [vmem:[%s1248_s1 + $0x38] sm:$0xff] (!%p139_p2)   ;;  %v1187_v24 = vld [vmem:[%s1249_s2] ss:$0 sm:$0xff] (!%p139_p2) }
   0x8   : > { %1004 = vmatprep.subr.bf16.mxu0 (!%p139_p2), %v1075_v1  ;;  %1051 = vmatprep.subr.bf16.mxu1 (!%p139_p2), %v1075_v1 }
   0xb   : > { %1005 = vmatpush3.bf16.msra.mxu0 (!%p139_p2), %v1075_v1  ;;  %1059 = vmatpush3.bf16.msra.mxu1 (!%p139_p2), %v1075_v1 }
   0xc   : > { %1006 = vmatprep.subr.bf16.mxu0 (!%p139_p2), %v1076_v2  ;;  %1052 = vmatprep.subr.bf16.mxu1 (!%p139_p2), %v1076_v2 }
   0xd   : > { %s1252_s16 = smov (!%p163_p3, %s788_s16), 63 }
   0xe   : > { %s789_s21 = sshll.u32 %s1252_s16, 2 }
   0xf   : > { %s1151_s24 = scalar_lea.vmem %s1247_s0, %s789_s21  ;;  %1007 = vmatpush3.bf16.msra.mxu0 %v1076_v2  ;;  %1060 = vmatpush3.bf16.msra.mxu1 %v1076_v2  ;;  %s1202_s13 = scalar_lea.vmem %s1250_s3, %s789_s21 }
  0x10   : > { %v1082_v4 = vld [vmem:[%s1151_s24] sm:$0xff]   ;;  %1008 = vmatprep.subr.bf16.mxu0 %v1077_v3  ;;  %1053 = vmatprep.subr.bf16.mxu1 %v1077_v3  ;;  %v1084_v10 = vld [vmem:[%s1151_s24 + $0x8] sm:$0xff]   ;;  %v1086_v12 = vld [vmem:[%s1151_s24 + $0x10] sm:$0xff]  }
  0x11   : > { %v1083_v5 = vld [vmem:[%s1151_s24 + $0x40] sm:$0xff]   ;;  %1018 = vmatprep.mubr.bf16.mxu0 %v1082_v4  ;;  %v1085_v11 = vld [vmem:[%s1151_s24 + $0x48] sm:$0xff]   ;;  %v1087_v13 = vld [vmem:[%s1151_s24 + $0x50] sm:$0xff]  }
  0x12   : > { %1034 = vmatprep.mubr.bf16.mxu1 %v1083_v5  ;;  %v1088_v14 = vld [vmem:[%s1151_s24 + $0x18] sm:$0xff]   ;;  %v1090_v16 = vld [vmem:[%s1151_s24 + $0x20] sm:$0xff]   ;;  %v1092_v18 = vld [vmem:[%s1151_s24 + $0x28] sm:$0xff]  }
  0x13   : > { %1009 = vmatpush3.bf16.msra.mxu0 %v1077_v3  ;;  %1061 = vmatpush3.bf16.msra.mxu1 %v1077_v3  ;;  %v1089_v15 = vld [vmem:[%s1151_s24 + $0x58] sm:$0xff]   ;;  %v1091_v17 = vld [vmem:[%s1151_s24 + $0x60] sm:$0xff]   ;;  %v1093_v19 = vld [vmem:[%s1151_s24 + $0x68] sm:$0xff]  }
  0x14   : > { %1010 = vmatprep.subr.bf16.mxu0 %v1078_v6  ;;  %1054 = vmatprep.subr.bf16.mxu1 %v1078_v6  ;;  %v1094_v20 = vld [vmem:[%s1151_s24 + $0x30] sm:$0xff]   ;;  %v1096_v22 = vld [vmem:[%s1151_s24 + $0x38] sm:$0xff]  }
  0x15   : > { %v1095_v21 = vld [vmem:[%s1151_s24 + $0x70] sm:$0xff]   ;;  %v1097_v23 = vld [vmem:[%s1151_s24 + $0x78] sm:$0xff]  }
  0x17   : > { %1011 = vmatpush3.bf16.msra.mxu0 %v1078_v6  ;;  %1062 = vmatpush3.bf16.msra.mxu1 %v1078_v6 }
  0x18   : > { %1012 = vmatprep.subr.bf16.mxu0 %v1079_v7  ;;  %1055 = vmatprep.subr.bf16.mxu1 %v1079_v7 }
  0x1b   : > { %1013 = vmatpush3.bf16.msra.mxu0 %v1079_v7  ;;  %1063 = vmatpush3.bf16.msra.mxu1 %v1079_v7 }
  0x1c   : > { %1014 = vmatprep.subr.bf16.mxu0 %v1080_v8  ;;  %1056 = vmatprep.subr.bf16.mxu1 %v1080_v8 }
  0x1f   : > { %1015 = vmatpush3.bf16.msra.mxu0 %v1080_v8  ;;  %1064 = vmatpush3.bf16.msra.mxu1 %v1080_v8 }
  0x20   : > { %1016 = vmatprep.subr.bf16.mxu0 %v1081_v9  ;;  %1057 = vmatprep.subr.bf16.mxu1 %v1081_v9 }
  0x23   : > { %1017 = vmatpush3.bf16.msra.mxu0 %v1081_v9  ;;  %1065 = vmatpush3.bf16.msra.mxu1 %v1081_v9 }
  0x26   : > { %1019 = vmatmul.mubr.bf16.vlgmr.msra.gmra.mrb[0].mxu0 %v1084_v10  ;;  %1035 = vmatmul.mubr.bf16.vlgmr.msra.gmra.mrb[0].mxu1 %v1085_v11 }
  0x27   : > { %1022 = vmatprep.mubr.bf16.mxu0 %v1086_v12  ;;  %1038 = vmatprep.mubr.bf16.mxu1 %v1087_v13 }
  0x2e   : > { %1023 = vmatmul.mubr.bf16.gmra.mrb[4].mxu0 %v1088_v14  ;;  %1039 = vmatmul.mubr.bf16.gmra.mrb[4].mxu1 %v1089_v15 }
  0x2f   : > { %1026 = vmatprep.mubr.bf16.mxu0 %v1090_v16  ;;  %1042 = vmatprep.mubr.bf16.mxu1 %v1091_v17 }
  0x36   : > { %1027 = vmatmul.mubr.bf16.gmra.mrb[8].mxu0 %v1092_v18  ;;  %1043 = vmatmul.mubr.bf16.gmra.mrb[8].mxu1 %v1093_v19 }
  0x37   : > { %1030 = vmatprep.mubr.bf16.mxu0 %v1094_v20  ;;  %1046 = vmatprep.mubr.bf16.mxu1 %v1095_v21 }
  0x3e   : > { %1031 = vmatmul.mubr.bf16.gmra.mrb[12].mxu0 %v1096_v22  ;;  %1047 = vmatmul.mubr.bf16.gmra.mrb[12].mxu1 %v1097_v23 }
  0xf9   : > { %v1020_v25 = vpop.f32.mrb[0].mxu0  ;;  %v1036_v26 = vpop.f32.mrb[0].mxu1 }
  0xfa   : > { %v417_v27 = vadd.f32 %v1020_v25, %v1187_v24  ;;  %v481_v28 = vadd.f32 %v1036_v26, %v1187_v24  ;;  %v408_v29 = vpop.f32.mrb[1].mxu0  ;;  %v472_v30 = vpop.f32.mrb[1].mxu1 }
  0xfb   : > { %v409_v31 = vadd.f32 %v1187_v24, %v408_v29  ;;  %v473_v32 = vadd.f32 %v1187_v24, %v472_v30  ;;  %v1021_v33 = vpop.f32.mrb[2].mxu0  ;;  %v1037_v34 = vpop.f32.mrb[2].mxu1 }
  0xfc   : > { %v420_v35 = vadd.f32 %v1021_v33, %v1187_v24  ;;  %v484_v36 = vadd.f32 %v1037_v34, %v1187_v24  ;;  %v411_v37 = vpop.f32.mrb[3].mxu0  ;;  %v475_v38 = vpop.f32.mrb[3].mxu1  ;;  %v537_v41 = vmax.f32 %v417_v27, 0.0  ;;  %v553_v42 = vmax.f32 %v481_v28, 0.0 }
  0xfd   : > { %v412_v39 = vadd.f32 %v1187_v24, %v411_v37  ;;  %v476_v40 = vadd.f32 %v1187_v24, %v475_v38  ;;  %v535_v45 = vmax.f32 %v409_v31, 0.0  ;;  %v551_v46 = vmax.f32 %v473_v32, 0.0 }
  0xfe   : > { %v538_v43 = vmax.f32 %v420_v35, 0.0  ;;  %v554_v44 = vmax.f32 %v484_v36, 0.0 }
  0xff   : > { %v536_v47 = vmax.f32 %v412_v39, 0.0  ;;  %v552_v48 = vmax.f32 %v476_v40, 0.0 }
 0x100   : > { %v891_v49 = vpack.c.bf16 %v538_v43, %v537_v41  ;;  %v931_v50 = vpack.c.bf16 %v554_v44, %v553_v42 }
 0x101   : > { %v886_v51 = vpack.c.bf16 %v536_v47, %v535_v45  ;;  %v926_v52 = vpack.c.bf16 %v552_v48, %v551_v46  ;;  %v1024_v53 = vpop.f32.mrb[4].mxu0  ;;  %v1040_v54 = vpop.f32.mrb[4].mxu1 }
 0x102   : > { %963 = vst [vmem:[%s1202_s13 + $0x8] sm:$0xff] %v891_v49   ;;  %971 = vst [vmem:[%s1202_s13 + $0x48] sm:$0xff] %v931_v50   ;;  %v433_v55 = vadd.f32 %v1024_v53, %v1187_v24  ;;  %v497_v56 = vadd.f32 %v1040_v54, %v1187_v24  ;;  %v424_v57 = vpop.f32.mrb[5].mxu0  ;;  %v488_v58 = vpop.f32.mrb[5].mxu1 }
 0x103   : > { %887 = vst [vmem:[%s1202_s13] sm:$0xff] %v886_v51   ;;  %970 = vst [vmem:[%s1202_s13 + $0x40] sm:$0xff] %v926_v52   ;;  %v425_v59 = vadd.f32 %v1187_v24, %v424_v57  ;;  %v489_v60 = vadd.f32 %v1187_v24, %v488_v58  ;;  %v1025_v61 = vpop.f32.mrb[6].mxu0  ;;  %v1041_v62 = vpop.f32.mrb[6].mxu1 }
 0x104   : > { %v436_v63 = vadd.f32 %v1025_v61, %v1187_v24  ;;  %v500_v0 = vadd.f32 %v1041_v62, %v1187_v24  ;;  %v427_v1 = vpop.f32.mrb[7].mxu0  ;;  %v491_v2 = vpop.f32.mrb[7].mxu1  ;;  %v541_v5 = vmax.f32 %v433_v55, 0.0  ;;  %v557_v6 = vmax.f32 %v497_v56, 0.0 }
 0x105   : > { %v428_v3 = vadd.f32 %v1187_v24, %v427_v1  ;;  %v492_v4 = vadd.f32 %v1187_v24, %v491_v2  ;;  %v539_v9 = vmax.f32 %v425_v59, 0.0  ;;  %v555_v10 = vmax.f32 %v489_v60, 0.0 }
 0x106   : > { %v542_v7 = vmax.f32 %v436_v63, 0.0  ;;  %v558_v8 = vmax.f32 %v500_v0, 0.0 }
 0x107   : > { %v540_v11 = vmax.f32 %v428_v3, 0.0  ;;  %v556_v12 = vmax.f32 %v492_v4, 0.0 }
 0x108   : > { %v901_v13 = vpack.c.bf16 %v542_v7, %v541_v5  ;;  %v941_v14 = vpack.c.bf16 %v558_v8, %v557_v6 }
 0x109   : > { %v896_v15 = vpack.c.bf16 %v540_v11, %v539_v9  ;;  %v936_v16 = vpack.c.bf16 %v556_v12, %v555_v10  ;;  %v1028_v17 = vpop.f32.mrb[8].mxu0  ;;  %v1044_v18 = vpop.f32.mrb[8].mxu1 }
 0x10a   : > { %965 = vst [vmem:[%s1202_s13 + $0x18] sm:$0xff] %v901_v13   ;;  %973 = vst [vmem:[%s1202_s13 + $0x58] sm:$0xff] %v941_v14   ;;  %v449_v19 = vadd.f32 %v1028_v17, %v1187_v24  ;;  %v513_v20 = vadd.f32 %v1044_v18, %v1187_v24  ;;  %v440_v21 = vpop.f32.mrb[9].mxu0  ;;  %v504_v22 = vpop.f32.mrb[9].mxu1 }
 0x10b   : > { %964 = vst [vmem:[%s1202_s13 + $0x10] sm:$0xff] %v896_v15   ;;  %972 = vst [vmem:[%s1202_s13 + $0x50] sm:$0xff] %v936_v16   ;;  %v441_v23 = vadd.f32 %v1187_v24, %v440_v21  ;;  %v505_v25 = vadd.f32 %v1187_v24, %v504_v22  ;;  %v1029_v26 = vpop.f32.mrb[10].mxu0  ;;  %v1045_v27 = vpop.f32.mrb[10].mxu1 }
 0x10c   : > { %v452_v28 = vadd.f32 %v1029_v26, %v1187_v24  ;;  %v516_v29 = vadd.f32 %v1045_v27, %v1187_v24  ;;  %v443_v30 = vpop.f32.mrb[11].mxu0  ;;  %v507_v31 = vpop.f32.mrb[11].mxu1  ;;  %v545_v34 = vmax.f32 %v449_v19, 0.0  ;;  %v561_v35 = vmax.f32 %v513_v20, 0.0 }
 0x10d   : > { %v444_v32 = vadd.f32 %v1187_v24, %v443_v30  ;;  %v508_v33 = vadd.f32 %v1187_v24, %v507_v31  ;;  %v543_v38 = vmax.f32 %v441_v23, 0.0  ;;  %v559_v39 = vmax.f32 %v505_v25, 0.0 }
 0x10e   : > { %v546_v36 = vmax.f32 %v452_v28, 0.0  ;;  %v562_v37 = vmax.f32 %v516_v29, 0.0 }
 0x10f   : > { %v544_v40 = vmax.f32 %v444_v32, 0.0  ;;  %v560_v41 = vmax.f32 %v508_v33, 0.0 }
 0x110   : > { %v911_v42 = vpack.c.bf16 %v546_v36, %v545_v34  ;;  %v951_v43 = vpack.c.bf16 %v562_v37, %v561_v35 }
 0x111   : > { %v906_v44 = vpack.c.bf16 %v544_v40, %v543_v38  ;;  %v946_v45 = vpack.c.bf16 %v560_v41, %v559_v39  ;;  %v1032_v46 = vpop.f32.mrb[12].mxu0  ;;  %v1048_v47 = vpop.f32.mrb[12].mxu1 }
 0x112   : > { %967 = vst [vmem:[%s1202_s13 + $0x28] sm:$0xff] %v911_v42   ;;  %975 = vst [vmem:[%s1202_s13 + $0x68] sm:$0xff] %v951_v43   ;;  %v465_v48 = vadd.f32 %v1032_v46, %v1187_v24  ;;  %v529_v49 = vadd.f32 %v1048_v47, %v1187_v24  ;;  %v456_v50 = vpop.f32.mrb[13].mxu0  ;;  %v520_v51 = vpop.f32.mrb[13].mxu1 }
 0x113   : > { %966 = vst [vmem:[%s1202_s13 + $0x20] sm:$0xff] %v906_v44   ;;  %974 = vst [vmem:[%s1202_s13 + $0x60] sm:$0xff] %v946_v45   ;;  %v457_v52 = vadd.f32 %v1187_v24, %v456_v50  ;;  %v521_v53 = vadd.f32 %v1187_v24, %v520_v51  ;;  %v1033_v54 = vpop.f32.mrb[14].mxu0  ;;  %v1049_v55 = vpop.f32.mrb[14].mxu1 }
 0x114   : > { %v468_v56 = vadd.f32 %v1033_v54, %v1187_v24  ;;  %v532_v57 = vadd.f32 %v1049_v55, %v1187_v24  ;;  %v459_v58 = vpop.f32.mrb[15].mxu0  ;;  %v523_v59 = vpop.f32.mrb[15].mxu1  ;;  %v549_v62 = vmax.f32 %v465_v48, 0.0  ;;  %v565_v63 = vmax.f32 %v529_v49, 0.0 }
 0x115   : > { %v460_v60 = vadd.f32 %v1187_v24, %v459_v58  ;;  %v524_v61 = vadd.f32 %v1187_v24, %v523_v59  ;;  %v547_v2 = vmax.f32 %v457_v52, 0.0  ;;  %v563_v3 = vmax.f32 %v521_v53, 0.0 }
 0x116   : > { %v550_v0 = vmax.f32 %v468_v56, 0.0  ;;  %v566_v1 = vmax.f32 %v532_v57, 0.0 }
 0x117   : > { %v548_v4 = vmax.f32 %v460_v60, 0.0  ;;  %v564_v5 = vmax.f32 %v524_v61, 0.0 }
 0x118   : > { %v921_v6 = vpack.c.bf16 %v550_v0, %v549_v62  ;;  %v961_v7 = vpack.c.bf16 %v566_v1, %v565_v63 }
 0x119   : > { %v916_v8 = vpack.c.bf16 %v548_v4, %v547_v2  ;;  %v956_v9 = vpack.c.bf16 %v564_v5, %v563_v3 }
 0x11a   : > { %969 = vst [vmem:[%s1202_s13 + $0x38] sm:$0xff] %v921_v6   ;;  %977 = vst [vmem:[%s1202_s13 + $0x78] sm:$0xff] %v961_v7  }
 0x11b   : > { %968 = vst [vmem:[%s1202_s13 + $0x30] sm:$0xff] %v916_v8   ;;  %976 = vst [vmem:[%s1202_s13 + $0x70] sm:$0xff] %v956_v9  }
 0x11c PF: > { %s13_s12 = sadd.s32 1, %s1104_s12  }
 0x11d   : > { %p10_p4 = scmp.ge.s32.totalorder %s13_s12, 4  }
 0x11f   :  { %12 = sbr.rel (!%p10_p4) target bundleno = 1 (0x1), region = 62 }

// kernel: affine_channel_transform.19
= control target key start
LH: loop header
LB: loop body
LE: loop exit
PB: predicated region body
PF: predicated region fallthrough
CT: control target
= control target key end

     0   :  { %8 = vsyncpa [#allocation3], 0  ;;  %s871_s12 = smov 0   ;;  %s1042_s0 = inlined_call_operand.vmem [shape: bf16[512,18], index: 0, kind: input, shape index: {}]   ;;  %s1043_s1 = inlined_call_operand.vmem [shape: bf16[18,128], index: 1, kind: input, shape index: {}]   ;;  %s1044_s2 = inlined_call_operand.hbm [shape: f32[1,128], index: 2, kind: input, shape index: {}]   ;;  %s1045_s3 = inlined_call_operand.vmem [shape: f32[512,128], index: 3, kind: output, shape index: {}]  }
   0x1 LB: > { %s665_s13 = sadd.s32 4294967295, %s848_s12   ;;  %p667_p0 = scmp.ge.s32.totalorder %s848_s12, 1  ;;  %s848_s12 = sphi %s871_s12, %s14_s12  }
   0x2   : > { %p113_p1 = scmp.lt.s32.totalorder %s848_s12, 3  ;;  %p885_p3 = scmp.eq.s32.totalorder %s665_s13, 0 }
   0x3   : > { %s850_s16 = smov [#allocation2]   ;;  %s810_s21 = scalar_lea.hbm %s1044_s2, 16 }
   0x4   : > { %p879_p2 = pnand %p667_p0, %p113_p1  ;;  %s129_s17 = sshll.u32 %s850_s16, 4  ;;  %s130_s17 = int_to_ptr.vmem [resolvable:$true] %s129_s17 }
   0x5   : > { %s1050_s15 = scalar_select %p885_p3, 1, 0 }
   0x6   : > { %s1049_s14 = scalar_select %p879_p2, 1, 0 }
   0x7   : > { %p777_p4 = pneg %p879_p2  ;;  %p811_p6 = scmp.ne.s32.totalorder %s1044_s2, %s810_s21 }
   0x8   : > { %p817_p10 = scmp.lt.u32.totalorder %s810_s21, %s1044_s2 }
   0x9   : > { %p893_p5 = pnand %p885_p3, %p777_p4 }
   0xb   : > { %p812_p7 = pneg %p893_p5 }
   0xd   : > { %p813_p8 = pnand %p812_p7, %p811_p6 }
   0xf   : > { %p814_p9 = pneg %p813_p8 }
  0x11   : > { %p819_p11 = pnand %p817_p10, %p814_p9 }
  0x13   : > { %822 = shalt.err (!%p819_p11)
}
  0x14   : > { %s823_s26 = scalar_lea.vmem %s130_s17, 16  ;;  %s830_s27 = scalar_lea.vmem %s130_s17, 32 }
  0x15   : > { %p824_p12 = scmp.ne.s32.totalorder %s130_s17, %s823_s26  ;;  %p831_p1 = scmp.lt.s32.totalorder %s130_s17, %s130_s17 }
  0x16   : > { %p832_p4 = scmp.lt.s32.totalorder %s830_s27, %s823_s26 }
  0x17   : > { %p826_p13 = pnand %p824_p12, %p812_p7 }
  0x18   : > { %p833_p3 = por %p832_p4, %p831_p1 }
  0x19   : > { %p827_p0 = pneg %p826_p13 }
  0x1b   : > { %p834_p2 = pnand %p833_p3, %p827_p0 }
  0x1d   : > { %837 = shalt.err (!%p834_p2)
}
  0x1e   : > { %780 = dma.hbm_to_vmem [thread:$0]  (!%p893_p5), %s1044_s2, 16, %s130_s17, [#allocation3]  }
  0x1f   : > { %p1052_p6 = scmp.ne.s32.totalorder %s1049_s14, 0 }
  0x20   : > { %p1053_p8 = scmp.ne.s32.totalorder (!%p1052_p6), %s1050_s15, 0 }
  0x21   : > { %151 = sbr.rel (%p1052_p6) target bundleno = 294 (0x126), region = 32 }
  0x28   : > { %843 = dma.done.wait (%p1053_p8), [#allocation3], 16  }
  0x29   : > { %845 = vsyncadd (%p1053_p8), [#allocation3], 4294967280  ;;  %s672_s30 = sshll.u32 %s665_s13, 5  ;;  %vm368_vm0 = vcmask 1040384   ;;  %v792_v0 = vld [vmem:[%s1043_s1] sm:$0xff]   ;;  %vm319_vm1 = vcmask 146432  }
  0x2a   : > { %p176_p3 = scmp.lt.s32.totalorder %s672_s30, 63  ;;  %v793_v1 = vld [vmem:[%s1043_s1 + $0x8] ss:$0 sps:$4 sm:$0x11]   ;;  %731 = vmatprep.subr.bf16.mxu0 %v792_v0  ;;  %767 = vmatprep.subr.bf16.mxu1 %v792_v0  ;;  %v967_v19 = vld [vmem:[#allocation2] ss:$0 sm:$0xff] }
  0x2b   : > { %732 = vmatpush3.bf16.msra.mxu0 %v792_v0  ;;  %769 = vmatpush3.bf16.msra.mxu1 %v792_v0  ;;  %v370_v4 = vsel %vm368_vm0, %v793_v1, 0 }
  0x2c   : > { %s1055_s30 = smov (!%p176_p3, %s672_s30), 63  ;;  %771 = vmatprep.subr.msk.bf16.mxu0 %vm368_vm0, %v793_v1  ;;  %772 = vmatprep.subr.msk.bf16.mxu1 %vm368_vm0, %v793_v1 }
  0x2d   : > { %s673_s4 = sshll.u32 %s1055_s30, 2  ;;  %s675_s13 = sshll.u32 %s1055_s30, 3 }
  0x2e   : > { %s927_s7 = scalar_lea.vmem %s1042_s0, %s673_s4  ;;  %s975_s16 = scalar_lea.vmem %s1045_s3, %s675_s13 }
  0x2f   : > { %v794_v2 = vld [vmem:[%s927_s7] sm:$0xff]   ;;  %v796_v5 = vld [vmem:[%s927_s7 + $0x8] sm:$0xff]   ;;  %v798_v7 = vld [vmem:[%s927_s7 + $0x10] sm:$0xff]   ;;  %734 = vmatpush3.bf16.msra.mxu0 %v370_v4  ;;  %770 = vmatpush3.bf16.msra.mxu1 %v370_v4 }
  0x30   : > { %v795_v3 = vld [vmem:[%s927_s7 + $0x40] sm:$0xff]   ;;  %735 = vmatprep.mubr.msk.bf16.mxu0 %vm319_vm1, %v794_v2  ;;  %v797_v6 = vld [vmem:[%s927_s7 + $0x48] sm:$0xff]   ;;  %v799_v8 = vld [vmem:[%s927_s7 + $0x50] sm:$0xff]  }
  0x31   : > { %751 = vmatprep.mubr.msk.bf16.mxu1 %vm319_vm1, %v795_v3  ;;  %v800_v9 = vld [vmem:[%s927_s7 + $0x18] sm:$0xff]   ;;  %v802_v11 = vld [vmem:[%s927_s7 + $0x20] sm:$0xff]   ;;  %v804_v13 = vld [vmem:[%s927_s7 + $0x28] sm:$0xff]  }
  0x32   : > { %736 = vmatmul.mubr.msk.bf16.vlgmr.msra.gmra.mrb[0].mxu0 %vm319_vm1, %v796_v5  ;;  %752 = vmatmul.mubr.msk.bf16.vlgmr.msra.gmra.mrb[0].mxu1 %vm319_vm1, %v797_v6  ;;  %v801_v10 = vld [vmem:[%s927_s7 + $0x58] sm:$0xff]   ;;  %v803_v12 = vld [vmem:[%s927_s7 + $0x60] sm:$0xff]   ;;  %v805_v14 = vld [vmem:[%s927_s7 + $0x68] sm:$0xff]  }
  0x33   : > { %739 = vmatprep.mubr.msk.bf16.mxu0 %vm319_vm1, %v798_v7  ;;  %755 = vmatprep.mubr.msk.bf16.mxu1 %vm319_vm1, %v799_v8  ;;  %v806_v15 = vld [vmem:[%s927_s7 + $0x30] sm:$0xff]   ;;  %v808_v17 = vld [vmem:[%s927_s7 + $0x38] sm:$0xff]  }
  0x34   : > { %v807_v16 = vld [vmem:[%s927_s7 + $0x70] sm:$0xff]   ;;  %v809_v18 = vld [vmem:[%s927_s7 + $0x78] sm:$0xff]  }
  0x3a   : > { %740 = vmatmul.mubr.msk.bf16.gmra.mrb[4].mxu0 %vm319_vm1, %v800_v9  ;;  %756 = vmatmul.mubr.msk.bf16.gmra.mrb[4].mxu1 %vm319_vm1, %v801_v10 }
  0x3b   : > { %743 = vmatprep.mubr.msk.bf16.mxu0 %vm319_vm1, %v802_v11  ;;  %759 = vmatprep.mubr.msk.bf16.mxu1 %vm319_vm1, %v803_v12 }
  0x42   : > { %744 = vmatmul.mubr.msk.bf16.gmra.mrb[8].mxu0 %vm319_vm1, %v804_v13  ;;  %760 = vmatmul.mubr.msk.bf16.gmra.mrb[8].mxu1 %vm319_vm1, %v805_v14 }
  0x43   : > { %747 = vmatprep.mubr.msk.bf16.mxu0 %vm319_vm1, %v806_v15  ;;  %763 = vmatprep.mubr.msk.bf16.mxu1 %vm319_vm1, %v807_v16 }
  0x4a   : > { %748 = vmatmul.mubr.msk.bf16.gmra.mrb[12].mxu0 %vm319_vm1, %v808_v17  ;;  %764 = vmatmul.mubr.msk.bf16.gmra.mrb[12].mxu1 %vm319_vm1, %v809_v18 }
 0x105   : > { %v737_v20 = vpop.f32.mrb[0].mxu0  ;;  %v753_v21 = vpop.f32.mrb[0].mxu1 }
 0x106   : > { %v415_v22 = vadd.f32 %v737_v20, %v967_v19  ;;  %v479_v23 = vadd.f32 %v753_v21, %v967_v19  ;;  %v406_v24 = vpop.f32.mrb[1].mxu0  ;;  %v470_v25 = vpop.f32.mrb[1].mxu1 }
 0x107   : > { %v407_v26 = vadd.f32 %v967_v19, %v406_v24  ;;  %v471_v27 = vadd.f32 %v967_v19, %v470_v25  ;;  %v738_v28 = vpop.f32.mrb[2].mxu0  ;;  %v754_v29 = vpop.f32.mrb[2].mxu1 }
 0x108   : > { %v535_v30 = vmax.f32 %v415_v22, 0.0  ;;  %v551_v31 = vmax.f32 %v479_v23, 0.0  ;;  %v418_v32 = vadd.f32 %v738_v28, %v967_v19  ;;  %v482_v33 = vadd.f32 %v754_v29, %v967_v19  ;;  %v409_v34 = vpop.f32.mrb[3].mxu0  ;;  %v473_v35 = vpop.f32.mrb[3].mxu1 }
 0x109   : > { %v533_v36 = vmax.f32 %v407_v26, 0.0  ;;  %v549_v37 = vmax.f32 %v471_v27, 0.0  ;;  %v410_v38 = vadd.f32 %v967_v19, %v409_v34  ;;  %v474_v39 = vadd.f32 %v967_v19, %v473_v35 }
 0x10a   : > { %567 = vst [vmem:[%s975_s16 + $0x10] sm:$0xff] %v535_v30  ;;  %583 = vst [vmem:[%s975_s16 + $0x90] sm:$0xff] %v551_v31  ;;  %v536_v40 = vmax.f32 %v418_v32, 0.0  ;;  %v552_v41 = vmax.f32 %v482_v33, 0.0 }
 0x10b   : > { %565 = vst [vmem:[%s975_s16] sm:$0xff] %v533_v36  ;;  %581 = vst [vmem:[%s975_s16 + $0x80] sm:$0xff] %v549_v37  ;;  %v534_v42 = vmax.f32 %v410_v38, 0.0  ;;  %v550_v43 = vmax.f32 %v474_v39, 0.0 }
 0x10c   : > { %568 = vst [vmem:[%s975_s16 + $0x18] sm:$0xff] %v536_v40  ;;  %584 = vst [vmem:[%s975_s16 + $0x98] sm:$0xff] %v552_v41 }
 0x10d   : > { %566 = vst [vmem:[%s975_s16 + $0x8] sm:$0xff] %v534_v42  ;;  %582 = vst [vmem:[%s975_s16 + $0x88] sm:$0xff] %v550_v43  ;;  %v741_v44 = vpop.f32.mrb[4].mxu0  ;;  %v757_v45 = vpop.f32.mrb[4].mxu1 }
 0x10e   : > { %v431_v46 = vadd.f32 %v741_v44, %v967_v19  ;;  %v495_v47 = vadd.f32 %v757_v45, %v967_v19  ;;  %v422_v48 = vpop.f32.mrb[5].mxu0  ;;  %v486_v49 = vpop.f32.mrb[5].mxu1 }
 0x10f   : > { %v423_v50 = vadd.f32 %v967_v19, %v422_v48  ;;  %v487_v51 = vadd.f32 %v967_v19, %v486_v49  ;;  %v742_v52 = vpop.f32.mrb[6].mxu0  ;;  %v758_v53 = vpop.f32.mrb[6].mxu1 }
 0x110   : > { %v539_v54 = vmax.f32 %v431_v46, 0.0  ;;  %v555_v55 = vmax.f32 %v495_v47, 0.0  ;;  %v434_v56 = vadd.f32 %v742_v52, %v967_v19  ;;  %v498_v57 = vadd.f32 %v758_v53, %v967_v19  ;;  %v425_v58 = vpop.f32.mrb[7].mxu0  ;;  %v489_v59 = vpop.f32.mrb[7].mxu1 }
 0x111   : > { %v537_v60 = vmax.f32 %v423_v50, 0.0  ;;  %v553_v61 = vmax.f32 %v487_v51, 0.0  ;;  %v426_v62 = vadd.f32 %v967_v19, %v425_v58  ;;  %v490_v63 = vadd.f32 %v967_v19, %v489_v59 }
 0x112   : > { %571 = vst [vmem:[%s975_s16 + $0x30] sm:$0xff] %v539_v54  ;;  %587 = vst [vmem:[%s975_s16 + $0xb0] sm:$0xff] %v555_v55  ;;  %v540_v0 = vmax.f32 %v434_v56, 0.0  ;;  %v556_v1 = vmax.f32 %v498_v57, 0.0 }
 0x113   : > { %569 = vst [vmem:[%s975_s16 + $0x20] sm:$0xff] %v537_v60  ;;  %585 = vst [vmem:[%s975_s16 + $0xa0] sm:$0xff] %v553_v61  ;;  %v538_v2 = vmax.f32 %v426_v62, 0.0  ;;  %v554_v3 = vmax.f32 %v490_v63, 0.0 }
 0x114   : > { %572 = vst [vmem:[%s975_s16 + $0x38] sm:$0xff] %v540_v0  ;;  %588 = vst [vmem:[%s975_s16 + $0xb8] sm:$0xff] %v556_v1 }
 0x115   : > { %570 = vst [vmem:[%s975_s16 + $0x28] sm:$0xff] %v538_v2  ;;  %586 = vst [vmem:[%s975_s16 + $0xa8] sm:$0xff] %v554_v3  ;;  %v745_v4 = vpop.f32.mrb[8].mxu0  ;;  %v761_v5 = vpop.f32.mrb[8].mxu1 }
 0x116   : > { %v447_v6 = vadd.f32 %v745_v4, %v967_v19  ;;  %v511_v7 = vadd.f32 %v761_v5, %v967_v19  ;;  %v438_v8 = vpop.f32.mrb[9].mxu0  ;;  %v502_v9 = vpop.f32.mrb[9].mxu1 }
 0x117   : > { %v439_v10 = vadd.f32 %v967_v19, %v438_v8  ;;  %v503_v11 = vadd.f32 %v967_v19, %v502_v9  ;;  %v746_v12 = vpop.f32.mrb[10].mxu0  ;;  %v762_v13 = vpop.f32.mrb[10].mxu1 }
 0x118   : > { %v543_v14 = vmax.f32 %v447_v6, 0.0  ;;  %v559_v15 = vmax.f32 %v511_v7, 0.0  ;;  %v450_v16 = vadd.f32 %v746_v12, %v967_v19  ;;  %v514_v17 = vadd.f32 %v762_v13, %v967_v19  ;;  %v441_v18 = vpop.f32.mrb[11].mxu0  ;;  %v505_v20 = vpop.f32.mrb[11].mxu1 }
 0x119   : > { %v541_v21 = vmax.f32 %v439_v10, 0.0  ;;  %v557_v22 = vmax.f32 %v503_v11, 0.0  ;;  %v442_v23 = vadd.f32 %v967_v19, %v441_v18  ;;  %v506_v24 = vadd.f32 %v967_v19, %v505_v20 }
 0x11a   : > { %575 = vst [vmem:[%s975_s16 + $0x50] sm:$0xff] %v543_v14  ;;  %591 = vst [vmem:[%s975_s16 + $0xd0] sm:$0xff] %v559_v15  ;;  %v544_v25 = vmax.f32 %v450_v16, 0.0  ;;  %v560_v26 = vmax.f32 %v514_v17, 0.0 }
 0x11b   : > { %573 = vst [vmem:[%s975_s16 + $0x40] sm:$0xff] %v541_v21  ;;  %589 = vst [vmem:[%s975_s16 + $0xc0] sm:$0xff] %v557_v22  ;;  %v542_v27 = vmax.f32 %v442_v23, 0.0  ;;  %v558_v28 = vmax.f32 %v506_v24, 0.0 }
 0x11c   : > { %576 = vst [vmem:[%s975_s16 + $0x58] sm:$0xff] %v544_v25  ;;  %592 = vst [vmem:[%s975_s16 + $0xd8] sm:$0xff] %v560_v26 }
 0x11d   : > { %574 = vst [vmem:[%s975_s16 + $0x48] sm:$0xff] %v542_v27  ;;  %590 = vst [vmem:[%s975_s16 + $0xc8] sm:$0xff] %v558_v28  ;;  %v749_v29 = vpop.f32.mrb[12].mxu0  ;;  %v765_v30 = vpop.f32.mrb[12].mxu1 }
 0x11e   : > { %v463_v31 = vadd.f32 %v749_v29, %v967_v19  ;;  %v527_v32 = vadd.f32 %v765_v30, %v967_v19  ;;  %v454_v33 = vpop.f32.mrb[13].mxu0  ;;  %v518_v34 = vpop.f32.mrb[13].mxu1 }
 0x11f   : > { %v455_v35 = vadd.f32 %v967_v19, %v454_v33  ;;  %v519_v36 = vadd.f32 %v967_v19, %v518_v34  ;;  %v750_v37 = vpop.f32.mrb[14].mxu0  ;;  %v766_v38 = vpop.f32.mrb[14].mxu1 }
 0x120   : > { %v547_v39 = vmax.f32 %v463_v31, 0.0  ;;  %v563_v40 = vmax.f32 %v527_v32, 0.0  ;;  %v466_v41 = vadd.f32 %v750_v37, %v967_v19  ;;  %v530_v42 = vadd.f32 %v766_v38, %v967_v19  ;;  %v457_v43 = vpop.f32.mrb[15].mxu0  ;;  %v521_v44 = vpop.f32.mrb[15].mxu1 }
 0x121   : > { %v545_v45 = vmax.f32 %v455_v35, 0.0  ;;  %v561_v46 = vmax.f32 %v519_v36, 0.0  ;;  %v458_v47 = vadd.f32 %v967_v19, %v457_v43  ;;  %v522_v48 = vadd.f32 %v967_v19, %v521_v44 }
 0x122   : > { %579 = vst [vmem:[%s975_s16 + $0x70] sm:$0xff] %v547_v39  ;;  %595 = vst [vmem:[%s975_s16 + $0xf0] sm:$0xff] %v563_v40  ;;  %v548_v49 = vmax.f32 %v466_v41, 0.0  ;;  %v564_v50 = vmax.f32 %v530_v42, 0.0 }
 0x123   : > { %577 = vst [vmem:[%s975_s16 + $0x60] sm:$0xff] %v545_v45  ;;  %593 = vst [vmem:[%s975_s16 + $0xe0] sm:$0xff] %v561_v46  ;;  %v546_v51 = vmax.f32 %v458_v47, 0.0  ;;  %v562_v52 = vmax.f32 %v522_v48, 0.0 }
 0x124   : > { %580 = vst [vmem:[%s975_s16 + $0x78] sm:$0xff] %v548_v49  ;;  %596 = vst [vmem:[%s975_s16 + $0xf8] sm:$0xff] %v564_v50 }
 0x125   : > { %578 = vst [vmem:[%s975_s16 + $0x68] sm:$0xff] %v546_v51  ;;  %594 = vst [vmem:[%s975_s16 + $0xe8] sm:$0xff] %v562_v52 }
 0x126 PF: > { %s14_s12 = sadd.s32 1, %s848_s12  }
 0x127   : > { %p11_p2 = scmp.ge.s32.totalorder %s14_s12, 4  }
 0x129   :  { %13 = sbr.rel (!%p11_p2) target bundleno = 1 (0x1), region = 67 }
 0x130   :  { %619 = vsyncpa [#allocation3], 1 }
 0x131   :  { %621 = vsyncpa [#allocation3 + $0x1], 1 }

// kernel: affine_channel_transform.35
= control target key start
LH: loop header
LB: loop body
LE: loop exit
PB: predicated region body
PF: predicated region fallthrough
CT: control target
= control target key end

     0   :  { %11 = vsyncpa [#allocation3], 0  ;;  %s5167_s0 = inlined_call_operand.hbm [shape: bf16[512,1152], index: 0, kind: input, shape index: {}]   ;;  %s5168_s1 = inlined_call_operand.vmem [shape: bf16[1152,128], index: 1, kind: input, shape index: {}]   ;;  %s5169_s2 = inlined_call_operand.vmem [shape: f32[1,128], index: 2, kind: input, shape index: {}]   ;;  %s5170_s3 = inlined_call_operand.vmem [shape: bf16[128,128], index: 3, kind: input, shape index: {}]   ;;  %s5171_s4 = inlined_call_operand.vmem [shape: f32[1,128], index: 4, kind: input, shape index: {}]   ;;  %s5172_s5 = inlined_call_operand.vmem [shape: f32[512,128], index: 5, kind: input, shape index: {}]   ;;  %s5173_s6 = inlined_call_operand.vmem [shape: f32[512,128], index: 6, kind: output, shape index: {}]  }
   0x1   :  { %13 = vsyncpa [#allocation3 + $0x1], 0  ;;  %s4337_s21 = smov 0   ;;  %s4339_s22 = smov 0  }
   0x2   :  { %s4341_s23 = smov 0   ;;  %s4343_s24 = smov 0  }
   0x3 LB: > { %s3069_s25 = sadd.s32 4294967295, %s4297_s24   ;;  %s4357_s26 = sadd.s32 1, %s4297_s24   ;;  %s4297_s24 = sphi %s4343_s24, %s5180_s24   ;;  %s4293_s23 = sphi %s4341_s23, %s5179_s23   ;;  %s4289_s22 = sphi %s4339_s22, %s5178_s22   ;;  %s4285_s21 = sphi %s4337_s21, %s5177_s21  }
   0x4   : > { %s23_s27 = ssub.s32 %s4297_s24, %s4357_s26  ;;  %s26_s28 = sadd.s32 1, %s4293_s23 }
   0x5   : > { %p24_p0 = scmp.eq.s32.totalorder %s23_s27, 0  ;;  %p33_p1 = scmp.ne.s32.totalorder %s4293_s23, %s4289_s22 }
   0x6   : > { %p34_p2 = scmp.eq.s32.totalorder %s4297_s24, 0  ;;  %p39_p3 = scmp.ne.s32.totalorder %s4289_s22, %s4285_s21 }
   0x7   : > { %s4367_s29 = scalar_select %p24_p0, %s4293_s23, %s26_s28  }
   0x8   : > { %p35_p4 = por %p34_p2, %p33_p1  ;;  %p40_p5 = scmp.eq.s32.totalorder %s3069_s25, 0 }
   0x9   : > { %p3910_p6 = scmp.lt.s32.totalorder %s4297_s24, 2  ;;  %s211_s7 = sand.u32 1, %s4293_s23  }
   0xa   : > { %p4372_p7 = por %p40_p5, %p39_p3  ;;  %s3901_s8 = smul.u32 1152, %s211_s7 }
   0xb   : > { %s3902_s9 = smul.u32 18432, %s4297_s24  ;;  %p4378_p8 = pnand %p3910_p6, %p35_p4 }
   0xc   : > { %s215_s14 = scalar_lea.vmem [#allocation2], %s3901_s8  ;;  %s4390_s16 = scalar_lea.sflag [#allocation3], %s211_s7 }
   0xd   : > { %s4385_s13 = scalar_lea.hbm %s5167_s0, %s3902_s9  ;;  %s223_s15 = sshll.u32 %s215_s14, 4  ;;  %s4387_s15 = int_to_ptr.vmem [resolvable:$true] %s223_s15 }
   0xe   : > { %s4233_s17 = scalar_lea.hbm %s4385_s13, 18432  ;;  %p4235_p11 = pneg %p4378_p8 }
   0xf   : > { %p4234_p10 = scmp.ne.s32.totalorder %s4385_s13, %s4233_s17  ;;  %s4238_s20 = scalar_lea.hbm %s5167_s0, 36864 }
  0x10   : > { %p4239_p0 = scmp.lt.u32.totalorder %s4385_s13, %s5167_s0  ;;  %p4240_p1 = scmp.lt.u32.totalorder %s4238_s20, %s4233_s17 }
  0x11   : > { %p4236_p12 = pnand %p4235_p11, %p4234_p10  ;;  %p4242_p3 = scmp.lt.u32.totalorder %s4233_s17, %s4385_s13 }
  0x12   : > { %p4241_p2 = por %p4240_p1, %p4239_p0 }
  0x13   : > { %p4237_p13 = pneg %p4236_p12 }
  0x14   : > { %p4243_p4 = por %p4242_p3, %p4241_p2 }
  0x16   : > { %p4244_p5 = pnand %p4243_p4, %p4237_p13 }
  0x18   : > { %4247 = shalt.err (!%p4244_p5)
}
  0x19   : > { %s4248_s28 = scalar_lea.vmem %s4387_s15, 18432  ;;  %s4299_s7 = smov [#allocation2]  }
  0x1a   : > { %p4249_p6 = scmp.ne.s32.totalorder %s4387_s15, %s4248_s28  ;;  %s4253_s8 = sshll.u32 %s4299_s7, 4  ;;  %s4254_s8 = int_to_ptr.vmem [resolvable:$false] %s4253_s8 }
  0x1b   : > { %s4255_s9 = scalar_lea.vmem %s4254_s8, 36864  ;;  %p4256_p9 = scmp.lt.s32.totalorder %s4387_s15, %s4254_s8 }
  0x1c   : > { %p4251_p10 = pnand %p4249_p6, %p4235_p11  ;;  %p4257_p0 = scmp.lt.s32.totalorder %s4255_s9, %s4248_s28 }
  0x1e   : > { %p4252_p12 = pneg %p4251_p10  ;;  %p4258_p1 = por %p4257_p0, %p4256_p9 }
  0x20   : > { %p4259_p2 = pnand %p4258_p1, %p4252_p12 }
  0x22   : > { %4262 = shalt.err (!%p4259_p2)
}
  0x23   : > { %s4300_s11 = smov 576   ;;  %s4301_s12 = smov 36  }
  0x24   : > { %3909 = dma.hbm_to_vmem [thread:$0]  (!%p4378_p8), %s4385_s13, 18432, %s4387_s15, %s4390_s16, %s4300_s11, %s4300_s11, %s4301_s12  }
  0x25   : > { %p240_p11 = scmp.lt.s32.totalorder %s4297_s24, 3  ;;  %p5176_p13 = scmp.ge.s32.totalorder %s4297_s24, 1 }
  0x27   : > { %p241_p3 = pnand %p5176_p13, %p240_p11 }
  0x28   : > { %s246_s14 = sand.u32 (!%p241_p3), 1, %s4289_s22  }
  0x29   : > { %244 = sbr.rel (%p241_p3) target bundleno = 838 (0x346), region = 44  ;;  %s247_s18 = scalar_lea.sflag (!%p241_p3), [#allocation3], %s246_s14 }
  0x2a   : > { %s3903_s17 = smul.u32 (!%p241_p3), 1152, %s246_s14 }
  0x2c   : > { %s4422_s19 = scalar_lea.vmem (!%p241_p3), [#allocation2], %s3903_s17 }
  0x30   : > { %4280 = dma.done.wait (%p4372_p7), %s247_s18, 18432  }
  0x31   : > { %4282 = vsyncadd (%p4372_p7), %s247_s18, 4294948864  ;;  %v3945_v0 = vld [vmem:[%s5168_s1 + $0x40] sm:$0xff]   ;;  %v3949_v4 = vld [vmem:[%s5168_s1 + $0x48] sm:$0xff]   ;;  %s3077_s30 = sshll.u32 %s3069_s25, 5 }
  0x32   : > { %v3946_v1 = vld [vmem:[%s5168_s1] sm:$0xff]   ;;  %3309 = vmatprep.subr.bf16.mxu0 %v3945_v0  ;;  %v3950_v5 = vld [vmem:[%s5168_s1 + $0x8] sm:$0xff]   ;;  %v3953_v8 = vld [vmem:[%s5168_s1 + $0x50] sm:$0xff]   ;;  %p286_p7 = scmp.lt.s32.totalorder %s3077_s30, 63 }
  0x33   : > { %v3947_v2 = vld [vmem:[%s5168_s1 + $0xc0] sm:$0xff]   ;;  %3310 = vmatpush3.bf16.msra.mxu0 %v3946_v1  ;;  %v3951_v6 = vld [vmem:[%s5168_s1 + $0xc8] sm:$0xff]   ;;  %v3954_v9 = vld [vmem:[%s5168_s1 + $0x10] sm:$0xff]  }
  0x34   : > { %v3948_v3 = vld [vmem:[%s5168_s1 + $0x80] sm:$0xff]   ;;  %3421 = vmatprep.subr.bf16.mxu1 %v3947_v2  ;;  %3311 = vmatprep.subr.bf16.mxu0 %v3949_v4  ;;  %v3952_v7 = vld [vmem:[%s5168_s1 + $0x88] sm:$0xff]   ;;  %v3955_v10 = vld [vmem:[%s5168_s1 + $0xd0] sm:$0xff]   ;;  %s5182_s30 = smov (!%p286_p7, %s3077_s30), 63 }
  0x35   : > { %3422 = vmatpush3.bf16.msra.mxu1 %v3948_v3  ;;  %v3956_v11 = vld [vmem:[%s5168_s1 + $0x90] sm:$0xff]   ;;  %v3957_v12 = vld [vmem:[%s5168_s1 + $0x58] sm:$0xff]   ;;  %v3961_v16 = vld [vmem:[%s5168_s1 + $0x60] sm:$0xff]   ;;  %s3078_s7 = sshll.u32 %s5182_s30, 3 }
  0x36   : > { %3423 = vmatprep.subr.bf16.mxu1 %v3951_v6  ;;  %v3958_v13 = vld [vmem:[%s5168_s1 + $0x18] sm:$0xff]   ;;  %v3962_v17 = vld [vmem:[%s5168_s1 + $0x20] sm:$0xff]   ;;  %v3965_v20 = vld [vmem:[%s5168_s1 + $0x68] sm:$0xff]   ;;  %s5046_s11 = scalar_lea.vmem %s5172_s5, %s3078_s7  ;;  %s5063_s17 = scalar_lea.vmem %s5173_s6, %s3078_s7 }
  0x37   : > { %3312 = vmatpush3.bf16.msra.mxu0 %v3950_v5  ;;  %v3959_v14 = vld [vmem:[%s5168_s1 + $0xd8] sm:$0xff]   ;;  %v3963_v18 = vld [vmem:[%s5168_s1 + $0xe0] sm:$0xff]   ;;  %v3966_v21 = vld [vmem:[%s5168_s1 + $0x28] sm:$0xff]  }
  0x38   : > { %3313 = vmatprep.subr.bf16.mxu0 %v3953_v8  ;;  %v3960_v15 = vld [vmem:[%s5168_s1 + $0x98] sm:$0xff]   ;;  %v3964_v19 = vld [vmem:[%s5168_s1 + $0xa0] sm:$0xff]   ;;  %v3967_v22 = vld [vmem:[%s5168_s1 + $0xe8] sm:$0xff]  }
  0x39   : > { %3424 = vmatpush3.bf16.msra.mxu1 %v3952_v7  ;;  %v3968_v23 = vld [vmem:[%s5168_s1 + $0xa8] sm:$0xff]   ;;  %v3969_v24 = vld [vmem:[%s5168_s1 + $0x70] sm:$0xff]   ;;  %v3973_v28 = vld [vmem:[%s5168_s1 + $0x78] sm:$0xff]  }
  0x3a   : > { %3425 = vmatprep.subr.bf16.mxu1 %v3955_v10  ;;  %v3970_v25 = vld [vmem:[%s5168_s1 + $0x30] sm:$0xff]   ;;  %v3974_v29 = vld [vmem:[%s5168_s1 + $0x38] sm:$0xff]   ;;  %v3976_v31 = vld [vmem:[%s4422_s19] ss:$36 sps:$4 sm:$0xff]  }
  0x3b   : > { %3314 = vmatpush3.bf16.msra.mxu0 %v3954_v9  ;;  %v3971_v26 = vld [vmem:[%s5168_s1 + $0xf0] sm:$0xff]   ;;  %v3975_v30 = vld [vmem:[%s5168_s1 + $0xf8] sm:$0xff]   ;;  %v3978_v32 = vld [vmem:[%s4422_s19 + $0x4] ss:$36 sps:$4 sm:$0xff]  }
  0x3c   : > { %3315 = vmatprep.subr.bf16.mxu0 %v3957_v12  ;;  %v3972_v27 = vld [vmem:[%s5168_s1 + $0xb0] sm:$0xff]   ;;  %v3979_v33 = vld [vmem:[%s5168_s1 + $0xb8] sm:$0xff]   ;;  %1809 = vmatprep.mubr.bf16.mxu0 %v3978_v32  ;;  %v3980_v34 = vld [vmem:[%s5168_s1 + $0x140] sm:$0xff]  }
  0x3d   : > { %3426 = vmatpush3.bf16.msra.mxu1 %v3956_v11  ;;  %v3981_v35 = vld [vmem:[%s4422_s19 + $0x8] ss:$36 sps:$4 sm:$0xff]   ;;  %v3984_v37 = vld [vmem:[%s5168_s1 + $0x100] sm:$0xff]   ;;  %v3988_v39 = vld [vmem:[%s4422_s19 + $0x54] ss:$36 sps:$4 sm:$0xff]  }
  0x3e   : > { %3427 = vmatprep.subr.bf16.mxu1 %v3959_v14  ;;  %v3983_v36 = vld [vmem:[%s4422_s19 + $0xc] ss:$36 sps:$4 sm:$0xff]   ;;  %v3991_v41 = vld [vmem:[%s4422_s19 + $0x94] ss:$36 sps:$4 sm:$0xff]   ;;  %v3995_v44 = vld [vmem:[%s4422_s19 + $0x9c] ss:$36 sps:$4 sm:$0xff]  }
  0x3f   : > { %3316 = vmatpush3.bf16.msra.mxu0 %v3958_v13  ;;  %1970 = vmatprep.mubr.bf16.mxu1 %v3983_v36  ;;  %v3985_v38 = vld [vmem:[%s4422_s19 + $0x4c] ss:$36 sps:$4 sm:$0xff]   ;;  %v3999_v47 = vld [vmem:[%s4422_s19 + $0xdc] ss:$36 sps:$4 sm:$0xff]   ;;  %v4002_v51 = vld [vmem:[%s4422_s19 + $0xe4] ss:$36 sps:$4 sm:$0xff]  }
  0x40   : > { %3317 = vmatprep.subr.bf16.mxu0 %v3961_v16  ;;  %v3987_v40 = vld [vmem:[%s4422_s19 + $0x48] ss:$36 sps:$4 sm:$0xff]   ;;  %v3990_v43 = vld [vmem:[%s4422_s19 + $0x50] ss:$36 sps:$4 sm:$0xff]   ;;  %v3998_v49 = vld [vmem:[%s4422_s19 + $0x98] ss:$36 sps:$4 sm:$0xff]  }
  0x41   : > { %3428 = vmatpush3.bf16.msra.mxu1 %v3960_v15  ;;  %v3994_v42 = vld [vmem:[%s5168_s1 + $0x148] sm:$0xff]   ;;  %v3993_v46 = vld [vmem:[%s4422_s19 + $0x90] ss:$36 sps:$4 sm:$0xff]   ;;  %v4001_v52 = vld [vmem:[%s4422_s19 + $0xd8] ss:$36 sps:$4 sm:$0xff]  }
  0x42   : > { %3429 = vmatprep.subr.bf16.mxu1 %v3963_v18  ;;  %v3997_v45 = vld [vmem:[%s5168_s1 + $0x108] sm:$0xff]   ;;  %v4008_v48 = vld [vmem:[%s5168_s1 + $0x150] sm:$0xff]   ;;  %v4022_v54 = vld [vmem:[%s5168_s1 + $0x158] sm:$0xff]  }
  0x43   : > { %3318 = vmatpush3.bf16.msra.mxu0 %v3962_v17  ;;  %v4011_v50 = vld [vmem:[%s5168_s1 + $0x110] sm:$0xff]   ;;  %v4005_v53 = vld [vmem:[%s4422_s19 + $0x124] ss:$36 sps:$4 sm:$0xff]   ;;  %v4025_v56 = vld [vmem:[%s5168_s1 + $0x118] sm:$0xff]  }
  0x44   : > { %3319 = vmatprep.subr.bf16.mxu0 %v3965_v20  ;;  %v4004_v55 = vld [vmem:[%s4422_s19 + $0xe0] ss:$36 sps:$4 sm:$0xff]   ;;  %v4009_v57 = vld [vmem:[%s4422_s19 + $0x12c] ss:$36 sps:$4 sm:$0xff]   ;;  %v4016_v0 = vld [vmem:[%s4422_s19 + $0x174] ss:$36 sps:$4 sm:$0xff]  }
  0x45   : > { %3430 = vmatpush3.bf16.msra.mxu1 %v3964_v19  ;;  %v4007_v58 = vld [vmem:[%s4422_s19 + $0x120] ss:$36 sps:$4 sm:$0xff]   ;;  %v4013_v61 = vld [vmem:[%s4422_s19 + $0x16c] ss:$36 sps:$4 sm:$0xff]   ;;  %v4019_v3 = vld [vmem:[%s4422_s19 + $0x1b4] ss:$36 sps:$4 sm:$0xff]  }
  0x46   : > { %3431 = vmatprep.subr.bf16.mxu1 %v3967_v22  ;;  %v4033_v59 = vld [vmem:[%s5168_s1 + $0x1c0] sm:$0xff]   ;;  %v4012_v63 = vld [vmem:[%s4422_s19 + $0x128] ss:$36 sps:$4 sm:$0xff]   ;;  %v4018_v6 = vld [vmem:[%s4422_s19 + $0x170] ss:$36 sps:$4 sm:$0xff]  }
  0x47   : > { %3320 = vmatpush3.bf16.msra.mxu0 %v3966_v21  ;;  %v4034_v60 = vld [vmem:[%s5168_s1 + $0x180] sm:$0xff]   ;;  %v4015_v2 = vld [vmem:[%s4422_s19 + $0x168] ss:$36 sps:$4 sm:$0xff]   ;;  %v4021_v10 = vld [vmem:[%s4422_s19 + $0x1b0] ss:$36 sps:$4 sm:$0xff]  }
  0x48   : > { %3321 = vmatprep.subr.bf16.mxu0 %v3969_v24  ;;  %v4038_v62 = vld [vmem:[%s5168_s1 + $0x160] sm:$0xff]   ;;  %v4049_v4 = vld [vmem:[%s5168_s1 + $0x1c8] sm:$0xff]   ;;  %v4065_v12 = vld [vmem:[%s5168_s1 + $0x1d0] sm:$0xff]  }
  0x49   : > { %3432 = vmatpush3.bf16.msra.mxu1 %v3968_v23  ;;  %v4041_v1 = vld [vmem:[%s5168_s1 + $0x120] sm:$0xff]   ;;  %v4050_v5 = vld [vmem:[%s5168_s1 + $0x188] sm:$0xff]   ;;  %v4066_v13 = vld [vmem:[%s5168_s1 + $0x190] sm:$0xff]  }
  0x4a   : > { %3433 = vmatprep.subr.bf16.mxu1 %v3971_v26  ;;  %v4054_v7 = vld [vmem:[%s5168_s1 + $0x168] sm:$0xff]   ;;  %v4023_v8 = vld [vmem:[%s4422_s19 + $0x1bc] ss:$36 sps:$4 sm:$0xff]   ;;  %v4070_v16 = vld [vmem:[%s5168_s1 + $0x170] sm:$0xff]  }
  0x4b   : > { %3322 = vmatpush3.bf16.msra.mxu0 %v3970_v25  ;;  %v4057_v9 = vld [vmem:[%s5168_s1 + $0x128] sm:$0xff]   ;;  %v4027_v11 = vld [vmem:[%s4422_s19 + $0x1fc] ss:$36 sps:$4 sm:$0xff]   ;;  %v4073_v17 = vld [vmem:[%s5168_s1 + $0x130] sm:$0xff]  }
  0x4c   : > { %3323 = vmatprep.subr.bf16.mxu0 %v3973_v28  ;;  %v4026_v14 = vld [vmem:[%s4422_s19 + $0x1b8] ss:$36 sps:$4 sm:$0xff]   ;;  %v4030_v15 = vld [vmem:[%s4422_s19 + $0x204] ss:$36 sps:$4 sm:$0xff]   ;;  %v4039_v21 = vld [vmem:[%s4422_s19 + $0x24c] ss:$36 sps:$4 sm:$0xff]  }
  0x4d   : > { %3434 = vmatpush3.bf16.msra.mxu1 %v3972_v27  ;;  %v4029_v18 = vld [vmem:[%s4422_s19 + $0x1f8] ss:$36 sps:$4 sm:$0xff]   ;;  %v4032_v19 = vld [vmem:[%s4422_s19 + $0x200] ss:$36 sps:$4 sm:$0xff]   ;;  %v4043_v26 = vld [vmem:[%s4422_s19 + $0x28c] ss:$36 sps:$4 sm:$0xff]  }
  0x4e   : > { %3435 = vmatprep.subr.bf16.mxu1 %v3975_v30  ;;  %v4035_v20 = vld [vmem:[%s4422_s19 + $0x244] ss:$36 sps:$4 sm:$0xff]   ;;  %v4081_v22 = vld [vmem:[%s5168_s1 + $0x1d8] sm:$0xff]   ;;  %v4101_v36 = vld [vmem:[%s5168_s1 + $0x1f0] sm:$0xff]  }
  0x4f   : > { %3324 = vmatpush3.bf16.msra.mxu0 %v3974_v29  ;;  %v4082_v23 = vld [vmem:[%s5168_s1 + $0x198] sm:$0xff]   ;;  %v4037_v25 = vld [vmem:[%s4422_s19 + $0x240] ss:$36 sps:$4 sm:$0xff]   ;;  %v4042_v28 = vld [vmem:[%s4422_s19 + $0x248] ss:$36 sps:$4 sm:$0xff]  }
  0x50   : > { %3533 = vmatprep.subr.bf16.mxu0 %v3980_v34  ;;  %v4086_v24 = vld [vmem:[%s5168_s1 + $0x178] sm:$0xff]   ;;  %v4091_v29 = vld [vmem:[%s5168_s1 + $0x1e0] sm:$0xff]   ;;  %v4045_v34 = vld [vmem:[%s4422_s19 + $0x288] ss:$36 sps:$4 sm:$0xff]  }
  0x51   : > { %3436 = vmatpush3.bf16.msra.mxu1 %v3979_v33  ;;  %v4089_v27 = vld [vmem:[%s5168_s1 + $0x138] sm:$0xff]   ;;  %v4092_v30 = vld [vmem:[%s5168_s1 + $0x1a0] sm:$0xff]   ;;  %v4096_v33 = vld [vmem:[%s5168_s1 + $0x1a8] sm:$0xff]  }
  0x52   : > { %1810 = vmatmul.mubr.bf16.vlgmr.msra.gmra.mrb[0].mxu0 %v3976_v31  ;;  %3645 = vmatprep.subr.bf16.mxu1 %v4033_v59  ;;  %v4093_v31 = vld [vmem:[%s5168_s1 + $0x1e8] sm:$0xff]   ;;  %v4046_v32 = vld [vmem:[%s4422_s19 + $0x294] ss:$36 sps:$4 sm:$0xff]  }
  0x53   : > { %3534 = vmatpush3.bf16.msra.mxu0 %v3984_v37  ;;  %1817 = vmatprep.mubr.bf16.mxu0 %v3985_v38  ;;  %v4102_v37 = vld [vmem:[%s5168_s1 + $0x1b0] sm:$0xff]   ;;  %v4103_v38 = vld [vmem:[%s5168_s1 + $0x1f8] sm:$0xff]  }
  0x54   : > { %1971 = vmatmul.mubr.bf16.vlgmr.msra.gmra.mrb[0].mxu1 %v3981_v35  ;;  %3535 = vmatprep.subr.bf16.mxu0 %v3994_v42  ;;  %v4051_v35 = vld [vmem:[%s4422_s19 + $0x2d4] ss:$36 sps:$4 sm:$0xff]   ;;  %v4108_v42 = vld [vmem:[%s5168_s1 + $0x200] sm:$0xff]  }
  0x55   : > { %1978 = vmatprep.mubr.bf16.mxu1 %v3988_v39  ;;  %3646 = vmatpush3.bf16.msra.mxu1 %v4034_v60  ;;  %v4048_v39 = vld [vmem:[%s4422_s19 + $0x290] ss:$36 sps:$4 sm:$0xff]   ;;  %v4094_v60 = vld [vmem:[%s4422_s19 + $0x43c] ss:$36 sps:$4 sm:$0xff]  }
  0x56   : > { %3647 = vmatprep.subr.bf16.mxu1 %v4049_v4  ;;  %v4085_v59 = vld [vmem:[%s4422_s19 + $0x3f0] ss:$36 sps:$4 sm:$0xff]   ;;  %v4112_v4 = vld [vmem:[%s4422_s19 + $0x5c] ss:$36 sps:$4 sm:$0xff]  }
  0x57   : > { %3536 = vmatpush3.bf16.msra.mxu0 %v3997_v45  ;;  %v4058_v45 = vld [vmem:[%s4422_s19 + $0x2d8] ss:$36 sps:$4 sm:$0xff]  }
  0x58   : > { %3537 = vmatprep.subr.bf16.mxu0 %v4008_v48  ;;  %v4067_v48 = vld [vmem:[%s4422_s19 + $0x364] ss:$36 sps:$4 sm:$0xff]  }
  0x59   : > { %3648 = vmatpush3.bf16.msra.mxu1 %v4050_v5  ;;  %v4109_v5 = vld [vmem:[%s4422_s19 + $0x18] ss:$36 sps:$4 sm:$0xff]  }
  0x5a   : > { %1818 = vmatmul.mubr.bf16.gmra.mrb[4].mxu0 %v3987_v40  ;;  %3649 = vmatprep.subr.bf16.mxu1 %v4065_v12  ;;  %v4055_v40 = vld [vmem:[%s4422_s19 + $0x2dc] ss:$36 sps:$4 sm:$0xff]  }
  0x5b   : > { %1825 = vmatprep.mubr.bf16.mxu0 %v3991_v41  ;;  %3538 = vmatpush3.bf16.msra.mxu0 %v4011_v50  ;;  %v4107_v41 = vld [vmem:[%s5168_s1 + $0x1b8] sm:$0xff]   ;;  %v4071_v50 = vld [vmem:[%s4422_s19 + $0x36c] ss:$36 sps:$4 sm:$0xff]  }
  0x5c   : > { %1979 = vmatmul.mubr.bf16.gmra.mrb[4].mxu1 %v3990_v43  ;;  %3539 = vmatprep.subr.bf16.mxu0 %v4022_v54  ;;  %v4053_v43 = vld [vmem:[%s4422_s19 + $0x2d0] ss:$36 sps:$4 sm:$0xff]   ;;  %v4147_v12 = vld [vmem:[%s5168_s1 + $0x218] sm:$0xff]  }
  0x5d   : > { %1986 = vmatprep.mubr.bf16.mxu1 %v3995_v44  ;;  %3650 = vmatpush3.bf16.msra.mxu1 %v4066_v13  ;;  %v4059_v44 = vld [vmem:[%s4422_s19 + $0x31c] ss:$36 sps:$4 sm:$0xff]   ;;  %v4078_v54 = vld [vmem:[%s4422_s19 + $0x3b4] ss:$36 sps:$4 sm:$0xff]   ;;  %v4122_v13 = vld [vmem:[%s4422_s19 + $0xac] ss:$36 sps:$4 sm:$0xff]  }
  0x5e   : > { %3651 = vmatprep.subr.bf16.mxu1 %v4081_v22  ;;  %v4131_v22 = vld [vmem:[%s4422_s19 + $0x134] ss:$36 sps:$4 sm:$0xff]  }
  0x5f   : > { %3540 = vmatpush3.bf16.msra.mxu0 %v4025_v56  ;;  %v4083_v56 = vld [vmem:[%s4422_s19 + $0x3f4] ss:$36 sps:$4 sm:$0xff]  }
  0x60   : > { %3541 = vmatprep.subr.bf16.mxu0 %v4038_v62  ;;  %v4098_v62 = vld [vmem:[%s4422_s19 + $0x444] ss:$36 sps:$4 sm:$0xff]  }
  0x61   : > { %3652 = vmatpush3.bf16.msra.mxu1 %v4082_v23  ;;  %v4199_v23 = vld [vmem:[%s5168_s1 + $0x238] sm:$0xff]  }
  0x62   : > { %1826 = vmatmul.mubr.bf16.gmra.mrb[8].mxu0 %v3993_v46  ;;  %3653 = vmatprep.subr.bf16.mxu1 %v4091_v29  ;;  %v4062_v46 = vld [vmem:[%s4422_s19 + $0x324] ss:$36 sps:$4 sm:$0xff]  }
  0x63   : > { %1833 = vmatprep.mubr.bf16.mxu0 %v3999_v47  ;;  %3542 = vmatpush3.bf16.msra.mxu0 %v4041_v1  ;;  %v4061_v47 = vld [vmem:[%s4422_s19 + $0x318] ss:$36 sps:$4 sm:$0xff]   ;;  %v4100_v1 = vld [vmem:[%s4422_s19 + $0x440] ss:$36 sps:$4 sm:$0xff]  }
  0x64   : > { %1987 = vmatmul.mubr.bf16.gmra.mrb[8].mxu1 %v3998_v49  ;;  %3543 = vmatprep.subr.bf16.mxu0 %v4054_v7  ;;  %v4064_v49 = vld [vmem:[%s4422_s19 + $0x320] ss:$36 sps:$4 sm:$0xff]  }
  0x65   : > { %1994 = vmatprep.mubr.bf16.mxu1 %v4002_v51  ;;  %3654 = vmatpush3.bf16.msra.mxu1 %v4092_v30  ;;  %v4069_v51 = vld [vmem:[%s4422_s19 + $0x360] ss:$36 sps:$4 sm:$0xff]   ;;  %v4140_v30 = vld [vmem:[%s4422_s19 + $0x178] ss:$36 sps:$4 sm:$0xff]  }
  0x66   : > { %3655 = vmatprep.subr.bf16.mxu1 %v4093_v31  ;;  %v4115_v7 = vld [vmem:[%s4422_s19 + $0x64] ss:$36 sps:$4 sm:$0xff]  }
  0x67   : > { %3544 = vmatpush3.bf16.msra.mxu0 %v4057_v9  ;;  %v4114_v9 = vld [vmem:[%s4422_s19 + $0x58] ss:$36 sps:$4 sm:$0xff]   ;;  %v4141_v29 = vld [vmem:[%s4422_s19 + $0x184] ss:$36 sps:$4 sm:$0xff]  }
  0x68   : > { %3545 = vmatprep.subr.bf16.mxu0 %v4070_v16  ;;  %v4125_v16 = vld [vmem:[%s4422_s19 + $0xec] ss:$36 sps:$4 sm:$0xff]   ;;  %v4144_v31 = vld [vmem:[%s4422_s19 + $0x1c4] ss:$36 sps:$4 sm:$0xff]  }
  0x69   : > { %3656 = vmatpush3.bf16.msra.mxu1 %v4096_v33  ;;  %v4148_v33 = vld [vmem:[%s4422_s19 + $0x1cc] ss:$36 sps:$4 sm:$0xff]  }
  0x6a   : > { %1834 = vmatmul.mubr.bf16.gmra.mrb[12].mxu0 %v4001_v52  ;;  %3657 = vmatprep.subr.bf16.mxu1 %v4101_v36  ;;  %v4075_v52 = vld [vmem:[%s4422_s19 + $0x3ac] ss:$36 sps:$4 sm:$0xff]  }
  0x6b   : > { %1841 = vmatprep.mubr.bf16.mxu0 %v4005_v53  ;;  %3546 = vmatpush3.bf16.msra.mxu0 %v4073_v17  ;;  %v4074_v53 = vld [vmem:[%s4422_s19 + $0x368] ss:$36 sps:$4 sm:$0xff]  }
  0x6c   : > { %1995 = vmatmul.mubr.bf16.gmra.mrb[12].mxu1 %v4004_v55  ;;  %3547 = vmatprep.subr.bf16.mxu0 %v4086_v24  ;;  %v4077_v55 = vld [vmem:[%s4422_s19 + $0x3a8] ss:$36 sps:$4 sm:$0xff]   ;;  %v4130_v24 = vld [vmem:[%s4422_s19 + $0xf0] ss:$36 sps:$4 sm:$0xff]  }
  0x6d   : > { %2002 = vmatprep.mubr.bf16.mxu1 %v4009_v57  ;;  %3658 = vmatpush3.bf16.msra.mxu1 %v4102_v37  ;;  %v4080_v57 = vld [vmem:[%s4422_s19 + $0x3b0] ss:$36 sps:$4 sm:$0xff]   ;;  %v4173_v17 = vld [vmem:[%s5168_s1 + $0x228] sm:$0xff]  }
  0x6e   : > { %3659 = vmatprep.subr.bf16.mxu1 %v4103_v38  ;;  %v4150_v36 = vld [vmem:[%s4422_s19 + $0x1c8] ss:$36 sps:$4 sm:$0xff]   ;;  %v4154_v37 = vld [vmem:[%s4422_s19 + $0x214] ss:$36 sps:$4 sm:$0xff]  }
  0x6f   : > { %3548 = vmatpush3.bf16.msra.mxu0 %v4089_v27  ;;  %v4138_v27 = vld [vmem:[%s4422_s19 + $0x17c] ss:$36 sps:$4 sm:$0xff]   ;;  %v4153_v38 = vld [vmem:[%s4422_s19 + $0x208] ss:$36 sps:$4 sm:$0xff]  }
  0x70   : > { %3805 = vmatprep.subr.bf16.mxu0 %v4108_v42 }
  0x71   : > { %3660 = vmatpush3.bf16.msra.mxu1 %v4107_v41  ;;  %v4161_v41 = vld [vmem:[%s4422_s19 + $0x25c] ss:$36 sps:$4 sm:$0xff]  }
  0x72   : > { %1842 = vmatmul.mubr.bf16.gmra.mrb[16].mxu0 %v4007_v58  ;;  %v4087_v58 = vld [vmem:[%s4422_s19 + $0x3fc] ss:$36 sps:$4 sm:$0xff]  }
  0x73   : > { %1849 = vmatprep.mubr.bf16.mxu0 %v4013_v61  ;;  %v4090_v61 = vld [vmem:[%s4422_s19 + $0x3f8] ss:$36 sps:$4 sm:$0xff]  }
  0x74   : > { %2003 = vmatmul.mubr.bf16.gmra.mrb[16].mxu1 %v4012_v63  ;;  %v4097_v63 = vld [vmem:[%s4422_s19 + $0x438] ss:$36 sps:$4 sm:$0xff]  }
  0x75   : > { %2010 = vmatprep.mubr.bf16.mxu1 %v4016_v0  ;;  %v4106_v0 = vld [vmem:[%s4422_s19 + $0x14] ss:$36 sps:$4 sm:$0xff]  }
  0x7a   : > { %1850 = vmatmul.mubr.bf16.gmra.mrb[20].mxu0 %v4015_v2  ;;  %v4111_v2 = vld [vmem:[%s4422_s19 + $0x1c] ss:$36 sps:$4 sm:$0xff]  }
  0x7b   : > { %1857 = vmatprep.mubr.bf16.mxu0 %v4019_v3  ;;  %v4104_v3 = vld [vmem:[%s4422_s19 + $0x10] ss:$36 sps:$4 sm:$0xff]  }
  0x7c   : > { %2011 = vmatmul.mubr.bf16.gmra.mrb[20].mxu1 %v4018_v6  ;;  %v4121_v6 = vld [vmem:[%s5168_s1 + $0x208] sm:$0xff]  }
  0x7d   : > { %2018 = vmatprep.mubr.bf16.mxu1 %v4023_v8  ;;  %v4134_v8 = vld [vmem:[%s5168_s1 + $0x210] sm:$0xff]  }
  0x82   : > { %1858 = vmatmul.mubr.bf16.gmra.mrb[24].mxu0 %v4021_v10  ;;  %v4118_v10 = vld [vmem:[%s4422_s19 + $0xa4] ss:$36 sps:$4 sm:$0xff]  }
  0x83   : > { %1865 = vmatprep.mubr.bf16.mxu0 %v4027_v11  ;;  %v4117_v11 = vld [vmem:[%s4422_s19 + $0x60] ss:$36 sps:$4 sm:$0xff]  }
  0x84   : > { %2019 = vmatmul.mubr.bf16.gmra.mrb[24].mxu1 %v4026_v14  ;;  %v4160_v14 = vld [vmem:[%s5168_s1 + $0x220] sm:$0xff]  }
  0x85   : > { %2026 = vmatprep.mubr.bf16.mxu1 %v4030_v15  ;;  %v4120_v15 = vld [vmem:[%s4422_s19 + $0xa0] ss:$36 sps:$4 sm:$0xff]  }
  0x8a   : > { %1866 = vmatmul.mubr.bf16.gmra.mrb[28].mxu0 %v4029_v18  ;;  %v4124_v18 = vld [vmem:[%s4422_s19 + $0xa8] ss:$36 sps:$4 sm:$0xff]  }
  0x8b   : > { %1873 = vmatprep.mubr.bf16.mxu0 %v4035_v20  ;;  %v4186_v20 = vld [vmem:[%s5168_s1 + $0x230] sm:$0xff]  }
  0x8c   : > { %2027 = vmatmul.mubr.bf16.gmra.mrb[28].mxu1 %v4032_v19  ;;  %v4128_v19 = vld [vmem:[%s4422_s19 + $0xf4] ss:$36 sps:$4 sm:$0xff]  }
  0x8d   : > { %2034 = vmatprep.mubr.bf16.mxu1 %v4039_v21  ;;  %v4127_v21 = vld [vmem:[%s4422_s19 + $0xe8] ss:$36 sps:$4 sm:$0xff]  }
  0x92   : > { %1874 = vmatmul.mubr.bf16.gmra.mrb[32].mxu0 %v4037_v25  ;;  %v4135_v25 = vld [vmem:[%s4422_s19 + $0x13c] ss:$36 sps:$4 sm:$0xff]  }
  0x93   : > { %1881 = vmatprep.mubr.bf16.mxu0 %v4043_v26  ;;  %v4133_v26 = vld [vmem:[%s4422_s19 + $0x130] ss:$36 sps:$4 sm:$0xff]  }
  0x94   : > { %2035 = vmatmul.mubr.bf16.gmra.mrb[32].mxu1 %v4042_v28  ;;  %v4137_v28 = vld [vmem:[%s4422_s19 + $0x138] ss:$36 sps:$4 sm:$0xff]  }
  0x95   : > { %2042 = vmatprep.mubr.bf16.mxu1 %v4046_v32  ;;  %v4143_v32 = vld [vmem:[%s4422_s19 + $0x180] ss:$36 sps:$4 sm:$0xff]  }
  0x9a   : > { %1882 = vmatmul.mubr.bf16.gmra.mrb[36].mxu0 %v4045_v34  ;;  %v4146_v34 = vld [vmem:[%s4422_s19 + $0x1c0] ss:$36 sps:$4 sm:$0xff]  }
  0x9b   : > { %1889 = vmatprep.mubr.bf16.mxu0 %v4051_v35  ;;  %v4151_v35 = vld [vmem:[%s4422_s19 + $0x20c] ss:$36 sps:$4 sm:$0xff]  }
  0x9c   : > { %2043 = vmatmul.mubr.bf16.gmra.mrb[36].mxu1 %v4048_v39  ;;  %v4157_v39 = vld [vmem:[%s4422_s19 + $0x254] ss:$36 sps:$4 sm:$0xff]  }
  0x9d   : > { %2050 = vmatprep.mubr.bf16.mxu1 %v4055_v40  ;;  %v4156_v40 = vld [vmem:[%s4422_s19 + $0x210] ss:$36 sps:$4 sm:$0xff]  }
  0xa2   : > { %1890 = vmatmul.mubr.bf16.gmra.mrb[40].mxu0 %v4053_v43  ;;  %v4164_v43 = vld [vmem:[%s4422_s19 + $0x29c] ss:$36 sps:$4 sm:$0xff]  }
  0xa3   : > { %1897 = vmatprep.mubr.bf16.mxu0 %v4059_v44  ;;  %v4163_v44 = vld [vmem:[%s4422_s19 + $0x258] ss:$36 sps:$4 sm:$0xff]  }
  0xa4   : > { %2051 = vmatmul.mubr.bf16.gmra.mrb[40].mxu1 %v4058_v45  ;;  %v4167_v45 = vld [vmem:[%s4422_s19 + $0x2a4] ss:$36 sps:$4 sm:$0xff]  }
  0xa5   : > { %2058 = vmatprep.mubr.bf16.mxu1 %v4062_v46  ;;  %v4166_v46 = vld [vmem:[%s4422_s19 + $0x298] ss:$36 sps:$4 sm:$0xff]  }
  0xaa   : > { %1898 = vmatmul.mubr.bf16.gmra.mrb[44].mxu0 %v4061_v47  ;;  %v4170_v47 = vld [vmem:[%s4422_s19 + $0x2e4] ss:$36 sps:$4 sm:$0xff]  }
  0xab   : > { %1905 = vmatprep.mubr.bf16.mxu0 %v4067_v48  ;;  %v4169_v48 = vld [vmem:[%s4422_s19 + $0x2a0] ss:$36 sps:$4 sm:$0xff]  }
  0xac   : > { %2059 = vmatmul.mubr.bf16.gmra.mrb[44].mxu1 %v4064_v49  ;;  %v4174_v49 = vld [vmem:[%s4422_s19 + $0x2ec] ss:$36 sps:$4 sm:$0xff]  }
  0xad   : > { %2066 = vmatprep.mubr.bf16.mxu1 %v4071_v50  ;;  %v4172_v50 = vld [vmem:[%s4422_s19 + $0x2e0] ss:$36 sps:$4 sm:$0xff]  }
  0xb2   : > { %1906 = vmatmul.mubr.bf16.gmra.mrb[48].mxu0 %v4069_v51  ;;  %v4177_v51 = vld [vmem:[%s4422_s19 + $0x32c] ss:$36 sps:$4 sm:$0xff]  }
  0xb3   : > { %1913 = vmatprep.mubr.bf16.mxu0 %v4075_v52  ;;  %v4176_v52 = vld [vmem:[%s4422_s19 + $0x2e8] ss:$36 sps:$4 sm:$0xff]  }
  0xb4   : > { %2067 = vmatmul.mubr.bf16.gmra.mrb[48].mxu1 %v4074_v53  ;;  %v4180_v53 = vld [vmem:[%s4422_s19 + $0x334] ss:$36 sps:$4 sm:$0xff]  }
  0xb5   : > { %2074 = vmatprep.mubr.bf16.mxu1 %v4078_v54 }
  0xba   : > { %1914 = vmatmul.mubr.bf16.gmra.mrb[52].mxu0 %v4077_v55  ;;  %v4757_v55 = vld [vmem:[%s5169_s2] ss:$0 sm:$0xff] }
  0xbb   : > { %1921 = vmatprep.mubr.bf16.mxu0 %v4083_v56 }
  0xbc   : > { %2075 = vmatmul.mubr.bf16.gmra.mrb[52].mxu1 %v4080_v57  ;;  %v4179_v57 = vld [vmem:[%s4422_s19 + $0x328] ss:$36 sps:$4 sm:$0xff]  }
  0xbd   : > { %2082 = vmatprep.mubr.bf16.mxu1 %v4087_v58 }
  0xc2   : > { %1922 = vmatmul.mubr.bf16.gmra.mrb[56].mxu0 %v4085_v59 }
  0xc3   : > { %1929 = vmatprep.mubr.bf16.mxu0 %v4094_v60  ;;  %v4183_v60 = vld [vmem:[%s4422_s19 + $0x374] ss:$36 sps:$4 sm:$0xff]  }
  0xc4   : > { %2083 = vmatmul.mubr.bf16.gmra.mrb[56].mxu1 %v4090_v61 }
  0xc5   : > { %2090 = vmatprep.mubr.bf16.mxu1 %v4098_v62 }
  0xca   : > { %1930 = vmatmul.mubr.bf16.gmra.mrb[60].mxu0 %v4097_v63 }
  0xcb   : > { %2131 = vmatprep.mubr.bf16.mxu0 %v4106_v0 }
  0xcc   : > { %2091 = vmatmul.mubr.bf16.gmra.mrb[60].mxu1 %v4100_v1 }
  0xcd   : > { %2292 = vmatprep.mubr.bf16.mxu1 %v4111_v2  ;;  %v4182_v2 = vld [vmem:[%s4422_s19 + $0x330] ss:$36 sps:$4 sm:$0xff]  }
  0xd2   : > { %2132 = vmatmul.mubr.bf16.vlgmr.msra.gmra.mrb[64].mxu0 %v4104_v3 }
  0xd3   : > { %3806 = vmatpush3.bf16.msra.mxu0 %v4108_v42  ;;  %2139 = vmatprep.mubr.bf16.mxu0 %v4112_v4  ;;  %v4159_v42 = vld [vmem:[%s4422_s19 + $0x250] ss:$36 sps:$4 sm:$0xff]  }
  0xd4   : > { %3807 = vmatprep.subr.bf16.mxu0 %v4121_v6  ;;  %2293 = vmatmul.mubr.bf16.vlgmr.msra.gmra.mrb[64].mxu1 %v4109_v5  ;;  %v4187_v5 = vld [vmem:[%s4422_s19 + $0x37c] ss:$36 sps:$4 sm:$0xff]  }
  0xd5   : > { %2300 = vmatprep.mubr.bf16.mxu1 %v4115_v7 }
  0xd7   : > { %3808 = vmatpush3.bf16.msra.mxu0 %v4121_v6 }
  0xd8   : > { %3809 = vmatprep.subr.bf16.mxu0 %v4134_v8 }
  0xda   : > { %2140 = vmatmul.mubr.bf16.gmra.mrb[68].mxu0 %v4114_v9 }
  0xdb   : > { %2147 = vmatprep.mubr.bf16.mxu0 %v4118_v10  ;;  %3810 = vmatpush3.bf16.msra.mxu0 %v4134_v8 }
  0xdc   : > { %3811 = vmatprep.subr.bf16.mxu0 %v4147_v12  ;;  %2301 = vmatmul.mubr.bf16.gmra.mrb[68].mxu1 %v4117_v11 }
  0xdd   : > { %2308 = vmatprep.mubr.bf16.mxu1 %v4122_v13  ;;  %v4185_v13 = vld [vmem:[%s4422_s19 + $0x370] ss:$36 sps:$4 sm:$0xff]  }
  0xdf   : > { %3812 = vmatpush3.bf16.msra.mxu0 %v4147_v12 }
  0xe0   : > { %3813 = vmatprep.subr.bf16.mxu0 %v4160_v14 }
  0xe2   : > { %2148 = vmatmul.mubr.bf16.gmra.mrb[72].mxu0 %v4120_v15 }
  0xe3   : > { %2155 = vmatprep.mubr.bf16.mxu0 %v4125_v16  ;;  %3814 = vmatpush3.bf16.msra.mxu0 %v4160_v14  ;;  %v4190_v16 = vld [vmem:[%s4422_s19 + $0x3bc] ss:$36 sps:$4 sm:$0xff]  }
  0xe4   : > { %3815 = vmatprep.subr.bf16.mxu0 %v4173_v17  ;;  %2309 = vmatmul.mubr.bf16.gmra.mrb[72].mxu1 %v4124_v18 }
  0xe5   : > { %2316 = vmatprep.mubr.bf16.mxu1 %v4128_v19 }
  0xe7   : > { %3816 = vmatpush3.bf16.msra.mxu0 %v4173_v17 }
  0xe8   : > { %3817 = vmatprep.subr.bf16.mxu0 %v4186_v20 }
  0xea   : > { %2156 = vmatmul.mubr.bf16.gmra.mrb[76].mxu0 %v4127_v21 }
  0xeb   : > { %2163 = vmatprep.mubr.bf16.mxu0 %v4131_v22  ;;  %3818 = vmatpush3.bf16.msra.mxu0 %v4186_v20  ;;  %v4189_v22 = vld [vmem:[%s4422_s19 + $0x378] ss:$36 sps:$4 sm:$0xff]  }
  0xec   : > { %3819 = vmatprep.subr.bf16.mxu0 %v4199_v23  ;;  %2317 = vmatmul.mubr.bf16.gmra.mrb[76].mxu1 %v4130_v24 }
  0xed   : > { %2324 = vmatprep.mubr.bf16.mxu1 %v4135_v25  ;;  %v4193_v25 = vld [vmem:[%s4422_s19 + $0x3c4] ss:$36 sps:$4 sm:$0xff]  }
  0xef   : > { %3820 = vmatpush3.bf16.msra.mxu0 %v4199_v23 }
  0xf2   : > { %2164 = vmatmul.mubr.bf16.gmra.mrb[80].mxu0 %v4133_v26 }
  0xf3   : > { %2171 = vmatprep.mubr.bf16.mxu0 %v4138_v27 }
  0xf4   : > { %2325 = vmatmul.mubr.bf16.gmra.mrb[80].mxu1 %v4137_v28  ;;  %v4225_v28 = vld [vmem:[%s5170_s3] sm:$0xff]  }
  0xf5   : > { %2332 = vmatprep.mubr.bf16.mxu1 %v4141_v29  ;;  %3853 = vmatprep.subr.bf16.mxu1 %v4225_v28 }
  0xf6   : > { %3854 = vmatpush3.bf16.msra.mxu1 %v4225_v28 }
  0xfa   : > { %2172 = vmatmul.mubr.bf16.gmra.mrb[84].mxu0 %v4140_v30 }
  0xfb   : > { %2179 = vmatprep.mubr.bf16.mxu0 %v4144_v31 }
  0xfc   : > { %2333 = vmatmul.mubr.bf16.gmra.mrb[84].mxu1 %v4143_v32 }
  0xfd   : > { %2340 = vmatprep.mubr.bf16.mxu1 %v4148_v33 }
 0x102   : > { %2180 = vmatmul.mubr.bf16.gmra.mrb[88].mxu0 %v4146_v34  ;;  %v4192_v34 = vld [vmem:[%s4422_s19 + $0x3b8] ss:$36 sps:$4 sm:$0xff]  }
 0x103   : > { %2187 = vmatprep.mubr.bf16.mxu0 %v4151_v35 }
 0x104   : > { %2341 = vmatmul.mubr.bf16.gmra.mrb[88].mxu1 %v4150_v36 }
 0x105   : > { %2348 = vmatprep.mubr.bf16.mxu1 %v4154_v37  ;;  %v4196_v37 = vld [vmem:[%s4422_s19 + $0x404] ss:$36 sps:$4 sm:$0xff]  }
 0x10a   : > { %2188 = vmatmul.mubr.bf16.gmra.mrb[92].mxu0 %v4153_v38 }
 0x10b   : > { %2195 = vmatprep.mubr.bf16.mxu0 %v4157_v39 }
 0x10c   : > { %2349 = vmatmul.mubr.bf16.gmra.mrb[92].mxu1 %v4156_v40 }
 0x10d   : > { %2356 = vmatprep.mubr.bf16.mxu1 %v4161_v41 }
 0x112   : > { %2196 = vmatmul.mubr.bf16.gmra.mrb[96].mxu0 %v4159_v42 }
 0x113   : > { %2203 = vmatprep.mubr.bf16.mxu0 %v4164_v43  ;;  %v4195_v43 = vld [vmem:[%s4422_s19 + $0x3c0] ss:$36 sps:$4 sm:$0xff]  }
 0x114   : > { %2357 = vmatmul.mubr.bf16.gmra.mrb[96].mxu1 %v4163_v44 }
 0x115   : > { %2364 = vmatprep.mubr.bf16.mxu1 %v4167_v45 }
 0x11a   : > { %2204 = vmatmul.mubr.bf16.gmra.mrb[100].mxu0 %v4166_v46  ;;  %v4200_v46 = vld [vmem:[%s4422_s19 + $0x40c] ss:$36 sps:$4 sm:$0xff]  }
 0x11b   : > { %2211 = vmatprep.mubr.bf16.mxu0 %v4170_v47 }
 0x11c   : > { %2365 = vmatmul.mubr.bf16.gmra.mrb[100].mxu1 %v4169_v48 }
 0x11d   : > { %2372 = vmatprep.mubr.bf16.mxu1 %v4174_v49 }
 0x122   : > { %2212 = vmatmul.mubr.bf16.gmra.mrb[104].mxu0 %v4172_v50 }
 0x123   : > { %2219 = vmatprep.mubr.bf16.mxu0 %v4177_v51 }
 0x124   : > { %2373 = vmatmul.mubr.bf16.gmra.mrb[104].mxu1 %v4176_v52 }
 0x125   : > { %v3325_v54 = vpop.f32.mrb[0].mxu0  ;;  %2380 = vmatprep.mubr.bf16.mxu1 %v4180_v53 }
 0x126   : > { %v3326_v56 = vpop.f32.mrb[1].mxu0 }
 0x127   : > { %v3327_v58 = vadd.f32 %v3326_v56, %v3325_v54  ;;  %v3328_v59 = vpop.f32.mrb[2].mxu0  ;;  %v3437_v61 = vpop.f32.mrb[0].mxu1  ;;  %v4198_v54 = vld [vmem:[%s4422_s19 + $0x400] ss:$36 sps:$4 sm:$0xff]  }
 0x128   : > { %v3329_v62 = vpop.f32.mrb[3].mxu0  ;;  %v3438_v1 = vpop.f32.mrb[1].mxu1 }
 0x129   : > { %v1812_v63 = vadd.f32 %v3327_v58, %v4757_v55  ;;  %v3330_v0 = vadd.f32 %v3329_v62, %v3328_v59  ;;  %v3439_v3 = vadd.f32 %v3438_v1, %v3437_v61  ;;  %v3440_v4 = vpop.f32.mrb[2].mxu1  ;;  %v4203_v58 = vld [vmem:[%s4422_s19 + $0x44c] ss:$36 sps:$4 sm:$0xff]  }
 0x12a   : > { %2220 = vmatmul.mubr.bf16.gmra.mrb[108].mxu0 %v4179_v57  ;;  %v3441_v7 = vpop.f32.mrb[3].mxu1 }
 0x12b   : > { %v1815_v6 = vadd.f32 %v3330_v0, %v4757_v55  ;;  %2227 = vmatprep.mubr.bf16.mxu0 %v4183_v60  ;;  %v4765_v8 = vadd.f32 %v3439_v3, %v1812_v63  ;;  %v3442_v9 = vadd.f32 %v3441_v7, %v3440_v4  ;;  %v4202_v0 = vld [vmem:[%s4422_s19 + $0x408] ss:$36 sps:$4 sm:$0xff]   ;;  %v4206_v3 = vld [vmem:[%s4422_s19 + $0x454] ss:$36 sps:$4 sm:$0xff]  }
 0x12c   : > { %2381 = vmatmul.mubr.bf16.gmra.mrb[108].mxu1 %v4182_v2 }
 0x12d   : > { %v3331_v10 = vpop.f32.mrb[4].mxu0  ;;  %v4767_v11 = vadd.f32 %v3442_v9, %v1815_v6  ;;  %2388 = vmatprep.mubr.bf16.mxu1 %v4187_v5  ;;  %v4226_v6 = vld [vmem:[%s5170_s3 + $0x8] sm:$0xff]  }
 0x12e   : > { %v3332_v12 = vpop.f32.mrb[5].mxu0  ;;  %3855 = vmatprep.subr.bf16.mxu1 %v4226_v6 }
 0x12f   : > { %v3333_v14 = vadd.f32 %v3332_v12, %v3331_v10  ;;  %v3334_v15 = vpop.f32.mrb[6].mxu0  ;;  %v3443_v17 = vpop.f32.mrb[4].mxu1  ;;  %3856 = vmatpush3.bf16.msra.mxu1 %v4226_v6 }
 0x130   : > { %v3335_v18 = vpop.f32.mrb[7].mxu0  ;;  %v3444_v21 = vpop.f32.mrb[5].mxu1 }
 0x131   : > { %v1820_v19 = vadd.f32 %v3333_v14, %v4757_v55  ;;  %v3336_v20 = vadd.f32 %v3335_v18, %v3334_v15  ;;  %v3445_v23 = vadd.f32 %v3444_v21, %v3443_v17  ;;  %v3446_v24 = vpop.f32.mrb[6].mxu1  ;;  %v4205_v14 = vld [vmem:[%s4422_s19 + $0x448] ss:$36 sps:$4 sm:$0xff]   ;;  %v4209_v17 = vld [vmem:[%s4422_s19 + $0x20] ss:$36 sps:$4 sm:$0xff]  }
 0x132   : > { %2228 = vmatmul.mubr.bf16.gmra.mrb[112].mxu0 %v4185_v13  ;;  %v3447_v27 = vpop.f32.mrb[7].mxu1 }
 0x133   : > { %v1823_v26 = vadd.f32 %v3336_v20, %v4757_v55  ;;  %2235 = vmatprep.mubr.bf16.mxu0 %v4190_v16  ;;  %v4778_v29 = vadd.f32 %v3445_v23, %v1820_v19  ;;  %v3448_v30 = vadd.f32 %v3447_v27, %v3446_v24  ;;  %v4208_v23 = vld [vmem:[%s4422_s19 + $0x450] ss:$36 sps:$4 sm:$0xff]  }
 0x134   : > { %2389 = vmatmul.mubr.bf16.gmra.mrb[112].mxu1 %v4189_v22 }
 0x135   : > { %v3337_v31 = vpop.f32.mrb[8].mxu0  ;;  %v4780_v32 = vadd.f32 %v3448_v30, %v1823_v26  ;;  %2396 = vmatprep.mubr.bf16.mxu1 %v4193_v25 }
 0x136   : > { %v3338_v33 = vpop.f32.mrb[9].mxu0 }
 0x137   : > { %v3339_v35 = vadd.f32 %v3338_v33, %v3337_v31  ;;  %v3340_v36 = vpop.f32.mrb[10].mxu0  ;;  %v3449_v38 = vpop.f32.mrb[8].mxu1 }
 0x138   : > { %v3341_v39 = vpop.f32.mrb[11].mxu0  ;;  %v3450_v42 = vpop.f32.mrb[9].mxu1 }
 0x139   : > { %v1828_v40 = vadd.f32 %v3339_v35, %v4757_v55  ;;  %v3342_v41 = vadd.f32 %v3341_v39, %v3340_v36  ;;  %v3451_v44 = vadd.f32 %v3450_v42, %v3449_v38  ;;  %v3452_v45 = vpop.f32.mrb[10].mxu1  ;;  %v4210_v35 = vld [vmem:[%s4422_s19 + $0x68] ss:$36 sps:$4 sm:$0xff]   ;;  %v4211_v38 = vld [vmem:[%s4422_s19 + $0xb0] ss:$36 sps:$4 sm:$0xff]  }
 0x13a   : > { %2236 = vmatmul.mubr.bf16.gmra.mrb[116].mxu0 %v4192_v34  ;;  %v3453_v48 = vpop.f32.mrb[11].mxu1 }
 0x13b   : > { %v1831_v47 = vadd.f32 %v3342_v41, %v4757_v55  ;;  %2243 = vmatprep.mubr.bf16.mxu0 %v4196_v37  ;;  %v4788_v49 = vadd.f32 %v3451_v44, %v1828_v40  ;;  %v3454_v50 = vadd.f32 %v3453_v48, %v3452_v45  ;;  %v4227_v48 = vld [vmem:[%s5170_s3 + $0x10] sm:$0xff]  }
 0x13c   : > { %2397 = vmatmul.mubr.bf16.gmra.mrb[116].mxu1 %v4195_v43  ;;  %3857 = vmatprep.subr.bf16.mxu1 %v4227_v48 }
 0x13d   : > { %v3343_v51 = vpop.f32.mrb[12].mxu0  ;;  %v4790_v52 = vadd.f32 %v3454_v50, %v1831_v47  ;;  %2404 = vmatprep.mubr.bf16.mxu1 %v4200_v46  ;;  %3858 = vmatpush3.bf16.msra.mxu1 %v4227_v48 }
 0x13e   : > { %v3344_v53 = vpop.f32.mrb[13].mxu0 }
 0x13f   : > { %v3345_v56 = vadd.f32 %v3344_v53, %v3343_v51  ;;  %v3346_v57 = vpop.f32.mrb[14].mxu0  ;;  %v3455_v59 = vpop.f32.mrb[12].mxu1 }
 0x140   : > { %v3347_v60 = vpop.f32.mrb[15].mxu0  ;;  %v3456_v63 = vpop.f32.mrb[13].mxu1 }
 0x141   : > { %v1836_v61 = vadd.f32 %v3345_v56, %v4757_v55  ;;  %v3348_v62 = vadd.f32 %v3347_v60, %v3346_v57  ;;  %v3457_v1 = vadd.f32 %v3456_v63, %v3455_v59  ;;  %v3458_v2 = vpop.f32.mrb[14].mxu1  ;;  %v4212_v57 = vld [vmem:[%s4422_s19 + $0xf8] ss:$36 sps:$4 sm:$0xff]   ;;  %v4213_v60 = vld [vmem:[%s4422_s19 + $0x140] ss:$36 sps:$4 sm:$0xff]  }
 0x142   : > { %2244 = vmatmul.mubr.bf16.gmra.mrb[120].mxu0 %v4198_v54  ;;  %v3459_v5 = vpop.f32.mrb[15].mxu1 }
 0x143   : > { %v1839_v4 = vadd.f32 %v3348_v62, %v4757_v55  ;;  %2251 = vmatprep.mubr.bf16.mxu0 %v4203_v58  ;;  %v4801_v7 = vadd.f32 %v3457_v1, %v1836_v61  ;;  %v3460_v9 = vadd.f32 %v3459_v5, %v3458_v2 }
 0x144   : > { %2405 = vmatmul.mubr.bf16.gmra.mrb[120].mxu1 %v4202_v0 }
 0x145   : > { %v3349_v10 = vpop.f32.mrb[16].mxu0  ;;  %v4803_v12 = vadd.f32 %v3460_v9, %v1839_v4  ;;  %2412 = vmatprep.mubr.bf16.mxu1 %v4206_v3 }
 0x146   : > { %v3350_v13 = vpop.f32.mrb[17].mxu0 }
 0x147   : > { %v3351_v15 = vadd.f32 %v3350_v13, %v3349_v10  ;;  %v3352_v16 = vpop.f32.mrb[18].mxu0  ;;  %v3461_v18 = vpop.f32.mrb[16].mxu1 }
 0x148   : > { %v3353_v19 = vpop.f32.mrb[19].mxu0  ;;  %v3462_v22 = vpop.f32.mrb[17].mxu1 }
 0x149   : > { %v1844_v20 = vadd.f32 %v3351_v15, %v4757_v55  ;;  %v3354_v21 = vadd.f32 %v3353_v19, %v3352_v16  ;;  %v3463_v24 = vadd.f32 %v3462_v22, %v3461_v18  ;;  %v3464_v25 = vpop.f32.mrb[18].mxu1  ;;  %v4214_v15 = vld [vmem:[%s4422_s19 + $0x188] ss:$36 sps:$4 sm:$0xff]   ;;  %v4215_v18 = vld [vmem:[%s4422_s19 + $0x1d0] ss:$36 sps:$4 sm:$0xff]  }
 0x14a   : > { %2252 = vmatmul.mubr.bf16.gmra.mrb[124].mxu0 %v4205_v14  ;;  %v3465_v27 = vpop.f32.mrb[19].mxu1 }
 0x14b   : > { %v1847_v26 = vadd.f32 %v3354_v21, %v4757_v55  ;;  %3821 = vmatprep.mubr.bf16.mxu0 %v4209_v17  ;;  %v4810_v28 = vadd.f32 %v3463_v24, %v1844_v20  ;;  %v3466_v30 = vadd.f32 %v3465_v27, %v3464_v25 }
 0x14c   : > { %2413 = vmatmul.mubr.bf16.gmra.mrb[124].mxu1 %v4208_v23 }
 0x14d   : > { %v3355_v31 = vpop.f32.mrb[20].mxu0  ;;  %v4812_v33 = vadd.f32 %v3466_v30, %v1847_v26  ;;  %v4228_v30 = vld [vmem:[%s5170_s3 + $0x18] sm:$0xff]  }
 0x14e   : > { %v3356_v34 = vpop.f32.mrb[21].mxu0  ;;  %3859 = vmatprep.subr.bf16.mxu1 %v4228_v30 }
 0x14f   : > { %v3357_v36 = vadd.f32 %v3356_v34, %v3355_v31  ;;  %v3358_v37 = vpop.f32.mrb[22].mxu0  ;;  %v3467_v39 = vpop.f32.mrb[20].mxu1  ;;  %3860 = vmatpush3.bf16.msra.mxu1 %v4228_v30 }
 0x150   : > { %v3359_v40 = vpop.f32.mrb[23].mxu0  ;;  %v3468_v43 = vpop.f32.mrb[21].mxu1 }
 0x151   : > { %v1852_v41 = vadd.f32 %v3357_v36, %v4757_v55  ;;  %v3360_v42 = vadd.f32 %v3359_v40, %v3358_v37  ;;  %v3469_v44 = vadd.f32 %v3468_v43, %v3467_v39  ;;  %v3470_v45 = vpop.f32.mrb[22].mxu1 }
 0x152   : > { %3822 = vmatmul.mubr.bf16.vlgmr.msra.gmra.mrb[128].mxu0 %v4210_v35  ;;  %v3471_v47 = vpop.f32.mrb[23].mxu1 }
 0x153   : > { %v1855_v46 = vadd.f32 %v3360_v42, %v4757_v55  ;;  %3825 = vmatprep.mubr.bf16.mxu0 %v4211_v38  ;;  %v4821_v50 = vadd.f32 %v3469_v44, %v1852_v41  ;;  %v3472_v51 = vadd.f32 %v3471_v47, %v3470_v45  ;;  %v4216_v38 = vld [vmem:[%s4422_s19 + $0x218] ss:$36 sps:$4 sm:$0xff]   ;;  %v4217_v41 = vld [vmem:[%s4422_s19 + $0x260] ss:$36 sps:$4 sm:$0xff]  }
 0x155   : > { %v3361_v53 = vpop.f32.mrb[24].mxu0  ;;  %v4823_v54 = vadd.f32 %v3472_v51, %v1855_v46 }
 0x156   : > { %v3362_v56 = vpop.f32.mrb[25].mxu0 }
 0x157   : > { %v3363_v58 = vadd.f32 %v3362_v56, %v3361_v53  ;;  %v3364_v59 = vpop.f32.mrb[26].mxu0  ;;  %v3473_v61 = vpop.f32.mrb[24].mxu1 }
 0x158   : > { %v3365_v62 = vpop.f32.mrb[27].mxu0  ;;  %v3474_v1 = vpop.f32.mrb[25].mxu1 }
 0x159   : > { %v1860_v63 = vadd.f32 %v3363_v58, %v4757_v55  ;;  %v3366_v0 = vadd.f32 %v3365_v62, %v3364_v59  ;;  %v3475_v2 = vadd.f32 %v3474_v1, %v3473_v61  ;;  %v3476_v3 = vpop.f32.mrb[26].mxu1  ;;  %v4218_v61 = vld [vmem:[%s4422_s19 + $0x2a8] ss:$36 sps:$4 sm:$0xff]  }
 0x15a   : > { %3826 = vmatmul.mubr.bf16.gmra.mrb[132].mxu0 %v4212_v57  ;;  %v3477_v5 = vpop.f32.mrb[27].mxu1 }
 0x15b   : > { %v1863_v4 = vadd.f32 %v3366_v0, %v4757_v55  ;;  %3829 = vmatprep.mubr.bf16.mxu0 %v4213_v60  ;;  %v4829_v6 = vadd.f32 %v3475_v2, %v1860_v63  ;;  %v3478_v9 = vadd.f32 %v3477_v5, %v3476_v3  ;;  %v4219_v0 = vld [vmem:[%s4422_s19 + $0x2f0] ss:$36 sps:$4 sm:$0xff]  }
 0x15d   : > { %v3367_v10 = vpop.f32.mrb[28].mxu0  ;;  %v4831_v13 = vadd.f32 %v3478_v9, %v1863_v4 }
 0x15e   : > { %v3368_v14 = vpop.f32.mrb[29].mxu0 }
 0x15f   : > { %v3369_v16 = vadd.f32 %v3368_v14, %v3367_v10  ;;  %v3370_v17 = vpop.f32.mrb[30].mxu0  ;;  %v3479_v19 = vpop.f32.mrb[28].mxu1 }
 0x160   : > { %v3371_v20 = vpop.f32.mrb[31].mxu0  ;;  %v3480_v23 = vpop.f32.mrb[29].mxu1 }
 0x161   : > { %v1868_v21 = vadd.f32 %v3369_v16, %v4757_v55  ;;  %v3372_v22 = vadd.f32 %v3371_v20, %v3370_v17  ;;  %v3481_v24 = vadd.f32 %v3480_v23, %v3479_v19  ;;  %v3482_v25 = vpop.f32.mrb[30].mxu1  ;;  %v4229_v16 = vld [vmem:[%s5170_s3 + $0x20] sm:$0xff]  }
 0x162   : > { %3830 = vmatmul.mubr.bf16.gmra.mrb[136].mxu0 %v4214_v15  ;;  %v3483_v27 = vpop.f32.mrb[31].mxu1  ;;  %3861 = vmatprep.subr.bf16.mxu1 %v4229_v16 }
 0x163   : > { %v1871_v26 = vadd.f32 %v3372_v22, %v4757_v55  ;;  %3833 = vmatprep.mubr.bf16.mxu0 %v4215_v18  ;;  %v4840_v31 = vadd.f32 %v3481_v24, %v1868_v21  ;;  %v3484_v34 = vadd.f32 %v3483_v27, %v3482_v25  ;;  %v4220_v22 = vld [vmem:[%s4422_s19 + $0x338] ss:$36 sps:$4 sm:$0xff]   ;;  %3862 = vmatpush3.bf16.msra.mxu1 %v4229_v16  ;;  %v4221_v25 = vld [vmem:[%s4422_s19 + $0x380] ss:$36 sps:$4 sm:$0xff]  }
 0x165   : > { %v3373_v35 = vpop.f32.mrb[32].mxu0  ;;  %v4842_v36 = vadd.f32 %v3484_v34, %v1871_v26 }
 0x166   : > { %v3374_v37 = vpop.f32.mrb[33].mxu0 }
 0x167   : > { %v3375_v39 = vadd.f32 %v3374_v37, %v3373_v35  ;;  %v3376_v40 = vpop.f32.mrb[34].mxu0  ;;  %v3485_v42 = vpop.f32.mrb[32].mxu1 }
 0x168   : > { %v3377_v43 = vpop.f32.mrb[35].mxu0  ;;  %v3486_v46 = vpop.f32.mrb[33].mxu1 }
 0x169   : > { %v1876_v44 = vadd.f32 %v3375_v39, %v4757_v55  ;;  %v3378_v45 = vadd.f32 %v3377_v43, %v3376_v40  ;;  %v3487_v47 = vadd.f32 %v3486_v46, %v3485_v42  ;;  %v3488_v48 = vpop.f32.mrb[34].mxu1  ;;  %v4222_v46 = vld [vmem:[%s4422_s19 + $0x3c8] ss:$36 sps:$4 sm:$0xff]  }
 0x16a   : > { %3834 = vmatmul.mubr.bf16.gmra.mrb[140].mxu0 %v4216_v38  ;;  %v3489_v53 = vpop.f32.mrb[35].mxu1 }
 0x16b   : > { %v1879_v51 = vadd.f32 %v3378_v45, %v4757_v55  ;;  %3837 = vmatprep.mubr.bf16.mxu0 %v4217_v41  ;;  %v4848_v56 = vadd.f32 %v3487_v47, %v1876_v44  ;;  %v3490_v57 = vadd.f32 %v3489_v53, %v3488_v48 }
 0x16d   : > { %v3379_v58 = vpop.f32.mrb[36].mxu0  ;;  %v4850_v59 = vadd.f32 %v3490_v57, %v1879_v51  ;;  %v4223_v51 = vld [vmem:[%s4422_s19 + $0x410] ss:$36 sps:$4 sm:$0xff]  }
 0x16e   : > { %v3380_v60 = vpop.f32.mrb[37].mxu0 }
 0x16f   : > { %v3381_v62 = vadd.f32 %v3380_v60, %v3379_v58  ;;  %v3382_v63 = vpop.f32.mrb[38].mxu0  ;;  %v3491_v1 = vpop.f32.mrb[36].mxu1 }
 0x170   : > { %v3383_v2 = vpop.f32.mrb[39].mxu0  ;;  %v3492_v5 = vpop.f32.mrb[37].mxu1 }
 0x171   : > { %v1884_v3 = vadd.f32 %v3381_v62, %v4757_v55  ;;  %v3384_v4 = vadd.f32 %v3383_v2, %v3382_v63  ;;  %v3493_v9 = vadd.f32 %v3492_v5, %v3491_v1  ;;  %v3494_v10 = vpop.f32.mrb[38].mxu1  ;;  %v4230_v2 = vld [vmem:[%s5170_s3 + $0x28] sm:$0xff]  }
 0x172   : > { %3838 = vmatmul.mubr.bf16.gmra.mrb[144].mxu0 %v4218_v61  ;;  %v3495_v15 = vpop.f32.mrb[39].mxu1  ;;  %3863 = vmatprep.subr.bf16.mxu1 %v4230_v2 }
 0x173   : > { %v1887_v14 = vadd.f32 %v3384_v4, %v4757_v55  ;;  %3841 = vmatprep.mubr.bf16.mxu0 %v4219_v0  ;;  %v4859_v17 = vadd.f32 %v3493_v9, %v1884_v3  ;;  %v3496_v18 = vadd.f32 %v3495_v15, %v3494_v10  ;;  %3864 = vmatpush3.bf16.msra.mxu1 %v4230_v2 }
 0x175   : > { %v3385_v19 = vpop.f32.mrb[40].mxu0  ;;  %v4861_v20 = vadd.f32 %v3496_v18, %v1887_v14  ;;  %v4224_v14 = vld [vmem:[%s4422_s19 + $0x458] ss:$36 sps:$4 sm:$0xff]  }
 0x176   : > { %v3386_v21 = vpop.f32.mrb[41].mxu0 }
 0x177   : > { %v3387_v23 = vadd.f32 %v3386_v21, %v3385_v19  ;;  %v3388_v24 = vpop.f32.mrb[42].mxu0  ;;  %v3497_v26 = vpop.f32.mrb[40].mxu1 }
 0x178   : > { %v3389_v27 = vpop.f32.mrb[43].mxu0  ;;  %v3498_v35 = vpop.f32.mrb[41].mxu1 }
 0x179   : > { %v1892_v30 = vadd.f32 %v3387_v23, %v4757_v55  ;;  %v3390_v34 = vadd.f32 %v3389_v27, %v3388_v24  ;;  %v3499_v37 = vadd.f32 %v3498_v35, %v3497_v26  ;;  %v3500_v38 = vpop.f32.mrb[42].mxu1 }
 0x17a   : > { %3842 = vmatmul.mubr.bf16.gmra.mrb[148].mxu0 %v4220_v22  ;;  %v3501_v40 = vpop.f32.mrb[43].mxu1 }
 0x17b   : > { %v1895_v39 = vadd.f32 %v3390_v34, %v4757_v55  ;;  %3845 = vmatprep.mubr.bf16.mxu0 %v4221_v25  ;;  %v4867_v41 = vadd.f32 %v3499_v37, %v1892_v30  ;;  %v3502_v42 = vadd.f32 %v3501_v40, %v3500_v38 }
 0x17d   : > { %v3391_v43 = vpop.f32.mrb[44].mxu0  ;;  %v4869_v44 = vadd.f32 %v3502_v42, %v1895_v39 }
 0x17e   : > { %v3392_v45 = vpop.f32.mrb[45].mxu0 }
 0x17f   : > { %v3393_v47 = vadd.f32 %v3392_v45, %v3391_v43  ;;  %v3394_v48 = vpop.f32.mrb[46].mxu0  ;;  %v3503_v53 = vpop.f32.mrb[44].mxu1 }
 0x180   : > { %v3395_v57 = vpop.f32.mrb[47].mxu0  ;;  %v3504_v61 = vpop.f32.mrb[45].mxu1 }
 0x181   : > { %v1900_v58 = vadd.f32 %v3393_v47, %v4757_v55  ;;  %v3396_v60 = vadd.f32 %v3395_v57, %v3394_v48  ;;  %v3505_v62 = vadd.f32 %v3504_v61, %v3503_v53  ;;  %v3506_v63 = vpop.f32.mrb[46].mxu1 }
 0x182   : > { %3846 = vmatmul.mubr.bf16.gmra.mrb[152].mxu0 %v4222_v46  ;;  %v3507_v1 = vpop.f32.mrb[47].mxu1 }
 0x183   : > { %v1903_v0 = vadd.f32 %v3396_v60, %v4757_v55  ;;  %3849 = vmatprep.mubr.bf16.mxu0 %v4223_v51  ;;  %v4878_v3 = vadd.f32 %v3505_v62, %v1900_v58  ;;  %v3508_v4 = vadd.f32 %v3507_v1, %v3506_v63  ;;  %v4231_v58 = vld [vmem:[%s5170_s3 + $0x30] sm:$0xff]  }
 0x184   : > { %3865 = vmatprep.subr.bf16.mxu1 %v4231_v58 }
 0x185   : > { %v3397_v5 = vpop.f32.mrb[48].mxu0  ;;  %v4880_v9 = vadd.f32 %v3508_v4, %v1903_v0  ;;  %3866 = vmatpush3.bf16.msra.mxu1 %v4231_v58 }
 0x186   : > { %v3398_v10 = vpop.f32.mrb[49].mxu0 }
 0x187   : > { %v3399_v15 = vadd.f32 %v3398_v10, %v3397_v5  ;;  %v3400_v16 = vpop.f32.mrb[50].mxu0  ;;  %v3509_v18 = vpop.f32.mrb[48].mxu1 }
 0x188   : > { %v3401_v19 = vpop.f32.mrb[51].mxu0  ;;  %v3510_v23 = vpop.f32.mrb[49].mxu1 }
 0x189   : > { %v1908_v21 = vadd.f32 %v3399_v15, %v4757_v55  ;;  %v3402_v22 = vadd.f32 %v3401_v19, %v3400_v16  ;;  %v3511_v24 = vadd.f32 %v3510_v23, %v3509_v18  ;;  %v3512_v25 = vpop.f32.mrb[50].mxu1 }
 0x18a   : > { %3850 = vmatmul.mubr.bf16.gmra.mrb[156].mxu0 %v4224_v14  ;;  %v3513_v27 = vpop.f32.mrb[51].mxu1 }
 0x18b   : > { %v1911_v26 = vadd.f32 %v3402_v22, %v4757_v55  ;;  %v4885_v30 = vadd.f32 %v3511_v24, %v1908_v21  ;;  %v3514_v34 = vadd.f32 %v3513_v27, %v3512_v25 }
 0x18d   : > { %v3403_v35 = vpop.f32.mrb[52].mxu0  ;;  %v4887_v37 = vadd.f32 %v3514_v34, %v1911_v26 }
 0x18e   : > { %v3404_v38 = vpop.f32.mrb[53].mxu0 }
 0x18f   : > { %v3405_v39 = vadd.f32 %v3404_v38, %v3403_v35  ;;  %v3406_v40 = vpop.f32.mrb[54].mxu0  ;;  %v3515_v42 = vpop.f32.mrb[52].mxu1 }
 0x190   : > { %v3407_v43 = vpop.f32.mrb[55].mxu0  ;;  %v3516_v47 = vpop.f32.mrb[53].mxu1 }
 0x191   : > { %v1916_v45 = vadd.f32 %v3405_v39, %v4757_v55  ;;  %v3408_v46 = vadd.f32 %v3407_v43, %v3406_v40  ;;  %v3517_v48 = vadd.f32 %v3516_v47, %v3515_v42  ;;  %v3518_v51 = vpop.f32.mrb[54].mxu1 }
 0x192   : > { %v3519_v57 = vpop.f32.mrb[55].mxu1 }
 0x193   : > { %v1919_v53 = vadd.f32 %v3408_v46, %v4757_v55  ;;  %v4894_v60 = vadd.f32 %v3517_v48, %v1916_v45  ;;  %v3520_v61 = vadd.f32 %v3519_v57, %v3518_v51  ;;  %v4232_v48 = vld [vmem:[%s5170_s3 + $0x38] sm:$0xff]  }
 0x194   : > { %3867 = vmatprep.subr.bf16.mxu1 %v4232_v48 }
 0x195   : > { %v3409_v62 = vpop.f32.mrb[56].mxu0  ;;  %v4896_v63 = vadd.f32 %v3520_v61, %v1919_v53  ;;  %3868 = vmatpush3.bf16.msra.mxu1 %v4232_v48 }
 0x196   : > { %v3410_v0 = vpop.f32.mrb[57].mxu0 }
 0x197   : > { %v3411_v1 = vadd.f32 %v3410_v0, %v3409_v62  ;;  %v3412_v2 = vpop.f32.mrb[58].mxu0  ;;  %v3521_v4 = vpop.f32.mrb[56].mxu1 }
 0x198   : > { %v3413_v5 = vpop.f32.mrb[59].mxu0  ;;  %v3522_v15 = vpop.f32.mrb[57].mxu1 }
 0x199   : > { %v1924_v10 = vadd.f32 %v3411_v1, %v4757_v55  ;;  %v3414_v14 = vadd.f32 %v3413_v5, %v3412_v2  ;;  %v3523_v16 = vadd.f32 %v3522_v15, %v3521_v4  ;;  %v3524_v18 = vpop.f32.mrb[58].mxu1 }
 0x19a   : > { %v3525_v21 = vpop.f32.mrb[59].mxu1 }
 0x19b   : > { %v1927_v19 = vadd.f32 %v3414_v14, %v4757_v55  ;;  %v4900_v22 = vadd.f32 %v3523_v16, %v1924_v10  ;;  %v3526_v23 = vadd.f32 %v3525_v21, %v3524_v18 }
 0x19d   : > { %v3415_v24 = vpop.f32.mrb[60].mxu0  ;;  %v4902_v25 = vadd.f32 %v3526_v23, %v1927_v19 }
 0x19e   : > { %v3416_v26 = vpop.f32.mrb[61].mxu0 }
 0x19f   : > { %v3417_v27 = vadd.f32 %v3416_v26, %v3415_v24  ;;  %v3418_v34 = vpop.f32.mrb[62].mxu0  ;;  %v3527_v35 = vpop.f32.mrb[60].mxu1 }
 0x1a0   : > { %v3419_v38 = vpop.f32.mrb[63].mxu0  ;;  %v3528_v42 = vpop.f32.mrb[61].mxu1 }
 0x1a1   : > { %v1932_v39 = vadd.f32 %v3417_v27, %v4757_v55  ;;  %v3420_v40 = vadd.f32 %v3419_v38, %v3418_v34  ;;  %v3529_v43 = vadd.f32 %v3528_v42, %v3527_v35  ;;  %v3530_v45 = vpop.f32.mrb[62].mxu1 }
 0x1a2   : > { %v3531_v47 = vpop.f32.mrb[63].mxu1 }
 0x1a3   : > { %v1935_v46 = vadd.f32 %v3420_v40, %v4757_v55  ;;  %v4909_v51 = vadd.f32 %v3529_v43, %v1932_v39  ;;  %v3532_v53 = vadd.f32 %v3531_v47, %v3530_v45 }
 0x1a5   : > { %v3549_v57 = vpop.f32.mrb[64].mxu0  ;;  %v4911_v58 = vadd.f32 %v3532_v53, %v1935_v46 }
 0x1a6   : > { %v3550_v61 = vpop.f32.mrb[65].mxu0 }
 0x1a7   : > { %v3551_v62 = vadd.f32 %v3550_v61, %v3549_v57  ;;  %v3552_v0 = vpop.f32.mrb[66].mxu0  ;;  %v3661_v1 = vpop.f32.mrb[64].mxu1 }
 0x1a8   : > { %v3553_v2 = vpop.f32.mrb[67].mxu0  ;;  %v3662_v5 = vpop.f32.mrb[65].mxu1 }
 0x1a9   : > { %v2134_v55 = vadd.f32 %v3551_v62, %v4765_v8  ;;  %v3554_v4 = vadd.f32 %v3553_v2, %v3552_v0  ;;  %v3663_v10 = vadd.f32 %v3662_v5, %v3661_v1  ;;  %v3664_v14 = vpop.f32.mrb[66].mxu1 }
 0x1aa   : > { %v3665_v16 = vpop.f32.mrb[67].mxu1 }
 0x1ab   : > { %v2137_v15 = vadd.f32 %v3554_v4, %v4767_v11  ;;  %v3666_v18 = vadd.f32 %v3665_v16, %v3664_v14  ;;  %v4915_v19 = vadd.f32 %v3663_v10, %v2134_v55 }
 0x1ad   : > { %v3555_v21 = vpop.f32.mrb[68].mxu0  ;;  %v4917_v24 = vadd.f32 %v3666_v18, %v2137_v15 }
 0x1ae   : > { %v3556_v23 = vpop.f32.mrb[69].mxu0 }
 0x1af   : > { %v3557_v26 = vadd.f32 %v3556_v23, %v3555_v21  ;;  %v3558_v27 = vpop.f32.mrb[70].mxu0  ;;  %v3667_v34 = vpop.f32.mrb[68].mxu1 }
 0x1b0   : > { %v3559_v35 = vpop.f32.mrb[71].mxu0  ;;  %v3668_v39 = vpop.f32.mrb[69].mxu1 }
 0x1b1   : > { %v2142_v8 = vadd.f32 %v3557_v26, %v4778_v29  ;;  %v3560_v38 = vadd.f32 %v3559_v35, %v3558_v27  ;;  %v3669_v40 = vadd.f32 %v3668_v39, %v3667_v34  ;;  %v3670_v42 = vpop.f32.mrb[70].mxu1 }
 0x1b2   : > { %v3671_v43 = vpop.f32.mrb[71].mxu1 }
 0x1b3   : > { %v2145_v11 = vadd.f32 %v3560_v38, %v4780_v32  ;;  %v3672_v45 = vadd.f32 %v3671_v43, %v3670_v42  ;;  %v4921_v46 = vadd.f32 %v3669_v40, %v2142_v8 }
 0x1b5   : > { %v3561_v47 = vpop.f32.mrb[72].mxu0  ;;  %v4923_v53 = vadd.f32 %v3672_v45, %v2145_v11 }
 0x1b6   : > { %v3562_v48 = vpop.f32.mrb[73].mxu0 }
 0x1b7   : > { %v3563_v57 = vadd.f32 %v3562_v48, %v3561_v47  ;;  %v3564_v61 = vpop.f32.mrb[74].mxu0  ;;  %v3673_v62 = vpop.f32.mrb[72].mxu1 }
 0x1b8   : > { %v3565_v0 = vpop.f32.mrb[75].mxu0  ;;  %v3674_v2 = vpop.f32.mrb[73].mxu1 }
 0x1b9   : > { %v2150_v29 = vadd.f32 %v3563_v57, %v4788_v49  ;;  %v3566_v1 = vadd.f32 %v3565_v0, %v3564_v61  ;;  %v3675_v55 = vadd.f32 %v3674_v2, %v3673_v62  ;;  %v3676_v4 = vpop.f32.mrb[74].mxu1 }
 0x1ba   : > { %v3677_v5 = vpop.f32.mrb[75].mxu1 }
 0x1bb   : > { %v2153_v32 = vadd.f32 %v3566_v1, %v4790_v52  ;;  %v3678_v10 = vadd.f32 %v3677_v5, %v3676_v4  ;;  %v4927_v14 = vadd.f32 %v3675_v55, %v2150_v29 }
 0x1bd   : > { %v3567_v15 = vpop.f32.mrb[76].mxu0  ;;  %v4929_v18 = vadd.f32 %v3678_v10, %v2153_v32 }
 0x1be   : > { %v3568_v16 = vpop.f32.mrb[77].mxu0 }
 0x1bf   : > { %v3569_v21 = vadd.f32 %v3568_v16, %v3567_v15  ;;  %v3570_v23 = vpop.f32.mrb[78].mxu0  ;;  %v3679_v26 = vpop.f32.mrb[76].mxu1 }
 0x1c0   : > { %v3571_v27 = vpop.f32.mrb[79].mxu0  ;;  %v3680_v35 = vpop.f32.mrb[77].mxu1 }
 0x1c1   : > { %v2158_v49 = vadd.f32 %v3569_v21, %v4801_v7  ;;  %v3572_v34 = vadd.f32 %v3571_v27, %v3570_v23  ;;  %v3681_v8 = vadd.f32 %v3680_v35, %v3679_v26  ;;  %v3682_v38 = vpop.f32.mrb[78].mxu1 }
 0x1c2   : > { %v3683_v39 = vpop.f32.mrb[79].mxu1 }
 0x1c3   : > { %v2161_v52 = vadd.f32 %v3572_v34, %v4803_v12  ;;  %v3684_v40 = vadd.f32 %v3683_v39, %v3682_v38  ;;  %v4933_v42 = vadd.f32 %v3681_v8, %v2158_v49 }
 0x1c5   : > { %v3573_v11 = vpop.f32.mrb[80].mxu0  ;;  %v4935_v45 = vadd.f32 %v3684_v40, %v2161_v52 }
 0x1c6   : > { %v3574_v43 = vpop.f32.mrb[81].mxu0 }
 0x1c7   : > { %v3575_v47 = vadd.f32 %v3574_v43, %v3573_v11  ;;  %v3576_v48 = vpop.f32.mrb[82].mxu0  ;;  %v3685_v57 = vpop.f32.mrb[80].mxu1 }
 0x1c8   : > { %v3577_v61 = vpop.f32.mrb[83].mxu0  ;;  %v3686_v0 = vpop.f32.mrb[81].mxu1 }
 0x1c9   : > { %v2166_v7 = vadd.f32 %v3575_v47, %v4810_v28  ;;  %v3578_v62 = vadd.f32 %v3577_v61, %v3576_v48  ;;  %v3687_v29 = vadd.f32 %v3686_v0, %v3685_v57  ;;  %v3688_v1 = vpop.f32.mrb[82].mxu1 }
 0x1ca   : > { %v3689_v2 = vpop.f32.mrb[83].mxu1 }
 0x1cb   : > { %v2169_v12 = vadd.f32 %v3578_v62, %v4812_v33  ;;  %v3690_v55 = vadd.f32 %v3689_v2, %v3688_v1  ;;  %v4939_v4 = vadd.f32 %v3687_v29, %v2166_v7 }
 0x1cd   : > { %v3579_v32 = vpop.f32.mrb[84].mxu0  ;;  %v4941_v10 = vadd.f32 %v3690_v55, %v2169_v12 }
 0x1ce   : > { %v3580_v5 = vpop.f32.mrb[85].mxu0 }
 0x1cf   : > { %v3581_v15 = vadd.f32 %v3580_v5, %v3579_v32  ;;  %v3582_v16 = vpop.f32.mrb[86].mxu0  ;;  %v3691_v21 = vpop.f32.mrb[84].mxu1 }
 0x1d0   : > { %v3583_v23 = vpop.f32.mrb[87].mxu0  ;;  %v3692_v27 = vpop.f32.mrb[85].mxu1 }
 0x1d1   : > { %v2174_v28 = vadd.f32 %v3581_v15, %v4821_v50  ;;  %v3584_v26 = vadd.f32 %v3583_v23, %v3582_v16  ;;  %v3693_v49 = vadd.f32 %v3692_v27, %v3691_v21  ;;  %v3694_v34 = vpop.f32.mrb[86].mxu1 }
 0x1d2   : > { %v3695_v35 = vpop.f32.mrb[87].mxu1 }
 0x1d3   : > { %v2177_v33 = vadd.f32 %v3584_v26, %v4823_v54  ;;  %v3696_v8 = vadd.f32 %v3695_v35, %v3694_v34  ;;  %v4945_v38 = vadd.f32 %v3693_v49, %v2174_v28 }
 0x1d5   : > { %v3585_v52 = vpop.f32.mrb[88].mxu0  ;;  %v4947_v40 = vadd.f32 %v3696_v8, %v2177_v33 }
 0x1d6   : > { %v3586_v39 = vpop.f32.mrb[89].mxu0 }
 0x1d7   : > { %v3587_v11 = vadd.f32 %v3586_v39, %v3585_v52  ;;  %v3588_v43 = vpop.f32.mrb[90].mxu0  ;;  %v3697_v47 = vpop.f32.mrb[88].mxu1 }
 0x1d8   : > { %v3589_v48 = vpop.f32.mrb[91].mxu0  ;;  %v3698_v61 = vpop.f32.mrb[89].mxu1 }
 0x1d9   : > { %v2182_v50 = vadd.f32 %v3587_v11, %v4829_v6  ;;  %v3590_v57 = vadd.f32 %v3589_v48, %v3588_v43  ;;  %v3699_v7 = vadd.f32 %v3698_v61, %v3697_v47  ;;  %v3700_v62 = vpop.f32.mrb[90].mxu1 }
 0x1da   : > { %v3701_v0 = vpop.f32.mrb[91].mxu1 }
 0x1db   : > { %v2185_v54 = vadd.f32 %v3590_v57, %v4831_v13  ;;  %v3702_v29 = vadd.f32 %v3701_v0, %v3700_v62  ;;  %v4951_v1 = vadd.f32 %v3699_v7, %v2182_v50 }
 0x1dd   : > { %v3591_v12 = vpop.f32.mrb[92].mxu0  ;;  %v4953_v55 = vadd.f32 %v3702_v29, %v2185_v54 }
 0x1de   : > { %v3592_v2 = vpop.f32.mrb[93].mxu0 }
 0x1df   : > { %v3593_v32 = vadd.f32 %v3592_v2, %v3591_v12  ;;  %v3594_v5 = vpop.f32.mrb[94].mxu0  ;;  %v3703_v15 = vpop.f32.mrb[92].mxu1 }
 0x1e0   : > { %v3595_v16 = vpop.f32.mrb[95].mxu0  ;;  %v3704_v23 = vpop.f32.mrb[93].mxu1 }
 0x1e1   : > { %v2190_v6 = vadd.f32 %v3593_v32, %v4840_v31  ;;  %v3596_v21 = vadd.f32 %v3595_v16, %v3594_v5  ;;  %v3705_v28 = vadd.f32 %v3704_v23, %v3703_v15  ;;  %v3706_v26 = vpop.f32.mrb[94].mxu1 }
 0x1e2   : > { %v3707_v27 = vpop.f32.mrb[95].mxu1 }
 0x1e3   : > { %v2193_v13 = vadd.f32 %v3596_v21, %v4842_v36  ;;  %v3708_v49 = vadd.f32 %v3707_v27, %v3706_v26  ;;  %v4957_v34 = vadd.f32 %v3705_v28, %v2190_v6 }
 0x1e5   : > { %v3597_v33 = vpop.f32.mrb[96].mxu0  ;;  %v4959_v8 = vadd.f32 %v3708_v49, %v2193_v13 }
 0x1e6   : > { %v3598_v35 = vpop.f32.mrb[97].mxu0 }
 0x1e7   : > { %v3599_v52 = vadd.f32 %v3598_v35, %v3597_v33  ;;  %v3600_v39 = vpop.f32.mrb[98].mxu0  ;;  %v3709_v11 = vpop.f32.mrb[96].mxu1 }
 0x1e8   : > { %v3601_v43 = vpop.f32.mrb[99].mxu0  ;;  %v3710_v48 = vpop.f32.mrb[97].mxu1 }
 0x1e9   : > { %v2198_v31 = vadd.f32 %v3599_v52, %v4848_v56  ;;  %v3602_v47 = vadd.f32 %v3601_v43, %v3600_v39  ;;  %v3711_v50 = vadd.f32 %v3710_v48, %v3709_v11  ;;  %v3712_v57 = vpop.f32.mrb[98].mxu1 }
 0x1ea   : > { %v3713_v61 = vpop.f32.mrb[99].mxu1 }
 0x1eb   : > { %v2201_v36 = vadd.f32 %v3602_v47, %v4850_v59  ;;  %v3714_v7 = vadd.f32 %v3713_v61, %v3712_v57  ;;  %v4963_v62 = vadd.f32 %v3711_v50, %v2198_v31 }
 0x1ed   : > { %v3603_v54 = vpop.f32.mrb[100].mxu0  ;;  %v4965_v29 = vadd.f32 %v3714_v7, %v2201_v36 }
 0x1ee   : > { %v3604_v0 = vpop.f32.mrb[101].mxu0 }
 0x1ef   : > { %v3605_v12 = vadd.f32 %v3604_v0, %v3603_v54  ;;  %v3606_v2 = vpop.f32.mrb[102].mxu0  ;;  %v3715_v32 = vpop.f32.mrb[100].mxu1 }
 0x1f0   : > { %v3607_v5 = vpop.f32.mrb[103].mxu0  ;;  %v3716_v16 = vpop.f32.mrb[101].mxu1 }
 0x1f1   : > { %v2206_v56 = vadd.f32 %v3605_v12, %v4859_v17  ;;  %v3608_v15 = vadd.f32 %v3607_v5, %v3606_v2  ;;  %v3717_v6 = vadd.f32 %v3716_v16, %v3715_v32  ;;  %v3718_v21 = vpop.f32.mrb[102].mxu1 }
 0x1f2   : > { %v3719_v23 = vpop.f32.mrb[103].mxu1 }
 0x1f3   : > { %v2209_v59 = vadd.f32 %v3608_v15, %v4861_v20  ;;  %v3720_v28 = vadd.f32 %v3719_v23, %v3718_v21  ;;  %v4969_v26 = vadd.f32 %v3717_v6, %v2206_v56 }
 0x1f5   : > { %v3609_v13 = vpop.f32.mrb[104].mxu0  ;;  %v4971_v49 = vadd.f32 %v3720_v28, %v2209_v59 }
 0x1f6   : > { %v3610_v27 = vpop.f32.mrb[105].mxu0 }
 0x1f7   : > { %v3611_v33 = vadd.f32 %v3610_v27, %v3609_v13  ;;  %v3612_v35 = vpop.f32.mrb[106].mxu0  ;;  %v3721_v52 = vpop.f32.mrb[104].mxu1 }
 0x1f8   : > { %v3613_v39 = vpop.f32.mrb[107].mxu0  ;;  %v3722_v43 = vpop.f32.mrb[105].mxu1 }
 0x1f9   : > { %v2214_v17 = vadd.f32 %v3611_v33, %v4867_v41  ;;  %v3614_v11 = vadd.f32 %v3613_v39, %v3612_v35  ;;  %v3723_v31 = vadd.f32 %v3722_v43, %v3721_v52  ;;  %v3724_v47 = vpop.f32.mrb[106].mxu1 }
 0x1fa   : > { %v3725_v48 = vpop.f32.mrb[107].mxu1 }
 0x1fb   : > { %v2217_v20 = vadd.f32 %v3614_v11, %v4869_v44  ;;  %v3726_v50 = vadd.f32 %v3725_v48, %v3724_v47  ;;  %v4975_v57 = vadd.f32 %v3723_v31, %v2214_v17 }
 0x1fd   : > { %v3615_v36 = vpop.f32.mrb[108].mxu0  ;;  %v4977_v7 = vadd.f32 %v3726_v50, %v2217_v20 }
 0x1fe   : > { %v3616_v61 = vpop.f32.mrb[109].mxu0 }
 0x1ff   : > { %v3617_v54 = vadd.f32 %v3616_v61, %v3615_v36  ;;  %v3618_v0 = vpop.f32.mrb[110].mxu0  ;;  %v3727_v12 = vpop.f32.mrb[108].mxu1 }
 0x200   : > { %v3619_v2 = vpop.f32.mrb[111].mxu0  ;;  %v3728_v5 = vpop.f32.mrb[109].mxu1 }
 0x201   : > { %v2222_v41 = vadd.f32 %v3617_v54, %v4878_v3  ;;  %v3620_v32 = vadd.f32 %v3619_v2, %v3618_v0  ;;  %v3729_v56 = vadd.f32 %v3728_v5, %v3727_v12  ;;  %v3730_v15 = vpop.f32.mrb[110].mxu1 }
 0x202   : > { %v3731_v16 = vpop.f32.mrb[111].mxu1 }
 0x203   : > { %v2225_v44 = vadd.f32 %v3620_v32, %v4880_v9  ;;  %v3732_v6 = vadd.f32 %v3731_v16, %v3730_v15  ;;  %v4981_v21 = vadd.f32 %v3729_v56, %v2222_v41 }
 0x205   : > { %v3621_v59 = vpop.f32.mrb[112].mxu0  ;;  %v4983_v28 = vadd.f32 %v3732_v6, %v2225_v44 }
 0x206   : > { %v3622_v23 = vpop.f32.mrb[113].mxu0 }
 0x207   : > { %v3623_v13 = vadd.f32 %v3622_v23, %v3621_v59  ;;  %v3624_v27 = vpop.f32.mrb[114].mxu0  ;;  %v3733_v33 = vpop.f32.mrb[112].mxu1 }
 0x208   : > { %v3625_v35 = vpop.f32.mrb[115].mxu0  ;;  %v3734_v39 = vpop.f32.mrb[113].mxu1 }
 0x209   : > { %v2230_v3 = vadd.f32 %v3623_v13, %v4885_v30  ;;  %v3626_v52 = vadd.f32 %v3625_v35, %v3624_v27  ;;  %v3735_v17 = vadd.f32 %v3734_v39, %v3733_v33  ;;  %v3736_v11 = vpop.f32.mrb[114].mxu1 }
 0x20a   : > { %v3737_v43 = vpop.f32.mrb[115].mxu1 }
 0x20b   : > { %v2233_v9 = vadd.f32 %v3626_v52, %v4887_v37  ;;  %v3738_v31 = vadd.f32 %v3737_v43, %v3736_v11  ;;  %v4987_v47 = vadd.f32 %v3735_v17, %v2230_v3 }
 0x20d   : > { %v3627_v20 = vpop.f32.mrb[116].mxu0  ;;  %v4989_v50 = vadd.f32 %v3738_v31, %v2233_v9 }
 0x20e   : > { %v3628_v48 = vpop.f32.mrb[117].mxu0 }
 0x20f   : > { %v3629_v36 = vadd.f32 %v3628_v48, %v3627_v20  ;;  %v3630_v61 = vpop.f32.mrb[118].mxu0  ;;  %v3739_v54 = vpop.f32.mrb[116].mxu1 }
 0x210   : > { %v3631_v0 = vpop.f32.mrb[119].mxu0  ;;  %v3740_v2 = vpop.f32.mrb[117].mxu1 }
 0x211   : > { %v2238_v30 = vadd.f32 %v3629_v36, %v4894_v60  ;;  %v3632_v12 = vadd.f32 %v3631_v0, %v3630_v61  ;;  %v3741_v41 = vadd.f32 %v3740_v2, %v3739_v54  ;;  %v3742_v32 = vpop.f32.mrb[118].mxu1 }
 0x212   : > { %v3743_v5 = vpop.f32.mrb[119].mxu1 }
 0x213   : > { %v2241_v37 = vadd.f32 %v3632_v12, %v4896_v63  ;;  %v3744_v56 = vadd.f32 %v3743_v5, %v3742_v32  ;;  %v4993_v15 = vadd.f32 %v3741_v41, %v2238_v30 }
 0x215   : > { %v3633_v44 = vpop.f32.mrb[120].mxu0  ;;  %v4995_v6 = vadd.f32 %v3744_v56, %v2241_v37 }
 0x216   : > { %v3634_v16 = vpop.f32.mrb[121].mxu0 }
 0x217   : > { %v3635_v59 = vadd.f32 %v3634_v16, %v3633_v44  ;;  %v3636_v23 = vpop.f32.mrb[122].mxu0  ;;  %v3745_v13 = vpop.f32.mrb[120].mxu1 }
 0x218   : > { %v3637_v27 = vpop.f32.mrb[123].mxu0  ;;  %v3746_v35 = vpop.f32.mrb[121].mxu1 }
 0x219   : > { %v2246_v60 = vadd.f32 %v3635_v59, %v4900_v22  ;;  %v3638_v33 = vadd.f32 %v3637_v27, %v3636_v23  ;;  %v3747_v3 = vadd.f32 %v3746_v35, %v3745_v13  ;;  %v3748_v52 = vpop.f32.mrb[122].mxu1 }
 0x21a   : > { %v3749_v39 = vpop.f32.mrb[123].mxu1 }
 0x21b   : > { %v2249_v63 = vadd.f32 %v3638_v33, %v4902_v25  ;;  %v3750_v17 = vadd.f32 %v3749_v39, %v3748_v52  ;;  %v4999_v11 = vadd.f32 %v3747_v3, %v2246_v60 }
 0x21d   : > { %v3639_v9 = vpop.f32.mrb[124].mxu0  ;;  %v5001_v31 = vadd.f32 %v3750_v17, %v2249_v63 }
 0x21e   : > { %v3640_v43 = vpop.f32.mrb[125].mxu0 }
 0x21f   : > { %v3641_v20 = vadd.f32 %v3640_v43, %v3639_v9  ;;  %v3642_v48 = vpop.f32.mrb[126].mxu0  ;;  %v3751_v36 = vpop.f32.mrb[124].mxu1 }
 0x220   : > { %v3643_v61 = vpop.f32.mrb[127].mxu0  ;;  %v3752_v0 = vpop.f32.mrb[125].mxu1 }
 0x221   : > { %v2254_v22 = vadd.f32 %v3641_v20, %v4909_v51  ;;  %v3644_v54 = vadd.f32 %v3643_v61, %v3642_v48  ;;  %v3753_v30 = vadd.f32 %v3752_v0, %v3751_v36  ;;  %v3754_v12 = vpop.f32.mrb[126].mxu1 }
 0x222   : > { %v3755_v2 = vpop.f32.mrb[127].mxu1 }
 0x223   : > { %v2257_v25 = vadd.f32 %v3644_v54, %v4911_v58  ;;  %v3756_v41 = vadd.f32 %v3755_v2, %v3754_v12  ;;  %v5005_v32 = vadd.f32 %v3753_v30, %v2254_v22 }
 0x225   : > { %v3823_v37 = vpop.f32.mrb[128].mxu0  ;;  %v5008_v44 = vadd.f32 %v3756_v41, %v2257_v25 }
 0x226   : > { %v2464_v5 = vadd.f32 %v3823_v37, %v4921_v46  ;;  %v2455_v56 = vpop.f32.mrb[129].mxu0 }
 0x227   : > { %v2456_v16 = vadd.f32 %v2455_v56, %v4915_v19  ;;  %v3824_v59 = vpop.f32.mrb[130].mxu0 }
 0x228   : > { %v2467_v51 = vadd.f32 %v3824_v59, %v4923_v53  ;;  %v2458_v23 = vpop.f32.mrb[131].mxu0  ;;  %v2584_v27 = vmax.f32 %v2464_v5, 0.0 }
 0x229   : > { %v2459_v13 = vadd.f32 %v2458_v23, %v4917_v24  ;;  %v2582_v60 = vmax.f32 %v2456_v16, 0.0 }
 0x22a   : > { %v2585_v58 = vmax.f32 %v2467_v51, 0.0 }
 0x22b   : > { %v2583_v33 = vmax.f32 %v2459_v13, 0.0 }
 0x22c   : > { %v2615_v35 = vpack.c.bf16 %v2585_v58, %v2584_v27 }
 0x22d   : > { %v2614_v3 = vpack.c.bf16 %v2583_v33, %v2582_v60  ;;  %v3827_v52 = vpop.f32.mrb[132].mxu0 }
 0x22e   : > { %v2480_v46 = vadd.f32 %v3827_v52, %v4933_v42  ;;  %v2471_v63 = vpop.f32.mrb[133].mxu0 }
 0x22f   : > { %v2472_v39 = vadd.f32 %v2471_v63, %v4927_v14  ;;  %v3828_v17 = vpop.f32.mrb[134].mxu0  ;;  %3869 = vmatprep.mubr.bf16.mxu1 %v2614_v3 }
 0x230   : > { %v2483_v19 = vadd.f32 %v3828_v17, %v4935_v45  ;;  %v2474_v53 = vpop.f32.mrb[135].mxu0  ;;  %3870 = vmatmul.mubr.bf16.vlgmr.msra.gmra.mrb[128].mxu1 %v2615_v35  ;;  %v2588_v9 = vmax.f32 %v2480_v46, 0.0 }
 0x231   : > { %v2475_v24 = vadd.f32 %v2474_v53, %v4929_v18  ;;  %v2586_v20 = vmax.f32 %v2472_v39, 0.0 }
 0x232   : > { %v2589_v43 = vmax.f32 %v2483_v19, 0.0 }
 0x233   : > { %v2587_v48 = vmax.f32 %v2475_v24, 0.0 }
 0x234   : > { %v2617_v36 = vpack.c.bf16 %v2589_v43, %v2588_v9 }
 0x235   : > { %v2616_v61 = vpack.c.bf16 %v2587_v48, %v2586_v20  ;;  %v3831_v22 = vpop.f32.mrb[136].mxu0 }
 0x236   : > { %v2496_v42 = vadd.f32 %v3831_v22, %v4945_v38  ;;  %v2487_v54 = vpop.f32.mrb[137].mxu0 }
 0x237   : > { %v2488_v14 = vadd.f32 %v2487_v54, %v4939_v4  ;;  %v3832_v0 = vpop.f32.mrb[138].mxu0  ;;  %3873 = vmatprep.mubr.bf16.mxu1 %v2616_v61 }
 0x238   : > { %v2499_v45 = vadd.f32 %v3832_v0, %v4947_v40  ;;  %v2490_v30 = vpop.f32.mrb[139].mxu0  ;;  %3874 = vmatmul.mubr.bf16.gmra.mrb[132].mxu1 %v2617_v36  ;;  %v2592_v12 = vmax.f32 %v2496_v42, 0.0 }
 0x239   : > { %v2491_v18 = vadd.f32 %v2490_v30, %v4941_v10  ;;  %v2590_v2 = vmax.f32 %v2488_v14, 0.0 }
 0x23a   : > { %v2593_v25 = vmax.f32 %v2499_v45, 0.0 }
 0x23b   : > { %v2591_v41 = vmax.f32 %v2491_v18, 0.0 }
 0x23c   : > { %v2619_v37 = vpack.c.bf16 %v2593_v25, %v2592_v12 }
 0x23d   : > { %v2618_v5 = vpack.c.bf16 %v2591_v41, %v2590_v2  ;;  %v3835_v56 = vpop.f32.mrb[140].mxu0 }
 0x23e   : > { %v2512_v38 = vadd.f32 %v3835_v56, %v4957_v34  ;;  %v2503_v16 = vpop.f32.mrb[141].mxu0 }
 0x23f   : > { %v2504_v4 = vadd.f32 %v2503_v16, %v4951_v1  ;;  %v3836_v59 = vpop.f32.mrb[142].mxu0  ;;  %3877 = vmatprep.mubr.bf16.mxu1 %v2618_v5 }
 0x240   : > { %v2515_v40 = vadd.f32 %v3836_v59, %v4959_v8  ;;  %v2506_v51 = vpop.f32.mrb[143].mxu0  ;;  %3878 = vmatmul.mubr.bf16.gmra.mrb[136].mxu1 %v2619_v37  ;;  %v2596_v23 = vmax.f32 %v2512_v38, 0.0 }
 0x241   : > { %v2507_v10 = vadd.f32 %v2506_v51, %v4953_v55  ;;  %v2594_v27 = vmax.f32 %v2504_v4, 0.0 }
 0x242   : > { %v2597_v13 = vmax.f32 %v2515_v40, 0.0 }
 0x243   : > { %v2595_v58 = vmax.f32 %v2507_v10, 0.0 }
 0x244   : > { %v2621_v60 = vpack.c.bf16 %v2597_v13, %v2596_v23 }
 0x245   : > { %v2620_v33 = vpack.c.bf16 %v2595_v58, %v2594_v27  ;;  %v3839_v35 = vpop.f32.mrb[144].mxu0  ;;  %v2862_v58 = vld [vmem:[%s5046_s11] sm:$0xff] }
 0x246   : > { %v2528_v34 = vadd.f32 %v3839_v35, %v4969_v26  ;;  %v2519_v3 = vpop.f32.mrb[145].mxu0  ;;  %v2865_v35 = vld [vmem:[%s5046_s11 + $0x18] sm:$0xff] }
 0x247   : > { %v2520_v1 = vadd.f32 %v2519_v3, %v4963_v62  ;;  %v3840_v52 = vpop.f32.mrb[146].mxu0  ;;  %3881 = vmatprep.mubr.bf16.mxu1 %v2620_v33 }
 0x248   : > { %v2531_v8 = vadd.f32 %v3840_v52, %v4971_v49  ;;  %v2522_v46 = vpop.f32.mrb[147].mxu0  ;;  %3882 = vmatmul.mubr.bf16.gmra.mrb[140].mxu1 %v2621_v60  ;;  %v2600_v63 = vmax.f32 %v2528_v34, 0.0  ;;  %v2863_v52 = vld [vmem:[%s5046_s11 + $0x8] sm:$0xff] }
 0x249   : > { %v2523_v55 = vadd.f32 %v2522_v46, %v4965_v29  ;;  %v2598_v17 = vmax.f32 %v2520_v1, 0.0 }
 0x24a   : > { %v2601_v39 = vmax.f32 %v2531_v8, 0.0 }
 0x24b   : > { %v2599_v19 = vmax.f32 %v2523_v55, 0.0 }
 0x24c   : > { %v2623_v53 = vpack.c.bf16 %v2601_v39, %v2600_v63 }
 0x24d   : > { %v2622_v24 = vpack.c.bf16 %v2599_v19, %v2598_v17  ;;  %v3843_v9 = vpop.f32.mrb[148].mxu0 }
 0x24e   : > { %v2544_v26 = vadd.f32 %v3843_v9, %v4981_v21  ;;  %v2535_v43 = vpop.f32.mrb[149].mxu0  ;;  %v2868_v9 = vld [vmem:[%s5046_s11 + $0x30] sm:$0xff] }
 0x24f   : > { %v2536_v62 = vadd.f32 %v2535_v43, %v4975_v57  ;;  %v3844_v20 = vpop.f32.mrb[150].mxu0  ;;  %3885 = vmatprep.mubr.bf16.mxu1 %v2622_v24 }
 0x250   : > { %v2547_v49 = vadd.f32 %v3844_v20, %v4983_v28  ;;  %v2538_v48 = vpop.f32.mrb[151].mxu0  ;;  %3886 = vmatmul.mubr.bf16.gmra.mrb[144].mxu1 %v2623_v53  ;;  %v2604_v36 = vmax.f32 %v2544_v26, 0.0 }
 0x251   : > { %v2539_v29 = vadd.f32 %v2538_v48, %v4977_v7  ;;  %v2602_v22 = vmax.f32 %v2536_v62, 0.0  ;;  %v2866_v62 = vld [vmem:[%s5046_s11 + $0x20] sm:$0xff]  ;;  %v2869_v48 = vld [vmem:[%s5046_s11 + $0x38] sm:$0xff] }
 0x252   : > { %v2605_v61 = vmax.f32 %v2547_v49, 0.0 }
 0x253   : > { %v2603_v42 = vmax.f32 %v2539_v29, 0.0 }
 0x254   : > { %v2625_v54 = vpack.c.bf16 %v2605_v61, %v2604_v36 }
 0x255   : > { %v2624_v14 = vpack.c.bf16 %v2603_v42, %v2602_v22  ;;  %v3847_v0 = vpop.f32.mrb[152].mxu0  ;;  %v2867_v22 = vld [vmem:[%s5046_s11 + $0x28] sm:$0xff] }
 0x256   : > { %v2560_v21 = vadd.f32 %v3847_v0, %v4993_v15  ;;  %v2551_v45 = vpop.f32.mrb[153].mxu0 }
 0x257   : > { %v2552_v57 = vadd.f32 %v2551_v45, %v4987_v47  ;;  %v3848_v30 = vpop.f32.mrb[154].mxu0  ;;  %3889 = vmatprep.mubr.bf16.mxu1 %v2624_v14 }
 0x258   : > { %v2563_v28 = vadd.f32 %v3848_v30, %v4995_v6  ;;  %v2554_v18 = vpop.f32.mrb[155].mxu0  ;;  %3890 = vmatmul.mubr.bf16.gmra.mrb[148].mxu1 %v2625_v54  ;;  %v2608_v12 = vmax.f32 %v2560_v21, 0.0 }
 0x259   : > { %v2555_v7 = vadd.f32 %v2554_v18, %v4989_v50  ;;  %v2606_v2 = vmax.f32 %v2552_v57, 0.0  ;;  %v2872_v18 = vld [vmem:[%s5046_s11 + $0x50] sm:$0xff] }
 0x25a   : > { %v2609_v25 = vmax.f32 %v2563_v28, 0.0 }
 0x25b   : > { %v2607_v41 = vmax.f32 %v2555_v7, 0.0 }
 0x25c   : > { %v2627_v37 = vpack.c.bf16 %v2609_v25, %v2608_v12  ;;  %v2870_v25 = vld [vmem:[%s5046_s11 + $0x40] sm:$0xff] }
 0x25d   : > { %v2626_v5 = vpack.c.bf16 %v2607_v41, %v2606_v2  ;;  %v3851_v56 = vpop.f32.mrb[156].mxu0 }
 0x25e   : > { %v2576_v15 = vadd.f32 %v3851_v56, %v5005_v32  ;;  %v2567_v38 = vpop.f32.mrb[157].mxu0  ;;  %v2864_v32 = vld [vmem:[%s5046_s11 + $0x10] sm:$0xff] }
 0x25f   : > { %v2568_v47 = vadd.f32 %v2567_v38, %v4999_v11  ;;  %v3852_v16 = vpop.f32.mrb[158].mxu0  ;;  %3893 = vmatprep.mubr.bf16.mxu1 %v2626_v5  ;;  %v5051_v11 = vld [vmem:[%s5171_s4] ss:$0 sm:$0xff]  ;;  %v2871_v38 = vld [vmem:[%s5046_s11 + $0x48] sm:$0xff] }
 0x260   : > { %v2579_v6 = vadd.f32 %v3852_v16, %v5008_v44  ;;  %v2570_v4 = vpop.f32.mrb[159].mxu0  ;;  %3894 = vmatmul.mubr.bf16.gmra.mrb[152].mxu1 %v2627_v37  ;;  %v2612_v59 = vmax.f32 %v2576_v15, 0.0  ;;  %v2873_v37 = vld [vmem:[%s5046_s11 + $0x58] sm:$0xff] }
 0x261   : > { %v2571_v50 = vadd.f32 %v2570_v4, %v5001_v31  ;;  %v2610_v51 = vmax.f32 %v2568_v47, 0.0 }
 0x262   : > { %v2613_v40 = vmax.f32 %v2579_v6, 0.0 }
 0x263   : > { %v2611_v10 = vmax.f32 %v2571_v50, 0.0 }
 0x264   : > { %v2629_v23 = vpack.c.bf16 %v2613_v40, %v2612_v59 }
 0x265   : > { %v2628_v13 = vpack.c.bf16 %v2611_v10, %v2610_v51 }
 0x267   : > { %3897 = vmatprep.mubr.bf16.mxu1 %v2628_v13 }
 0x268   : > { %3898 = vmatmul.mubr.bf16.gmra.mrb[156].mxu1 %v2629_v23  ;;  %v2876_v23 = vld [vmem:[%s5046_s11 + $0x70] sm:$0xff] }
 0x303   : > { %v3871_v31 = vpop.f32.mrb[128].mxu1 }
 0x304   : > { %v2744_v44 = vadd.f32 %v3871_v31, %v5051_v11  ;;  %v2735_v27 = vpop.f32.mrb[129].mxu1 }
 0x305   : > { %v2736_v60 = vadd.f32 %v5051_v11, %v2735_v27  ;;  %v3872_v33 = vpop.f32.mrb[130].mxu1 }
 0x306   : > { %v2896_v34 = vadd.f32 %v2864_v32, %v2744_v44  ;;  %v2747_v3 = vadd.f32 %v3872_v33, %v5051_v11  ;;  %v2738_v1 = vpop.f32.mrb[131].mxu1  ;;  %v2874_v32 = vld [vmem:[%s5046_s11 + $0x60] sm:$0xff] }
 0x307   : > { %v2894_v8 = vadd.f32 %v2862_v58, %v2736_v60  ;;  %v2739_v46 = vadd.f32 %v5051_v11, %v2738_v1  ;;  %v2877_v58 = vld [vmem:[%s5046_s11 + $0x78] sm:$0xff] }
 0x308   : > { %v2928_v55 = vmax.f32 %v2896_v34, 0.0  ;;  %v2897_v63 = vadd.f32 %v2865_v35, %v2747_v3  ;;  %v2875_v34 = vld [vmem:[%s5046_s11 + $0x68] sm:$0xff] }
 0x309   : > { %v2926_v39 = vmax.f32 %v2894_v8, 0.0  ;;  %v2895_v17 = vadd.f32 %v2863_v52, %v2739_v46 }
 0x30a   : > { %2960 = vst [vmem:[%s5063_s17 + $0x10] sm:$0xff] %v2928_v55  ;;  %v2929_v19 = vmax.f32 %v2897_v63, 0.0 }
 0x30b   : > { %2958 = vst [vmem:[%s5063_s17] sm:$0xff] %v2926_v39  ;;  %v2927_v53 = vmax.f32 %v2895_v17, 0.0  ;;  %v3875_v24 = vpop.f32.mrb[132].mxu1 }
 0x30c   : > { %2961 = vst [vmem:[%s5063_s17 + $0x18] sm:$0xff] %v2929_v19  ;;  %v2760_v26 = vadd.f32 %v3875_v24, %v5051_v11  ;;  %v2751_v43 = vpop.f32.mrb[133].mxu1  ;;  %v2880_v19 = vld [vmem:[%s5046_s11 + $0x90] sm:$0xff] }
 0x30d   : > { %2959 = vst [vmem:[%s5063_s17 + $0x8] sm:$0xff] %v2927_v53  ;;  %v2752_v20 = vadd.f32 %v5051_v11, %v2751_v43  ;;  %v3876_v49 = vpop.f32.mrb[134].mxu1 }
 0x30e   : > { %v2900_v29 = vadd.f32 %v2868_v9, %v2760_v26  ;;  %v2763_v36 = vadd.f32 %v3876_v49, %v5051_v11  ;;  %v2754_v61 = vpop.f32.mrb[135].mxu1  ;;  %v2878_v9 = vld [vmem:[%s5046_s11 + $0x80] sm:$0xff] }
 0x30f   : > { %v2898_v42 = vadd.f32 %v2866_v62, %v2752_v20  ;;  %v2755_v54 = vadd.f32 %v5051_v11, %v2754_v61  ;;  %v2881_v62 = vld [vmem:[%s5046_s11 + $0x98] sm:$0xff] }
 0x310   : > { %v2932_v14 = vmax.f32 %v2900_v29, 0.0  ;;  %v2901_v0 = vadd.f32 %v2869_v48, %v2763_v36  ;;  %v2879_v29 = vld [vmem:[%s5046_s11 + $0x88] sm:$0xff] }
 0x311   : > { %v2930_v21 = vmax.f32 %v2898_v42, 0.0  ;;  %v2899_v45 = vadd.f32 %v2867_v22, %v2755_v54 }
 0x312   : > { %2964 = vst [vmem:[%s5063_s17 + $0x30] sm:$0xff] %v2932_v14  ;;  %v2933_v57 = vmax.f32 %v2901_v0, 0.0 }
 0x313   : > { %2962 = vst [vmem:[%s5063_s17 + $0x20] sm:$0xff] %v2930_v21  ;;  %v2931_v30 = vmax.f32 %v2899_v45, 0.0  ;;  %v3879_v28 = vpop.f32.mrb[136].mxu1 }
 0x314   : > { %2965 = vst [vmem:[%s5063_s17 + $0x38] sm:$0xff] %v2933_v57  ;;  %v2776_v7 = vadd.f32 %v3879_v28, %v5051_v11  ;;  %v2767_v12 = vpop.f32.mrb[137].mxu1  ;;  %v2884_v57 = vld [vmem:[%s5046_s11 + $0xb0] sm:$0xff] }
 0x315   : > { %2963 = vst [vmem:[%s5063_s17 + $0x28] sm:$0xff] %v2931_v30  ;;  %v2768_v2 = vadd.f32 %v5051_v11, %v2767_v12  ;;  %v3880_v41 = vpop.f32.mrb[138].mxu1 }
 0x316   : > { %v2904_v5 = vadd.f32 %v2872_v18, %v2776_v7  ;;  %v2779_v56 = vadd.f32 %v3880_v41, %v5051_v11  ;;  %v2770_v15 = vpop.f32.mrb[139].mxu1  ;;  %v2882_v18 = vld [vmem:[%s5046_s11 + $0xa0] sm:$0xff] }
 0x317   : > { %v2902_v47 = vadd.f32 %v2870_v25, %v2768_v2  ;;  %v2771_v16 = vadd.f32 %v5051_v11, %v2770_v15  ;;  %v2885_v25 = vld [vmem:[%s5046_s11 + $0xb8] sm:$0xff] }
 0x318   : > { %v2936_v6 = vmax.f32 %v2904_v5, 0.0  ;;  %v2905_v4 = vadd.f32 %v2873_v37, %v2779_v56  ;;  %v2883_v5 = vld [vmem:[%s5046_s11 + $0xa8] sm:$0xff] }
 0x319   : > { %v2934_v50 = vmax.f32 %v2902_v47, 0.0  ;;  %v2903_v59 = vadd.f32 %v2871_v38, %v2771_v16 }
 0x31a   : > { %2968 = vst [vmem:[%s5063_s17 + $0x50] sm:$0xff] %v2936_v6  ;;  %v2937_v40 = vmax.f32 %v2905_v4, 0.0 }
 0x31b   : > { %2966 = vst [vmem:[%s5063_s17 + $0x40] sm:$0xff] %v2934_v50  ;;  %v2935_v51 = vmax.f32 %v2903_v59, 0.0  ;;  %v3883_v10 = vpop.f32.mrb[140].mxu1 }
 0x31c   : > { %2969 = vst [vmem:[%s5063_s17 + $0x58] sm:$0xff] %v2937_v40  ;;  %v2792_v13 = vadd.f32 %v3883_v10, %v5051_v11  ;;  %v2783_v31 = vpop.f32.mrb[141].mxu1  ;;  %v2888_v40 = vld [vmem:[%s5046_s11 + $0xd0] sm:$0xff] }
 0x31d   : > { %2967 = vst [vmem:[%s5063_s17 + $0x48] sm:$0xff] %v2935_v51  ;;  %v2784_v44 = vadd.f32 %v5051_v11, %v2783_v31  ;;  %v3884_v27 = vpop.f32.mrb[142].mxu1 }
 0x31e   : > { %v2908_v60 = vadd.f32 %v2876_v23, %v2792_v13  ;;  %v2795_v33 = vadd.f32 %v3884_v27, %v5051_v11  ;;  %v2786_v35 = vpop.f32.mrb[143].mxu1  ;;  %v2886_v23 = vld [vmem:[%s5046_s11 + $0xc0] sm:$0xff] }
 0x31f   : > { %v2906_v3 = vadd.f32 %v2874_v32, %v2784_v44  ;;  %v2787_v1 = vadd.f32 %v5051_v11, %v2786_v35  ;;  %v2889_v32 = vld [vmem:[%s5046_s11 + $0xd8] sm:$0xff] }
 0x320   : > { %v2940_v52 = vmax.f32 %v2908_v60, 0.0  ;;  %v2909_v8 = vadd.f32 %v2877_v58, %v2795_v33  ;;  %v2887_v60 = vld [vmem:[%s5046_s11 + $0xc8] sm:$0xff] }
 0x321   : > { %v2938_v46 = vmax.f32 %v2906_v3, 0.0  ;;  %v2907_v55 = vadd.f32 %v2875_v34, %v2787_v1 }
 0x322   : > { %2972 = vst [vmem:[%s5063_s17 + $0x70] sm:$0xff] %v2940_v52  ;;  %v2941_v63 = vmax.f32 %v2909_v8, 0.0 }
 0x323   : > { %2970 = vst [vmem:[%s5063_s17 + $0x60] sm:$0xff] %v2938_v46  ;;  %v2939_v39 = vmax.f32 %v2907_v55, 0.0  ;;  %v3887_v17 = vpop.f32.mrb[144].mxu1 }
 0x324   : > { %2973 = vst [vmem:[%s5063_s17 + $0x78] sm:$0xff] %v2941_v63  ;;  %v2808_v53 = vadd.f32 %v3887_v17, %v5051_v11  ;;  %v2799_v24 = vpop.f32.mrb[145].mxu1  ;;  %v2892_v63 = vld [vmem:[%s5046_s11 + $0xf0] sm:$0xff] }
 0x325   : > { %2971 = vst [vmem:[%s5063_s17 + $0x68] sm:$0xff] %v2939_v39  ;;  %v2800_v26 = vadd.f32 %v5051_v11, %v2799_v24  ;;  %v3888_v43 = vpop.f32.mrb[146].mxu1 }
 0x326   : > { %v2912_v20 = vadd.f32 %v2880_v19, %v2808_v53  ;;  %v2811_v49 = vadd.f32 %v3888_v43, %v5051_v11  ;;  %v2802_v48 = vpop.f32.mrb[147].mxu1  ;;  %v2890_v19 = vld [vmem:[%s5046_s11 + $0xe0] sm:$0xff] }
 0x327   : > { %v2910_v36 = vadd.f32 %v2878_v9, %v2800_v26  ;;  %v2803_v61 = vadd.f32 %v5051_v11, %v2802_v48  ;;  %v2893_v9 = vld [vmem:[%s5046_s11 + $0xf8] sm:$0xff] }
 0x328   : > { %v2944_v22 = vmax.f32 %v2912_v20, 0.0  ;;  %v2913_v42 = vadd.f32 %v2881_v62, %v2811_v49  ;;  %v2891_v20 = vld [vmem:[%s5046_s11 + $0xe8] sm:$0xff] }
 0x329   : > { %v2942_v54 = vmax.f32 %v2910_v36, 0.0  ;;  %v2911_v14 = vadd.f32 %v2879_v29, %v2803_v61 }
 0x32a   : > { %2976 = vst [vmem:[%s5063_s17 + $0x90] sm:$0xff] %v2944_v22  ;;  %v2945_v0 = vmax.f32 %v2913_v42, 0.0 }
 0x32b   : > { %2974 = vst [vmem:[%s5063_s17 + $0x80] sm:$0xff] %v2942_v54  ;;  %v2943_v21 = vmax.f32 %v2911_v14, 0.0  ;;  %v3891_v45 = vpop.f32.mrb[148].mxu1 }
 0x32c   : > { %2977 = vst [vmem:[%s5063_s17 + $0x98] sm:$0xff] %v2945_v0  ;;  %v2824_v30 = vadd.f32 %v3891_v45, %v5051_v11  ;;  %v2815_v28 = vpop.f32.mrb[149].mxu1 }
 0x32d   : > { %2975 = vst [vmem:[%s5063_s17 + $0x88] sm:$0xff] %v2943_v21  ;;  %v2816_v7 = vadd.f32 %v5051_v11, %v2815_v28  ;;  %v3892_v12 = vpop.f32.mrb[150].mxu1 }
 0x32e   : > { %v2916_v2 = vadd.f32 %v2884_v57, %v2824_v30  ;;  %v2827_v41 = vadd.f32 %v3892_v12, %v5051_v11  ;;  %v2818_v37 = vpop.f32.mrb[151].mxu1 }
 0x32f   : > { %v2914_v56 = vadd.f32 %v2882_v18, %v2816_v7  ;;  %v2819_v15 = vadd.f32 %v5051_v11, %v2818_v37 }
 0x330   : > { %v2948_v38 = vmax.f32 %v2916_v2, 0.0  ;;  %v2917_v47 = vadd.f32 %v2885_v25, %v2827_v41 }
 0x331   : > { %v2946_v16 = vmax.f32 %v2914_v56, 0.0  ;;  %v2915_v6 = vadd.f32 %v2883_v5, %v2819_v15 }
 0x332   : > { %2980 = vst [vmem:[%s5063_s17 + $0xb0] sm:$0xff] %v2948_v38  ;;  %v2949_v4 = vmax.f32 %v2917_v47, 0.0 }
 0x333   : > { %2978 = vst [vmem:[%s5063_s17 + $0xa0] sm:$0xff] %v2946_v16  ;;  %v2947_v50 = vmax.f32 %v2915_v6, 0.0  ;;  %v3895_v59 = vpop.f32.mrb[152].mxu1 }
 0x334   : > { %2981 = vst [vmem:[%s5063_s17 + $0xb8] sm:$0xff] %v2949_v4  ;;  %v2840_v51 = vadd.f32 %v3895_v59, %v5051_v11  ;;  %v2831_v10 = vpop.f32.mrb[153].mxu1 }
 0x335   : > { %2979 = vst [vmem:[%s5063_s17 + $0xa8] sm:$0xff] %v2947_v50  ;;  %v2832_v13 = vadd.f32 %v5051_v11, %v2831_v10  ;;  %v3896_v31 = vpop.f32.mrb[154].mxu1 }
 0x336   : > { %v2920_v44 = vadd.f32 %v2888_v40, %v2840_v51  ;;  %v2843_v27 = vadd.f32 %v3896_v31, %v5051_v11  ;;  %v2834_v58 = vpop.f32.mrb[155].mxu1 }
 0x337   : > { %v2918_v33 = vadd.f32 %v2886_v23, %v2832_v13  ;;  %v2835_v35 = vadd.f32 %v5051_v11, %v2834_v58 }
 0x338   : > { %v2952_v34 = vmax.f32 %v2920_v44, 0.0  ;;  %v2921_v3 = vadd.f32 %v2889_v32, %v2843_v27 }
 0x339   : > { %v2950_v1 = vmax.f32 %v2918_v33, 0.0  ;;  %v2919_v52 = vadd.f32 %v2887_v60, %v2835_v35 }
 0x33a   : > { %2984 = vst [vmem:[%s5063_s17 + $0xd0] sm:$0xff] %v2952_v34  ;;  %v2953_v8 = vmax.f32 %v2921_v3, 0.0 }
 0x33b   : > { %2982 = vst [vmem:[%s5063_s17 + $0xc0] sm:$0xff] %v2950_v1  ;;  %v2951_v46 = vmax.f32 %v2919_v52, 0.0  ;;  %v3899_v55 = vpop.f32.mrb[156].mxu1 }
 0x33c   : > { %2985 = vst [vmem:[%s5063_s17 + $0xd8] sm:$0xff] %v2953_v8  ;;  %v2856_v39 = vadd.f32 %v3899_v55, %v5051_v11  ;;  %v2847_v17 = vpop.f32.mrb[157].mxu1 }
 0x33d   : > { %2983 = vst [vmem:[%s5063_s17 + $0xc8] sm:$0xff] %v2951_v46  ;;  %v2848_v53 = vadd.f32 %v5051_v11, %v2847_v17  ;;  %v3900_v24 = vpop.f32.mrb[158].mxu1 }
 0x33e   : > { %v2924_v26 = vadd.f32 %v2892_v63, %v2856_v39  ;;  %v2859_v43 = vadd.f32 %v3900_v24, %v5051_v11  ;;  %v2850_v62 = vpop.f32.mrb[159].mxu1 }
 0x33f   : > { %v2922_v49 = vadd.f32 %v2890_v19, %v2848_v53  ;;  %v2851_v48 = vadd.f32 %v5051_v11, %v2850_v62 }
 0x340   : > { %v2956_v29 = vmax.f32 %v2924_v26, 0.0  ;;  %v2925_v36 = vadd.f32 %v2893_v9, %v2859_v43 }
 0x341   : > { %v2954_v61 = vmax.f32 %v2922_v49, 0.0  ;;  %v2923_v22 = vadd.f32 %v2891_v20, %v2851_v48 }
 0x342   : > { %2988 = vst [vmem:[%s5063_s17 + $0xf0] sm:$0xff] %v2956_v29  ;;  %v2957_v42 = vmax.f32 %v2925_v36, 0.0 }
 0x343   : > { %2986 = vst [vmem:[%s5063_s17 + $0xe0] sm:$0xff] %v2954_v61  ;;  %v2955_v54 = vmax.f32 %v2923_v22, 0.0 }
 0x344   : > { %2989 = vst [vmem:[%s5063_s17 + $0xf8] sm:$0xff] %v2957_v42 }
 0x345   : > { %2987 = vst [vmem:[%s5063_s17 + $0xe8] sm:$0xff] %v2955_v54 }
 0x346 PF: > { %p16_p8 = scmp.ge.s32.totalorder %s4357_s26, 4   ;;  %s5177_s21 = smov %s4289_s22 }
 0x347   : > { %s5178_s22 = smov %s4293_s23  ;;  %s5179_s23 = smov %s4367_s29 }
 0x348   : > { %s5180_s24 = smov %s4357_s26  ;;  %18 = sbr.rel (!%p16_p8) target bundleno = 3 (0x3), region = 87 }
 0x34f   :  { %3012 = vsyncpa [#allocation3], 1 }
 0x350   :  { %3014 = vsyncpa [#allocation3 + $0x1], 1 }

// kernel: affine_channel_transform.21
= control target key start
LH: loop header
LB: loop body
LE: loop exit
PB: predicated region body
PF: predicated region fallthrough
CT: control target
= control target key end

     0   :  { %11 = vsyncpa [#allocation3], 0  ;;  %s5135_s0 = inlined_call_operand.hbm [shape: bf16[512,1152], index: 0, kind: input, shape index: {}]   ;;  %s5136_s1 = inlined_call_operand.vmem [shape: bf16[1152,128], index: 1, kind: input, shape index: {}]   ;;  %s5137_s2 = inlined_call_operand.vmem [shape: f32[1,128], index: 2, kind: input, shape index: {}]   ;;  %s5138_s3 = inlined_call_operand.vmem [shape: bf16[128,128], index: 3, kind: input, shape index: {}]   ;;  %s5139_s4 = inlined_call_operand.vmem [shape: f32[1,128], index: 4, kind: input, shape index: {}]   ;;  %s5140_s5 = inlined_call_operand.vmem [shape: f32[512,128], index: 5, kind: input, shape index: {}]   ;;  %s5141_s6 = inlined_call_operand.vmem [shape: f32[512,128], index: 6, kind: output, shape index: {}]  }
   0x1   :  { %13 = vsyncpa [#allocation3 + $0x1], 0  ;;  %s4305_s21 = smov 0   ;;  %s4307_s22 = smov 0  }
   0x2   :  { %s4309_s23 = smov 0   ;;  %s4311_s24 = smov 0  }
   0x3 LB: > { %s3037_s25 = sadd.s32 4294967295, %s4265_s24   ;;  %s4325_s26 = sadd.s32 1, %s4265_s24   ;;  %s4265_s24 = sphi %s4311_s24, %s5148_s24   ;;  %s4261_s23 = sphi %s4309_s23, %s5147_s23   ;;  %s4257_s22 = sphi %s4307_s22, %s5146_s22   ;;  %s4253_s21 = sphi %s4305_s21, %s5145_s21  }
   0x4   : > { %s23_s27 = ssub.s32 %s4265_s24, %s4325_s26  ;;  %s26_s28 = sadd.s32 1, %s4261_s23 }
   0x5   : > { %p24_p0 = scmp.eq.s32.totalorder %s23_s27, 0  ;;  %p33_p1 = scmp.ne.s32.totalorder %s4261_s23, %s4257_s22 }
   0x6   : > { %p34_p2 = scmp.eq.s32.totalorder %s4265_s24, 0  ;;  %p39_p3 = scmp.ne.s32.totalorder %s4257_s22, %s4253_s21 }
   0x7   : > { %s4335_s29 = scalar_select %p24_p0, %s4261_s23, %s26_s28  }
   0x8   : > { %p35_p4 = por %p34_p2, %p33_p1  ;;  %p40_p5 = scmp.eq.s32.totalorder %s3037_s25, 0 }
   0x9   : > { %p3878_p6 = scmp.lt.s32.totalorder %s4265_s24, 2  ;;  %s211_s7 = sand.u32 1, %s4261_s23  }
   0xa   : > { %p4340_p7 = por %p40_p5, %p39_p3  ;;  %s3869_s8 = smul.u32 1152, %s211_s7 }
   0xb   : > { %s3870_s9 = smul.u32 18432, %s4265_s24  ;;  %p4346_p8 = pnand %p3878_p6, %p35_p4 }
   0xc   : > { %s215_s14 = scalar_lea.vmem [#allocation2], %s3869_s8  ;;  %s4358_s16 = scalar_lea.sflag [#allocation3], %s211_s7 }
   0xd   : > { %s4353_s13 = scalar_lea.hbm %s5135_s0, %s3870_s9  ;;  %s223_s15 = sshll.u32 %s215_s14, 4  ;;  %s4355_s15 = int_to_ptr.vmem [resolvable:$true] %s223_s15 }
   0xe   : > { %s4201_s17 = scalar_lea.hbm %s4353_s13, 18432  ;;  %p4203_p11 = pneg %p4346_p8 }
   0xf   : > { %p4202_p10 = scmp.ne.s32.totalorder %s4353_s13, %s4201_s17  ;;  %s4206_s20 = scalar_lea.hbm %s5135_s0, 36864 }
  0x10   : > { %p4207_p0 = scmp.lt.u32.totalorder %s4353_s13, %s5135_s0  ;;  %p4208_p1 = scmp.lt.u32.totalorder %s4206_s20, %s4201_s17 }
  0x11   : > { %p4204_p12 = pnand %p4203_p11, %p4202_p10  ;;  %p4210_p3 = scmp.lt.u32.totalorder %s4201_s17, %s4353_s13 }
  0x12   : > { %p4209_p2 = por %p4208_p1, %p4207_p0 }
  0x13   : > { %p4205_p13 = pneg %p4204_p12 }
  0x14   : > { %p4211_p4 = por %p4210_p3, %p4209_p2 }
  0x16   : > { %p4212_p5 = pnand %p4211_p4, %p4205_p13 }
  0x18   : > { %4215 = shalt.err (!%p4212_p5)
}
  0x19   : > { %s4216_s28 = scalar_lea.vmem %s4355_s15, 18432  ;;  %s4267_s7 = smov [#allocation2]  }
  0x1a   : > { %p4217_p6 = scmp.ne.s32.totalorder %s4355_s15, %s4216_s28  ;;  %s4221_s8 = sshll.u32 %s4267_s7, 4  ;;  %s4222_s8 = int_to_ptr.vmem [resolvable:$false] %s4221_s8 }
  0x1b   : > { %s4223_s9 = scalar_lea.vmem %s4222_s8, 36864  ;;  %p4224_p9 = scmp.lt.s32.totalorder %s4355_s15, %s4222_s8 }
  0x1c   : > { %p4219_p10 = pnand %p4217_p6, %p4203_p11  ;;  %p4225_p0 = scmp.lt.s32.totalorder %s4223_s9, %s4216_s28 }
  0x1e   : > { %p4220_p12 = pneg %p4219_p10  ;;  %p4226_p1 = por %p4225_p0, %p4224_p9 }
  0x20   : > { %p4227_p2 = pnand %p4226_p1, %p4220_p12 }
  0x22   : > { %4230 = shalt.err (!%p4227_p2)
}
  0x23   : > { %s4268_s11 = smov 576   ;;  %s4269_s12 = smov 36  }
  0x24   : > { %3877 = dma.hbm_to_vmem [thread:$0]  (!%p4346_p8), %s4353_s13, 18432, %s4355_s15, %s4358_s16, %s4268_s11, %s4268_s11, %s4269_s12  }
  0x25   : > { %p240_p11 = scmp.lt.s32.totalorder %s4265_s24, 3  ;;  %p5144_p13 = scmp.ge.s32.totalorder %s4265_s24, 1 }
  0x27   : > { %p241_p3 = pnand %p5144_p13, %p240_p11 }
  0x28   : > { %s246_s14 = sand.u32 (!%p241_p3), 1, %s4257_s22  }
  0x29   : > { %244 = sbr.rel (%p241_p3) target bundleno = 836 (0x344), region = 44  ;;  %s247_s18 = scalar_lea.sflag (!%p241_p3), [#allocation3], %s246_s14 }
  0x2a   : > { %s3871_s17 = smul.u32 (!%p241_p3), 1152, %s246_s14 }
  0x2c   : > { %s4390_s19 = scalar_lea.vmem (!%p241_p3), [#allocation2], %s3871_s17 }
  0x30   : > { %4248 = dma.done.wait (%p4340_p7), %s247_s18, 18432  }
  0x31   : > { %4250 = vsyncadd (%p4340_p7), %s247_s18, 4294948864  ;;  %v3913_v0 = vld [vmem:[%s5136_s1 + $0x40] sm:$0xff]   ;;  %v3917_v4 = vld [vmem:[%s5136_s1 + $0x48] sm:$0xff]   ;;  %s3045_s30 = sshll.u32 %s3037_s25, 5 }
  0x32   : > { %v3914_v1 = vld [vmem:[%s5136_s1] sm:$0xff]   ;;  %3277 = vmatprep.subr.bf16.mxu0 %v3913_v0  ;;  %v3918_v5 = vld [vmem:[%s5136_s1 + $0x8] sm:$0xff]   ;;  %v3921_v8 = vld [vmem:[%s5136_s1 + $0x50] sm:$0xff]   ;;  %p286_p7 = scmp.lt.s32.totalorder %s3045_s30, 63 }
  0x33   : > { %v3915_v2 = vld [vmem:[%s5136_s1 + $0xc0] sm:$0xff]   ;;  %3278 = vmatpush3.bf16.msra.mxu0 %v3914_v1  ;;  %v3919_v6 = vld [vmem:[%s5136_s1 + $0xc8] sm:$0xff]   ;;  %v3922_v9 = vld [vmem:[%s5136_s1 + $0x10] sm:$0xff]  }
  0x34   : > { %v3916_v3 = vld [vmem:[%s5136_s1 + $0x80] sm:$0xff]   ;;  %3389 = vmatprep.subr.bf16.mxu1 %v3915_v2  ;;  %3279 = vmatprep.subr.bf16.mxu0 %v3917_v4  ;;  %v3920_v7 = vld [vmem:[%s5136_s1 + $0x88] sm:$0xff]   ;;  %v3923_v10 = vld [vmem:[%s5136_s1 + $0xd0] sm:$0xff]   ;;  %s5150_s30 = smov (!%p286_p7, %s3045_s30), 63 }
  0x35   : > { %3390 = vmatpush3.bf16.msra.mxu1 %v3916_v3  ;;  %v3924_v11 = vld [vmem:[%s5136_s1 + $0x90] sm:$0xff]   ;;  %v3925_v12 = vld [vmem:[%s5136_s1 + $0x58] sm:$0xff]   ;;  %v3929_v16 = vld [vmem:[%s5136_s1 + $0x60] sm:$0xff]   ;;  %s3046_s7 = sshll.u32 %s5150_s30, 3 }
  0x36   : > { %3391 = vmatprep.subr.bf16.mxu1 %v3919_v6  ;;  %v3926_v13 = vld [vmem:[%s5136_s1 + $0x18] sm:$0xff]   ;;  %v3930_v17 = vld [vmem:[%s5136_s1 + $0x20] sm:$0xff]   ;;  %v3933_v20 = vld [vmem:[%s5136_s1 + $0x68] sm:$0xff]   ;;  %s5014_s11 = scalar_lea.vmem %s5140_s5, %s3046_s7  ;;  %s5027_s17 = scalar_lea.vmem %s5141_s6, %s3046_s7 }
  0x37   : > { %3280 = vmatpush3.bf16.msra.mxu0 %v3918_v5  ;;  %v3927_v14 = vld [vmem:[%s5136_s1 + $0xd8] sm:$0xff]   ;;  %v3931_v18 = vld [vmem:[%s5136_s1 + $0xe0] sm:$0xff]   ;;  %v3934_v21 = vld [vmem:[%s5136_s1 + $0x28] sm:$0xff]  }
  0x38   : > { %3281 = vmatprep.subr.bf16.mxu0 %v3921_v8  ;;  %v3928_v15 = vld [vmem:[%s5136_s1 + $0x98] sm:$0xff]   ;;  %v3932_v19 = vld [vmem:[%s5136_s1 + $0xa0] sm:$0xff]   ;;  %v3935_v22 = vld [vmem:[%s5136_s1 + $0xe8] sm:$0xff]  }
  0x39   : > { %3392 = vmatpush3.bf16.msra.mxu1 %v3920_v7  ;;  %v3936_v23 = vld [vmem:[%s5136_s1 + $0xa8] sm:$0xff]   ;;  %v3937_v24 = vld [vmem:[%s5136_s1 + $0x70] sm:$0xff]   ;;  %v3941_v28 = vld [vmem:[%s5136_s1 + $0x78] sm:$0xff]  }
  0x3a   : > { %3393 = vmatprep.subr.bf16.mxu1 %v3923_v10  ;;  %v3938_v25 = vld [vmem:[%s5136_s1 + $0x30] sm:$0xff]   ;;  %v3942_v29 = vld [vmem:[%s5136_s1 + $0x38] sm:$0xff]   ;;  %v3944_v31 = vld [vmem:[%s4390_s19] ss:$36 sps:$4 sm:$0xff]  }
  0x3b   : > { %3282 = vmatpush3.bf16.msra.mxu0 %v3922_v9  ;;  %v3939_v26 = vld [vmem:[%s5136_s1 + $0xf0] sm:$0xff]   ;;  %v3943_v30 = vld [vmem:[%s5136_s1 + $0xf8] sm:$0xff]   ;;  %v3946_v32 = vld [vmem:[%s4390_s19 + $0x4] ss:$36 sps:$4 sm:$0xff]  }
  0x3c   : > { %3283 = vmatprep.subr.bf16.mxu0 %v3925_v12  ;;  %v3940_v27 = vld [vmem:[%s5136_s1 + $0xb0] sm:$0xff]   ;;  %v3947_v33 = vld [vmem:[%s5136_s1 + $0xb8] sm:$0xff]   ;;  %1809 = vmatprep.mubr.bf16.mxu0 %v3946_v32  ;;  %v3948_v34 = vld [vmem:[%s5136_s1 + $0x140] sm:$0xff]  }
  0x3d   : > { %3394 = vmatpush3.bf16.msra.mxu1 %v3924_v11  ;;  %v3949_v35 = vld [vmem:[%s4390_s19 + $0x8] ss:$36 sps:$4 sm:$0xff]   ;;  %v3952_v37 = vld [vmem:[%s5136_s1 + $0x100] sm:$0xff]   ;;  %v3956_v39 = vld [vmem:[%s4390_s19 + $0x54] ss:$36 sps:$4 sm:$0xff]  }
  0x3e   : > { %3395 = vmatprep.subr.bf16.mxu1 %v3927_v14  ;;  %v3951_v36 = vld [vmem:[%s4390_s19 + $0xc] ss:$36 sps:$4 sm:$0xff]   ;;  %v3959_v41 = vld [vmem:[%s4390_s19 + $0x94] ss:$36 sps:$4 sm:$0xff]   ;;  %v3963_v44 = vld [vmem:[%s4390_s19 + $0x9c] ss:$36 sps:$4 sm:$0xff]  }
  0x3f   : > { %3284 = vmatpush3.bf16.msra.mxu0 %v3926_v13  ;;  %1970 = vmatprep.mubr.bf16.mxu1 %v3951_v36  ;;  %v3953_v38 = vld [vmem:[%s4390_s19 + $0x4c] ss:$36 sps:$4 sm:$0xff]   ;;  %v3967_v47 = vld [vmem:[%s4390_s19 + $0xdc] ss:$36 sps:$4 sm:$0xff]   ;;  %v3970_v51 = vld [vmem:[%s4390_s19 + $0xe4] ss:$36 sps:$4 sm:$0xff]  }
  0x40   : > { %3285 = vmatprep.subr.bf16.mxu0 %v3929_v16  ;;  %v3955_v40 = vld [vmem:[%s4390_s19 + $0x48] ss:$36 sps:$4 sm:$0xff]   ;;  %v3958_v43 = vld [vmem:[%s4390_s19 + $0x50] ss:$36 sps:$4 sm:$0xff]   ;;  %v3966_v49 = vld [vmem:[%s4390_s19 + $0x98] ss:$36 sps:$4 sm:$0xff]  }
  0x41   : > { %3396 = vmatpush3.bf16.msra.mxu1 %v3928_v15  ;;  %v3962_v42 = vld [vmem:[%s5136_s1 + $0x148] sm:$0xff]   ;;  %v3961_v46 = vld [vmem:[%s4390_s19 + $0x90] ss:$36 sps:$4 sm:$0xff]   ;;  %v3969_v52 = vld [vmem:[%s4390_s19 + $0xd8] ss:$36 sps:$4 sm:$0xff]  }
  0x42   : > { %3397 = vmatprep.subr.bf16.mxu1 %v3931_v18  ;;  %v3965_v45 = vld [vmem:[%s5136_s1 + $0x108] sm:$0xff]   ;;  %v3976_v48 = vld [vmem:[%s5136_s1 + $0x150] sm:$0xff]   ;;  %v3990_v54 = vld [vmem:[%s5136_s1 + $0x158] sm:$0xff]  }
  0x43   : > { %3286 = vmatpush3.bf16.msra.mxu0 %v3930_v17  ;;  %v3979_v50 = vld [vmem:[%s5136_s1 + $0x110] sm:$0xff]   ;;  %v3973_v53 = vld [vmem:[%s4390_s19 + $0x124] ss:$36 sps:$4 sm:$0xff]   ;;  %v3993_v56 = vld [vmem:[%s5136_s1 + $0x118] sm:$0xff]  }
  0x44   : > { %3287 = vmatprep.subr.bf16.mxu0 %v3933_v20  ;;  %v3972_v55 = vld [vmem:[%s4390_s19 + $0xe0] ss:$36 sps:$4 sm:$0xff]   ;;  %v3977_v57 = vld [vmem:[%s4390_s19 + $0x12c] ss:$36 sps:$4 sm:$0xff]   ;;  %v3984_v0 = vld [vmem:[%s4390_s19 + $0x174] ss:$36 sps:$4 sm:$0xff]  }
  0x45   : > { %3398 = vmatpush3.bf16.msra.mxu1 %v3932_v19  ;;  %v3975_v58 = vld [vmem:[%s4390_s19 + $0x120] ss:$36 sps:$4 sm:$0xff]   ;;  %v3981_v61 = vld [vmem:[%s4390_s19 + $0x16c] ss:$36 sps:$4 sm:$0xff]   ;;  %v3987_v3 = vld [vmem:[%s4390_s19 + $0x1b4] ss:$36 sps:$4 sm:$0xff]  }
  0x46   : > { %3399 = vmatprep.subr.bf16.mxu1 %v3935_v22  ;;  %v4001_v59 = vld [vmem:[%s5136_s1 + $0x1c0] sm:$0xff]   ;;  %v3980_v63 = vld [vmem:[%s4390_s19 + $0x128] ss:$36 sps:$4 sm:$0xff]   ;;  %v3986_v6 = vld [vmem:[%s4390_s19 + $0x170] ss:$36 sps:$4 sm:$0xff]  }
  0x47   : > { %3288 = vmatpush3.bf16.msra.mxu0 %v3934_v21  ;;  %v4002_v60 = vld [vmem:[%s5136_s1 + $0x180] sm:$0xff]   ;;  %v3983_v2 = vld [vmem:[%s4390_s19 + $0x168] ss:$36 sps:$4 sm:$0xff]   ;;  %v3989_v10 = vld [vmem:[%s4390_s19 + $0x1b0] ss:$36 sps:$4 sm:$0xff]  }
  0x48   : > { %3289 = vmatprep.subr.bf16.mxu0 %v3937_v24  ;;  %v4006_v62 = vld [vmem:[%s5136_s1 + $0x160] sm:$0xff]   ;;  %v4017_v4 = vld [vmem:[%s5136_s1 + $0x1c8] sm:$0xff]   ;;  %v4033_v12 = vld [vmem:[%s5136_s1 + $0x1d0] sm:$0xff]  }
  0x49   : > { %3400 = vmatpush3.bf16.msra.mxu1 %v3936_v23  ;;  %v4009_v1 = vld [vmem:[%s5136_s1 + $0x120] sm:$0xff]   ;;  %v4018_v5 = vld [vmem:[%s5136_s1 + $0x188] sm:$0xff]   ;;  %v4034_v13 = vld [vmem:[%s5136_s1 + $0x190] sm:$0xff]  }
  0x4a   : > { %3401 = vmatprep.subr.bf16.mxu1 %v3939_v26  ;;  %v4022_v7 = vld [vmem:[%s5136_s1 + $0x168] sm:$0xff]   ;;  %v3991_v8 = vld [vmem:[%s4390_s19 + $0x1bc] ss:$36 sps:$4 sm:$0xff]   ;;  %v4038_v16 = vld [vmem:[%s5136_s1 + $0x170] sm:$0xff]  }
  0x4b   : > { %3290 = vmatpush3.bf16.msra.mxu0 %v3938_v25  ;;  %v4025_v9 = vld [vmem:[%s5136_s1 + $0x128] sm:$0xff]   ;;  %v3995_v11 = vld [vmem:[%s4390_s19 + $0x1fc] ss:$36 sps:$4 sm:$0xff]   ;;  %v4041_v17 = vld [vmem:[%s5136_s1 + $0x130] sm:$0xff]  }
  0x4c   : > { %3291 = vmatprep.subr.bf16.mxu0 %v3941_v28  ;;  %v3994_v14 = vld [vmem:[%s4390_s19 + $0x1b8] ss:$36 sps:$4 sm:$0xff]   ;;  %v3998_v15 = vld [vmem:[%s4390_s19 + $0x204] ss:$36 sps:$4 sm:$0xff]   ;;  %v4007_v21 = vld [vmem:[%s4390_s19 + $0x24c] ss:$36 sps:$4 sm:$0xff]  }
  0x4d   : > { %3402 = vmatpush3.bf16.msra.mxu1 %v3940_v27  ;;  %v3997_v18 = vld [vmem:[%s4390_s19 + $0x1f8] ss:$36 sps:$4 sm:$0xff]   ;;  %v4000_v19 = vld [vmem:[%s4390_s19 + $0x200] ss:$36 sps:$4 sm:$0xff]   ;;  %v4011_v26 = vld [vmem:[%s4390_s19 + $0x28c] ss:$36 sps:$4 sm:$0xff]  }
  0x4e   : > { %3403 = vmatprep.subr.bf16.mxu1 %v3943_v30  ;;  %v4003_v20 = vld [vmem:[%s4390_s19 + $0x244] ss:$36 sps:$4 sm:$0xff]   ;;  %v4049_v22 = vld [vmem:[%s5136_s1 + $0x1d8] sm:$0xff]   ;;  %v4069_v36 = vld [vmem:[%s5136_s1 + $0x1f0] sm:$0xff]  }
  0x4f   : > { %3292 = vmatpush3.bf16.msra.mxu0 %v3942_v29  ;;  %v4050_v23 = vld [vmem:[%s5136_s1 + $0x198] sm:$0xff]   ;;  %v4005_v25 = vld [vmem:[%s4390_s19 + $0x240] ss:$36 sps:$4 sm:$0xff]   ;;  %v4010_v28 = vld [vmem:[%s4390_s19 + $0x248] ss:$36 sps:$4 sm:$0xff]  }
  0x50   : > { %3501 = vmatprep.subr.bf16.mxu0 %v3948_v34  ;;  %v4054_v24 = vld [vmem:[%s5136_s1 + $0x178] sm:$0xff]   ;;  %v4059_v29 = vld [vmem:[%s5136_s1 + $0x1e0] sm:$0xff]   ;;  %v4013_v34 = vld [vmem:[%s4390_s19 + $0x288] ss:$36 sps:$4 sm:$0xff]  }
  0x51   : > { %3404 = vmatpush3.bf16.msra.mxu1 %v3947_v33  ;;  %v4057_v27 = vld [vmem:[%s5136_s1 + $0x138] sm:$0xff]   ;;  %v4060_v30 = vld [vmem:[%s5136_s1 + $0x1a0] sm:$0xff]   ;;  %v4064_v33 = vld [vmem:[%s5136_s1 + $0x1a8] sm:$0xff]  }
  0x52   : > { %1810 = vmatmul.mubr.bf16.vlgmr.msra.gmra.mrb[0].mxu0 %v3944_v31  ;;  %3613 = vmatprep.subr.bf16.mxu1 %v4001_v59  ;;  %v4061_v31 = vld [vmem:[%s5136_s1 + $0x1e8] sm:$0xff]   ;;  %v4014_v32 = vld [vmem:[%s4390_s19 + $0x294] ss:$36 sps:$4 sm:$0xff]  }
  0x53   : > { %3502 = vmatpush3.bf16.msra.mxu0 %v3952_v37  ;;  %1817 = vmatprep.mubr.bf16.mxu0 %v3953_v38  ;;  %v4070_v37 = vld [vmem:[%s5136_s1 + $0x1b0] sm:$0xff]   ;;  %v4071_v38 = vld [vmem:[%s5136_s1 + $0x1f8] sm:$0xff]  }
  0x54   : > { %1971 = vmatmul.mubr.bf16.vlgmr.msra.gmra.mrb[0].mxu1 %v3949_v35  ;;  %3503 = vmatprep.subr.bf16.mxu0 %v3962_v42  ;;  %v4019_v35 = vld [vmem:[%s4390_s19 + $0x2d4] ss:$36 sps:$4 sm:$0xff]   ;;  %v4076_v42 = vld [vmem:[%s5136_s1 + $0x200] sm:$0xff]  }
  0x55   : > { %1978 = vmatprep.mubr.bf16.mxu1 %v3956_v39  ;;  %3614 = vmatpush3.bf16.msra.mxu1 %v4002_v60  ;;  %v4016_v39 = vld [vmem:[%s4390_s19 + $0x290] ss:$36 sps:$4 sm:$0xff]   ;;  %v4062_v60 = vld [vmem:[%s4390_s19 + $0x43c] ss:$36 sps:$4 sm:$0xff]  }
  0x56   : > { %3615 = vmatprep.subr.bf16.mxu1 %v4017_v4  ;;  %v4053_v59 = vld [vmem:[%s4390_s19 + $0x3f0] ss:$36 sps:$4 sm:$0xff]   ;;  %v4080_v4 = vld [vmem:[%s4390_s19 + $0x5c] ss:$36 sps:$4 sm:$0xff]  }
  0x57   : > { %3504 = vmatpush3.bf16.msra.mxu0 %v3965_v45  ;;  %v4026_v45 = vld [vmem:[%s4390_s19 + $0x2d8] ss:$36 sps:$4 sm:$0xff]  }
  0x58   : > { %3505 = vmatprep.subr.bf16.mxu0 %v3976_v48  ;;  %v4035_v48 = vld [vmem:[%s4390_s19 + $0x364] ss:$36 sps:$4 sm:$0xff]  }
  0x59   : > { %3616 = vmatpush3.bf16.msra.mxu1 %v4018_v5  ;;  %v4077_v5 = vld [vmem:[%s4390_s19 + $0x18] ss:$36 sps:$4 sm:$0xff]  }
  0x5a   : > { %1818 = vmatmul.mubr.bf16.gmra.mrb[4].mxu0 %v3955_v40  ;;  %3617 = vmatprep.subr.bf16.mxu1 %v4033_v12  ;;  %v4023_v40 = vld [vmem:[%s4390_s19 + $0x2dc] ss:$36 sps:$4 sm:$0xff]  }
  0x5b   : > { %1825 = vmatprep.mubr.bf16.mxu0 %v3959_v41  ;;  %3506 = vmatpush3.bf16.msra.mxu0 %v3979_v50  ;;  %v4075_v41 = vld [vmem:[%s5136_s1 + $0x1b8] sm:$0xff]   ;;  %v4039_v50 = vld [vmem:[%s4390_s19 + $0x36c] ss:$36 sps:$4 sm:$0xff]  }
  0x5c   : > { %1979 = vmatmul.mubr.bf16.gmra.mrb[4].mxu1 %v3958_v43  ;;  %3507 = vmatprep.subr.bf16.mxu0 %v3990_v54  ;;  %v4021_v43 = vld [vmem:[%s4390_s19 + $0x2d0] ss:$36 sps:$4 sm:$0xff]   ;;  %v4115_v12 = vld [vmem:[%s5136_s1 + $0x218] sm:$0xff]  }
  0x5d   : > { %1986 = vmatprep.mubr.bf16.mxu1 %v3963_v44  ;;  %3618 = vmatpush3.bf16.msra.mxu1 %v4034_v13  ;;  %v4027_v44 = vld [vmem:[%s4390_s19 + $0x31c] ss:$36 sps:$4 sm:$0xff]   ;;  %v4046_v54 = vld [vmem:[%s4390_s19 + $0x3b4] ss:$36 sps:$4 sm:$0xff]   ;;  %v4090_v13 = vld [vmem:[%s4390_s19 + $0xac] ss:$36 sps:$4 sm:$0xff]  }
  0x5e   : > { %3619 = vmatprep.subr.bf16.mxu1 %v4049_v22  ;;  %v4099_v22 = vld [vmem:[%s4390_s19 + $0x134] ss:$36 sps:$4 sm:$0xff]  }
  0x5f   : > { %3508 = vmatpush3.bf16.msra.mxu0 %v3993_v56  ;;  %v4051_v56 = vld [vmem:[%s4390_s19 + $0x3f4] ss:$36 sps:$4 sm:$0xff]  }
  0x60   : > { %3509 = vmatprep.subr.bf16.mxu0 %v4006_v62  ;;  %v4066_v62 = vld [vmem:[%s4390_s19 + $0x444] ss:$36 sps:$4 sm:$0xff]  }
  0x61   : > { %3620 = vmatpush3.bf16.msra.mxu1 %v4050_v23  ;;  %v4167_v23 = vld [vmem:[%s5136_s1 + $0x238] sm:$0xff]  }
  0x62   : > { %1826 = vmatmul.mubr.bf16.gmra.mrb[8].mxu0 %v3961_v46  ;;  %3621 = vmatprep.subr.bf16.mxu1 %v4059_v29  ;;  %v4030_v46 = vld [vmem:[%s4390_s19 + $0x324] ss:$36 sps:$4 sm:$0xff]  }
  0x63   : > { %1833 = vmatprep.mubr.bf16.mxu0 %v3967_v47  ;;  %3510 = vmatpush3.bf16.msra.mxu0 %v4009_v1  ;;  %v4029_v47 = vld [vmem:[%s4390_s19 + $0x318] ss:$36 sps:$4 sm:$0xff]   ;;  %v4068_v1 = vld [vmem:[%s4390_s19 + $0x440] ss:$36 sps:$4 sm:$0xff]  }
  0x64   : > { %1987 = vmatmul.mubr.bf16.gmra.mrb[8].mxu1 %v3966_v49  ;;  %3511 = vmatprep.subr.bf16.mxu0 %v4022_v7  ;;  %v4032_v49 = vld [vmem:[%s4390_s19 + $0x320] ss:$36 sps:$4 sm:$0xff]  }
  0x65   : > { %1994 = vmatprep.mubr.bf16.mxu1 %v3970_v51  ;;  %3622 = vmatpush3.bf16.msra.mxu1 %v4060_v30  ;;  %v4037_v51 = vld [vmem:[%s4390_s19 + $0x360] ss:$36 sps:$4 sm:$0xff]   ;;  %v4108_v30 = vld [vmem:[%s4390_s19 + $0x178] ss:$36 sps:$4 sm:$0xff]  }
  0x66   : > { %3623 = vmatprep.subr.bf16.mxu1 %v4061_v31  ;;  %v4083_v7 = vld [vmem:[%s4390_s19 + $0x64] ss:$36 sps:$4 sm:$0xff]  }
  0x67   : > { %3512 = vmatpush3.bf16.msra.mxu0 %v4025_v9  ;;  %v4082_v9 = vld [vmem:[%s4390_s19 + $0x58] ss:$36 sps:$4 sm:$0xff]   ;;  %v4109_v29 = vld [vmem:[%s4390_s19 + $0x184] ss:$36 sps:$4 sm:$0xff]  }
  0x68   : > { %3513 = vmatprep.subr.bf16.mxu0 %v4038_v16  ;;  %v4093_v16 = vld [vmem:[%s4390_s19 + $0xec] ss:$36 sps:$4 sm:$0xff]   ;;  %v4112_v31 = vld [vmem:[%s4390_s19 + $0x1c4] ss:$36 sps:$4 sm:$0xff]  }
  0x69   : > { %3624 = vmatpush3.bf16.msra.mxu1 %v4064_v33  ;;  %v4116_v33 = vld [vmem:[%s4390_s19 + $0x1cc] ss:$36 sps:$4 sm:$0xff]  }
  0x6a   : > { %1834 = vmatmul.mubr.bf16.gmra.mrb[12].mxu0 %v3969_v52  ;;  %3625 = vmatprep.subr.bf16.mxu1 %v4069_v36  ;;  %v4043_v52 = vld [vmem:[%s4390_s19 + $0x3ac] ss:$36 sps:$4 sm:$0xff]  }
  0x6b   : > { %1841 = vmatprep.mubr.bf16.mxu0 %v3973_v53  ;;  %3514 = vmatpush3.bf16.msra.mxu0 %v4041_v17  ;;  %v4042_v53 = vld [vmem:[%s4390_s19 + $0x368] ss:$36 sps:$4 sm:$0xff]  }
  0x6c   : > { %1995 = vmatmul.mubr.bf16.gmra.mrb[12].mxu1 %v3972_v55  ;;  %3515 = vmatprep.subr.bf16.mxu0 %v4054_v24  ;;  %v4045_v55 = vld [vmem:[%s4390_s19 + $0x3a8] ss:$36 sps:$4 sm:$0xff]   ;;  %v4098_v24 = vld [vmem:[%s4390_s19 + $0xf0] ss:$36 sps:$4 sm:$0xff]  }
  0x6d   : > { %2002 = vmatprep.mubr.bf16.mxu1 %v3977_v57  ;;  %3626 = vmatpush3.bf16.msra.mxu1 %v4070_v37  ;;  %v4048_v57 = vld [vmem:[%s4390_s19 + $0x3b0] ss:$36 sps:$4 sm:$0xff]   ;;  %v4141_v17 = vld [vmem:[%s5136_s1 + $0x228] sm:$0xff]  }
  0x6e   : > { %3627 = vmatprep.subr.bf16.mxu1 %v4071_v38  ;;  %v4118_v36 = vld [vmem:[%s4390_s19 + $0x1c8] ss:$36 sps:$4 sm:$0xff]   ;;  %v4122_v37 = vld [vmem:[%s4390_s19 + $0x214] ss:$36 sps:$4 sm:$0xff]  }
  0x6f   : > { %3516 = vmatpush3.bf16.msra.mxu0 %v4057_v27  ;;  %v4106_v27 = vld [vmem:[%s4390_s19 + $0x17c] ss:$36 sps:$4 sm:$0xff]   ;;  %v4121_v38 = vld [vmem:[%s4390_s19 + $0x208] ss:$36 sps:$4 sm:$0xff]  }
  0x70   : > { %3773 = vmatprep.subr.bf16.mxu0 %v4076_v42 }
  0x71   : > { %3628 = vmatpush3.bf16.msra.mxu1 %v4075_v41  ;;  %v4129_v41 = vld [vmem:[%s4390_s19 + $0x25c] ss:$36 sps:$4 sm:$0xff]  }
  0x72   : > { %1842 = vmatmul.mubr.bf16.gmra.mrb[16].mxu0 %v3975_v58  ;;  %v4055_v58 = vld [vmem:[%s4390_s19 + $0x3fc] ss:$36 sps:$4 sm:$0xff]  }
  0x73   : > { %1849 = vmatprep.mubr.bf16.mxu0 %v3981_v61  ;;  %v4058_v61 = vld [vmem:[%s4390_s19 + $0x3f8] ss:$36 sps:$4 sm:$0xff]  }
  0x74   : > { %2003 = vmatmul.mubr.bf16.gmra.mrb[16].mxu1 %v3980_v63  ;;  %v4065_v63 = vld [vmem:[%s4390_s19 + $0x438] ss:$36 sps:$4 sm:$0xff]  }
  0x75   : > { %2010 = vmatprep.mubr.bf16.mxu1 %v3984_v0  ;;  %v4074_v0 = vld [vmem:[%s4390_s19 + $0x14] ss:$36 sps:$4 sm:$0xff]  }
  0x7a   : > { %1850 = vmatmul.mubr.bf16.gmra.mrb[20].mxu0 %v3983_v2  ;;  %v4079_v2 = vld [vmem:[%s4390_s19 + $0x1c] ss:$36 sps:$4 sm:$0xff]  }
  0x7b   : > { %1857 = vmatprep.mubr.bf16.mxu0 %v3987_v3  ;;  %v4072_v3 = vld [vmem:[%s4390_s19 + $0x10] ss:$36 sps:$4 sm:$0xff]  }
  0x7c   : > { %2011 = vmatmul.mubr.bf16.gmra.mrb[20].mxu1 %v3986_v6  ;;  %v4089_v6 = vld [vmem:[%s5136_s1 + $0x208] sm:$0xff]  }
  0x7d   : > { %2018 = vmatprep.mubr.bf16.mxu1 %v3991_v8  ;;  %v4102_v8 = vld [vmem:[%s5136_s1 + $0x210] sm:$0xff]  }
  0x82   : > { %1858 = vmatmul.mubr.bf16.gmra.mrb[24].mxu0 %v3989_v10  ;;  %v4086_v10 = vld [vmem:[%s4390_s19 + $0xa4] ss:$36 sps:$4 sm:$0xff]  }
  0x83   : > { %1865 = vmatprep.mubr.bf16.mxu0 %v3995_v11  ;;  %v4085_v11 = vld [vmem:[%s4390_s19 + $0x60] ss:$36 sps:$4 sm:$0xff]  }
  0x84   : > { %2019 = vmatmul.mubr.bf16.gmra.mrb[24].mxu1 %v3994_v14  ;;  %v4128_v14 = vld [vmem:[%s5136_s1 + $0x220] sm:$0xff]  }
  0x85   : > { %2026 = vmatprep.mubr.bf16.mxu1 %v3998_v15  ;;  %v4088_v15 = vld [vmem:[%s4390_s19 + $0xa0] ss:$36 sps:$4 sm:$0xff]  }
  0x8a   : > { %1866 = vmatmul.mubr.bf16.gmra.mrb[28].mxu0 %v3997_v18  ;;  %v4092_v18 = vld [vmem:[%s4390_s19 + $0xa8] ss:$36 sps:$4 sm:$0xff]  }
  0x8b   : > { %1873 = vmatprep.mubr.bf16.mxu0 %v4003_v20  ;;  %v4154_v20 = vld [vmem:[%s5136_s1 + $0x230] sm:$0xff]  }
  0x8c   : > { %2027 = vmatmul.mubr.bf16.gmra.mrb[28].mxu1 %v4000_v19  ;;  %v4096_v19 = vld [vmem:[%s4390_s19 + $0xf4] ss:$36 sps:$4 sm:$0xff]  }
  0x8d   : > { %2034 = vmatprep.mubr.bf16.mxu1 %v4007_v21  ;;  %v4095_v21 = vld [vmem:[%s4390_s19 + $0xe8] ss:$36 sps:$4 sm:$0xff]  }
  0x92   : > { %1874 = vmatmul.mubr.bf16.gmra.mrb[32].mxu0 %v4005_v25  ;;  %v4103_v25 = vld [vmem:[%s4390_s19 + $0x13c] ss:$36 sps:$4 sm:$0xff]  }
  0x93   : > { %1881 = vmatprep.mubr.bf16.mxu0 %v4011_v26  ;;  %v4101_v26 = vld [vmem:[%s4390_s19 + $0x130] ss:$36 sps:$4 sm:$0xff]  }
  0x94   : > { %2035 = vmatmul.mubr.bf16.gmra.mrb[32].mxu1 %v4010_v28  ;;  %v4105_v28 = vld [vmem:[%s4390_s19 + $0x138] ss:$36 sps:$4 sm:$0xff]  }
  0x95   : > { %2042 = vmatprep.mubr.bf16.mxu1 %v4014_v32  ;;  %v4111_v32 = vld [vmem:[%s4390_s19 + $0x180] ss:$36 sps:$4 sm:$0xff]  }
  0x9a   : > { %1882 = vmatmul.mubr.bf16.gmra.mrb[36].mxu0 %v4013_v34  ;;  %v4114_v34 = vld [vmem:[%s4390_s19 + $0x1c0] ss:$36 sps:$4 sm:$0xff]  }
  0x9b   : > { %1889 = vmatprep.mubr.bf16.mxu0 %v4019_v35  ;;  %v4119_v35 = vld [vmem:[%s4390_s19 + $0x20c] ss:$36 sps:$4 sm:$0xff]  }
  0x9c   : > { %2043 = vmatmul.mubr.bf16.gmra.mrb[36].mxu1 %v4016_v39  ;;  %v4125_v39 = vld [vmem:[%s4390_s19 + $0x254] ss:$36 sps:$4 sm:$0xff]  }
  0x9d   : > { %2050 = vmatprep.mubr.bf16.mxu1 %v4023_v40  ;;  %v4124_v40 = vld [vmem:[%s4390_s19 + $0x210] ss:$36 sps:$4 sm:$0xff]  }
  0xa2   : > { %1890 = vmatmul.mubr.bf16.gmra.mrb[40].mxu0 %v4021_v43  ;;  %v4132_v43 = vld [vmem:[%s4390_s19 + $0x29c] ss:$36 sps:$4 sm:$0xff]  }
  0xa3   : > { %1897 = vmatprep.mubr.bf16.mxu0 %v4027_v44  ;;  %v4131_v44 = vld [vmem:[%s4390_s19 + $0x258] ss:$36 sps:$4 sm:$0xff]  }
  0xa4   : > { %2051 = vmatmul.mubr.bf16.gmra.mrb[40].mxu1 %v4026_v45  ;;  %v4135_v45 = vld [vmem:[%s4390_s19 + $0x2a4] ss:$36 sps:$4 sm:$0xff]  }
  0xa5   : > { %2058 = vmatprep.mubr.bf16.mxu1 %v4030_v46  ;;  %v4134_v46 = vld [vmem:[%s4390_s19 + $0x298] ss:$36 sps:$4 sm:$0xff]  }
  0xaa   : > { %1898 = vmatmul.mubr.bf16.gmra.mrb[44].mxu0 %v4029_v47  ;;  %v4138_v47 = vld [vmem:[%s4390_s19 + $0x2e4] ss:$36 sps:$4 sm:$0xff]  }
  0xab   : > { %1905 = vmatprep.mubr.bf16.mxu0 %v4035_v48  ;;  %v4137_v48 = vld [vmem:[%s4390_s19 + $0x2a0] ss:$36 sps:$4 sm:$0xff]  }
  0xac   : > { %2059 = vmatmul.mubr.bf16.gmra.mrb[44].mxu1 %v4032_v49  ;;  %v4142_v49 = vld [vmem:[%s4390_s19 + $0x2ec] ss:$36 sps:$4 sm:$0xff]  }
  0xad   : > { %2066 = vmatprep.mubr.bf16.mxu1 %v4039_v50  ;;  %v4140_v50 = vld [vmem:[%s4390_s19 + $0x2e0] ss:$36 sps:$4 sm:$0xff]  }
  0xb2   : > { %1906 = vmatmul.mubr.bf16.gmra.mrb[48].mxu0 %v4037_v51  ;;  %v4145_v51 = vld [vmem:[%s4390_s19 + $0x32c] ss:$36 sps:$4 sm:$0xff]  }
  0xb3   : > { %1913 = vmatprep.mubr.bf16.mxu0 %v4043_v52  ;;  %v4144_v52 = vld [vmem:[%s4390_s19 + $0x2e8] ss:$36 sps:$4 sm:$0xff]  }
  0xb4   : > { %2067 = vmatmul.mubr.bf16.gmra.mrb[48].mxu1 %v4042_v53  ;;  %v4148_v53 = vld [vmem:[%s4390_s19 + $0x334] ss:$36 sps:$4 sm:$0xff]  }
  0xb5   : > { %2074 = vmatprep.mubr.bf16.mxu1 %v4046_v54 }
  0xba   : > { %1914 = vmatmul.mubr.bf16.gmra.mrb[52].mxu0 %v4045_v55  ;;  %v4725_v55 = vld [vmem:[%s5137_s2] ss:$0 sm:$0xff] }
  0xbb   : > { %1921 = vmatprep.mubr.bf16.mxu0 %v4051_v56 }
  0xbc   : > { %2075 = vmatmul.mubr.bf16.gmra.mrb[52].mxu1 %v4048_v57  ;;  %v4147_v57 = vld [vmem:[%s4390_s19 + $0x328] ss:$36 sps:$4 sm:$0xff]  }
  0xbd   : > { %2082 = vmatprep.mubr.bf16.mxu1 %v4055_v58 }
  0xc2   : > { %1922 = vmatmul.mubr.bf16.gmra.mrb[56].mxu0 %v4053_v59 }
  0xc3   : > { %1929 = vmatprep.mubr.bf16.mxu0 %v4062_v60  ;;  %v4151_v60 = vld [vmem:[%s4390_s19 + $0x374] ss:$36 sps:$4 sm:$0xff]  }
  0xc4   : > { %2083 = vmatmul.mubr.bf16.gmra.mrb[56].mxu1 %v4058_v61 }
  0xc5   : > { %2090 = vmatprep.mubr.bf16.mxu1 %v4066_v62 }
  0xca   : > { %1930 = vmatmul.mubr.bf16.gmra.mrb[60].mxu0 %v4065_v63 }
  0xcb   : > { %2131 = vmatprep.mubr.bf16.mxu0 %v4074_v0 }
  0xcc   : > { %2091 = vmatmul.mubr.bf16.gmra.mrb[60].mxu1 %v4068_v1 }
  0xcd   : > { %2292 = vmatprep.mubr.bf16.mxu1 %v4079_v2  ;;  %v4150_v2 = vld [vmem:[%s4390_s19 + $0x330] ss:$36 sps:$4 sm:$0xff]  }
  0xd2   : > { %2132 = vmatmul.mubr.bf16.vlgmr.msra.gmra.mrb[64].mxu0 %v4072_v3 }
  0xd3   : > { %3774 = vmatpush3.bf16.msra.mxu0 %v4076_v42  ;;  %2139 = vmatprep.mubr.bf16.mxu0 %v4080_v4  ;;  %v4127_v42 = vld [vmem:[%s4390_s19 + $0x250] ss:$36 sps:$4 sm:$0xff]  }
  0xd4   : > { %3775 = vmatprep.subr.bf16.mxu0 %v4089_v6  ;;  %2293 = vmatmul.mubr.bf16.vlgmr.msra.gmra.mrb[64].mxu1 %v4077_v5  ;;  %v4155_v5 = vld [vmem:[%s4390_s19 + $0x37c] ss:$36 sps:$4 sm:$0xff]  }
  0xd5   : > { %2300 = vmatprep.mubr.bf16.mxu1 %v4083_v7 }
  0xd7   : > { %3776 = vmatpush3.bf16.msra.mxu0 %v4089_v6 }
  0xd8   : > { %3777 = vmatprep.subr.bf16.mxu0 %v4102_v8 }
  0xda   : > { %2140 = vmatmul.mubr.bf16.gmra.mrb[68].mxu0 %v4082_v9 }
  0xdb   : > { %2147 = vmatprep.mubr.bf16.mxu0 %v4086_v10  ;;  %3778 = vmatpush3.bf16.msra.mxu0 %v4102_v8 }
  0xdc   : > { %3779 = vmatprep.subr.bf16.mxu0 %v4115_v12  ;;  %2301 = vmatmul.mubr.bf16.gmra.mrb[68].mxu1 %v4085_v11 }
  0xdd   : > { %2308 = vmatprep.mubr.bf16.mxu1 %v4090_v13  ;;  %v4153_v13 = vld [vmem:[%s4390_s19 + $0x370] ss:$36 sps:$4 sm:$0xff]  }
  0xdf   : > { %3780 = vmatpush3.bf16.msra.mxu0 %v4115_v12 }
  0xe0   : > { %3781 = vmatprep.subr.bf16.mxu0 %v4128_v14 }
  0xe2   : > { %2148 = vmatmul.mubr.bf16.gmra.mrb[72].mxu0 %v4088_v15 }
  0xe3   : > { %2155 = vmatprep.mubr.bf16.mxu0 %v4093_v16  ;;  %3782 = vmatpush3.bf16.msra.mxu0 %v4128_v14  ;;  %v4158_v16 = vld [vmem:[%s4390_s19 + $0x3bc] ss:$36 sps:$4 sm:$0xff]  }
  0xe4   : > { %3783 = vmatprep.subr.bf16.mxu0 %v4141_v17  ;;  %2309 = vmatmul.mubr.bf16.gmra.mrb[72].mxu1 %v4092_v18 }
  0xe5   : > { %2316 = vmatprep.mubr.bf16.mxu1 %v4096_v19 }
  0xe7   : > { %3784 = vmatpush3.bf16.msra.mxu0 %v4141_v17 }
  0xe8   : > { %3785 = vmatprep.subr.bf16.mxu0 %v4154_v20 }
  0xea   : > { %2156 = vmatmul.mubr.bf16.gmra.mrb[76].mxu0 %v4095_v21 }
  0xeb   : > { %2163 = vmatprep.mubr.bf16.mxu0 %v4099_v22  ;;  %3786 = vmatpush3.bf16.msra.mxu0 %v4154_v20  ;;  %v4157_v22 = vld [vmem:[%s4390_s19 + $0x378] ss:$36 sps:$4 sm:$0xff]  }
  0xec   : > { %3787 = vmatprep.subr.bf16.mxu0 %v4167_v23  ;;  %2317 = vmatmul.mubr.bf16.gmra.mrb[76].mxu1 %v4098_v24 }
  0xed   : > { %2324 = vmatprep.mubr.bf16.mxu1 %v4103_v25  ;;  %v4161_v25 = vld [vmem:[%s4390_s19 + $0x3c4] ss:$36 sps:$4 sm:$0xff]  }
  0xef   : > { %3788 = vmatpush3.bf16.msra.mxu0 %v4167_v23 }
  0xf2   : > { %2164 = vmatmul.mubr.bf16.gmra.mrb[80].mxu0 %v4101_v26 }
  0xf3   : > { %2171 = vmatprep.mubr.bf16.mxu0 %v4106_v27 }
  0xf4   : > { %2325 = vmatmul.mubr.bf16.gmra.mrb[80].mxu1 %v4105_v28  ;;  %v4193_v28 = vld [vmem:[%s5138_s3] sm:$0xff]  }
  0xf5   : > { %2332 = vmatprep.mubr.bf16.mxu1 %v4109_v29  ;;  %3821 = vmatprep.subr.bf16.mxu1 %v4193_v28 }
  0xf6   : > { %3822 = vmatpush3.bf16.msra.mxu1 %v4193_v28 }
  0xfa   : > { %2172 = vmatmul.mubr.bf16.gmra.mrb[84].mxu0 %v4108_v30 }
  0xfb   : > { %2179 = vmatprep.mubr.bf16.mxu0 %v4112_v31 }
  0xfc   : > { %2333 = vmatmul.mubr.bf16.gmra.mrb[84].mxu1 %v4111_v32 }
  0xfd   : > { %2340 = vmatprep.mubr.bf16.mxu1 %v4116_v33 }
 0x102   : > { %2180 = vmatmul.mubr.bf16.gmra.mrb[88].mxu0 %v4114_v34  ;;  %v4160_v34 = vld [vmem:[%s4390_s19 + $0x3b8] ss:$36 sps:$4 sm:$0xff]  }
 0x103   : > { %2187 = vmatprep.mubr.bf16.mxu0 %v4119_v35 }
 0x104   : > { %2341 = vmatmul.mubr.bf16.gmra.mrb[88].mxu1 %v4118_v36 }
 0x105   : > { %2348 = vmatprep.mubr.bf16.mxu1 %v4122_v37  ;;  %v4164_v37 = vld [vmem:[%s4390_s19 + $0x404] ss:$36 sps:$4 sm:$0xff]  }
 0x10a   : > { %2188 = vmatmul.mubr.bf16.gmra.mrb[92].mxu0 %v4121_v38 }
 0x10b   : > { %2195 = vmatprep.mubr.bf16.mxu0 %v4125_v39 }
 0x10c   : > { %2349 = vmatmul.mubr.bf16.gmra.mrb[92].mxu1 %v4124_v40 }
 0x10d   : > { %2356 = vmatprep.mubr.bf16.mxu1 %v4129_v41 }
 0x112   : > { %2196 = vmatmul.mubr.bf16.gmra.mrb[96].mxu0 %v4127_v42 }
 0x113   : > { %2203 = vmatprep.mubr.bf16.mxu0 %v4132_v43  ;;  %v4163_v43 = vld [vmem:[%s4390_s19 + $0x3c0] ss:$36 sps:$4 sm:$0xff]  }
 0x114   : > { %2357 = vmatmul.mubr.bf16.gmra.mrb[96].mxu1 %v4131_v44 }
 0x115   : > { %2364 = vmatprep.mubr.bf16.mxu1 %v4135_v45 }
 0x11a   : > { %2204 = vmatmul.mubr.bf16.gmra.mrb[100].mxu0 %v4134_v46  ;;  %v4168_v46 = vld [vmem:[%s4390_s19 + $0x40c] ss:$36 sps:$4 sm:$0xff]  }
 0x11b   : > { %2211 = vmatprep.mubr.bf16.mxu0 %v4138_v47 }
 0x11c   : > { %2365 = vmatmul.mubr.bf16.gmra.mrb[100].mxu1 %v4137_v48 }
 0x11d   : > { %2372 = vmatprep.mubr.bf16.mxu1 %v4142_v49 }
 0x122   : > { %2212 = vmatmul.mubr.bf16.gmra.mrb[104].mxu0 %v4140_v50 }
 0x123   : > { %2219 = vmatprep.mubr.bf16.mxu0 %v4145_v51 }
 0x124   : > { %2373 = vmatmul.mubr.bf16.gmra.mrb[104].mxu1 %v4144_v52 }
 0x125   : > { %v3293_v54 = vpop.f32.mrb[0].mxu0  ;;  %2380 = vmatprep.mubr.bf16.mxu1 %v4148_v53 }
 0x126   : > { %v3294_v56 = vpop.f32.mrb[1].mxu0 }
 0x127   : > { %v3295_v58 = vadd.f32 %v3294_v56, %v3293_v54  ;;  %v3296_v59 = vpop.f32.mrb[2].mxu0  ;;  %v3405_v61 = vpop.f32.mrb[0].mxu1  ;;  %v4166_v54 = vld [vmem:[%s4390_s19 + $0x400] ss:$36 sps:$4 sm:$0xff]  }
 0x128   : > { %v3297_v62 = vpop.f32.mrb[3].mxu0  ;;  %v3406_v1 = vpop.f32.mrb[1].mxu1 }
 0x129   : > { %v1812_v63 = vadd.f32 %v3295_v58, %v4725_v55  ;;  %v3298_v0 = vadd.f32 %v3297_v62, %v3296_v59  ;;  %v3407_v3 = vadd.f32 %v3406_v1, %v3405_v61  ;;  %v3408_v4 = vpop.f32.mrb[2].mxu1  ;;  %v4171_v58 = vld [vmem:[%s4390_s19 + $0x44c] ss:$36 sps:$4 sm:$0xff]  }
 0x12a   : > { %2220 = vmatmul.mubr.bf16.gmra.mrb[108].mxu0 %v4147_v57  ;;  %v3409_v7 = vpop.f32.mrb[3].mxu1 }
 0x12b   : > { %v1815_v6 = vadd.f32 %v3298_v0, %v4725_v55  ;;  %2227 = vmatprep.mubr.bf16.mxu0 %v4151_v60  ;;  %v4733_v8 = vadd.f32 %v3407_v3, %v1812_v63  ;;  %v3410_v9 = vadd.f32 %v3409_v7, %v3408_v4  ;;  %v4170_v0 = vld [vmem:[%s4390_s19 + $0x408] ss:$36 sps:$4 sm:$0xff]   ;;  %v4174_v3 = vld [vmem:[%s4390_s19 + $0x454] ss:$36 sps:$4 sm:$0xff]  }
 0x12c   : > { %2381 = vmatmul.mubr.bf16.gmra.mrb[108].mxu1 %v4150_v2 }
 0x12d   : > { %v3299_v10 = vpop.f32.mrb[4].mxu0  ;;  %v4735_v11 = vadd.f32 %v3410_v9, %v1815_v6  ;;  %2388 = vmatprep.mubr.bf16.mxu1 %v4155_v5  ;;  %v4194_v6 = vld [vmem:[%s5138_s3 + $0x8] sm:$0xff]  }
 0x12e   : > { %v3300_v12 = vpop.f32.mrb[5].mxu0  ;;  %3823 = vmatprep.subr.bf16.mxu1 %v4194_v6 }
 0x12f   : > { %v3301_v14 = vadd.f32 %v3300_v12, %v3299_v10  ;;  %v3302_v15 = vpop.f32.mrb[6].mxu0  ;;  %v3411_v17 = vpop.f32.mrb[4].mxu1  ;;  %3824 = vmatpush3.bf16.msra.mxu1 %v4194_v6 }
 0x130   : > { %v3303_v18 = vpop.f32.mrb[7].mxu0  ;;  %v3412_v21 = vpop.f32.mrb[5].mxu1 }
 0x131   : > { %v1820_v19 = vadd.f32 %v3301_v14, %v4725_v55  ;;  %v3304_v20 = vadd.f32 %v3303_v18, %v3302_v15  ;;  %v3413_v23 = vadd.f32 %v3412_v21, %v3411_v17  ;;  %v3414_v24 = vpop.f32.mrb[6].mxu1  ;;  %v4173_v14 = vld [vmem:[%s4390_s19 + $0x448] ss:$36 sps:$4 sm:$0xff]   ;;  %v4177_v17 = vld [vmem:[%s4390_s19 + $0x20] ss:$36 sps:$4 sm:$0xff]  }
 0x132   : > { %2228 = vmatmul.mubr.bf16.gmra.mrb[112].mxu0 %v4153_v13  ;;  %v3415_v27 = vpop.f32.mrb[7].mxu1 }
 0x133   : > { %v1823_v26 = vadd.f32 %v3304_v20, %v4725_v55  ;;  %2235 = vmatprep.mubr.bf16.mxu0 %v4158_v16  ;;  %v4746_v29 = vadd.f32 %v3413_v23, %v1820_v19  ;;  %v3416_v30 = vadd.f32 %v3415_v27, %v3414_v24  ;;  %v4176_v23 = vld [vmem:[%s4390_s19 + $0x450] ss:$36 sps:$4 sm:$0xff]  }
 0x134   : > { %2389 = vmatmul.mubr.bf16.gmra.mrb[112].mxu1 %v4157_v22 }
 0x135   : > { %v3305_v31 = vpop.f32.mrb[8].mxu0  ;;  %v4748_v32 = vadd.f32 %v3416_v30, %v1823_v26  ;;  %2396 = vmatprep.mubr.bf16.mxu1 %v4161_v25 }
 0x136   : > { %v3306_v33 = vpop.f32.mrb[9].mxu0 }
 0x137   : > { %v3307_v35 = vadd.f32 %v3306_v33, %v3305_v31  ;;  %v3308_v36 = vpop.f32.mrb[10].mxu0  ;;  %v3417_v38 = vpop.f32.mrb[8].mxu1 }
 0x138   : > { %v3309_v39 = vpop.f32.mrb[11].mxu0  ;;  %v3418_v42 = vpop.f32.mrb[9].mxu1 }
 0x139   : > { %v1828_v40 = vadd.f32 %v3307_v35, %v4725_v55  ;;  %v3310_v41 = vadd.f32 %v3309_v39, %v3308_v36  ;;  %v3419_v44 = vadd.f32 %v3418_v42, %v3417_v38  ;;  %v3420_v45 = vpop.f32.mrb[10].mxu1  ;;  %v4178_v35 = vld [vmem:[%s4390_s19 + $0x68] ss:$36 sps:$4 sm:$0xff]   ;;  %v4179_v38 = vld [vmem:[%s4390_s19 + $0xb0] ss:$36 sps:$4 sm:$0xff]  }
 0x13a   : > { %2236 = vmatmul.mubr.bf16.gmra.mrb[116].mxu0 %v4160_v34  ;;  %v3421_v48 = vpop.f32.mrb[11].mxu1 }
 0x13b   : > { %v1831_v47 = vadd.f32 %v3310_v41, %v4725_v55  ;;  %2243 = vmatprep.mubr.bf16.mxu0 %v4164_v37  ;;  %v4756_v49 = vadd.f32 %v3419_v44, %v1828_v40  ;;  %v3422_v50 = vadd.f32 %v3421_v48, %v3420_v45  ;;  %v4195_v48 = vld [vmem:[%s5138_s3 + $0x10] sm:$0xff]  }
 0x13c   : > { %2397 = vmatmul.mubr.bf16.gmra.mrb[116].mxu1 %v4163_v43  ;;  %3825 = vmatprep.subr.bf16.mxu1 %v4195_v48 }
 0x13d   : > { %v3311_v51 = vpop.f32.mrb[12].mxu0  ;;  %v4758_v52 = vadd.f32 %v3422_v50, %v1831_v47  ;;  %2404 = vmatprep.mubr.bf16.mxu1 %v4168_v46  ;;  %3826 = vmatpush3.bf16.msra.mxu1 %v4195_v48 }
 0x13e   : > { %v3312_v53 = vpop.f32.mrb[13].mxu0 }
 0x13f   : > { %v3313_v56 = vadd.f32 %v3312_v53, %v3311_v51  ;;  %v3314_v57 = vpop.f32.mrb[14].mxu0  ;;  %v3423_v59 = vpop.f32.mrb[12].mxu1 }
 0x140   : > { %v3315_v60 = vpop.f32.mrb[15].mxu0  ;;  %v3424_v63 = vpop.f32.mrb[13].mxu1 }
 0x141   : > { %v1836_v61 = vadd.f32 %v3313_v56, %v4725_v55  ;;  %v3316_v62 = vadd.f32 %v3315_v60, %v3314_v57  ;;  %v3425_v1 = vadd.f32 %v3424_v63, %v3423_v59  ;;  %v3426_v2 = vpop.f32.mrb[14].mxu1  ;;  %v4180_v57 = vld [vmem:[%s4390_s19 + $0xf8] ss:$36 sps:$4 sm:$0xff]   ;;  %v4181_v60 = vld [vmem:[%s4390_s19 + $0x140] ss:$36 sps:$4 sm:$0xff]  }
 0x142   : > { %2244 = vmatmul.mubr.bf16.gmra.mrb[120].mxu0 %v4166_v54  ;;  %v3427_v5 = vpop.f32.mrb[15].mxu1 }
 0x143   : > { %v1839_v4 = vadd.f32 %v3316_v62, %v4725_v55  ;;  %2251 = vmatprep.mubr.bf16.mxu0 %v4171_v58  ;;  %v4769_v7 = vadd.f32 %v3425_v1, %v1836_v61  ;;  %v3428_v9 = vadd.f32 %v3427_v5, %v3426_v2 }
 0x144   : > { %2405 = vmatmul.mubr.bf16.gmra.mrb[120].mxu1 %v4170_v0 }
 0x145   : > { %v3317_v10 = vpop.f32.mrb[16].mxu0  ;;  %v4771_v12 = vadd.f32 %v3428_v9, %v1839_v4  ;;  %2412 = vmatprep.mubr.bf16.mxu1 %v4174_v3 }
 0x146   : > { %v3318_v13 = vpop.f32.mrb[17].mxu0 }
 0x147   : > { %v3319_v15 = vadd.f32 %v3318_v13, %v3317_v10  ;;  %v3320_v16 = vpop.f32.mrb[18].mxu0  ;;  %v3429_v18 = vpop.f32.mrb[16].mxu1 }
 0x148   : > { %v3321_v19 = vpop.f32.mrb[19].mxu0  ;;  %v3430_v22 = vpop.f32.mrb[17].mxu1 }
 0x149   : > { %v1844_v20 = vadd.f32 %v3319_v15, %v4725_v55  ;;  %v3322_v21 = vadd.f32 %v3321_v19, %v3320_v16  ;;  %v3431_v24 = vadd.f32 %v3430_v22, %v3429_v18  ;;  %v3432_v25 = vpop.f32.mrb[18].mxu1  ;;  %v4182_v15 = vld [vmem:[%s4390_s19 + $0x188] ss:$36 sps:$4 sm:$0xff]   ;;  %v4183_v18 = vld [vmem:[%s4390_s19 + $0x1d0] ss:$36 sps:$4 sm:$0xff]  }
 0x14a   : > { %2252 = vmatmul.mubr.bf16.gmra.mrb[124].mxu0 %v4173_v14  ;;  %v3433_v27 = vpop.f32.mrb[19].mxu1 }
 0x14b   : > { %v1847_v26 = vadd.f32 %v3322_v21, %v4725_v55  ;;  %3789 = vmatprep.mubr.bf16.mxu0 %v4177_v17  ;;  %v4778_v28 = vadd.f32 %v3431_v24, %v1844_v20  ;;  %v3434_v30 = vadd.f32 %v3433_v27, %v3432_v25 }
 0x14c   : > { %2413 = vmatmul.mubr.bf16.gmra.mrb[124].mxu1 %v4176_v23 }
 0x14d   : > { %v3323_v31 = vpop.f32.mrb[20].mxu0  ;;  %v4780_v33 = vadd.f32 %v3434_v30, %v1847_v26  ;;  %v4196_v30 = vld [vmem:[%s5138_s3 + $0x18] sm:$0xff]  }
 0x14e   : > { %v3324_v34 = vpop.f32.mrb[21].mxu0  ;;  %3827 = vmatprep.subr.bf16.mxu1 %v4196_v30 }
 0x14f   : > { %v3325_v36 = vadd.f32 %v3324_v34, %v3323_v31  ;;  %v3326_v37 = vpop.f32.mrb[22].mxu0  ;;  %v3435_v39 = vpop.f32.mrb[20].mxu1  ;;  %3828 = vmatpush3.bf16.msra.mxu1 %v4196_v30 }
 0x150   : > { %v3327_v40 = vpop.f32.mrb[23].mxu0  ;;  %v3436_v43 = vpop.f32.mrb[21].mxu1 }
 0x151   : > { %v1852_v41 = vadd.f32 %v3325_v36, %v4725_v55  ;;  %v3328_v42 = vadd.f32 %v3327_v40, %v3326_v37  ;;  %v3437_v44 = vadd.f32 %v3436_v43, %v3435_v39  ;;  %v3438_v45 = vpop.f32.mrb[22].mxu1 }
 0x152   : > { %3790 = vmatmul.mubr.bf16.vlgmr.msra.gmra.mrb[128].mxu0 %v4178_v35  ;;  %v3439_v47 = vpop.f32.mrb[23].mxu1 }
 0x153   : > { %v1855_v46 = vadd.f32 %v3328_v42, %v4725_v55  ;;  %3793 = vmatprep.mubr.bf16.mxu0 %v4179_v38  ;;  %v4789_v50 = vadd.f32 %v3437_v44, %v1852_v41  ;;  %v3440_v51 = vadd.f32 %v3439_v47, %v3438_v45  ;;  %v4184_v38 = vld [vmem:[%s4390_s19 + $0x218] ss:$36 sps:$4 sm:$0xff]   ;;  %v4185_v41 = vld [vmem:[%s4390_s19 + $0x260] ss:$36 sps:$4 sm:$0xff]  }
 0x155   : > { %v3329_v53 = vpop.f32.mrb[24].mxu0  ;;  %v4791_v54 = vadd.f32 %v3440_v51, %v1855_v46 }
 0x156   : > { %v3330_v56 = vpop.f32.mrb[25].mxu0 }
 0x157   : > { %v3331_v58 = vadd.f32 %v3330_v56, %v3329_v53  ;;  %v3332_v59 = vpop.f32.mrb[26].mxu0  ;;  %v3441_v61 = vpop.f32.mrb[24].mxu1 }
 0x158   : > { %v3333_v62 = vpop.f32.mrb[27].mxu0  ;;  %v3442_v1 = vpop.f32.mrb[25].mxu1 }
 0x159   : > { %v1860_v63 = vadd.f32 %v3331_v58, %v4725_v55  ;;  %v3334_v0 = vadd.f32 %v3333_v62, %v3332_v59  ;;  %v3443_v2 = vadd.f32 %v3442_v1, %v3441_v61  ;;  %v3444_v3 = vpop.f32.mrb[26].mxu1  ;;  %v4186_v61 = vld [vmem:[%s4390_s19 + $0x2a8] ss:$36 sps:$4 sm:$0xff]  }
 0x15a   : > { %3794 = vmatmul.mubr.bf16.gmra.mrb[132].mxu0 %v4180_v57  ;;  %v3445_v5 = vpop.f32.mrb[27].mxu1 }
 0x15b   : > { %v1863_v4 = vadd.f32 %v3334_v0, %v4725_v55  ;;  %3797 = vmatprep.mubr.bf16.mxu0 %v4181_v60  ;;  %v4797_v6 = vadd.f32 %v3443_v2, %v1860_v63  ;;  %v3446_v9 = vadd.f32 %v3445_v5, %v3444_v3  ;;  %v4187_v0 = vld [vmem:[%s4390_s19 + $0x2f0] ss:$36 sps:$4 sm:$0xff]  }
 0x15d   : > { %v3335_v10 = vpop.f32.mrb[28].mxu0  ;;  %v4799_v13 = vadd.f32 %v3446_v9, %v1863_v4 }
 0x15e   : > { %v3336_v14 = vpop.f32.mrb[29].mxu0 }
 0x15f   : > { %v3337_v16 = vadd.f32 %v3336_v14, %v3335_v10  ;;  %v3338_v17 = vpop.f32.mrb[30].mxu0  ;;  %v3447_v19 = vpop.f32.mrb[28].mxu1 }
 0x160   : > { %v3339_v20 = vpop.f32.mrb[31].mxu0  ;;  %v3448_v23 = vpop.f32.mrb[29].mxu1 }
 0x161   : > { %v1868_v21 = vadd.f32 %v3337_v16, %v4725_v55  ;;  %v3340_v22 = vadd.f32 %v3339_v20, %v3338_v17  ;;  %v3449_v24 = vadd.f32 %v3448_v23, %v3447_v19  ;;  %v3450_v25 = vpop.f32.mrb[30].mxu1  ;;  %v4197_v16 = vld [vmem:[%s5138_s3 + $0x20] sm:$0xff]  }
 0x162   : > { %3798 = vmatmul.mubr.bf16.gmra.mrb[136].mxu0 %v4182_v15  ;;  %v3451_v27 = vpop.f32.mrb[31].mxu1  ;;  %3829 = vmatprep.subr.bf16.mxu1 %v4197_v16 }
 0x163   : > { %v1871_v26 = vadd.f32 %v3340_v22, %v4725_v55  ;;  %3801 = vmatprep.mubr.bf16.mxu0 %v4183_v18  ;;  %v4808_v31 = vadd.f32 %v3449_v24, %v1868_v21  ;;  %v3452_v34 = vadd.f32 %v3451_v27, %v3450_v25  ;;  %v4188_v22 = vld [vmem:[%s4390_s19 + $0x338] ss:$36 sps:$4 sm:$0xff]   ;;  %3830 = vmatpush3.bf16.msra.mxu1 %v4197_v16  ;;  %v4189_v25 = vld [vmem:[%s4390_s19 + $0x380] ss:$36 sps:$4 sm:$0xff]  }
 0x165   : > { %v3341_v35 = vpop.f32.mrb[32].mxu0  ;;  %v4810_v36 = vadd.f32 %v3452_v34, %v1871_v26 }
 0x166   : > { %v3342_v37 = vpop.f32.mrb[33].mxu0 }
 0x167   : > { %v3343_v39 = vadd.f32 %v3342_v37, %v3341_v35  ;;  %v3344_v40 = vpop.f32.mrb[34].mxu0  ;;  %v3453_v42 = vpop.f32.mrb[32].mxu1 }
 0x168   : > { %v3345_v43 = vpop.f32.mrb[35].mxu0  ;;  %v3454_v46 = vpop.f32.mrb[33].mxu1 }
 0x169   : > { %v1876_v44 = vadd.f32 %v3343_v39, %v4725_v55  ;;  %v3346_v45 = vadd.f32 %v3345_v43, %v3344_v40  ;;  %v3455_v47 = vadd.f32 %v3454_v46, %v3453_v42  ;;  %v3456_v48 = vpop.f32.mrb[34].mxu1  ;;  %v4190_v46 = vld [vmem:[%s4390_s19 + $0x3c8] ss:$36 sps:$4 sm:$0xff]  }
 0x16a   : > { %3802 = vmatmul.mubr.bf16.gmra.mrb[140].mxu0 %v4184_v38  ;;  %v3457_v53 = vpop.f32.mrb[35].mxu1 }
 0x16b   : > { %v1879_v51 = vadd.f32 %v3346_v45, %v4725_v55  ;;  %3805 = vmatprep.mubr.bf16.mxu0 %v4185_v41  ;;  %v4816_v56 = vadd.f32 %v3455_v47, %v1876_v44  ;;  %v3458_v57 = vadd.f32 %v3457_v53, %v3456_v48 }
 0x16d   : > { %v3347_v58 = vpop.f32.mrb[36].mxu0  ;;  %v4818_v59 = vadd.f32 %v3458_v57, %v1879_v51  ;;  %v4191_v51 = vld [vmem:[%s4390_s19 + $0x410] ss:$36 sps:$4 sm:$0xff]  }
 0x16e   : > { %v3348_v60 = vpop.f32.mrb[37].mxu0 }
 0x16f   : > { %v3349_v62 = vadd.f32 %v3348_v60, %v3347_v58  ;;  %v3350_v63 = vpop.f32.mrb[38].mxu0  ;;  %v3459_v1 = vpop.f32.mrb[36].mxu1 }
 0x170   : > { %v3351_v2 = vpop.f32.mrb[39].mxu0  ;;  %v3460_v5 = vpop.f32.mrb[37].mxu1 }
 0x171   : > { %v1884_v3 = vadd.f32 %v3349_v62, %v4725_v55  ;;  %v3352_v4 = vadd.f32 %v3351_v2, %v3350_v63  ;;  %v3461_v9 = vadd.f32 %v3460_v5, %v3459_v1  ;;  %v3462_v10 = vpop.f32.mrb[38].mxu1  ;;  %v4198_v2 = vld [vmem:[%s5138_s3 + $0x28] sm:$0xff]  }
 0x172   : > { %3806 = vmatmul.mubr.bf16.gmra.mrb[144].mxu0 %v4186_v61  ;;  %v3463_v15 = vpop.f32.mrb[39].mxu1  ;;  %3831 = vmatprep.subr.bf16.mxu1 %v4198_v2 }
 0x173   : > { %v1887_v14 = vadd.f32 %v3352_v4, %v4725_v55  ;;  %3809 = vmatprep.mubr.bf16.mxu0 %v4187_v0  ;;  %v4827_v17 = vadd.f32 %v3461_v9, %v1884_v3  ;;  %v3464_v18 = vadd.f32 %v3463_v15, %v3462_v10  ;;  %3832 = vmatpush3.bf16.msra.mxu1 %v4198_v2 }
 0x175   : > { %v3353_v19 = vpop.f32.mrb[40].mxu0  ;;  %v4829_v20 = vadd.f32 %v3464_v18, %v1887_v14  ;;  %v4192_v14 = vld [vmem:[%s4390_s19 + $0x458] ss:$36 sps:$4 sm:$0xff]  }
 0x176   : > { %v3354_v21 = vpop.f32.mrb[41].mxu0 }
 0x177   : > { %v3355_v23 = vadd.f32 %v3354_v21, %v3353_v19  ;;  %v3356_v24 = vpop.f32.mrb[42].mxu0  ;;  %v3465_v26 = vpop.f32.mrb[40].mxu1 }
 0x178   : > { %v3357_v27 = vpop.f32.mrb[43].mxu0  ;;  %v3466_v35 = vpop.f32.mrb[41].mxu1 }
 0x179   : > { %v1892_v30 = vadd.f32 %v3355_v23, %v4725_v55  ;;  %v3358_v34 = vadd.f32 %v3357_v27, %v3356_v24  ;;  %v3467_v37 = vadd.f32 %v3466_v35, %v3465_v26  ;;  %v3468_v38 = vpop.f32.mrb[42].mxu1 }
 0x17a   : > { %3810 = vmatmul.mubr.bf16.gmra.mrb[148].mxu0 %v4188_v22  ;;  %v3469_v40 = vpop.f32.mrb[43].mxu1 }
 0x17b   : > { %v1895_v39 = vadd.f32 %v3358_v34, %v4725_v55  ;;  %3813 = vmatprep.mubr.bf16.mxu0 %v4189_v25  ;;  %v4835_v41 = vadd.f32 %v3467_v37, %v1892_v30  ;;  %v3470_v42 = vadd.f32 %v3469_v40, %v3468_v38 }
 0x17d   : > { %v3359_v43 = vpop.f32.mrb[44].mxu0  ;;  %v4837_v44 = vadd.f32 %v3470_v42, %v1895_v39 }
 0x17e   : > { %v3360_v45 = vpop.f32.mrb[45].mxu0 }
 0x17f   : > { %v3361_v47 = vadd.f32 %v3360_v45, %v3359_v43  ;;  %v3362_v48 = vpop.f32.mrb[46].mxu0  ;;  %v3471_v53 = vpop.f32.mrb[44].mxu1 }
 0x180   : > { %v3363_v57 = vpop.f32.mrb[47].mxu0  ;;  %v3472_v61 = vpop.f32.mrb[45].mxu1 }
 0x181   : > { %v1900_v58 = vadd.f32 %v3361_v47, %v4725_v55  ;;  %v3364_v60 = vadd.f32 %v3363_v57, %v3362_v48  ;;  %v3473_v62 = vadd.f32 %v3472_v61, %v3471_v53  ;;  %v3474_v63 = vpop.f32.mrb[46].mxu1 }
 0x182   : > { %3814 = vmatmul.mubr.bf16.gmra.mrb[152].mxu0 %v4190_v46  ;;  %v3475_v1 = vpop.f32.mrb[47].mxu1 }
 0x183   : > { %v1903_v0 = vadd.f32 %v3364_v60, %v4725_v55  ;;  %3817 = vmatprep.mubr.bf16.mxu0 %v4191_v51  ;;  %v4846_v3 = vadd.f32 %v3473_v62, %v1900_v58  ;;  %v3476_v4 = vadd.f32 %v3475_v1, %v3474_v63  ;;  %v4199_v58 = vld [vmem:[%s5138_s3 + $0x30] sm:$0xff]  }
 0x184   : > { %3833 = vmatprep.subr.bf16.mxu1 %v4199_v58 }
 0x185   : > { %v3365_v5 = vpop.f32.mrb[48].mxu0  ;;  %v4848_v9 = vadd.f32 %v3476_v4, %v1903_v0  ;;  %3834 = vmatpush3.bf16.msra.mxu1 %v4199_v58 }
 0x186   : > { %v3366_v10 = vpop.f32.mrb[49].mxu0 }
 0x187   : > { %v3367_v15 = vadd.f32 %v3366_v10, %v3365_v5  ;;  %v3368_v16 = vpop.f32.mrb[50].mxu0  ;;  %v3477_v18 = vpop.f32.mrb[48].mxu1 }
 0x188   : > { %v3369_v19 = vpop.f32.mrb[51].mxu0  ;;  %v3478_v23 = vpop.f32.mrb[49].mxu1 }
 0x189   : > { %v1908_v21 = vadd.f32 %v3367_v15, %v4725_v55  ;;  %v3370_v22 = vadd.f32 %v3369_v19, %v3368_v16  ;;  %v3479_v24 = vadd.f32 %v3478_v23, %v3477_v18  ;;  %v3480_v25 = vpop.f32.mrb[50].mxu1 }
 0x18a   : > { %3818 = vmatmul.mubr.bf16.gmra.mrb[156].mxu0 %v4192_v14  ;;  %v3481_v27 = vpop.f32.mrb[51].mxu1 }
 0x18b   : > { %v1911_v26 = vadd.f32 %v3370_v22, %v4725_v55  ;;  %v4853_v30 = vadd.f32 %v3479_v24, %v1908_v21  ;;  %v3482_v34 = vadd.f32 %v3481_v27, %v3480_v25 }
 0x18d   : > { %v3371_v35 = vpop.f32.mrb[52].mxu0  ;;  %v4855_v37 = vadd.f32 %v3482_v34, %v1911_v26 }
 0x18e   : > { %v3372_v38 = vpop.f32.mrb[53].mxu0 }
 0x18f   : > { %v3373_v39 = vadd.f32 %v3372_v38, %v3371_v35  ;;  %v3374_v40 = vpop.f32.mrb[54].mxu0  ;;  %v3483_v42 = vpop.f32.mrb[52].mxu1 }
 0x190   : > { %v3375_v43 = vpop.f32.mrb[55].mxu0  ;;  %v3484_v47 = vpop.f32.mrb[53].mxu1 }
 0x191   : > { %v1916_v45 = vadd.f32 %v3373_v39, %v4725_v55  ;;  %v3376_v46 = vadd.f32 %v3375_v43, %v3374_v40  ;;  %v3485_v48 = vadd.f32 %v3484_v47, %v3483_v42  ;;  %v3486_v51 = vpop.f32.mrb[54].mxu1 }
 0x192   : > { %v3487_v57 = vpop.f32.mrb[55].mxu1 }
 0x193   : > { %v1919_v53 = vadd.f32 %v3376_v46, %v4725_v55  ;;  %v4862_v60 = vadd.f32 %v3485_v48, %v1916_v45  ;;  %v3488_v61 = vadd.f32 %v3487_v57, %v3486_v51  ;;  %v4200_v48 = vld [vmem:[%s5138_s3 + $0x38] sm:$0xff]  }
 0x194   : > { %3835 = vmatprep.subr.bf16.mxu1 %v4200_v48 }
 0x195   : > { %v3377_v62 = vpop.f32.mrb[56].mxu0  ;;  %v4864_v63 = vadd.f32 %v3488_v61, %v1919_v53  ;;  %3836 = vmatpush3.bf16.msra.mxu1 %v4200_v48 }
 0x196   : > { %v3378_v0 = vpop.f32.mrb[57].mxu0 }
 0x197   : > { %v3379_v1 = vadd.f32 %v3378_v0, %v3377_v62  ;;  %v3380_v2 = vpop.f32.mrb[58].mxu0  ;;  %v3489_v4 = vpop.f32.mrb[56].mxu1 }
 0x198   : > { %v3381_v5 = vpop.f32.mrb[59].mxu0  ;;  %v3490_v15 = vpop.f32.mrb[57].mxu1 }
 0x199   : > { %v1924_v10 = vadd.f32 %v3379_v1, %v4725_v55  ;;  %v3382_v14 = vadd.f32 %v3381_v5, %v3380_v2  ;;  %v3491_v16 = vadd.f32 %v3490_v15, %v3489_v4  ;;  %v3492_v18 = vpop.f32.mrb[58].mxu1 }
 0x19a   : > { %v3493_v21 = vpop.f32.mrb[59].mxu1 }
 0x19b   : > { %v1927_v19 = vadd.f32 %v3382_v14, %v4725_v55  ;;  %v4868_v22 = vadd.f32 %v3491_v16, %v1924_v10  ;;  %v3494_v23 = vadd.f32 %v3493_v21, %v3492_v18 }
 0x19d   : > { %v3383_v24 = vpop.f32.mrb[60].mxu0  ;;  %v4870_v25 = vadd.f32 %v3494_v23, %v1927_v19 }
 0x19e   : > { %v3384_v26 = vpop.f32.mrb[61].mxu0 }
 0x19f   : > { %v3385_v27 = vadd.f32 %v3384_v26, %v3383_v24  ;;  %v3386_v34 = vpop.f32.mrb[62].mxu0  ;;  %v3495_v35 = vpop.f32.mrb[60].mxu1 }
 0x1a0   : > { %v3387_v38 = vpop.f32.mrb[63].mxu0  ;;  %v3496_v42 = vpop.f32.mrb[61].mxu1 }
 0x1a1   : > { %v1932_v39 = vadd.f32 %v3385_v27, %v4725_v55  ;;  %v3388_v40 = vadd.f32 %v3387_v38, %v3386_v34  ;;  %v3497_v43 = vadd.f32 %v3496_v42, %v3495_v35  ;;  %v3498_v45 = vpop.f32.mrb[62].mxu1 }
 0x1a2   : > { %v3499_v47 = vpop.f32.mrb[63].mxu1 }
 0x1a3   : > { %v1935_v46 = vadd.f32 %v3388_v40, %v4725_v55  ;;  %v4877_v51 = vadd.f32 %v3497_v43, %v1932_v39  ;;  %v3500_v53 = vadd.f32 %v3499_v47, %v3498_v45 }
 0x1a5   : > { %v3517_v57 = vpop.f32.mrb[64].mxu0  ;;  %v4879_v58 = vadd.f32 %v3500_v53, %v1935_v46 }
 0x1a6   : > { %v3518_v61 = vpop.f32.mrb[65].mxu0 }
 0x1a7   : > { %v3519_v62 = vadd.f32 %v3518_v61, %v3517_v57  ;;  %v3520_v0 = vpop.f32.mrb[66].mxu0  ;;  %v3629_v1 = vpop.f32.mrb[64].mxu1 }
 0x1a8   : > { %v3521_v2 = vpop.f32.mrb[67].mxu0  ;;  %v3630_v5 = vpop.f32.mrb[65].mxu1 }
 0x1a9   : > { %v2134_v55 = vadd.f32 %v3519_v62, %v4733_v8  ;;  %v3522_v4 = vadd.f32 %v3521_v2, %v3520_v0  ;;  %v3631_v10 = vadd.f32 %v3630_v5, %v3629_v1  ;;  %v3632_v14 = vpop.f32.mrb[66].mxu1 }
 0x1aa   : > { %v3633_v16 = vpop.f32.mrb[67].mxu1 }
 0x1ab   : > { %v2137_v15 = vadd.f32 %v3522_v4, %v4735_v11  ;;  %v3634_v18 = vadd.f32 %v3633_v16, %v3632_v14  ;;  %v4883_v19 = vadd.f32 %v3631_v10, %v2134_v55 }
 0x1ad   : > { %v3523_v21 = vpop.f32.mrb[68].mxu0  ;;  %v4885_v24 = vadd.f32 %v3634_v18, %v2137_v15 }
 0x1ae   : > { %v3524_v23 = vpop.f32.mrb[69].mxu0 }
 0x1af   : > { %v3525_v26 = vadd.f32 %v3524_v23, %v3523_v21  ;;  %v3526_v27 = vpop.f32.mrb[70].mxu0  ;;  %v3635_v34 = vpop.f32.mrb[68].mxu1 }
 0x1b0   : > { %v3527_v35 = vpop.f32.mrb[71].mxu0  ;;  %v3636_v39 = vpop.f32.mrb[69].mxu1 }
 0x1b1   : > { %v2142_v8 = vadd.f32 %v3525_v26, %v4746_v29  ;;  %v3528_v38 = vadd.f32 %v3527_v35, %v3526_v27  ;;  %v3637_v40 = vadd.f32 %v3636_v39, %v3635_v34  ;;  %v3638_v42 = vpop.f32.mrb[70].mxu1 }
 0x1b2   : > { %v3639_v43 = vpop.f32.mrb[71].mxu1 }
 0x1b3   : > { %v2145_v11 = vadd.f32 %v3528_v38, %v4748_v32  ;;  %v3640_v45 = vadd.f32 %v3639_v43, %v3638_v42  ;;  %v4889_v46 = vadd.f32 %v3637_v40, %v2142_v8 }
 0x1b5   : > { %v3529_v47 = vpop.f32.mrb[72].mxu0  ;;  %v4891_v53 = vadd.f32 %v3640_v45, %v2145_v11 }
 0x1b6   : > { %v3530_v48 = vpop.f32.mrb[73].mxu0 }
 0x1b7   : > { %v3531_v57 = vadd.f32 %v3530_v48, %v3529_v47  ;;  %v3532_v61 = vpop.f32.mrb[74].mxu0  ;;  %v3641_v62 = vpop.f32.mrb[72].mxu1 }
 0x1b8   : > { %v3533_v0 = vpop.f32.mrb[75].mxu0  ;;  %v3642_v2 = vpop.f32.mrb[73].mxu1 }
 0x1b9   : > { %v2150_v29 = vadd.f32 %v3531_v57, %v4756_v49  ;;  %v3534_v1 = vadd.f32 %v3533_v0, %v3532_v61  ;;  %v3643_v55 = vadd.f32 %v3642_v2, %v3641_v62  ;;  %v3644_v4 = vpop.f32.mrb[74].mxu1 }
 0x1ba   : > { %v3645_v5 = vpop.f32.mrb[75].mxu1 }
 0x1bb   : > { %v2153_v32 = vadd.f32 %v3534_v1, %v4758_v52  ;;  %v3646_v10 = vadd.f32 %v3645_v5, %v3644_v4  ;;  %v4895_v14 = vadd.f32 %v3643_v55, %v2150_v29 }
 0x1bd   : > { %v3535_v15 = vpop.f32.mrb[76].mxu0  ;;  %v4897_v18 = vadd.f32 %v3646_v10, %v2153_v32 }
 0x1be   : > { %v3536_v16 = vpop.f32.mrb[77].mxu0 }
 0x1bf   : > { %v3537_v21 = vadd.f32 %v3536_v16, %v3535_v15  ;;  %v3538_v23 = vpop.f32.mrb[78].mxu0  ;;  %v3647_v26 = vpop.f32.mrb[76].mxu1 }
 0x1c0   : > { %v3539_v27 = vpop.f32.mrb[79].mxu0  ;;  %v3648_v35 = vpop.f32.mrb[77].mxu1 }
 0x1c1   : > { %v2158_v49 = vadd.f32 %v3537_v21, %v4769_v7  ;;  %v3540_v34 = vadd.f32 %v3539_v27, %v3538_v23  ;;  %v3649_v8 = vadd.f32 %v3648_v35, %v3647_v26  ;;  %v3650_v38 = vpop.f32.mrb[78].mxu1 }
 0x1c2   : > { %v3651_v39 = vpop.f32.mrb[79].mxu1 }
 0x1c3   : > { %v2161_v52 = vadd.f32 %v3540_v34, %v4771_v12  ;;  %v3652_v40 = vadd.f32 %v3651_v39, %v3650_v38  ;;  %v4901_v42 = vadd.f32 %v3649_v8, %v2158_v49 }
 0x1c5   : > { %v3541_v11 = vpop.f32.mrb[80].mxu0  ;;  %v4903_v45 = vadd.f32 %v3652_v40, %v2161_v52 }
 0x1c6   : > { %v3542_v43 = vpop.f32.mrb[81].mxu0 }
 0x1c7   : > { %v3543_v47 = vadd.f32 %v3542_v43, %v3541_v11  ;;  %v3544_v48 = vpop.f32.mrb[82].mxu0  ;;  %v3653_v57 = vpop.f32.mrb[80].mxu1 }
 0x1c8   : > { %v3545_v61 = vpop.f32.mrb[83].mxu0  ;;  %v3654_v0 = vpop.f32.mrb[81].mxu1 }
 0x1c9   : > { %v2166_v7 = vadd.f32 %v3543_v47, %v4778_v28  ;;  %v3546_v62 = vadd.f32 %v3545_v61, %v3544_v48  ;;  %v3655_v29 = vadd.f32 %v3654_v0, %v3653_v57  ;;  %v3656_v1 = vpop.f32.mrb[82].mxu1 }
 0x1ca   : > { %v3657_v2 = vpop.f32.mrb[83].mxu1 }
 0x1cb   : > { %v2169_v12 = vadd.f32 %v3546_v62, %v4780_v33  ;;  %v3658_v55 = vadd.f32 %v3657_v2, %v3656_v1  ;;  %v4907_v4 = vadd.f32 %v3655_v29, %v2166_v7 }
 0x1cd   : > { %v3547_v32 = vpop.f32.mrb[84].mxu0  ;;  %v4909_v10 = vadd.f32 %v3658_v55, %v2169_v12 }
 0x1ce   : > { %v3548_v5 = vpop.f32.mrb[85].mxu0 }
 0x1cf   : > { %v3549_v15 = vadd.f32 %v3548_v5, %v3547_v32  ;;  %v3550_v16 = vpop.f32.mrb[86].mxu0  ;;  %v3659_v21 = vpop.f32.mrb[84].mxu1 }
 0x1d0   : > { %v3551_v23 = vpop.f32.mrb[87].mxu0  ;;  %v3660_v27 = vpop.f32.mrb[85].mxu1 }
 0x1d1   : > { %v2174_v28 = vadd.f32 %v3549_v15, %v4789_v50  ;;  %v3552_v26 = vadd.f32 %v3551_v23, %v3550_v16  ;;  %v3661_v49 = vadd.f32 %v3660_v27, %v3659_v21  ;;  %v3662_v34 = vpop.f32.mrb[86].mxu1 }
 0x1d2   : > { %v3663_v35 = vpop.f32.mrb[87].mxu1 }
 0x1d3   : > { %v2177_v33 = vadd.f32 %v3552_v26, %v4791_v54  ;;  %v3664_v8 = vadd.f32 %v3663_v35, %v3662_v34  ;;  %v4913_v38 = vadd.f32 %v3661_v49, %v2174_v28 }
 0x1d5   : > { %v3553_v52 = vpop.f32.mrb[88].mxu0  ;;  %v4915_v40 = vadd.f32 %v3664_v8, %v2177_v33 }
 0x1d6   : > { %v3554_v39 = vpop.f32.mrb[89].mxu0 }
 0x1d7   : > { %v3555_v11 = vadd.f32 %v3554_v39, %v3553_v52  ;;  %v3556_v43 = vpop.f32.mrb[90].mxu0  ;;  %v3665_v47 = vpop.f32.mrb[88].mxu1 }
 0x1d8   : > { %v3557_v48 = vpop.f32.mrb[91].mxu0  ;;  %v3666_v61 = vpop.f32.mrb[89].mxu1 }
 0x1d9   : > { %v2182_v50 = vadd.f32 %v3555_v11, %v4797_v6  ;;  %v3558_v57 = vadd.f32 %v3557_v48, %v3556_v43  ;;  %v3667_v7 = vadd.f32 %v3666_v61, %v3665_v47  ;;  %v3668_v62 = vpop.f32.mrb[90].mxu1 }
 0x1da   : > { %v3669_v0 = vpop.f32.mrb[91].mxu1 }
 0x1db   : > { %v2185_v54 = vadd.f32 %v3558_v57, %v4799_v13  ;;  %v3670_v29 = vadd.f32 %v3669_v0, %v3668_v62  ;;  %v4919_v1 = vadd.f32 %v3667_v7, %v2182_v50 }
 0x1dd   : > { %v3559_v12 = vpop.f32.mrb[92].mxu0  ;;  %v4921_v55 = vadd.f32 %v3670_v29, %v2185_v54 }
 0x1de   : > { %v3560_v2 = vpop.f32.mrb[93].mxu0 }
 0x1df   : > { %v3561_v32 = vadd.f32 %v3560_v2, %v3559_v12  ;;  %v3562_v5 = vpop.f32.mrb[94].mxu0  ;;  %v3671_v15 = vpop.f32.mrb[92].mxu1 }
 0x1e0   : > { %v3563_v16 = vpop.f32.mrb[95].mxu0  ;;  %v3672_v23 = vpop.f32.mrb[93].mxu1 }
 0x1e1   : > { %v2190_v6 = vadd.f32 %v3561_v32, %v4808_v31  ;;  %v3564_v21 = vadd.f32 %v3563_v16, %v3562_v5  ;;  %v3673_v28 = vadd.f32 %v3672_v23, %v3671_v15  ;;  %v3674_v26 = vpop.f32.mrb[94].mxu1 }
 0x1e2   : > { %v3675_v27 = vpop.f32.mrb[95].mxu1 }
 0x1e3   : > { %v2193_v13 = vadd.f32 %v3564_v21, %v4810_v36  ;;  %v3676_v49 = vadd.f32 %v3675_v27, %v3674_v26  ;;  %v4925_v34 = vadd.f32 %v3673_v28, %v2190_v6 }
 0x1e5   : > { %v3565_v33 = vpop.f32.mrb[96].mxu0  ;;  %v4927_v8 = vadd.f32 %v3676_v49, %v2193_v13 }
 0x1e6   : > { %v3566_v35 = vpop.f32.mrb[97].mxu0 }
 0x1e7   : > { %v3567_v52 = vadd.f32 %v3566_v35, %v3565_v33  ;;  %v3568_v39 = vpop.f32.mrb[98].mxu0  ;;  %v3677_v11 = vpop.f32.mrb[96].mxu1 }
 0x1e8   : > { %v3569_v43 = vpop.f32.mrb[99].mxu0  ;;  %v3678_v48 = vpop.f32.mrb[97].mxu1 }
 0x1e9   : > { %v2198_v31 = vadd.f32 %v3567_v52, %v4816_v56  ;;  %v3570_v47 = vadd.f32 %v3569_v43, %v3568_v39  ;;  %v3679_v50 = vadd.f32 %v3678_v48, %v3677_v11  ;;  %v3680_v57 = vpop.f32.mrb[98].mxu1 }
 0x1ea   : > { %v3681_v61 = vpop.f32.mrb[99].mxu1 }
 0x1eb   : > { %v2201_v36 = vadd.f32 %v3570_v47, %v4818_v59  ;;  %v3682_v7 = vadd.f32 %v3681_v61, %v3680_v57  ;;  %v4931_v62 = vadd.f32 %v3679_v50, %v2198_v31 }
 0x1ed   : > { %v3571_v54 = vpop.f32.mrb[100].mxu0  ;;  %v4933_v29 = vadd.f32 %v3682_v7, %v2201_v36 }
 0x1ee   : > { %v3572_v0 = vpop.f32.mrb[101].mxu0 }
 0x1ef   : > { %v3573_v12 = vadd.f32 %v3572_v0, %v3571_v54  ;;  %v3574_v2 = vpop.f32.mrb[102].mxu0  ;;  %v3683_v32 = vpop.f32.mrb[100].mxu1 }
 0x1f0   : > { %v3575_v5 = vpop.f32.mrb[103].mxu0  ;;  %v3684_v16 = vpop.f32.mrb[101].mxu1 }
 0x1f1   : > { %v2206_v56 = vadd.f32 %v3573_v12, %v4827_v17  ;;  %v3576_v15 = vadd.f32 %v3575_v5, %v3574_v2  ;;  %v3685_v6 = vadd.f32 %v3684_v16, %v3683_v32  ;;  %v3686_v21 = vpop.f32.mrb[102].mxu1 }
 0x1f2   : > { %v3687_v23 = vpop.f32.mrb[103].mxu1 }
 0x1f3   : > { %v2209_v59 = vadd.f32 %v3576_v15, %v4829_v20  ;;  %v3688_v28 = vadd.f32 %v3687_v23, %v3686_v21  ;;  %v4937_v26 = vadd.f32 %v3685_v6, %v2206_v56 }
 0x1f5   : > { %v3577_v13 = vpop.f32.mrb[104].mxu0  ;;  %v4939_v49 = vadd.f32 %v3688_v28, %v2209_v59 }
 0x1f6   : > { %v3578_v27 = vpop.f32.mrb[105].mxu0 }
 0x1f7   : > { %v3579_v33 = vadd.f32 %v3578_v27, %v3577_v13  ;;  %v3580_v35 = vpop.f32.mrb[106].mxu0  ;;  %v3689_v52 = vpop.f32.mrb[104].mxu1 }
 0x1f8   : > { %v3581_v39 = vpop.f32.mrb[107].mxu0  ;;  %v3690_v43 = vpop.f32.mrb[105].mxu1 }
 0x1f9   : > { %v2214_v17 = vadd.f32 %v3579_v33, %v4835_v41  ;;  %v3582_v11 = vadd.f32 %v3581_v39, %v3580_v35  ;;  %v3691_v31 = vadd.f32 %v3690_v43, %v3689_v52  ;;  %v3692_v47 = vpop.f32.mrb[106].mxu1 }
 0x1fa   : > { %v3693_v48 = vpop.f32.mrb[107].mxu1 }
 0x1fb   : > { %v2217_v20 = vadd.f32 %v3582_v11, %v4837_v44  ;;  %v3694_v50 = vadd.f32 %v3693_v48, %v3692_v47  ;;  %v4943_v57 = vadd.f32 %v3691_v31, %v2214_v17 }
 0x1fd   : > { %v3583_v36 = vpop.f32.mrb[108].mxu0  ;;  %v4945_v7 = vadd.f32 %v3694_v50, %v2217_v20 }
 0x1fe   : > { %v3584_v61 = vpop.f32.mrb[109].mxu0 }
 0x1ff   : > { %v3585_v54 = vadd.f32 %v3584_v61, %v3583_v36  ;;  %v3586_v0 = vpop.f32.mrb[110].mxu0  ;;  %v3695_v12 = vpop.f32.mrb[108].mxu1 }
 0x200   : > { %v3587_v2 = vpop.f32.mrb[111].mxu0  ;;  %v3696_v5 = vpop.f32.mrb[109].mxu1 }
 0x201   : > { %v2222_v41 = vadd.f32 %v3585_v54, %v4846_v3  ;;  %v3588_v32 = vadd.f32 %v3587_v2, %v3586_v0  ;;  %v3697_v56 = vadd.f32 %v3696_v5, %v3695_v12  ;;  %v3698_v15 = vpop.f32.mrb[110].mxu1 }
 0x202   : > { %v3699_v16 = vpop.f32.mrb[111].mxu1 }
 0x203   : > { %v2225_v44 = vadd.f32 %v3588_v32, %v4848_v9  ;;  %v3700_v6 = vadd.f32 %v3699_v16, %v3698_v15  ;;  %v4949_v21 = vadd.f32 %v3697_v56, %v2222_v41 }
 0x205   : > { %v3589_v59 = vpop.f32.mrb[112].mxu0  ;;  %v4951_v28 = vadd.f32 %v3700_v6, %v2225_v44 }
 0x206   : > { %v3590_v23 = vpop.f32.mrb[113].mxu0 }
 0x207   : > { %v3591_v13 = vadd.f32 %v3590_v23, %v3589_v59  ;;  %v3592_v27 = vpop.f32.mrb[114].mxu0  ;;  %v3701_v33 = vpop.f32.mrb[112].mxu1 }
 0x208   : > { %v3593_v35 = vpop.f32.mrb[115].mxu0  ;;  %v3702_v39 = vpop.f32.mrb[113].mxu1 }
 0x209   : > { %v2230_v3 = vadd.f32 %v3591_v13, %v4853_v30  ;;  %v3594_v52 = vadd.f32 %v3593_v35, %v3592_v27  ;;  %v3703_v17 = vadd.f32 %v3702_v39, %v3701_v33  ;;  %v3704_v11 = vpop.f32.mrb[114].mxu1 }
 0x20a   : > { %v3705_v43 = vpop.f32.mrb[115].mxu1 }
 0x20b   : > { %v2233_v9 = vadd.f32 %v3594_v52, %v4855_v37  ;;  %v3706_v31 = vadd.f32 %v3705_v43, %v3704_v11  ;;  %v4955_v47 = vadd.f32 %v3703_v17, %v2230_v3 }
 0x20d   : > { %v3595_v20 = vpop.f32.mrb[116].mxu0  ;;  %v4957_v50 = vadd.f32 %v3706_v31, %v2233_v9 }
 0x20e   : > { %v3596_v48 = vpop.f32.mrb[117].mxu0 }
 0x20f   : > { %v3597_v36 = vadd.f32 %v3596_v48, %v3595_v20  ;;  %v3598_v61 = vpop.f32.mrb[118].mxu0  ;;  %v3707_v54 = vpop.f32.mrb[116].mxu1 }
 0x210   : > { %v3599_v0 = vpop.f32.mrb[119].mxu0  ;;  %v3708_v2 = vpop.f32.mrb[117].mxu1 }
 0x211   : > { %v2238_v30 = vadd.f32 %v3597_v36, %v4862_v60  ;;  %v3600_v12 = vadd.f32 %v3599_v0, %v3598_v61  ;;  %v3709_v41 = vadd.f32 %v3708_v2, %v3707_v54  ;;  %v3710_v32 = vpop.f32.mrb[118].mxu1 }
 0x212   : > { %v3711_v5 = vpop.f32.mrb[119].mxu1 }
 0x213   : > { %v2241_v37 = vadd.f32 %v3600_v12, %v4864_v63  ;;  %v3712_v56 = vadd.f32 %v3711_v5, %v3710_v32  ;;  %v4961_v15 = vadd.f32 %v3709_v41, %v2238_v30 }
 0x215   : > { %v3601_v44 = vpop.f32.mrb[120].mxu0  ;;  %v4963_v6 = vadd.f32 %v3712_v56, %v2241_v37 }
 0x216   : > { %v3602_v16 = vpop.f32.mrb[121].mxu0 }
 0x217   : > { %v3603_v59 = vadd.f32 %v3602_v16, %v3601_v44  ;;  %v3604_v23 = vpop.f32.mrb[122].mxu0  ;;  %v3713_v13 = vpop.f32.mrb[120].mxu1 }
 0x218   : > { %v3605_v27 = vpop.f32.mrb[123].mxu0  ;;  %v3714_v35 = vpop.f32.mrb[121].mxu1 }
 0x219   : > { %v2246_v60 = vadd.f32 %v3603_v59, %v4868_v22  ;;  %v3606_v33 = vadd.f32 %v3605_v27, %v3604_v23  ;;  %v3715_v3 = vadd.f32 %v3714_v35, %v3713_v13  ;;  %v3716_v52 = vpop.f32.mrb[122].mxu1 }
 0x21a   : > { %v3717_v39 = vpop.f32.mrb[123].mxu1 }
 0x21b   : > { %v2249_v63 = vadd.f32 %v3606_v33, %v4870_v25  ;;  %v3718_v17 = vadd.f32 %v3717_v39, %v3716_v52  ;;  %v4967_v11 = vadd.f32 %v3715_v3, %v2246_v60 }
 0x21d   : > { %v3607_v9 = vpop.f32.mrb[124].mxu0  ;;  %v4969_v31 = vadd.f32 %v3718_v17, %v2249_v63 }
 0x21e   : > { %v3608_v43 = vpop.f32.mrb[125].mxu0 }
 0x21f   : > { %v3609_v20 = vadd.f32 %v3608_v43, %v3607_v9  ;;  %v3610_v48 = vpop.f32.mrb[126].mxu0  ;;  %v3719_v36 = vpop.f32.mrb[124].mxu1 }
 0x220   : > { %v3611_v61 = vpop.f32.mrb[127].mxu0  ;;  %v3720_v0 = vpop.f32.mrb[125].mxu1 }
 0x221   : > { %v2254_v22 = vadd.f32 %v3609_v20, %v4877_v51  ;;  %v3612_v54 = vadd.f32 %v3611_v61, %v3610_v48  ;;  %v3721_v30 = vadd.f32 %v3720_v0, %v3719_v36  ;;  %v3722_v12 = vpop.f32.mrb[126].mxu1 }
 0x222   : > { %v3723_v2 = vpop.f32.mrb[127].mxu1 }
 0x223   : > { %v2257_v25 = vadd.f32 %v3612_v54, %v4879_v58  ;;  %v3724_v41 = vadd.f32 %v3723_v2, %v3722_v12  ;;  %v4973_v32 = vadd.f32 %v3721_v30, %v2254_v22 }
 0x225   : > { %v3791_v37 = vpop.f32.mrb[128].mxu0  ;;  %v4976_v44 = vadd.f32 %v3724_v41, %v2257_v25 }
 0x226   : > { %v2464_v5 = vadd.f32 %v3791_v37, %v4889_v46  ;;  %v2455_v56 = vpop.f32.mrb[129].mxu0 }
 0x227   : > { %v2456_v16 = vadd.f32 %v2455_v56, %v4883_v19  ;;  %v3792_v59 = vpop.f32.mrb[130].mxu0 }
 0x228   : > { %v2467_v51 = vadd.f32 %v3792_v59, %v4891_v53  ;;  %v2458_v23 = vpop.f32.mrb[131].mxu0  ;;  %v2584_v27 = vmax.f32 %v2464_v5, 0.0 }
 0x229   : > { %v2459_v13 = vadd.f32 %v2458_v23, %v4885_v24  ;;  %v2582_v60 = vmax.f32 %v2456_v16, 0.0 }
 0x22a   : > { %v2585_v58 = vmax.f32 %v2467_v51, 0.0 }
 0x22b   : > { %v2583_v33 = vmax.f32 %v2459_v13, 0.0 }
 0x22c   : > { %v2615_v35 = vpack.c.bf16 %v2585_v58, %v2584_v27 }
 0x22d   : > { %v2614_v3 = vpack.c.bf16 %v2583_v33, %v2582_v60  ;;  %v3795_v52 = vpop.f32.mrb[132].mxu0 }
 0x22e   : > { %v2480_v46 = vadd.f32 %v3795_v52, %v4901_v42  ;;  %v2471_v63 = vpop.f32.mrb[133].mxu0 }
 0x22f   : > { %v2472_v39 = vadd.f32 %v2471_v63, %v4895_v14  ;;  %v3796_v17 = vpop.f32.mrb[134].mxu0  ;;  %3837 = vmatprep.mubr.bf16.mxu1 %v2614_v3 }
 0x230   : > { %v2483_v19 = vadd.f32 %v3796_v17, %v4903_v45  ;;  %v2474_v53 = vpop.f32.mrb[135].mxu0  ;;  %3838 = vmatmul.mubr.bf16.vlgmr.msra.gmra.mrb[128].mxu1 %v2615_v35  ;;  %v2588_v9 = vmax.f32 %v2480_v46, 0.0 }
 0x231   : > { %v2475_v24 = vadd.f32 %v2474_v53, %v4897_v18  ;;  %v2586_v20 = vmax.f32 %v2472_v39, 0.0 }
 0x232   : > { %v2589_v43 = vmax.f32 %v2483_v19, 0.0 }
 0x233   : > { %v2587_v48 = vmax.f32 %v2475_v24, 0.0 }
 0x234   : > { %v2617_v36 = vpack.c.bf16 %v2589_v43, %v2588_v9 }
 0x235   : > { %v2616_v61 = vpack.c.bf16 %v2587_v48, %v2586_v20  ;;  %v3799_v22 = vpop.f32.mrb[136].mxu0 }
 0x236   : > { %v2496_v42 = vadd.f32 %v3799_v22, %v4913_v38  ;;  %v2487_v54 = vpop.f32.mrb[137].mxu0 }
 0x237   : > { %v2488_v14 = vadd.f32 %v2487_v54, %v4907_v4  ;;  %v3800_v0 = vpop.f32.mrb[138].mxu0  ;;  %3841 = vmatprep.mubr.bf16.mxu1 %v2616_v61 }
 0x238   : > { %v2499_v45 = vadd.f32 %v3800_v0, %v4915_v40  ;;  %v2490_v30 = vpop.f32.mrb[139].mxu0  ;;  %3842 = vmatmul.mubr.bf16.gmra.mrb[132].mxu1 %v2617_v36  ;;  %v2592_v12 = vmax.f32 %v2496_v42, 0.0 }
 0x239   : > { %v2491_v18 = vadd.f32 %v2490_v30, %v4909_v10  ;;  %v2590_v2 = vmax.f32 %v2488_v14, 0.0 }
 0x23a   : > { %v2593_v25 = vmax.f32 %v2499_v45, 0.0 }
 0x23b   : > { %v2591_v41 = vmax.f32 %v2491_v18, 0.0 }
 0x23c   : > { %v2619_v37 = vpack.c.bf16 %v2593_v25, %v2592_v12 }
 0x23d   : > { %v2618_v5 = vpack.c.bf16 %v2591_v41, %v2590_v2  ;;  %v3803_v56 = vpop.f32.mrb[140].mxu0 }
 0x23e   : > { %v2512_v38 = vadd.f32 %v3803_v56, %v4925_v34  ;;  %v2503_v16 = vpop.f32.mrb[141].mxu0 }
 0x23f   : > { %v2504_v4 = vadd.f32 %v2503_v16, %v4919_v1  ;;  %v3804_v59 = vpop.f32.mrb[142].mxu0  ;;  %3845 = vmatprep.mubr.bf16.mxu1 %v2618_v5 }
 0x240   : > { %v2515_v40 = vadd.f32 %v3804_v59, %v4927_v8  ;;  %v2506_v51 = vpop.f32.mrb[143].mxu0  ;;  %3846 = vmatmul.mubr.bf16.gmra.mrb[136].mxu1 %v2619_v37  ;;  %v2596_v23 = vmax.f32 %v2512_v38, 0.0 }
 0x241   : > { %v2507_v10 = vadd.f32 %v2506_v51, %v4921_v55  ;;  %v2594_v27 = vmax.f32 %v2504_v4, 0.0 }
 0x242   : > { %v2597_v13 = vmax.f32 %v2515_v40, 0.0 }
 0x243   : > { %v2595_v58 = vmax.f32 %v2507_v10, 0.0 }
 0x244   : > { %v2621_v60 = vpack.c.bf16 %v2597_v13, %v2596_v23 }
 0x245   : > { %v2620_v33 = vpack.c.bf16 %v2595_v58, %v2594_v27  ;;  %v3807_v35 = vpop.f32.mrb[144].mxu0  ;;  %v2862_v58 = vld [vmem:[%s5014_s11] sm:$0xff] }
 0x246   : > { %v2528_v34 = vadd.f32 %v3807_v35, %v4937_v26  ;;  %v2519_v3 = vpop.f32.mrb[145].mxu0  ;;  %v2865_v35 = vld [vmem:[%s5014_s11 + $0x18] sm:$0xff] }
 0x247   : > { %v2520_v1 = vadd.f32 %v2519_v3, %v4931_v62  ;;  %v3808_v52 = vpop.f32.mrb[146].mxu0  ;;  %3849 = vmatprep.mubr.bf16.mxu1 %v2620_v33 }
 0x248   : > { %v2531_v8 = vadd.f32 %v3808_v52, %v4939_v49  ;;  %v2522_v46 = vpop.f32.mrb[147].mxu0  ;;  %3850 = vmatmul.mubr.bf16.gmra.mrb[140].mxu1 %v2621_v60  ;;  %v2600_v63 = vmax.f32 %v2528_v34, 0.0  ;;  %v2863_v52 = vld [vmem:[%s5014_s11 + $0x8] sm:$0xff] }
 0x249   : > { %v2523_v55 = vadd.f32 %v2522_v46, %v4933_v29  ;;  %v2598_v17 = vmax.f32 %v2520_v1, 0.0 }
 0x24a   : > { %v2601_v39 = vmax.f32 %v2531_v8, 0.0 }
 0x24b   : > { %v2599_v19 = vmax.f32 %v2523_v55, 0.0 }
 0x24c   : > { %v2623_v53 = vpack.c.bf16 %v2601_v39, %v2600_v63 }
 0x24d   : > { %v2622_v24 = vpack.c.bf16 %v2599_v19, %v2598_v17  ;;  %v3811_v9 = vpop.f32.mrb[148].mxu0  ;;  %v2868_v17 = vld [vmem:[%s5014_s11 + $0x30] sm:$0xff] }
 0x24e   : > { %v2544_v26 = vadd.f32 %v3811_v9, %v4949_v21  ;;  %v2535_v43 = vpop.f32.mrb[149].mxu0 }
 0x24f   : > { %v2536_v62 = vadd.f32 %v2535_v43, %v4943_v57  ;;  %v3812_v20 = vpop.f32.mrb[150].mxu0  ;;  %3853 = vmatprep.mubr.bf16.mxu1 %v2622_v24  ;;  %v2866_v24 = vld [vmem:[%s5014_s11 + $0x20] sm:$0xff]  ;;  %v2869_v43 = vld [vmem:[%s5014_s11 + $0x38] sm:$0xff] }
 0x250   : > { %v2547_v49 = vadd.f32 %v3812_v20, %v4951_v28  ;;  %v2538_v48 = vpop.f32.mrb[151].mxu0  ;;  %3854 = vmatmul.mubr.bf16.gmra.mrb[144].mxu1 %v2623_v53  ;;  %v2604_v36 = vmax.f32 %v2544_v26, 0.0 }
 0x251   : > { %v2539_v29 = vadd.f32 %v2538_v48, %v4945_v7  ;;  %v2602_v22 = vmax.f32 %v2536_v62, 0.0  ;;  %v2867_v48 = vld [vmem:[%s5014_s11 + $0x28] sm:$0xff] }
 0x252   : > { %v2605_v61 = vmax.f32 %v2547_v49, 0.0 }
 0x253   : > { %v2603_v42 = vmax.f32 %v2539_v29, 0.0 }
 0x254   : > { %v2625_v54 = vpack.c.bf16 %v2605_v61, %v2604_v36 }
 0x255   : > { %v2624_v14 = vpack.c.bf16 %v2603_v42, %v2602_v22  ;;  %v3815_v0 = vpop.f32.mrb[152].mxu0 }
 0x256   : > { %v2560_v21 = vadd.f32 %v3815_v0, %v4961_v15  ;;  %v2551_v45 = vpop.f32.mrb[153].mxu0 }
 0x257   : > { %v2552_v57 = vadd.f32 %v2551_v45, %v4955_v47  ;;  %v3816_v30 = vpop.f32.mrb[154].mxu0  ;;  %3857 = vmatprep.mubr.bf16.mxu1 %v2624_v14 }
 0x258   : > { %v2563_v28 = vadd.f32 %v3816_v30, %v4963_v6  ;;  %v2554_v18 = vpop.f32.mrb[155].mxu0  ;;  %3858 = vmatmul.mubr.bf16.gmra.mrb[148].mxu1 %v2625_v54  ;;  %v2608_v12 = vmax.f32 %v2560_v21, 0.0  ;;  %v2872_v54 = vld [vmem:[%s5014_s11 + $0x50] sm:$0xff]  ;;  %v2870_v21 = vld [vmem:[%s5014_s11 + $0x40] sm:$0xff]  ;;  %v2873_v30 = vld [vmem:[%s5014_s11 + $0x58] sm:$0xff] }
 0x259   : > { %v2555_v7 = vadd.f32 %v2554_v18, %v4957_v50  ;;  %v2606_v2 = vmax.f32 %v2552_v57, 0.0 }
 0x25a   : > { %v2609_v25 = vmax.f32 %v2563_v28, 0.0 }
 0x25b   : > { %v2607_v41 = vmax.f32 %v2555_v7, 0.0 }
 0x25c   : > { %v2627_v37 = vpack.c.bf16 %v2609_v25, %v2608_v12  ;;  %v2871_v12 = vld [vmem:[%s5014_s11 + $0x48] sm:$0xff] }
 0x25d   : > { %v2626_v5 = vpack.c.bf16 %v2607_v41, %v2606_v2  ;;  %v3819_v56 = vpop.f32.mrb[156].mxu0 }
 0x25e   : > { %v2576_v15 = vadd.f32 %v3819_v56, %v4973_v32  ;;  %v2567_v38 = vpop.f32.mrb[157].mxu0  ;;  %v2864_v32 = vld [vmem:[%s5014_s11 + $0x10] sm:$0xff] }
 0x25f   : > { %v2568_v47 = vadd.f32 %v2567_v38, %v4967_v11  ;;  %v3820_v16 = vpop.f32.mrb[158].mxu0  ;;  %3861 = vmatprep.mubr.bf16.mxu1 %v2626_v5  ;;  %v5019_v11 = vld [vmem:[%s5139_s4] ss:$0 sm:$0xff]  ;;  %v2876_v56 = vld [vmem:[%s5014_s11 + $0x70] sm:$0xff] }
 0x260   : > { %v2579_v6 = vadd.f32 %v3820_v16, %v4976_v44  ;;  %v2570_v4 = vpop.f32.mrb[159].mxu0  ;;  %3862 = vmatmul.mubr.bf16.gmra.mrb[152].mxu1 %v2627_v37  ;;  %v2612_v59 = vmax.f32 %v2576_v15, 0.0 }
 0x261   : > { %v2571_v50 = vadd.f32 %v2570_v4, %v4969_v31  ;;  %v2610_v51 = vmax.f32 %v2568_v47, 0.0  ;;  %v2874_v47 = vld [vmem:[%s5014_s11 + $0x60] sm:$0xff]  ;;  %v2877_v4 = vld [vmem:[%s5014_s11 + $0x78] sm:$0xff] }
 0x262   : > { %v2613_v40 = vmax.f32 %v2579_v6, 0.0 }
 0x263   : > { %v2611_v10 = vmax.f32 %v2571_v50, 0.0 }
 0x264   : > { %v2629_v23 = vpack.c.bf16 %v2613_v40, %v2612_v59 }
 0x265   : > { %v2628_v13 = vpack.c.bf16 %v2611_v10, %v2610_v51  ;;  %v2875_v51 = vld [vmem:[%s5014_s11 + $0x68] sm:$0xff] }
 0x267   : > { %3865 = vmatprep.mubr.bf16.mxu1 %v2628_v13 }
 0x268   : > { %3866 = vmatmul.mubr.bf16.gmra.mrb[156].mxu1 %v2629_v23 }
 0x303   : > { %v3839_v31 = vpop.f32.mrb[128].mxu1 }
 0x304   : > { %v2744_v44 = vadd.f32 %v3839_v31, %v5019_v11  ;;  %v2735_v27 = vpop.f32.mrb[129].mxu1 }
 0x305   : > { %v2736_v60 = vadd.f32 %v5019_v11, %v2735_v27  ;;  %v3840_v33 = vpop.f32.mrb[130].mxu1 }
 0x306   : > { %v2896_v34 = vadd.f32 %v2864_v32, %v2744_v44  ;;  %v2747_v3 = vadd.f32 %v3840_v33, %v5019_v11  ;;  %v2738_v1 = vpop.f32.mrb[131].mxu1  ;;  %v2880_v44 = vld [vmem:[%s5014_s11 + $0x90] sm:$0xff] }
 0x307   : > { %v2894_v8 = vadd.f32 %v2862_v58, %v2736_v60  ;;  %v2739_v46 = vadd.f32 %v5019_v11, %v2738_v1  ;;  %v2878_v60 = vld [vmem:[%s5014_s11 + $0x80] sm:$0xff] }
 0x308   : > { %2928 = vst [vmem:[%s5027_s17 + $0x10] sm:$0xff] %v2896_v34  ;;  %v2897_v55 = vadd.f32 %v2865_v35, %v2747_v3  ;;  %v2881_v34 = vld [vmem:[%s5014_s11 + $0x98] sm:$0xff] }
 0x309   : > { %2926 = vst [vmem:[%s5027_s17] sm:$0xff] %v2894_v8  ;;  %v2895_v63 = vadd.f32 %v2863_v52, %v2739_v46  ;;  %v2879_v8 = vld [vmem:[%s5014_s11 + $0x88] sm:$0xff] }
 0x30a   : > { %2929 = vst [vmem:[%s5027_s17 + $0x18] sm:$0xff] %v2897_v55 }
 0x30b   : > { %2927 = vst [vmem:[%s5027_s17 + $0x8] sm:$0xff] %v2895_v63  ;;  %v3843_v39 = vpop.f32.mrb[132].mxu1 }
 0x30c   : > { %v2760_v19 = vadd.f32 %v3843_v39, %v5019_v11  ;;  %v2751_v53 = vpop.f32.mrb[133].mxu1 }
 0x30d   : > { %v2752_v9 = vadd.f32 %v5019_v11, %v2751_v53  ;;  %v3844_v26 = vpop.f32.mrb[134].mxu1 }
 0x30e   : > { %v2900_v62 = vadd.f32 %v2868_v17, %v2760_v19  ;;  %v2763_v20 = vadd.f32 %v3844_v26, %v5019_v11  ;;  %v2754_v49 = vpop.f32.mrb[135].mxu1  ;;  %v2884_v19 = vld [vmem:[%s5014_s11 + $0xb0] sm:$0xff] }
 0x30f   : > { %v2898_v29 = vadd.f32 %v2866_v24, %v2752_v9  ;;  %v2755_v36 = vadd.f32 %v5019_v11, %v2754_v49  ;;  %v2882_v9 = vld [vmem:[%s5014_s11 + $0xa0] sm:$0xff] }
 0x310   : > { %2932 = vst [vmem:[%s5027_s17 + $0x30] sm:$0xff] %v2900_v62  ;;  %v2901_v61 = vadd.f32 %v2869_v43, %v2763_v20  ;;  %v2885_v62 = vld [vmem:[%s5014_s11 + $0xb8] sm:$0xff] }
 0x311   : > { %2930 = vst [vmem:[%s5027_s17 + $0x20] sm:$0xff] %v2898_v29  ;;  %v2899_v22 = vadd.f32 %v2867_v48, %v2755_v36  ;;  %v2883_v29 = vld [vmem:[%s5014_s11 + $0xa8] sm:$0xff] }
 0x312   : > { %2933 = vst [vmem:[%s5027_s17 + $0x38] sm:$0xff] %v2901_v61 }
 0x313   : > { %2931 = vst [vmem:[%s5027_s17 + $0x28] sm:$0xff] %v2899_v22  ;;  %v3847_v42 = vpop.f32.mrb[136].mxu1 }
 0x314   : > { %v2776_v14 = vadd.f32 %v3847_v42, %v5019_v11  ;;  %v2767_v0 = vpop.f32.mrb[137].mxu1 }
 0x315   : > { %v2768_v45 = vadd.f32 %v5019_v11, %v2767_v0  ;;  %v3848_v57 = vpop.f32.mrb[138].mxu1 }
 0x316   : > { %v2904_v28 = vadd.f32 %v2872_v54, %v2776_v14  ;;  %v2779_v18 = vadd.f32 %v3848_v57, %v5019_v11  ;;  %v2770_v7 = vpop.f32.mrb[139].mxu1  ;;  %v2888_v14 = vld [vmem:[%s5014_s11 + $0xd0] sm:$0xff] }
 0x317   : > { %v2902_v25 = vadd.f32 %v2870_v21, %v2768_v45  ;;  %v2771_v2 = vadd.f32 %v5019_v11, %v2770_v7  ;;  %v2886_v45 = vld [vmem:[%s5014_s11 + $0xc0] sm:$0xff] }
 0x318   : > { %2936 = vst [vmem:[%s5027_s17 + $0x50] sm:$0xff] %v2904_v28  ;;  %v2905_v41 = vadd.f32 %v2873_v30, %v2779_v18  ;;  %v2889_v28 = vld [vmem:[%s5014_s11 + $0xd8] sm:$0xff] }
 0x319   : > { %2934 = vst [vmem:[%s5027_s17 + $0x40] sm:$0xff] %v2902_v25  ;;  %v2903_v37 = vadd.f32 %v2871_v12, %v2771_v2  ;;  %v2887_v25 = vld [vmem:[%s5014_s11 + $0xc8] sm:$0xff] }
 0x31a   : > { %2937 = vst [vmem:[%s5027_s17 + $0x58] sm:$0xff] %v2905_v41 }
 0x31b   : > { %2935 = vst [vmem:[%s5027_s17 + $0x48] sm:$0xff] %v2903_v37  ;;  %v3851_v5 = vpop.f32.mrb[140].mxu1 }
 0x31c   : > { %v2792_v15 = vadd.f32 %v3851_v5, %v5019_v11  ;;  %v2783_v38 = vpop.f32.mrb[141].mxu1 }
 0x31d   : > { %v2784_v16 = vadd.f32 %v5019_v11, %v2783_v38  ;;  %v3852_v6 = vpop.f32.mrb[142].mxu1 }
 0x31e   : > { %v2908_v50 = vadd.f32 %v2876_v56, %v2792_v15  ;;  %v2795_v59 = vadd.f32 %v3852_v6, %v5019_v11  ;;  %v2786_v40 = vpop.f32.mrb[143].mxu1  ;;  %v2892_v15 = vld [vmem:[%s5014_s11 + $0xf0] sm:$0xff] }
 0x31f   : > { %v2906_v10 = vadd.f32 %v2874_v47, %v2784_v16  ;;  %v2787_v23 = vadd.f32 %v5019_v11, %v2786_v40  ;;  %v2890_v16 = vld [vmem:[%s5014_s11 + $0xe0] sm:$0xff] }
 0x320   : > { %2940 = vst [vmem:[%s5027_s17 + $0x70] sm:$0xff] %v2908_v50  ;;  %v2909_v13 = vadd.f32 %v2877_v4, %v2795_v59  ;;  %v2893_v50 = vld [vmem:[%s5014_s11 + $0xf8] sm:$0xff] }
 0x321   : > { %2938 = vst [vmem:[%s5027_s17 + $0x60] sm:$0xff] %v2906_v10  ;;  %v2907_v31 = vadd.f32 %v2875_v51, %v2787_v23  ;;  %v2891_v10 = vld [vmem:[%s5014_s11 + $0xe8] sm:$0xff] }
 0x322   : > { %2941 = vst [vmem:[%s5027_s17 + $0x78] sm:$0xff] %v2909_v13 }
 0x323   : > { %2939 = vst [vmem:[%s5027_s17 + $0x68] sm:$0xff] %v2907_v31  ;;  %v3855_v32 = vpop.f32.mrb[144].mxu1 }
 0x324   : > { %v2808_v27 = vadd.f32 %v3855_v32, %v5019_v11  ;;  %v2799_v58 = vpop.f32.mrb[145].mxu1 }
 0x325   : > { %v2800_v33 = vadd.f32 %v5019_v11, %v2799_v58  ;;  %v3856_v35 = vpop.f32.mrb[146].mxu1 }
 0x326   : > { %v2912_v3 = vadd.f32 %v2880_v44, %v2808_v27  ;;  %v2811_v1 = vadd.f32 %v3856_v35, %v5019_v11  ;;  %v2802_v52 = vpop.f32.mrb[147].mxu1 }
 0x327   : > { %v2910_v46 = vadd.f32 %v2878_v60, %v2800_v33  ;;  %v2803_v55 = vadd.f32 %v5019_v11, %v2802_v52 }
 0x328   : > { %2944 = vst [vmem:[%s5027_s17 + $0x90] sm:$0xff] %v2912_v3  ;;  %v2913_v63 = vadd.f32 %v2881_v34, %v2811_v1 }
 0x329   : > { %2942 = vst [vmem:[%s5027_s17 + $0x80] sm:$0xff] %v2910_v46  ;;  %v2911_v39 = vadd.f32 %v2879_v8, %v2803_v55 }
 0x32a   : > { %2945 = vst [vmem:[%s5027_s17 + $0x98] sm:$0xff] %v2913_v63 }
 0x32b   : > { %2943 = vst [vmem:[%s5027_s17 + $0x88] sm:$0xff] %v2911_v39  ;;  %v3859_v17 = vpop.f32.mrb[148].mxu1 }
 0x32c   : > { %v2824_v53 = vadd.f32 %v3859_v17, %v5019_v11  ;;  %v2815_v24 = vpop.f32.mrb[149].mxu1 }
 0x32d   : > { %v2816_v26 = vadd.f32 %v5019_v11, %v2815_v24  ;;  %v3860_v43 = vpop.f32.mrb[150].mxu1 }
 0x32e   : > { %v2916_v20 = vadd.f32 %v2884_v19, %v2824_v53  ;;  %v2827_v49 = vadd.f32 %v3860_v43, %v5019_v11  ;;  %v2818_v48 = vpop.f32.mrb[151].mxu1 }
 0x32f   : > { %v2914_v36 = vadd.f32 %v2882_v9, %v2816_v26  ;;  %v2819_v61 = vadd.f32 %v5019_v11, %v2818_v48 }
 0x330   : > { %2948 = vst [vmem:[%s5027_s17 + $0xb0] sm:$0xff] %v2916_v20  ;;  %v2917_v22 = vadd.f32 %v2885_v62, %v2827_v49 }
 0x331   : > { %2946 = vst [vmem:[%s5027_s17 + $0xa0] sm:$0xff] %v2914_v36  ;;  %v2915_v42 = vadd.f32 %v2883_v29, %v2819_v61 }
 0x332   : > { %2949 = vst [vmem:[%s5027_s17 + $0xb8] sm:$0xff] %v2917_v22 }
 0x333   : > { %2947 = vst [vmem:[%s5027_s17 + $0xa8] sm:$0xff] %v2915_v42  ;;  %v3863_v54 = vpop.f32.mrb[152].mxu1 }
 0x334   : > { %v2840_v0 = vadd.f32 %v3863_v54, %v5019_v11  ;;  %v2831_v21 = vpop.f32.mrb[153].mxu1 }
 0x335   : > { %v2832_v57 = vadd.f32 %v5019_v11, %v2831_v21  ;;  %v3864_v30 = vpop.f32.mrb[154].mxu1 }
 0x336   : > { %v2920_v18 = vadd.f32 %v2888_v14, %v2840_v0  ;;  %v2843_v7 = vadd.f32 %v3864_v30, %v5019_v11  ;;  %v2834_v12 = vpop.f32.mrb[155].mxu1 }
 0x337   : > { %v2918_v2 = vadd.f32 %v2886_v45, %v2832_v57  ;;  %v2835_v41 = vadd.f32 %v5019_v11, %v2834_v12 }
 0x338   : > { %2952 = vst [vmem:[%s5027_s17 + $0xd0] sm:$0xff] %v2920_v18  ;;  %v2921_v37 = vadd.f32 %v2889_v28, %v2843_v7 }
 0x339   : > { %2950 = vst [vmem:[%s5027_s17 + $0xc0] sm:$0xff] %v2918_v2  ;;  %v2919_v5 = vadd.f32 %v2887_v25, %v2835_v41 }
 0x33a   : > { %2953 = vst [vmem:[%s5027_s17 + $0xd8] sm:$0xff] %v2921_v37 }
 0x33b   : > { %2951 = vst [vmem:[%s5027_s17 + $0xc8] sm:$0xff] %v2919_v5  ;;  %v3867_v56 = vpop.f32.mrb[156].mxu1 }
 0x33c   : > { %v2856_v38 = vadd.f32 %v3867_v56, %v5019_v11  ;;  %v2847_v47 = vpop.f32.mrb[157].mxu1 }
 0x33d   : > { %v2848_v6 = vadd.f32 %v5019_v11, %v2847_v47  ;;  %v3868_v4 = vpop.f32.mrb[158].mxu1 }
 0x33e   : > { %v2924_v59 = vadd.f32 %v2892_v15, %v2856_v38  ;;  %v2859_v40 = vadd.f32 %v3868_v4, %v5019_v11  ;;  %v2850_v51 = vpop.f32.mrb[159].mxu1 }
 0x33f   : > { %v2922_v23 = vadd.f32 %v2890_v16, %v2848_v6  ;;  %v2851_v13 = vadd.f32 %v5019_v11, %v2850_v51 }
 0x340   : > { %2956 = vst [vmem:[%s5027_s17 + $0xf0] sm:$0xff] %v2924_v59  ;;  %v2925_v31 = vadd.f32 %v2893_v50, %v2859_v40 }
 0x341   : > { %2954 = vst [vmem:[%s5027_s17 + $0xe0] sm:$0xff] %v2922_v23  ;;  %v2923_v32 = vadd.f32 %v2891_v10, %v2851_v13 }
 0x342   : > { %2957 = vst [vmem:[%s5027_s17 + $0xf8] sm:$0xff] %v2925_v31 }
 0x343   : > { %2955 = vst [vmem:[%s5027_s17 + $0xe8] sm:$0xff] %v2923_v32 }
 0x344 PF: > { %p16_p8 = scmp.ge.s32.totalorder %s4325_s26, 4   ;;  %s5145_s21 = smov %s4257_s22 }
 0x345   : > { %s5146_s22 = smov %s4261_s23  ;;  %s5147_s23 = smov %s4335_s29 }
 0x346   : > { %s5148_s24 = smov %s4325_s26  ;;  %18 = sbr.rel (!%p16_p8) target bundleno = 3 (0x3), region = 87 }
 0x34d   :  { %2980 = vsyncpa [#allocation3], 1 }
 0x34e   :  { %2982 = vsyncpa [#allocation3 + $0x1], 1 }

// kernel: affine_channel_transform.37
= control target key start
LH: loop header
LB: loop body
LE: loop exit
PB: predicated region body
PF: predicated region fallthrough
CT: control target
= control target key end

     0   :  { %s108_s3 = inlined_call_operand.vmem [shape: f32[8,128], index: 3, kind: input, shape index: {}]   ;;  %s109_s0 = inlined_call_operand.<no memory space> [shape: f32[1], index: 0, kind: input, shape index: {}]   ;;  %s110_s1 = inlined_call_operand.<no memory space> [shape: f32[1], index: 1, kind: input, shape index: {}]   ;;  %s111_s6 = inlined_call_operand.vmem [shape: f32[8,128], index: 6, kind: output, shape index: {1}]   ;;  %s112_s2 = inlined_call_operand.vmem [shape: f32[8,128], index: 2, kind: input, shape index: {}]   ;;  %s113_s4 = inlined_call_operand.vmem [shape: f32[8,128], index: 4, kind: input, shape index: {}]   ;;  %s114_s5 = inlined_call_operand.vmem [shape: f32[8,128], index: 5, kind: output, shape index: {0}]  }
   0x1   :  { %v26_v0 = vld [vmem:[%s108_s3] sm:$0xff]  ;;  %v28_v1 = vstv %s109_s0  ;;  %v30_v3 = vstv %s110_s1 }
   0x2   :  { %48 = vtanh.f32 %v26_v0  ;;  %v32_v7 = vld [vmem:[%s112_s2] sm:$0xff] }
   0x3   :  { %v36_v9 = vld [vmem:[%s113_s4] sm:$0xff] }
   0xc   :  { %v49_v2 = vpop.eup %48 }
   0xd   :  { %v29_v4 = vmul.f32 %v49_v2, %v28_v1 }
   0xf   :  { %v31_v5 = vadd.f32 %v30_v3, %v29_v4 }
  0x11   :  { %v33_v6 = vmul.f32 1.442695, %v31_v5  ;;  %39 = vst [vmem:[%s111_s6] sm:$0xff] %v31_v5 }
  0x13   :  { %50 = vpow2.f32 %v33_v6 }
  0x1d   :  { %v51_v8 = vpop.eup %50 }
  0x1e   :  { %v35_v10 = vmul.f32 %v51_v8, %v32_v7 }
  0x20   :  { %v37_v11 = vadd.f32 %v36_v9, %v35_v10 }
  0x22   :  { %38 = vst [vmem:[%s114_s5] sm:$0xff] %v37_v11 }

// kernel: affine_channel_transform.36
= control target key start
LH: loop header
LB: loop body
LE: loop exit
PB: predicated region body
PF: predicated region fallthrough
CT: control target
= control target key end

     0   :  { %s3631_s12 = smov 0   ;;  %s4421_s0 = inlined_call_operand.vmem [shape: bf16[512,1152], index: 0, kind: input, shape index: {}]   ;;  %s4422_s1 = inlined_call_operand.vmem [shape: bf16[1152,128], index: 1, kind: input, shape index: {}]   ;;  %s4423_s2 = inlined_call_operand.vmem [shape: f32[1,128], index: 2, kind: input, shape index: {}]   ;;  %s4424_s3 = inlined_call_operand.vmem [shape: f32[512,128], index: 3, kind: output, shape index: {}]  }
   0x1 LB: > { %s2550_s13 = sadd.s32 4294967295, %s3609_s12   ;;  %p2554_p0 = scmp.ge.s32.totalorder %s3609_s12, 1  ;;  %s3609_s12 = sphi %s3631_s12, %s13_s12  }
   0x2   : > { %p139_p1 = scmp.lt.s32.totalorder %s3609_s12, 3 }
   0x4   : > { %p140_p2 = pnand %p2554_p0, %p139_p1 }
   0x5   : > { %v3323_v0 = vld [vmem:[%s4422_s1 + $0x40] sm:$0xff] (!%p140_p2)   ;;  %s2555_s16 = sshll.u32 (!%p140_p2), %s2550_s13, 5  ;;  %v3325_v2 = vld [vmem:[%s4422_s1 + $0x48] sm:$0xff] (!%p140_p2)   ;;  %v3327_v4 = vld [vmem:[%s4422_s1 + $0x50] sm:$0xff] (!%p140_p2)  }
   0x6   : > { %143 = sbr.rel (%p140_p2) target bundleno = 540 (0x21c), region = 32  ;;  %v3324_v1 = vld [vmem:[%s4422_s1] sm:$0xff] (!%p140_p2)   ;;  %2778 = vmatprep.subr.bf16.mxu0 (!%p140_p2), %v3323_v0  ;;  %3298 = vmatprep.subr.bf16.mxu1 (!%p140_p2), %v3323_v0  ;;  %p165_p3 = scmp.lt.s32.totalorder (!%p140_p2), %s2555_s16, 63  ;;  %v3326_v3 = vld [vmem:[%s4422_s1 + $0x8] sm:$0xff] (!%p140_p2)   ;;  %v3328_v5 = vld [vmem:[%s4422_s1 + $0x10] sm:$0xff] (!%p140_p2)  }
   0x7   : > { %2779 = vmatpush3.bf16.msra.mxu0 (!%p140_p2), %v3324_v1  ;;  %3306 = vmatpush3.bf16.msra.mxu1 (!%p140_p2), %v3324_v1  ;;  %v3329_v6 = vld [vmem:[%s4422_s1 + $0x58] sm:$0xff] (!%p140_p2)   ;;  %v3331_v8 = vld [vmem:[%s4422_s1 + $0x60] sm:$0xff] (!%p140_p2)   ;;  %v3333_v10 = vld [vmem:[%s4422_s1 + $0x68] sm:$0xff] (!%p140_p2)  }
   0x8   : > { %2780 = vmatprep.subr.bf16.mxu0 (!%p140_p2), %v3325_v2  ;;  %3299 = vmatprep.subr.bf16.mxu1 (!%p140_p2), %v3325_v2  ;;  %v3330_v7 = vld [vmem:[%s4422_s1 + $0x18] sm:$0xff] (!%p140_p2)   ;;  %v3332_v9 = vld [vmem:[%s4422_s1 + $0x20] sm:$0xff] (!%p140_p2)   ;;  %v3334_v13 = vld [vmem:[%s4422_s1 + $0x28] sm:$0xff] (!%p140_p2)  }
   0x9   : > { %v3335_v14 = vld [vmem:[%s4422_s1 + $0x70] sm:$0xff] (!%p140_p2)   ;;  %v3337_v16 = vld [vmem:[%s4422_s1 + $0x78] sm:$0xff] (!%p140_p2)   ;;  %v3345_v18 = vld [vmem:[%s4422_s1 + $0xc0] sm:$0xff] (!%p140_p2)  }
   0xa   : > { %v3336_v15 = vld [vmem:[%s4422_s1 + $0x30] sm:$0xff] (!%p140_p2)   ;;  %v3338_v17 = vld [vmem:[%s4422_s1 + $0x38] sm:$0xff] (!%p140_p2)   ;;  %v3348_v21 = vld [vmem:[%s4422_s1 + $0x140] sm:$0xff] (!%p140_p2)  }
   0xb   : > { %2781 = vmatpush3.bf16.msra.mxu0 (!%p140_p2), %v3326_v3  ;;  %3307 = vmatpush3.bf16.msra.mxu1 (!%p140_p2), %v3326_v3  ;;  %v3346_v22 = vld [vmem:[%s4422_s1 + $0x80] sm:$0xff] (!%p140_p2)   ;;  %v3347_v23 = vld [vmem:[%s4422_s1 + $0xc8] sm:$0xff] (!%p140_p2)   ;;  %v3357_v31 = vld [vmem:[%s4422_s1 + $0xd0] sm:$0xff] (!%p140_p2)  }
   0xc   : > { %2782 = vmatprep.subr.bf16.mxu0 (!%p140_p2), %v3327_v4  ;;  %3300 = vmatprep.subr.bf16.mxu1 (!%p140_p2), %v3327_v4  ;;  %v3350_v24 = vld [vmem:[%s4422_s1 + $0x100] sm:$0xff] (!%p140_p2)   ;;  %v3349_v27 = vld [vmem:[%s4422_s1 + $0x88] sm:$0xff] (!%p140_p2)   ;;  %v3358_v32 = vld [vmem:[%s4422_s1 + $0x90] sm:$0xff] (!%p140_p2)  }
   0xd   : > { %s4426_s16 = smov (!%p165_p3, %s2555_s16), 63  ;;  %v3368_v28 = vld [vmem:[%s4422_s1 + $0x148] sm:$0xff]   ;;  %v3359_v34 = vld [vmem:[%s4422_s1 + $0xd8] sm:$0xff]   ;;  %v3367_v40 = vld [vmem:[%s4422_s1 + $0xe0] sm:$0xff]  }
   0xe   : > { %s3314_s29 = smul.u32 36, %s4426_s16  ;;  %v3370_v33 = vld [vmem:[%s4422_s1 + $0x108] sm:$0xff]   ;;  %v3360_v37 = vld [vmem:[%s4422_s1 + $0x98] sm:$0xff]   ;;  %v3369_v41 = vld [vmem:[%s4422_s1 + $0xa0] sm:$0xff]  }
   0xf   : > { %2783 = vmatpush3.bf16.msra.mxu0 %v3328_v5  ;;  %3308 = vmatpush3.bf16.msra.mxu1 %v3328_v5  ;;  %v3371_v42 = vld [vmem:[%s4422_s1 + $0xe8] sm:$0xff]   ;;  %v3382_v43 = vld [vmem:[%s4422_s1 + $0x150] sm:$0xff]   ;;  %v3381_v52 = vld [vmem:[%s4422_s1 + $0xf8] sm:$0xff]  }
  0x10   : > { %2784 = vmatprep.subr.bf16.mxu0 %v3329_v6  ;;  %3301 = vmatprep.subr.bf16.mxu1 %v3329_v6  ;;  %s3672_s9 = scalar_lea.vmem %s4421_s0, %s3314_s29  ;;  %v3384_v46 = vld [vmem:[%s4422_s1 + $0x110] sm:$0xff]   ;;  %v3372_v47 = vld [vmem:[%s4422_s1 + $0xa8] sm:$0xff]   ;;  %v3399_v55 = vld [vmem:[%s4422_s1 + $0x158] sm:$0xff]  }
  0x11   : > { %v3341_v11 = vld [vmem:[%s3672_s9 + $0x4] ss:$36 sps:$4 sm:$0xff]   ;;  %v3351_v25 = vld [vmem:[%s3672_s9 + $0x4c] ss:$36 sps:$4 sm:$0xff]   ;;  %v3361_v35 = vld [vmem:[%s3672_s9 + $0x94] ss:$36 sps:$4 sm:$0xff]  }
  0x12   : > { %v3344_v12 = vld [vmem:[%s3672_s9 + $0x364] ss:$36 sps:$4 sm:$0xff]   ;;  %1689 = vmatprep.mubr.bf16.mxu0 %v3341_v11  ;;  %v3353_v26 = vld [vmem:[%s3672_s9 + $0x3ac] ss:$36 sps:$4 sm:$0xff]   ;;  %v3363_v36 = vld [vmem:[%s3672_s9 + $0x3f4] ss:$36 sps:$4 sm:$0xff]  }
  0x13   : > { %2785 = vmatpush3.bf16.msra.mxu0 %v3330_v7  ;;  %3309 = vmatpush3.bf16.msra.mxu1 %v3330_v7  ;;  %v3339_v19 = vld [vmem:[%s3672_s9] ss:$36 sps:$4 sm:$0xff]   ;;  %v3355_v29 = vld [vmem:[%s3672_s9 + $0x48] ss:$36 sps:$4 sm:$0xff]   ;;  %v3365_v38 = vld [vmem:[%s3672_s9 + $0x90] ss:$36 sps:$4 sm:$0xff]  }
  0x14   : > { %2786 = vmatprep.subr.bf16.mxu0 %v3331_v8  ;;  %3302 = vmatprep.subr.bf16.mxu1 %v3331_v8  ;;  %v3342_v20 = vld [vmem:[%s3672_s9 + $0x360] ss:$36 sps:$4 sm:$0xff]   ;;  %v3356_v30 = vld [vmem:[%s3672_s9 + $0x3a8] ss:$36 sps:$4 sm:$0xff]   ;;  %v3366_v39 = vld [vmem:[%s3672_s9 + $0x3f0] ss:$36 sps:$4 sm:$0xff]  }
  0x15   : > { %1785 = vmatprep.mubr.bf16.mxu1 %v3344_v12  ;;  %v3373_v44 = vld [vmem:[%s3672_s9 + $0xdc] ss:$36 sps:$4 sm:$0xff]   ;;  %v3379_v48 = vld [vmem:[%s4422_s1 + $0xf0] sm:$0xff]   ;;  %v3385_v53 = vld [vmem:[%s3672_s9 + $0x124] ss:$36 sps:$4 sm:$0xff]  }
  0x16   : > { %v3375_v45 = vld [vmem:[%s3672_s9 + $0x43c] ss:$36 sps:$4 sm:$0xff]   ;;  %v3380_v51 = vld [vmem:[%s4422_s1 + $0xb0] sm:$0xff]   ;;  %v3387_v58 = vld [vmem:[%s3672_s9 + $0x8] ss:$36 sps:$4 sm:$0xff]  }
  0x17   : > { %2787 = vmatpush3.bf16.msra.mxu0 %v3332_v9  ;;  %3310 = vmatpush3.bf16.msra.mxu1 %v3332_v9  ;;  %v3377_v49 = vld [vmem:[%s3672_s9 + $0xd8] ss:$36 sps:$4 sm:$0xff]   ;;  %v3389_v54 = vld [vmem:[%s3672_s9 + $0xc] ss:$36 sps:$4 sm:$0xff]   ;;  %v3390_v59 = vld [vmem:[%s3672_s9 + $0x120] ss:$36 sps:$4 sm:$0xff]  }
  0x18   : > { %2788 = vmatprep.subr.bf16.mxu0 %v3333_v10  ;;  %3303 = vmatprep.subr.bf16.mxu1 %v3333_v10  ;;  %v3378_v50 = vld [vmem:[%s3672_s9 + $0x438] ss:$36 sps:$4 sm:$0xff]   ;;  %v3391_v60 = vld [vmem:[%s4422_s1 + $0x1c0] sm:$0xff]   ;;  %v3393_v62 = vld [vmem:[%s3672_s9 + $0x16c] ss:$36 sps:$4 sm:$0xff]  }
  0x19   : > { %v3400_v56 = vld [vmem:[%s4422_s1 + $0x118] sm:$0xff]   ;;  %v3392_v61 = vld [vmem:[%s4422_s1 + $0x180] sm:$0xff]   ;;  %v3407_v1 = vld [vmem:[%s4422_s1 + $0x1c8] sm:$0xff]  }
  0x1a   : > { %v3383_v57 = vld [vmem:[%s4422_s1 + $0xb8] sm:$0xff]   ;;  %v3409_v0 = vld [vmem:[%s4422_s1 + $0x160] sm:$0xff]   ;;  %v3408_v3 = vld [vmem:[%s4422_s1 + $0x188] sm:$0xff]  }
  0x1b   : > { %2789 = vmatpush3.bf16.msra.mxu0 %v3334_v13  ;;  %3311 = vmatpush3.bf16.msra.mxu1 %v3334_v13  ;;  %v3395_v63 = vld [vmem:[%s3672_s9 + $0x54] ss:$36 sps:$4 sm:$0xff]   ;;  %v3410_v2 = vld [vmem:[%s4422_s1 + $0x120] sm:$0xff]   ;;  %v3397_v4 = vld [vmem:[%s3672_s9 + $0x168] ss:$36 sps:$4 sm:$0xff]  }
  0x1c   : > { %2790 = vmatprep.subr.bf16.mxu0 %v3335_v14  ;;  %3304 = vmatprep.subr.bf16.mxu1 %v3335_v14  ;;  %v3398_v5 = vld [vmem:[%s3672_s9 + $0x50] ss:$36 sps:$4 sm:$0xff]   ;;  %v3403_v7 = vld [vmem:[%s3672_s9 + $0x9c] ss:$36 sps:$4 sm:$0xff]   ;;  %v3423_v8 = vld [vmem:[%s4422_s1 + $0x168] sm:$0xff]  }
  0x1d   : > { %v3401_v6 = vld [vmem:[%s3672_s9 + $0x1b4] ss:$36 sps:$4 sm:$0xff]   ;;  %v3425_v10 = vld [vmem:[%s4422_s1 + $0x128] sm:$0xff]   ;;  %v3411_v14 = vld [vmem:[%s3672_s9 + $0x1fc] ss:$36 sps:$4 sm:$0xff]  }
  0x1e   : > { %v3424_v9 = vld [vmem:[%s4422_s1 + $0x1d0] sm:$0xff]   ;;  %v3406_v13 = vld [vmem:[%s3672_s9 + $0x98] ss:$36 sps:$4 sm:$0xff]  }
  0x1f   : > { %2791 = vmatpush3.bf16.msra.mxu0 %v3336_v15  ;;  %3312 = vmatpush3.bf16.msra.mxu1 %v3336_v15  ;;  %v3426_v11 = vld [vmem:[%s4422_s1 + $0x190] sm:$0xff]  }
  0x20   : > { %2792 = vmatprep.subr.bf16.mxu0 %v3337_v16  ;;  %3305 = vmatprep.subr.bf16.mxu1 %v3337_v16  ;;  %v3405_v12 = vld [vmem:[%s3672_s9 + $0x1b0] ss:$36 sps:$4 sm:$0xff]  }
  0x21   : > { %v3433_v15 = vld [vmem:[%s4422_s1 + $0x170] sm:$0xff]  }
  0x22   : > { %v3434_v16 = vld [vmem:[%s4422_s1 + $0x130] sm:$0xff]  }
  0x23   : > { %2793 = vmatpush3.bf16.msra.mxu0 %v3338_v17  ;;  %3313 = vmatpush3.bf16.msra.mxu1 %v3338_v17  ;;  %v3413_v17 = vld [vmem:[%s3672_s9 + $0xe4] ss:$36 sps:$4 sm:$0xff]  }
  0x24   : > { %2890 = vmatprep.subr.bf16.mxu1 %v3345_v18  ;;  %3002 = vmatprep.subr.bf16.mxu0 %v3348_v21  ;;  %v3441_v18 = vld [vmem:[%s4422_s1 + $0x1d8] sm:$0xff]   ;;  %v3416_v21 = vld [vmem:[%s3672_s9 + $0xe0] ss:$36 sps:$4 sm:$0xff]  }
  0x26   : > { %1690 = vmatmul.mubr.bf16.vlgmr.msra.gmra.mrb[0].mxu0 %v3339_v19  ;;  %1786 = vmatmul.mubr.bf16.vlgmr.msra.gmra.mrb[0].mxu1 %v3342_v20  ;;  %v3442_v19 = vld [vmem:[%s4422_s1 + $0x198] sm:$0xff]  }
  0x27   : > { %2891 = vmatpush3.bf16.msra.mxu1 %v3346_v22  ;;  %3003 = vmatpush3.bf16.msra.mxu0 %v3350_v24  ;;  %v3415_v20 = vld [vmem:[%s3672_s9 + $0x1f8] ss:$36 sps:$4 sm:$0xff]   ;;  %v3417_v22 = vld [vmem:[%s3672_s9 + $0x244] ss:$36 sps:$4 sm:$0xff]  }
  0x28   : > { %2892 = vmatprep.subr.bf16.mxu1 %v3347_v23  ;;  %1697 = vmatprep.mubr.bf16.mxu0 %v3351_v25  ;;  %v3419_v23 = vld [vmem:[%s3672_s9 + $0x12c] ss:$36 sps:$4 sm:$0xff]   ;;  %v3449_v24 = vld [vmem:[%s4422_s1 + $0x178] sm:$0xff]  }
  0x29   : > { %1793 = vmatprep.mubr.bf16.mxu1 %v3353_v26  ;;  %3004 = vmatprep.subr.bf16.mxu0 %v3368_v28  ;;  %v3450_v25 = vld [vmem:[%s4422_s1 + $0x138] sm:$0xff]   ;;  %v3457_v26 = vld [vmem:[%s4422_s1 + $0x1e0] sm:$0xff]  }
  0x2a   : > { %v3458_v28 = vld [vmem:[%s4422_s1 + $0x1a0] sm:$0xff]  }
  0x2b   : > { %2893 = vmatpush3.bf16.msra.mxu1 %v3349_v27  ;;  %3005 = vmatpush3.bf16.msra.mxu0 %v3370_v33  ;;  %v3421_v27 = vld [vmem:[%s3672_s9 + $0x240] ss:$36 sps:$4 sm:$0xff]   ;;  %v3472_v33 = vld [vmem:[%s4422_s1 + $0x1e8] sm:$0xff]  }
  0x2c   : > { %2894 = vmatprep.subr.bf16.mxu1 %v3357_v31  ;;  %3006 = vmatprep.subr.bf16.mxu0 %v3382_v43  ;;  %v3427_v31 = vld [vmem:[%s3672_s9 + $0x28c] ss:$36 sps:$4 sm:$0xff]   ;;  %v3443_v43 = vld [vmem:[%s3672_s9 + $0x31c] ss:$36 sps:$4 sm:$0xff]  }
  0x2e   : > { %1698 = vmatmul.mubr.bf16.gmra.mrb[4].mxu0 %v3355_v29  ;;  %1794 = vmatmul.mubr.bf16.gmra.mrb[4].mxu1 %v3356_v30  ;;  %v3459_v29 = vld [vmem:[%s4422_s1 + $0x200] sm:$0xff]   ;;  %v3422_v30 = vld [vmem:[%s3672_s9 + $0x128] ss:$36 sps:$4 sm:$0xff]  }
  0x2f   : > { %2895 = vmatpush3.bf16.msra.mxu1 %v3358_v32  ;;  %1705 = vmatprep.mubr.bf16.mxu0 %v3361_v35  ;;  %v3429_v32 = vld [vmem:[%s3672_s9 + $0x174] ss:$36 sps:$4 sm:$0xff]   ;;  %v3473_v35 = vld [vmem:[%s4422_s1 + $0x1a8] sm:$0xff]  }
  0x30   : > { %2896 = vmatprep.subr.bf16.mxu1 %v3359_v34  ;;  %1801 = vmatprep.mubr.bf16.mxu1 %v3363_v36  ;;  %v3431_v34 = vld [vmem:[%s3672_s9 + $0x288] ss:$36 sps:$4 sm:$0xff]   ;;  %v3432_v36 = vld [vmem:[%s3672_s9 + $0x170] ss:$36 sps:$4 sm:$0xff]  }
  0x31   : > { %3007 = vmatpush3.bf16.msra.mxu0 %v3384_v46  ;;  %v3448_v46 = vld [vmem:[%s3672_s9 + $0x200] ss:$36 sps:$4 sm:$0xff]  }
  0x32   : > { %3008 = vmatprep.subr.bf16.mxu0 %v3399_v55  ;;  %v3474_v55 = vld [vmem:[%s4422_s1 + $0x208] sm:$0xff]  }
  0x33   : > { %2897 = vmatpush3.bf16.msra.mxu1 %v3360_v37  ;;  %v3435_v37 = vld [vmem:[%s3672_s9 + $0x2d4] ss:$36 sps:$4 sm:$0xff]  }
  0x34   : > { %2898 = vmatprep.subr.bf16.mxu1 %v3367_v40  ;;  %v3440_v40 = vld [vmem:[%s3672_s9 + $0x1b8] ss:$36 sps:$4 sm:$0xff]  }
  0x35   : > { %3009 = vmatpush3.bf16.msra.mxu0 %v3400_v56  ;;  %v3489_v56 = vld [vmem:[%s4422_s1 + $0x210] sm:$0xff]  }
  0x36   : > { %1706 = vmatmul.mubr.bf16.gmra.mrb[8].mxu0 %v3365_v38  ;;  %1802 = vmatmul.mubr.bf16.gmra.mrb[8].mxu1 %v3366_v39  ;;  %v3437_v38 = vld [vmem:[%s3672_s9 + $0x1bc] ss:$36 sps:$4 sm:$0xff]   ;;  %v3439_v39 = vld [vmem:[%s3672_s9 + $0x2d0] ss:$36 sps:$4 sm:$0xff]  }
  0x37   : > { %2899 = vmatpush3.bf16.msra.mxu1 %v3369_v41  ;;  %1713 = vmatprep.mubr.bf16.mxu0 %v3373_v44  ;;  %v3487_v41 = vld [vmem:[%s4422_s1 + $0x1f0] sm:$0xff]   ;;  %v3445_v44 = vld [vmem:[%s3672_s9 + $0x204] ss:$36 sps:$4 sm:$0xff]  }
  0x38   : > { %2900 = vmatprep.subr.bf16.mxu1 %v3371_v42  ;;  %1809 = vmatprep.mubr.bf16.mxu1 %v3375_v45  ;;  %v3488_v42 = vld [vmem:[%s4422_s1 + $0x1b0] sm:$0xff]   ;;  %v3447_v45 = vld [vmem:[%s3672_s9 + $0x318] ss:$36 sps:$4 sm:$0xff]  }
  0x39   : > { %3010 = vmatprep.subr.bf16.mxu0 %v3409_v0  ;;  %v3471_v0 = vld [vmem:[%s3672_s9 + $0xa0] ss:$36 sps:$4 sm:$0xff]  }
  0x3a   : > { %3011 = vmatpush3.bf16.msra.mxu0 %v3410_v2  ;;  %v3477_v2 = vld [vmem:[%s3672_s9 + $0xec] ss:$36 sps:$4 sm:$0xff]  }
  0x3b   : > { %2901 = vmatpush3.bf16.msra.mxu1 %v3372_v47  ;;  %3012 = vmatprep.subr.bf16.mxu0 %v3423_v8  ;;  %v3502_v47 = vld [vmem:[%s4422_s1 + $0x1f8] sm:$0xff]  }
  0x3c   : > { %2902 = vmatprep.subr.bf16.mxu1 %v3379_v48  ;;  %v3503_v48 = vld [vmem:[%s4422_s1 + $0x1b8] sm:$0xff]  }
  0x3d   : > { %v3483_v8 = vld [vmem:[%s3672_s9 + $0x134] ss:$36 sps:$4 sm:$0xff]  }
  0x3e   : > { %1714 = vmatmul.mubr.bf16.gmra.mrb[12].mxu0 %v3377_v49  ;;  %1810 = vmatmul.mubr.bf16.gmra.mrb[12].mxu1 %v3378_v50  ;;  %v3451_v49 = vld [vmem:[%s3672_s9 + $0x24c] ss:$36 sps:$4 sm:$0xff]   ;;  %v3455_v50 = vld [vmem:[%s3672_s9 + $0x14] ss:$36 sps:$4 sm:$0xff]  }
  0x3f   : > { %2903 = vmatpush3.bf16.msra.mxu1 %v3380_v51  ;;  %1721 = vmatprep.mubr.bf16.mxu0 %v3385_v53  ;;  %v3453_v51 = vld [vmem:[%s3672_s9 + $0x10] ss:$36 sps:$4 sm:$0xff]  }
  0x40   : > { %2904 = vmatprep.subr.bf16.mxu1 %v3381_v52  ;;  %1850 = vmatprep.mubr.bf16.mxu1 %v3389_v54  ;;  %v3456_v52 = vld [vmem:[%s3672_s9 + $0x248] ss:$36 sps:$4 sm:$0xff]   ;;  %v3460_v53 = vld [vmem:[%s3672_s9 + $0x294] ss:$36 sps:$4 sm:$0xff]   ;;  %v3462_v54 = vld [vmem:[%s3672_s9 + $0x5c] ss:$36 sps:$4 sm:$0xff]  }
  0x41   : > { %3013 = vmatpush3.bf16.msra.mxu0 %v3425_v10  ;;  %v3485_v10 = vld [vmem:[%s3672_s9 + $0x368] ss:$36 sps:$4 sm:$0xff]  }
  0x42   : > { %3014 = vmatprep.subr.bf16.mxu0 %v3433_v15  ;;  %v3495_v15 = vld [vmem:[%s3672_s9 + $0x178] ss:$36 sps:$4 sm:$0xff]  }
  0x43   : > { %2905 = vmatpush3.bf16.msra.mxu1 %v3383_v57  ;;  %v3464_v57 = vld [vmem:[%s3672_s9 + $0x290] ss:$36 sps:$4 sm:$0xff]  }
  0x44   : > { %3114 = vmatprep.subr.bf16.mxu1 %v3391_v60  ;;  %v3468_v60 = vld [vmem:[%s3672_s9 + $0xa4] ss:$36 sps:$4 sm:$0xff]  }
  0x45   : > { %3015 = vmatpush3.bf16.msra.mxu0 %v3434_v16  ;;  %v3496_v16 = vld [vmem:[%s3672_s9 + $0x3fc] ss:$36 sps:$4 sm:$0xff]  }
  0x46   : > { %1722 = vmatmul.mubr.bf16.gmra.mrb[16].mxu0 %v3390_v59  ;;  %1851 = vmatmul.mubr.bf16.vlgmr.msra.gmra.mrb[16].mxu1 %v3387_v58  ;;  %v3465_v58 = vld [vmem:[%s3672_s9 + $0x58] ss:$36 sps:$4 sm:$0xff]  }
  0x47   : > { %3115 = vmatpush3.bf16.msra.mxu1 %v3392_v61  ;;  %1729 = vmatprep.mubr.bf16.mxu0 %v3393_v62  ;;  %v3466_v59 = vld [vmem:[%s3672_s9 + $0x2dc] ss:$36 sps:$4 sm:$0xff]  }
  0x48   : > { %1858 = vmatprep.mubr.bf16.mxu1 %v3395_v63  ;;  %3116 = vmatprep.subr.bf16.mxu1 %v3407_v1  ;;  %v3504_v61 = vld [vmem:[%s4422_s1 + $0x218] sm:$0xff]   ;;  %v3517_v62 = vld [vmem:[%s4422_s1 + $0x220] sm:$0xff]  }
  0x49   : > { %3016 = vmatprep.subr.bf16.mxu0 %v3449_v24  ;;  %v3470_v63 = vld [vmem:[%s3672_s9 + $0x2d8] ss:$36 sps:$4 sm:$0xff]   ;;  %v3475_v1 = vld [vmem:[%s3672_s9 + $0x324] ss:$36 sps:$4 sm:$0xff]  }
  0x4a   : > { %3017 = vmatpush3.bf16.msra.mxu0 %v3450_v25  ;;  %v3511_v24 = vld [vmem:[%s3672_s9 + $0x254] ss:$36 sps:$4 sm:$0xff]   ;;  %v3515_v25 = vld [vmem:[%s3672_s9 + $0x1c] ss:$36 sps:$4 sm:$0xff]  }
  0x4b   : > { %3117 = vmatpush3.bf16.msra.mxu1 %v3408_v3  ;;  %3250 = vmatprep.subr.bf16.mxu0 %v3459_v29  ;;  %v3530_v3 = vld [vmem:[%s4422_s1 + $0x228] sm:$0xff]  }
  0x4c   : > { %3118 = vmatprep.subr.bf16.mxu1 %v3424_v9  ;;  %v3556_v9 = vld [vmem:[%s4422_s1 + $0x238] sm:$0xff]  }
  0x4e   : > { %1730 = vmatmul.mubr.bf16.gmra.mrb[20].mxu0 %v3397_v4  ;;  %1859 = vmatmul.mubr.bf16.gmra.mrb[20].mxu1 %v3398_v5  ;;  %v3479_v4 = vld [vmem:[%s3672_s9 + $0x320] ss:$36 sps:$4 sm:$0xff]   ;;  %v3480_v5 = vld [vmem:[%s3672_s9 + $0xe8] ss:$36 sps:$4 sm:$0xff]  }
  0x4f   : > { %1737 = vmatprep.mubr.bf16.mxu0 %v3401_v6  ;;  %1866 = vmatprep.mubr.bf16.mxu1 %v3403_v7  ;;  %v3543_v6 = vld [vmem:[%s4422_s1 + $0x230] sm:$0xff]  }
  0x50   : > { %3119 = vmatpush3.bf16.msra.mxu1 %v3426_v11  ;;  %v3481_v7 = vld [vmem:[%s3672_s9 + $0x36c] ss:$36 sps:$4 sm:$0xff]  }
  0x51   : > { %3120 = vmatprep.subr.bf16.mxu1 %v3441_v18  ;;  %v3486_v11 = vld [vmem:[%s3672_s9 + $0x130] ss:$36 sps:$4 sm:$0xff]   ;;  %v3500_v18 = vld [vmem:[%s3672_s9 + $0x3f8] ss:$36 sps:$4 sm:$0xff]  }
  0x54   : > { %3121 = vmatpush3.bf16.msra.mxu1 %v3442_v19  ;;  %v3501_v19 = vld [vmem:[%s3672_s9 + $0x1c0] ss:$36 sps:$4 sm:$0xff]  }
  0x55   : > { %3122 = vmatprep.subr.bf16.mxu1 %v3457_v26  ;;  %v3513_v26 = vld [vmem:[%s3672_s9 + $0x18] ss:$36 sps:$4 sm:$0xff]  }
  0x56   : > { %1738 = vmatmul.mubr.bf16.gmra.mrb[24].mxu0 %v3405_v12  ;;  %1867 = vmatmul.mubr.bf16.gmra.mrb[24].mxu1 %v3406_v13  ;;  %v3490_v12 = vld [vmem:[%s3672_s9 + $0x3b4] ss:$36 sps:$4 sm:$0xff]   ;;  %v3492_v13 = vld [vmem:[%s3672_s9 + $0x17c] ss:$36 sps:$4 sm:$0xff]  }
  0x57   : > { %1745 = vmatprep.mubr.bf16.mxu0 %v3411_v14  ;;  %1874 = vmatprep.mubr.bf16.mxu1 %v3413_v17  ;;  %v3494_v14 = vld [vmem:[%s3672_s9 + $0x3b0] ss:$36 sps:$4 sm:$0xff]   ;;  %v3498_v17 = vld [vmem:[%s3672_s9 + $0x1c4] ss:$36 sps:$4 sm:$0xff]  }
  0x58   : > { %3123 = vmatpush3.bf16.msra.mxu1 %v3458_v28  ;;  %v3518_v28 = vld [vmem:[%s3672_s9 + $0x29c] ss:$36 sps:$4 sm:$0xff]  }
  0x59   : > { %3124 = vmatprep.subr.bf16.mxu1 %v3472_v33  ;;  %v3526_v33 = vld [vmem:[%s3672_s9 + $0xac] ss:$36 sps:$4 sm:$0xff]  }
  0x5c   : > { %3125 = vmatpush3.bf16.msra.mxu1 %v3473_v35  ;;  %v3529_v35 = vld [vmem:[%s3672_s9 + $0xa8] ss:$36 sps:$4 sm:$0xff]  }
  0x5d   : > { %3126 = vmatprep.subr.bf16.mxu1 %v3487_v41  ;;  %v3539_v41 = vld [vmem:[%s3672_s9 + $0x13c] ss:$36 sps:$4 sm:$0xff]  }
  0x5e   : > { %1746 = vmatmul.mubr.bf16.gmra.mrb[28].mxu0 %v3415_v20  ;;  %1875 = vmatmul.mubr.bf16.gmra.mrb[28].mxu1 %v3416_v21  ;;  %v3505_v20 = vld [vmem:[%s3672_s9 + $0x444] ss:$36 sps:$4 sm:$0xff]   ;;  %v3507_v21 = vld [vmem:[%s3672_s9 + $0x20c] ss:$36 sps:$4 sm:$0xff]  }
  0x5f   : > { %1753 = vmatprep.mubr.bf16.mxu0 %v3417_v22  ;;  %1882 = vmatprep.mubr.bf16.mxu1 %v3419_v23  ;;  %v3509_v22 = vld [vmem:[%s3672_s9 + $0x440] ss:$36 sps:$4 sm:$0xff]   ;;  %v3510_v23 = vld [vmem:[%s3672_s9 + $0x208] ss:$36 sps:$4 sm:$0xff]  }
  0x60   : > { %3127 = vmatpush3.bf16.msra.mxu1 %v3488_v42  ;;  %v3541_v42 = vld [vmem:[%s3672_s9 + $0x370] ss:$36 sps:$4 sm:$0xff]  }
  0x61   : > { %3128 = vmatprep.subr.bf16.mxu1 %v3502_v47  ;;  %v3549_v47 = vld [vmem:[%s3672_s9 + $0x180] ss:$36 sps:$4 sm:$0xff]  }
  0x64   : > { %3129 = vmatpush3.bf16.msra.mxu1 %v3503_v48  ;;  %v3550_v48 = vld [vmem:[%s3672_s9 + $0x404] ss:$36 sps:$4 sm:$0xff]  }
  0x66   : > { %1754 = vmatmul.mubr.bf16.gmra.mrb[32].mxu0 %v3421_v27  ;;  %1883 = vmatmul.mubr.bf16.gmra.mrb[32].mxu1 %v3422_v30  ;;  %v3516_v27 = vld [vmem:[%s3672_s9 + $0x250] ss:$36 sps:$4 sm:$0xff]   ;;  %v3522_v30 = vld [vmem:[%s3672_s9 + $0x298] ss:$36 sps:$4 sm:$0xff]  }
  0x67   : > { %1761 = vmatprep.mubr.bf16.mxu0 %v3427_v31  ;;  %1890 = vmatprep.mubr.bf16.mxu1 %v3429_v32  ;;  %v3523_v31 = vld [vmem:[%s3672_s9 + $0x60] ss:$36 sps:$4 sm:$0xff]  }
  0x68   : > { %v3524_v32 = vld [vmem:[%s3672_s9 + $0x2e4] ss:$36 sps:$4 sm:$0xff]  }
  0x6e   : > { %1762 = vmatmul.mubr.bf16.gmra.mrb[36].mxu0 %v3431_v34  ;;  %1891 = vmatmul.mubr.bf16.gmra.mrb[36].mxu1 %v3432_v36  ;;  %v3528_v34 = vld [vmem:[%s3672_s9 + $0x2e0] ss:$36 sps:$4 sm:$0xff]   ;;  %v3531_v36 = vld [vmem:[%s3672_s9 + $0x32c] ss:$36 sps:$4 sm:$0xff]  }
  0x6f   : > { %1769 = vmatprep.mubr.bf16.mxu0 %v3435_v37  ;;  %1898 = vmatprep.mubr.bf16.mxu1 %v3437_v38  ;;  %v3533_v37 = vld [vmem:[%s3672_s9 + $0xf4] ss:$36 sps:$4 sm:$0xff]   ;;  %v3535_v38 = vld [vmem:[%s3672_s9 + $0x328] ss:$36 sps:$4 sm:$0xff]  }
  0x76   : > { %1770 = vmatmul.mubr.bf16.gmra.mrb[40].mxu0 %v3439_v39  ;;  %1899 = vmatmul.mubr.bf16.gmra.mrb[40].mxu1 %v3440_v40  ;;  %v3536_v39 = vld [vmem:[%s3672_s9 + $0xf0] ss:$36 sps:$4 sm:$0xff]  }
  0x77   : > { %1777 = vmatprep.mubr.bf16.mxu0 %v3443_v43  ;;  %1906 = vmatprep.mubr.bf16.mxu1 %v3445_v44  ;;  %v3537_v40 = vld [vmem:[%s3672_s9 + $0x374] ss:$36 sps:$4 sm:$0xff]   ;;  %v3544_v44 = vld [vmem:[%s3672_s9 + $0x3bc] ss:$36 sps:$4 sm:$0xff]  }
  0x78   : > { %v3542_v43 = vld [vmem:[%s3672_s9 + $0x138] ss:$36 sps:$4 sm:$0xff]  }
  0x7e   : > { %1778 = vmatmul.mubr.bf16.gmra.mrb[44].mxu0 %v3447_v45  ;;  %1907 = vmatmul.mubr.bf16.gmra.mrb[44].mxu1 %v3448_v46  ;;  %v3546_v45 = vld [vmem:[%s3672_s9 + $0x184] ss:$36 sps:$4 sm:$0xff]   ;;  %v3548_v46 = vld [vmem:[%s3672_s9 + $0x3b8] ss:$36 sps:$4 sm:$0xff]  }
  0x7f   : > { %1914 = vmatprep.mubr.bf16.mxu1 %v3451_v49  ;;  %2011 = vmatprep.mubr.bf16.mxu0 %v3455_v50  ;;  %v3552_v49 = vld [vmem:[%s3672_s9 + $0x1cc] ss:$36 sps:$4 sm:$0xff]   ;;  %v3554_v50 = vld [vmem:[%s3672_s9 + $0x400] ss:$36 sps:$4 sm:$0xff]  }
  0x86   : > { %1915 = vmatmul.mubr.bf16.gmra.mrb[48].mxu1 %v3456_v52  ;;  %2012 = vmatmul.mubr.bf16.vlgmr.msra.gmra.mrb[48].mxu0 %v3453_v51  ;;  %v3555_v51 = vld [vmem:[%s3672_s9 + $0x1c8] ss:$36 sps:$4 sm:$0xff]  }
  0x87   : > { %3251 = vmatpush3.bf16.msra.mxu0 %v3459_v29  ;;  %1922 = vmatprep.mubr.bf16.mxu1 %v3460_v53  ;;  %v3520_v29 = vld [vmem:[%s3672_s9 + $0x64] ss:$36 sps:$4 sm:$0xff]   ;;  %v3557_v52 = vld [vmem:[%s3672_s9 + $0x44c] ss:$36 sps:$4 sm:$0xff]   ;;  %v3559_v53 = vld [vmem:[%s3672_s9 + $0x214] ss:$36 sps:$4 sm:$0xff]  }
  0x88   : > { %2019 = vmatprep.mubr.bf16.mxu0 %v3462_v54  ;;  %3252 = vmatprep.subr.bf16.mxu0 %v3474_v55 }
  0x8b   : > { %3253 = vmatpush3.bf16.msra.mxu0 %v3474_v55 }
  0x8c   : > { %3254 = vmatprep.subr.bf16.mxu0 %v3489_v56 }
  0x8e   : > { %1923 = vmatmul.mubr.bf16.gmra.mrb[52].mxu1 %v3464_v57  ;;  %2020 = vmatmul.mubr.bf16.gmra.mrb[52].mxu0 %v3465_v58  ;;  %v3561_v58 = vld [vmem:[%s3672_s9 + $0x448] ss:$36 sps:$4 sm:$0xff]  }
  0x8f   : > { %1930 = vmatprep.mubr.bf16.mxu1 %v3466_v59  ;;  %2027 = vmatprep.mubr.bf16.mxu0 %v3468_v60  ;;  %v3562_v59 = vld [vmem:[%s3672_s9 + $0x210] ss:$36 sps:$4 sm:$0xff]  }
  0x90   : > { %3255 = vmatpush3.bf16.msra.mxu0 %v3489_v56 }
  0x91   : > { %3256 = vmatprep.subr.bf16.mxu0 %v3504_v61 }
  0x94   : > { %3257 = vmatpush3.bf16.msra.mxu0 %v3504_v61 }
  0x95   : > { %3258 = vmatprep.subr.bf16.mxu0 %v3517_v62 }
  0x96   : > { %1931 = vmatmul.mubr.bf16.gmra.mrb[56].mxu1 %v3470_v63  ;;  %2028 = vmatmul.mubr.bf16.gmra.mrb[56].mxu0 %v3471_v0  ;;  %v3563_v0 = vld [vmem:[%s3672_s9 + $0x25c] ss:$36 sps:$4 sm:$0xff]  }
  0x97   : > { %1938 = vmatprep.mubr.bf16.mxu1 %v3475_v1  ;;  %2035 = vmatprep.mubr.bf16.mxu0 %v3477_v2  ;;  %v3565_v1 = vld [vmem:[%s3672_s9 + $0x20] ss:$36 sps:$4 sm:$0xff]  }
  0x98   : > { %3259 = vmatpush3.bf16.msra.mxu0 %v3517_v62 }
  0x99   : > { %3260 = vmatprep.subr.bf16.mxu0 %v3530_v3 }
  0x9c   : > { %3261 = vmatpush3.bf16.msra.mxu0 %v3530_v3 }
  0x9d   : > { %3262 = vmatprep.subr.bf16.mxu0 %v3543_v6 }
  0x9e   : > { %1939 = vmatmul.mubr.bf16.gmra.mrb[60].mxu1 %v3479_v4  ;;  %2036 = vmatmul.mubr.bf16.gmra.mrb[60].mxu0 %v3480_v5 }
  0x9f   : > { %1946 = vmatprep.mubr.bf16.mxu1 %v3481_v7  ;;  %2043 = vmatprep.mubr.bf16.mxu0 %v3483_v8 }
  0xa0   : > { %3263 = vmatpush3.bf16.msra.mxu0 %v3543_v6 }
  0xa1   : > { %3264 = vmatprep.subr.bf16.mxu0 %v3556_v9 }
  0xa4   : > { %3265 = vmatpush3.bf16.msra.mxu0 %v3556_v9 }
  0xa6   : > { %1947 = vmatmul.mubr.bf16.gmra.mrb[64].mxu1 %v3485_v10  ;;  %2044 = vmatmul.mubr.bf16.gmra.mrb[64].mxu0 %v3486_v11  ;;  %v3566_v10 = vld [vmem:[%s3672_s9 + $0x258] ss:$36 sps:$4 sm:$0xff]   ;;  %v3567_v11 = vld [vmem:[%s3672_s9 + $0x68] ss:$36 sps:$4 sm:$0xff]  }
  0xa7   : > { %1954 = vmatprep.mubr.bf16.mxu1 %v3490_v12  ;;  %2051 = vmatprep.mubr.bf16.mxu0 %v3492_v13 }
  0xae   : > { %1955 = vmatmul.mubr.bf16.gmra.mrb[68].mxu1 %v3494_v14  ;;  %2052 = vmatmul.mubr.bf16.gmra.mrb[68].mxu0 %v3495_v15 }
  0xaf   : > { %1962 = vmatprep.mubr.bf16.mxu1 %v3496_v16  ;;  %2059 = vmatprep.mubr.bf16.mxu0 %v3498_v17  ;;  %v3568_v16 = vld [vmem:[%s3672_s9 + $0x2a4] ss:$36 sps:$4 sm:$0xff]   ;;  %v3570_v17 = vld [vmem:[%s3672_s9 + $0xb0] ss:$36 sps:$4 sm:$0xff]  }
  0xb6   : > { %1963 = vmatmul.mubr.bf16.gmra.mrb[72].mxu1 %v3500_v18  ;;  %2060 = vmatmul.mubr.bf16.gmra.mrb[72].mxu0 %v3501_v19 }
  0xb7   : > { %1970 = vmatprep.mubr.bf16.mxu1 %v3505_v20  ;;  %2067 = vmatprep.mubr.bf16.mxu0 %v3507_v21 }
  0xbe   : > { %1971 = vmatmul.mubr.bf16.gmra.mrb[76].mxu1 %v3509_v22  ;;  %2068 = vmatmul.mubr.bf16.gmra.mrb[76].mxu0 %v3510_v23 }
  0xbf   : > { %2075 = vmatprep.mubr.bf16.mxu0 %v3511_v24  ;;  %2172 = vmatprep.mubr.bf16.mxu1 %v3515_v25 }
  0xc6   : > { %2076 = vmatmul.mubr.bf16.gmra.mrb[80].mxu0 %v3516_v27  ;;  %2173 = vmatmul.mubr.bf16.vlgmr.msra.gmra.mrb[80].mxu1 %v3513_v26  ;;  %v3571_v26 = vld [vmem:[%s3672_s9 + $0x2a0] ss:$36 sps:$4 sm:$0xff]   ;;  %v3572_v27 = vld [vmem:[%s3672_s9 + $0xf8] ss:$36 sps:$4 sm:$0xff]  }
  0xc7   : > { %2083 = vmatprep.mubr.bf16.mxu0 %v3518_v28  ;;  %2180 = vmatprep.mubr.bf16.mxu1 %v3520_v29 }
  0xce   : > { %2084 = vmatmul.mubr.bf16.gmra.mrb[84].mxu0 %v3522_v30  ;;  %2181 = vmatmul.mubr.bf16.gmra.mrb[84].mxu1 %v3523_v31 }
  0xcf   : > { %2091 = vmatprep.mubr.bf16.mxu0 %v3524_v32  ;;  %2188 = vmatprep.mubr.bf16.mxu1 %v3526_v33  ;;  %v3573_v32 = vld [vmem:[%s3672_s9 + $0x2ec] ss:$36 sps:$4 sm:$0xff]   ;;  %v3575_v33 = vld [vmem:[%s3672_s9 + $0x140] ss:$36 sps:$4 sm:$0xff]  }
  0xd6   : > { %2092 = vmatmul.mubr.bf16.gmra.mrb[88].mxu0 %v3528_v34  ;;  %2189 = vmatmul.mubr.bf16.gmra.mrb[88].mxu1 %v3529_v35 }
  0xd7   : > { %2099 = vmatprep.mubr.bf16.mxu0 %v3531_v36  ;;  %2196 = vmatprep.mubr.bf16.mxu1 %v3533_v37 }
  0xde   : > { %2100 = vmatmul.mubr.bf16.gmra.mrb[92].mxu0 %v3535_v38  ;;  %2197 = vmatmul.mubr.bf16.gmra.mrb[92].mxu1 %v3536_v39 }
  0xdf   : > { %2107 = vmatprep.mubr.bf16.mxu0 %v3537_v40  ;;  %2204 = vmatprep.mubr.bf16.mxu1 %v3539_v41 }
  0xe6   : > { %2108 = vmatmul.mubr.bf16.gmra.mrb[96].mxu0 %v3541_v42  ;;  %2205 = vmatmul.mubr.bf16.gmra.mrb[96].mxu1 %v3542_v43  ;;  %v3576_v42 = vld [vmem:[%s3672_s9 + $0x2e8] ss:$36 sps:$4 sm:$0xff]  }
  0xe7   : > { %2115 = vmatprep.mubr.bf16.mxu0 %v3544_v44  ;;  %2212 = vmatprep.mubr.bf16.mxu1 %v3546_v45  ;;  %v3577_v43 = vld [vmem:[%s3672_s9 + $0x188] ss:$36 sps:$4 sm:$0xff]  }
  0xee   : > { %2116 = vmatmul.mubr.bf16.gmra.mrb[100].mxu0 %v3548_v46  ;;  %2213 = vmatmul.mubr.bf16.gmra.mrb[100].mxu1 %v3549_v47 }
  0xef   : > { %2123 = vmatprep.mubr.bf16.mxu0 %v3550_v48  ;;  %2220 = vmatprep.mubr.bf16.mxu1 %v3552_v49  ;;  %v3578_v48 = vld [vmem:[%s3672_s9 + $0x334] ss:$36 sps:$4 sm:$0xff]  }
  0xf0   : > { %v3580_v49 = vld [vmem:[%s3672_s9 + $0x1d0] ss:$36 sps:$4 sm:$0xff]  }
  0xf6   : > { %2124 = vmatmul.mubr.bf16.gmra.mrb[104].mxu0 %v3554_v50  ;;  %2221 = vmatmul.mubr.bf16.gmra.mrb[104].mxu1 %v3555_v51 }
  0xf7   : > { %2131 = vmatprep.mubr.bf16.mxu0 %v3557_v52  ;;  %2228 = vmatprep.mubr.bf16.mxu1 %v3559_v53 }
  0xf9   : > { %v2866_v54 = vpop.f32.mrb[0].mxu1  ;;  %v2794_v55 = vpop.f32.mrb[0].mxu0 }
  0xfa   : > { %v2867_v56 = vpop.f32.mrb[1].mxu1  ;;  %v2795_v57 = vpop.f32.mrb[1].mxu0 }
  0xfb   : > { %v3975_v60 = vadd.f32 %v2867_v56, %v2866_v54  ;;  %v2869_v61 = vpop.f32.mrb[2].mxu1  ;;  %v3977_v62 = vadd.f32 %v2795_v57, %v2794_v55  ;;  %v2797_v63 = vpop.f32.mrb[2].mxu0  ;;  %v4024_v54 = vld [vmem:[%s4423_s2] ss:$0 sm:$0xff] }
  0xfc   : > { %v2870_v2 = vpop.f32.mrb[3].mxu1  ;;  %v2798_v3 = vpop.f32.mrb[3].mxu0 }
  0xfd   : > { %v3981_v4 = vadd.f32 %v2870_v2, %v2869_v61  ;;  %v3983_v5 = vadd.f32 %v2798_v3, %v2797_v63  ;;  %v3582_v61 = vld [vmem:[%s3672_s9 + $0x218] ss:$36 sps:$4 sm:$0xff]   ;;  %v1692_v63 = vadd.f32 %v3977_v62, %v4024_v54 }
  0xfe   : > { %2132 = vmatmul.mubr.bf16.gmra.mrb[108].mxu0 %v3561_v58  ;;  %2229 = vmatmul.mubr.bf16.gmra.mrb[108].mxu1 %v3562_v59  ;;  %v3581_v59 = vld [vmem:[%s3672_s9 + $0x330] ss:$36 sps:$4 sm:$0xff]  }
  0xff   : > { %2236 = vmatprep.mubr.bf16.mxu1 %v3563_v0  ;;  %3266 = vmatprep.mubr.bf16.mxu0 %v3565_v1 }
 0x101   : > { %v2872_v6 = vpop.f32.mrb[4].mxu1  ;;  %v2800_v7 = vpop.f32.mrb[4].mxu0 }
 0x102   : > { %v2873_v8 = vpop.f32.mrb[5].mxu1  ;;  %v2801_v9 = vpop.f32.mrb[5].mxu0 }
 0x103   : > { %v3987_v12 = vadd.f32 %v2873_v8, %v2872_v6  ;;  %v2875_v13 = vpop.f32.mrb[6].mxu1  ;;  %v3989_v14 = vadd.f32 %v2801_v9, %v2800_v7  ;;  %v2803_v15 = vpop.f32.mrb[6].mxu0  ;;  %v3583_v6 = vld [vmem:[%s3672_s9 + $0x37c] ss:$36 sps:$4 sm:$0xff]  }
 0x104   : > { %v2876_v18 = vpop.f32.mrb[7].mxu1  ;;  %v2804_v19 = vpop.f32.mrb[7].mxu0  ;;  %v3585_v7 = vld [vmem:[%s3672_s9 + $0x260] ss:$36 sps:$4 sm:$0xff]  }
 0x105   : > { %v3993_v20 = vadd.f32 %v2876_v18, %v2875_v13  ;;  %v3995_v21 = vadd.f32 %v2804_v19, %v2803_v15 }
 0x106   : > { %2237 = vmatmul.mubr.bf16.gmra.mrb[112].mxu1 %v3566_v10  ;;  %3267 = vmatmul.mubr.bf16.vlgmr.msra.gmra.mrb[112].mxu0 %v3567_v11  ;;  %v1695_v10 = vadd.f32 %v3983_v5, %v4024_v54  ;;  %v1700_v5 = vadd.f32 %v3989_v14, %v4024_v54 }
 0x107   : > { %2244 = vmatprep.mubr.bf16.mxu1 %v3568_v16  ;;  %3270 = vmatprep.mubr.bf16.mxu0 %v3570_v17 }
 0x109   : > { %v2878_v22 = vpop.f32.mrb[8].mxu1  ;;  %v2806_v23 = vpop.f32.mrb[8].mxu0 }
 0x10a   : > { %v2879_v24 = vpop.f32.mrb[9].mxu1  ;;  %v2807_v25 = vpop.f32.mrb[9].mxu0 }
 0x10b   : > { %v3999_v28 = vadd.f32 %v2879_v24, %v2878_v22  ;;  %v2881_v29 = vpop.f32.mrb[10].mxu1  ;;  %v4001_v30 = vadd.f32 %v2807_v25, %v2806_v23  ;;  %v2809_v31 = vpop.f32.mrb[10].mxu0  ;;  %v3586_v22 = vld [vmem:[%s3672_s9 + $0x378] ss:$36 sps:$4 sm:$0xff]   ;;  %v3587_v23 = vld [vmem:[%s3672_s9 + $0x2a8] ss:$36 sps:$4 sm:$0xff]  }
 0x10c   : > { %v2882_v34 = vpop.f32.mrb[11].mxu1  ;;  %v2810_v35 = vpop.f32.mrb[11].mxu0 }
 0x10d   : > { %v4005_v36 = vadd.f32 %v2882_v34, %v2881_v29  ;;  %v4007_v37 = vadd.f32 %v2810_v35, %v2809_v31  ;;  %v3588_v29 = vld [vmem:[%s3672_s9 + $0x3c4] ss:$36 sps:$4 sm:$0xff]   ;;  %v3590_v31 = vld [vmem:[%s3672_s9 + $0x2f0] ss:$36 sps:$4 sm:$0xff]   ;;  %v1703_v34 = vadd.f32 %v3995_v21, %v4024_v54  ;;  %v1708_v21 = vadd.f32 %v4001_v30, %v4024_v54 }
 0x10e   : > { %2245 = vmatmul.mubr.bf16.gmra.mrb[116].mxu1 %v3571_v26  ;;  %3271 = vmatmul.mubr.bf16.gmra.mrb[116].mxu0 %v3572_v27 }
 0x10f   : > { %2252 = vmatprep.mubr.bf16.mxu1 %v3573_v32  ;;  %3274 = vmatprep.mubr.bf16.mxu0 %v3575_v33 }
 0x111   : > { %v2884_v38 = vpop.f32.mrb[12].mxu1  ;;  %v2812_v39 = vpop.f32.mrb[12].mxu0 }
 0x112   : > { %v2885_v40 = vpop.f32.mrb[13].mxu1  ;;  %v2813_v41 = vpop.f32.mrb[13].mxu0 }
 0x113   : > { %v4011_v44 = vadd.f32 %v2885_v40, %v2884_v38  ;;  %v2887_v45 = vpop.f32.mrb[14].mxu1  ;;  %v4013_v46 = vadd.f32 %v2813_v41, %v2812_v39  ;;  %v2815_v47 = vpop.f32.mrb[14].mxu0 }
 0x114   : > { %v2888_v50 = vpop.f32.mrb[15].mxu1  ;;  %v2816_v51 = vpop.f32.mrb[15].mxu0 }
 0x115   : > { %v4017_v52 = vadd.f32 %v2888_v50, %v2887_v45  ;;  %v4019_v53 = vadd.f32 %v2816_v51, %v2815_v47  ;;  %v3591_v45 = vld [vmem:[%s3672_s9 + $0x3c0] ss:$36 sps:$4 sm:$0xff]   ;;  %v3592_v47 = vld [vmem:[%s3672_s9 + $0x338] ss:$36 sps:$4 sm:$0xff]  }
 0x116   : > { %2253 = vmatmul.mubr.bf16.gmra.mrb[120].mxu1 %v3576_v42  ;;  %3275 = vmatmul.mubr.bf16.gmra.mrb[120].mxu0 %v3577_v43 }
 0x117   : > { %2260 = vmatprep.mubr.bf16.mxu1 %v3578_v48  ;;  %3278 = vmatprep.mubr.bf16.mxu0 %v3580_v49 }
 0x119   : > { %v2906_v55 = vpop.f32.mrb[16].mxu1  ;;  %v2818_v56 = vpop.f32.mrb[16].mxu0 }
 0x11a   : > { %v2907_v57 = vpop.f32.mrb[17].mxu1  ;;  %v2819_v58 = vpop.f32.mrb[17].mxu0 }
 0x11b   : > { %v2908_v0 = vadd.f32 %v2907_v57, %v2906_v55  ;;  %v2909_v1 = vpop.f32.mrb[18].mxu1  ;;  %v4030_v2 = vadd.f32 %v2819_v58, %v2818_v56  ;;  %v2821_v3 = vpop.f32.mrb[18].mxu0  ;;  %v3593_v55 = vld [vmem:[%s3672_s9 + $0x40c] ss:$36 sps:$4 sm:$0xff]   ;;  %v3595_v56 = vld [vmem:[%s3672_s9 + $0x380] ss:$36 sps:$4 sm:$0xff]  }
 0x11c   : > { %v2910_v8 = vpop.f32.mrb[19].mxu1  ;;  %v2822_v9 = vpop.f32.mrb[19].mxu0 }
 0x11d   : > { %v4036_v11 = vadd.f32 %v2908_v0, %v1692_v63  ;;  %v2911_v13 = vadd.f32 %v2910_v8, %v2909_v1  ;;  %v4038_v15 = vadd.f32 %v2822_v9, %v2821_v3  ;;  %v3596_v8 = vld [vmem:[%s3672_s9 + $0x408] ss:$36 sps:$4 sm:$0xff]  }
 0x11e   : > { %2261 = vmatmul.mubr.bf16.gmra.mrb[124].mxu1 %v3581_v59  ;;  %3279 = vmatmul.mubr.bf16.gmra.mrb[124].mxu0 %v3582_v61  ;;  %v1711_v59 = vadd.f32 %v4007_v37, %v4024_v54  ;;  %v3597_v9 = vld [vmem:[%s3672_s9 + $0x3c8] ss:$36 sps:$4 sm:$0xff]   ;;  %v1716_v37 = vadd.f32 %v4013_v46, %v4024_v54 }
 0x11f   : > { %v4040_v62 = vadd.f32 %v2911_v13, %v1695_v10  ;;  %2268 = vmatprep.mubr.bf16.mxu1 %v3583_v6  ;;  %3282 = vmatprep.mubr.bf16.mxu0 %v3585_v7 }
 0x121   : > { %v2912_v16 = vpop.f32.mrb[20].mxu1  ;;  %v2824_v17 = vpop.f32.mrb[20].mxu0 }
 0x122   : > { %v2913_v18 = vpop.f32.mrb[21].mxu1  ;;  %v2825_v19 = vpop.f32.mrb[21].mxu0 }
 0x123   : > { %v2914_v24 = vadd.f32 %v2913_v18, %v2912_v16  ;;  %v2915_v25 = vpop.f32.mrb[22].mxu1  ;;  %v4046_v26 = vadd.f32 %v2825_v19, %v2824_v17  ;;  %v2827_v27 = vpop.f32.mrb[22].mxu0  ;;  %v3598_v18 = vld [vmem:[%s3672_s9 + $0x454] ss:$36 sps:$4 sm:$0xff]  }
 0x124   : > { %v2916_v32 = vpop.f32.mrb[23].mxu1  ;;  %v2828_v33 = vpop.f32.mrb[23].mxu0  ;;  %v3600_v19 = vld [vmem:[%s3672_s9 + $0x410] ss:$36 sps:$4 sm:$0xff]  }
 0x125   : > { %v4052_v35 = vadd.f32 %v2914_v24, %v1700_v5  ;;  %v2917_v38 = vadd.f32 %v2916_v32, %v2915_v25  ;;  %v4054_v39 = vadd.f32 %v2828_v33, %v2827_v27  ;;  %v1719_v5 = vadd.f32 %v4019_v53, %v4024_v54 }
 0x126   : > { %2269 = vmatmul.mubr.bf16.gmra.mrb[128].mxu1 %v3586_v22  ;;  %3283 = vmatmul.mubr.bf16.gmra.mrb[128].mxu0 %v3587_v23  ;;  %v1724_v53 = vadd.f32 %v4030_v2, %v4024_v54 }
 0x127   : > { %v4056_v14 = vadd.f32 %v2917_v38, %v1703_v34  ;;  %2276 = vmatprep.mubr.bf16.mxu1 %v3588_v29  ;;  %3286 = vmatprep.mubr.bf16.mxu0 %v3590_v31  ;;  %v3601_v34 = vld [vmem:[%s3672_s9 + $0x450] ss:$36 sps:$4 sm:$0xff]   ;;  %v3602_v38 = vld [vmem:[%s3672_s9 + $0x458] ss:$36 sps:$4 sm:$0xff]   ;;  %s2558_s9 = sshll.u32 %s4426_s16, 3 }
 0x128   : > { %s4346_s22 = scalar_lea.vmem %s4424_s3, %s2558_s9 }
 0x129   : > { %v2918_v40 = vpop.f32.mrb[24].mxu1  ;;  %v2830_v41 = vpop.f32.mrb[24].mxu0 }
 0x12a   : > { %v2919_v42 = vpop.f32.mrb[25].mxu1  ;;  %v2831_v43 = vpop.f32.mrb[25].mxu0 }
 0x12b   : > { %v2920_v48 = vadd.f32 %v2919_v42, %v2918_v40  ;;  %v2921_v49 = vpop.f32.mrb[26].mxu1  ;;  %v4062_v50 = vadd.f32 %v2831_v43, %v2830_v41  ;;  %v2833_v51 = vpop.f32.mrb[26].mxu0 }
 0x12c   : > { %v2922_v57 = vpop.f32.mrb[27].mxu1  ;;  %v2834_v58 = vpop.f32.mrb[27].mxu0 }
 0x12d   : > { %v4068_v61 = vadd.f32 %v2920_v48, %v1708_v21  ;;  %v2923_v63 = vadd.f32 %v2922_v57, %v2921_v49  ;;  %v4070_v0 = vadd.f32 %v2834_v58, %v2833_v51  ;;  %v1727_v21 = vadd.f32 %v4038_v15, %v4024_v54 }
 0x12e   : > { %2277 = vmatmul.mubr.bf16.gmra.mrb[132].mxu1 %v3591_v45  ;;  %3287 = vmatmul.mubr.bf16.gmra.mrb[132].mxu0 %v3592_v47 }
 0x12f   : > { %v4072_v30 = vadd.f32 %v2923_v63, %v1711_v59  ;;  %2284 = vmatprep.mubr.bf16.mxu1 %v3593_v55  ;;  %3290 = vmatprep.mubr.bf16.mxu0 %v3595_v56  ;;  %v1732_v59 = vadd.f32 %v4046_v26, %v4024_v54 }
 0x131   : > { %v2924_v1 = vpop.f32.mrb[28].mxu1  ;;  %v2836_v3 = vpop.f32.mrb[28].mxu0 }
 0x132   : > { %v2925_v6 = vpop.f32.mrb[29].mxu1  ;;  %v2837_v7 = vpop.f32.mrb[29].mxu0 }
 0x133   : > { %v2926_v10 = vadd.f32 %v2925_v6, %v2924_v1  ;;  %v2927_v13 = vpop.f32.mrb[30].mxu1  ;;  %v4078_v16 = vadd.f32 %v2837_v7, %v2836_v3  ;;  %v2839_v17 = vpop.f32.mrb[30].mxu0 }
 0x134   : > { %v2928_v22 = vpop.f32.mrb[31].mxu1  ;;  %v2840_v23 = vpop.f32.mrb[31].mxu0 }
 0x135   : > { %v4084_v24 = vadd.f32 %v2926_v10, %v1716_v37  ;;  %v2929_v25 = vadd.f32 %v2928_v22, %v2927_v13  ;;  %v4086_v27 = vadd.f32 %v2840_v23, %v2839_v17  ;;  %v1740_v22 = vadd.f32 %v4062_v50, %v4024_v54 }
 0x136   : > { %2285 = vmatmul.mubr.bf16.gmra.mrb[136].mxu1 %v3596_v8  ;;  %3291 = vmatmul.mubr.bf16.gmra.mrb[136].mxu0 %v3597_v9  ;;  %v1735_v8 = vadd.f32 %v4054_v39, %v4024_v54 }
 0x137   : > { %v4088_v46 = vadd.f32 %v2929_v25, %v1719_v5  ;;  %2292 = vmatprep.mubr.bf16.mxu1 %v3598_v18  ;;  %3294 = vmatprep.mubr.bf16.mxu0 %v3600_v19 }
 0x139   : > { %v2930_v29 = vpop.f32.mrb[32].mxu1  ;;  %v2842_v31 = vpop.f32.mrb[32].mxu0 }
 0x13a   : > { %v2931_v32 = vpop.f32.mrb[33].mxu1  ;;  %v2843_v33 = vpop.f32.mrb[33].mxu0 }
 0x13b   : > { %v2932_v40 = vadd.f32 %v2931_v32, %v2930_v29  ;;  %v2933_v41 = vpop.f32.mrb[34].mxu1  ;;  %v4094_v42 = vadd.f32 %v2843_v33, %v2842_v31  ;;  %v2845_v43 = vpop.f32.mrb[34].mxu0  ;;  %v1743_v32 = vadd.f32 %v4070_v0, %v4024_v54 }
 0x13c   : > { %v2934_v45 = vpop.f32.mrb[35].mxu1  ;;  %v2846_v47 = vpop.f32.mrb[35].mxu0 }
 0x13d   : > { %v4098_v48 = vadd.f32 %v2932_v40, %v1724_v53  ;;  %v2935_v49 = vadd.f32 %v2934_v45, %v2933_v41  ;;  %v2847_v51 = vadd.f32 %v2846_v47, %v2845_v43  ;;  %v1748_v45 = vadd.f32 %v4078_v16, %v4024_v54 }
 0x13e   : > { %2293 = vmatmul.mubr.bf16.gmra.mrb[140].mxu1 %v3601_v34  ;;  %3295 = vmatmul.mubr.bf16.gmra.mrb[140].mxu0 %v3602_v38 }
 0x13f   : > { %v4100_v55 = vadd.f32 %v2935_v49, %v1727_v21 }
 0x141   : > { %v2936_v56 = vpop.f32.mrb[36].mxu1  ;;  %v2848_v2 = vpop.f32.mrb[36].mxu0 }
 0x142   : > { %v2937_v57 = vpop.f32.mrb[37].mxu1  ;;  %v2849_v58 = vpop.f32.mrb[37].mxu0 }
 0x143   : > { %v2938_v63 = vadd.f32 %v2937_v57, %v2936_v56  ;;  %v2939_v1 = vpop.f32.mrb[38].mxu1  ;;  %v4104_v3 = vadd.f32 %v2849_v58, %v2848_v2  ;;  %v2851_v15 = vpop.f32.mrb[38].mxu0  ;;  %v1751_v57 = vadd.f32 %v4086_v27, %v4024_v54  ;;  %v1759_v27 = vadd.f32 %v2847_v51, %v4024_v54 }
 0x144   : > { %v2940_v6 = vpop.f32.mrb[39].mxu1  ;;  %v2852_v7 = vpop.f32.mrb[39].mxu0 }
 0x145   : > { %v4108_v9 = vadd.f32 %v2938_v63, %v1732_v59  ;;  %v2941_v37 = vadd.f32 %v2940_v6, %v2939_v1  ;;  %v2853_v10 = vadd.f32 %v2852_v7, %v2851_v15  ;;  %v1764_v51 = vadd.f32 %v4104_v3, %v4024_v54 }
 0x147   : > { %v4110_v13 = vadd.f32 %v2941_v37, %v1735_v8  ;;  %v1756_v8 = vadd.f32 %v4094_v42, %v4024_v54 }
 0x149   : > { %v2942_v17 = vpop.f32.mrb[40].mxu1  ;;  %v2854_v18 = vpop.f32.mrb[40].mxu0 }
 0x14a   : > { %v2943_v19 = vpop.f32.mrb[41].mxu1  ;;  %v2855_v26 = vpop.f32.mrb[41].mxu0 }
 0x14b   : > { %v2944_v23 = vadd.f32 %v2943_v19, %v2942_v17  ;;  %v2945_v5 = vpop.f32.mrb[42].mxu1  ;;  %v4114_v25 = vadd.f32 %v2855_v26, %v2854_v18  ;;  %v2857_v29 = vpop.f32.mrb[42].mxu0 }
 0x14c   : > { %v2946_v31 = vpop.f32.mrb[43].mxu1  ;;  %v2858_v39 = vpop.f32.mrb[43].mxu0 }
 0x14d   : > { %v4118_v33 = vadd.f32 %v2944_v23, %v1740_v22  ;;  %v2947_v34 = vadd.f32 %v2946_v31, %v2945_v5  ;;  %v4120_v38 = vadd.f32 %v2858_v39, %v2857_v29 }
 0x14f   : > { %v4122_v53 = vadd.f32 %v2947_v34, %v1743_v32 }
 0x151   : > { %v2948_v40 = vpop.f32.mrb[44].mxu1  ;;  %v2860_v41 = vpop.f32.mrb[44].mxu0 }
 0x152   : > { %v2949_v50 = vpop.f32.mrb[45].mxu1  ;;  %v2861_v43 = vpop.f32.mrb[45].mxu0 }
 0x153   : > { %v2950_v47 = vadd.f32 %v2949_v50, %v2948_v40  ;;  %v2951_v21 = vpop.f32.mrb[46].mxu1  ;;  %v4126_v49 = vadd.f32 %v2861_v43, %v2860_v41  ;;  %v2863_v56 = vpop.f32.mrb[46].mxu0 }
 0x154   : > { %v2952_v0 = vpop.f32.mrb[47].mxu1  ;;  %v2864_v2 = vpop.f32.mrb[47].mxu0 }
 0x155   : > { %v4130_v58 = vadd.f32 %v2950_v47, %v1748_v45  ;;  %v2953_v59 = vadd.f32 %v2952_v0, %v2951_v21  ;;  %v4132_v63 = vadd.f32 %v2864_v2, %v2863_v56 }
 0x157   : > { %v4134_v1 = vadd.f32 %v2953_v59, %v1751_v57 }
 0x159   : > { %v2954_v15 = vpop.f32.mrb[48].mxu1  ;;  %v3018_v6 = vpop.f32.mrb[48].mxu0 }
 0x15a   : > { %v2955_v16 = vpop.f32.mrb[49].mxu1  ;;  %v3019_v7 = vpop.f32.mrb[49].mxu0 }
 0x15b   : > { %v2956_v37 = vadd.f32 %v2955_v16, %v2954_v15  ;;  %v3020_v17 = vadd.f32 %v3019_v7, %v3018_v6  ;;  %v2957_v18 = vpop.f32.mrb[50].mxu1  ;;  %v3021_v19 = vpop.f32.mrb[50].mxu0 }
 0x15c   : > { %v2958_v26 = vpop.f32.mrb[51].mxu1  ;;  %v3022_v22 = vpop.f32.mrb[51].mxu0 }
 0x15d   : > { %v4139_v23 = vadd.f32 %v2956_v37, %v1756_v8  ;;  %v4142_v5 = vadd.f32 %v3020_v17, %v4036_v11  ;;  %v2959_v29 = vadd.f32 %v2958_v26, %v2957_v18  ;;  %v3023_v31 = vadd.f32 %v3022_v22, %v3021_v19 }
 0x15e   : > { %v1767_v11 = vadd.f32 %v2853_v10, %v4024_v54  ;;  %v1772_v10 = vadd.f32 %v4114_v25, %v4024_v54 }
 0x15f   : > { %v4144_v39 = vadd.f32 %v2959_v29, %v1759_v27  ;;  %v4147_v32 = vadd.f32 %v3023_v31, %v4040_v62 }
 0x161   : > { %v2960_v42 = vpop.f32.mrb[52].mxu1  ;;  %v3024_v34 = vpop.f32.mrb[52].mxu0 }
 0x162   : > { %v2961_v40 = vpop.f32.mrb[53].mxu1  ;;  %v3025_v41 = vpop.f32.mrb[53].mxu0 }
 0x163   : > { %v2962_v50 = vadd.f32 %v2961_v40, %v2960_v42  ;;  %v3026_v43 = vadd.f32 %v3025_v41, %v3024_v34  ;;  %v2963_v45 = vpop.f32.mrb[54].mxu1  ;;  %v3027_v47 = vpop.f32.mrb[54].mxu0 }
 0x164   : > { %v2964_v21 = vpop.f32.mrb[55].mxu1  ;;  %v3028_v56 = vpop.f32.mrb[55].mxu0 }
 0x165   : > { %v4152_v0 = vadd.f32 %v2962_v50, %v1764_v51  ;;  %v4155_v62 = vadd.f32 %v3026_v43, %v4052_v35  ;;  %v2965_v2 = vadd.f32 %v2964_v21, %v2963_v45  ;;  %v3029_v57 = vadd.f32 %v3028_v56, %v3027_v47 }
 0x166   : > { %v1775_v35 = vadd.f32 %v4120_v38, %v4024_v54  ;;  %v1780_v38 = vadd.f32 %v4126_v49, %v4024_v54 }
 0x167   : > { %v4157_v59 = vadd.f32 %v2965_v2, %v1767_v11  ;;  %v4160_v15 = vadd.f32 %v3029_v57, %v4056_v14 }
 0x169   : > { %v2966_v3 = vpop.f32.mrb[56].mxu1  ;;  %v3030_v6 = vpop.f32.mrb[56].mxu0 }
 0x16a   : > { %v2967_v16 = vpop.f32.mrb[57].mxu1  ;;  %v3031_v7 = vpop.f32.mrb[57].mxu0 }
 0x16b   : > { %v2968_v8 = vadd.f32 %v2967_v16, %v2966_v3  ;;  %v3032_v37 = vadd.f32 %v3031_v7, %v3030_v6  ;;  %v2969_v17 = vpop.f32.mrb[58].mxu1  ;;  %v3033_v18 = vpop.f32.mrb[58].mxu0 }
 0x16c   : > { %v2970_v19 = vpop.f32.mrb[59].mxu1  ;;  %v3034_v27 = vpop.f32.mrb[59].mxu0 }
 0x16d   : > { %v4166_v26 = vadd.f32 %v2968_v8, %v1772_v10  ;;  %v4169_v14 = vadd.f32 %v3032_v37, %v4068_v61  ;;  %v2971_v22 = vadd.f32 %v2970_v19, %v2969_v17  ;;  %v3035_v29 = vadd.f32 %v3034_v27, %v3033_v18 }
 0x16e   : > { %v1783_v61 = vadd.f32 %v4132_v63, %v4024_v54  ;;  %v1788_v63 = vadd.f32 %v3975_v60, %v4024_v54 }
 0x16f   : > { %v4171_v31 = vadd.f32 %v2971_v22, %v1775_v35  ;;  %v4174_v25 = vadd.f32 %v3035_v29, %v4072_v30 }
 0x171   : > { %v2972_v42 = vpop.f32.mrb[60].mxu1  ;;  %v3036_v34 = vpop.f32.mrb[60].mxu0 }
 0x172   : > { %v2973_v40 = vpop.f32.mrb[61].mxu1  ;;  %v3037_v41 = vpop.f32.mrb[61].mxu0 }
 0x173   : > { %v2974_v51 = vadd.f32 %v2973_v40, %v2972_v42  ;;  %v3038_v50 = vadd.f32 %v3037_v41, %v3036_v34  ;;  %v2975_v43 = vpop.f32.mrb[62].mxu1  ;;  %v3039_v45 = vpop.f32.mrb[62].mxu0 }
 0x174   : > { %v2976_v47 = vpop.f32.mrb[63].mxu1  ;;  %v3040_v11 = vpop.f32.mrb[63].mxu0 }
 0x175   : > { %v4180_v21 = vadd.f32 %v2974_v51, %v1780_v38  ;;  %v4183_v30 = vadd.f32 %v3038_v50, %v4084_v24  ;;  %v2977_v56 = vadd.f32 %v2976_v47, %v2975_v43  ;;  %v3041_v2 = vadd.f32 %v3040_v11, %v3039_v45 }
 0x176   : > { %v1791_v24 = vadd.f32 %v3981_v4, %v4024_v54  ;;  %v1796_v4 = vadd.f32 %v3987_v12, %v4024_v54 }
 0x177   : > { %v4185_v57 = vadd.f32 %v2977_v56, %v1783_v61  ;;  %v4188_v49 = vadd.f32 %v3041_v2, %v4088_v46 }
 0x179   : > { %v2978_v3 = vpop.f32.mrb[64].mxu1  ;;  %v3042_v6 = vpop.f32.mrb[64].mxu0 }
 0x17a   : > { %v2979_v16 = vpop.f32.mrb[65].mxu1  ;;  %v3043_v7 = vpop.f32.mrb[65].mxu0 }
 0x17b   : > { %v2980_v10 = vadd.f32 %v2979_v16, %v2978_v3  ;;  %v3044_v8 = vadd.f32 %v3043_v7, %v3042_v6  ;;  %v2981_v37 = vpop.f32.mrb[66].mxu1  ;;  %v3045_v17 = vpop.f32.mrb[66].mxu0 }
 0x17c   : > { %v2982_v18 = vpop.f32.mrb[67].mxu1  ;;  %v3046_v35 = vpop.f32.mrb[67].mxu0 }
 0x17d   : > { %v4194_v19 = vadd.f32 %v2980_v10, %v1788_v63  ;;  %v4197_v46 = vadd.f32 %v3044_v8, %v4098_v48  ;;  %v2983_v27 = vadd.f32 %v2982_v18, %v2981_v37  ;;  %v3047_v22 = vadd.f32 %v3046_v35, %v3045_v17 }
 0x17e   : > { %v1799_v48 = vadd.f32 %v3993_v20, %v4024_v54  ;;  %v1804_v20 = vadd.f32 %v3999_v28, %v4024_v54 }
 0x17f   : > { %v4199_v29 = vadd.f32 %v2983_v27, %v1791_v24  ;;  %v4202_v60 = vadd.f32 %v3047_v22, %v4100_v55 }
 0x181   : > { %v2984_v42 = vpop.f32.mrb[68].mxu1  ;;  %v3048_v34 = vpop.f32.mrb[68].mxu0 }
 0x182   : > { %v2985_v40 = vpop.f32.mrb[69].mxu1  ;;  %v3049_v41 = vpop.f32.mrb[69].mxu0 }
 0x183   : > { %v2986_v38 = vadd.f32 %v2985_v40, %v2984_v42  ;;  %v3050_v51 = vadd.f32 %v3049_v41, %v3048_v34  ;;  %v2987_v50 = vpop.f32.mrb[70].mxu1  ;;  %v3051_v43 = vpop.f32.mrb[70].mxu0 }
 0x184   : > { %v2988_v45 = vpop.f32.mrb[71].mxu1  ;;  %v3052_v61 = vpop.f32.mrb[71].mxu0 }
 0x185   : > { %v4208_v47 = vadd.f32 %v2986_v38, %v1796_v4  ;;  %v4211_v55 = vadd.f32 %v3050_v51, %v4108_v9  ;;  %v2989_v11 = vadd.f32 %v2988_v45, %v2987_v50  ;;  %v3053_v56 = vadd.f32 %v3052_v61, %v3051_v43 }
 0x186   : > { %v1807_v9 = vadd.f32 %v4005_v36, %v4024_v54  ;;  %v1812_v36 = vadd.f32 %v4011_v44, %v4024_v54 }
 0x187   : > { %v4213_v2 = vadd.f32 %v2989_v11, %v1799_v48  ;;  %v4216_v12 = vadd.f32 %v3053_v56, %v4110_v13 }
 0x189   : > { %v2990_v3 = vpop.f32.mrb[72].mxu1  ;;  %v3054_v6 = vpop.f32.mrb[72].mxu0 }
 0x18a   : > { %v2991_v16 = vpop.f32.mrb[73].mxu1  ;;  %v3055_v7 = vpop.f32.mrb[73].mxu0 }
 0x18b   : > { %v2992_v63 = vadd.f32 %v2991_v16, %v2990_v3  ;;  %v3056_v10 = vadd.f32 %v3055_v7, %v3054_v6  ;;  %v2993_v8 = vpop.f32.mrb[74].mxu1  ;;  %v3057_v37 = vpop.f32.mrb[74].mxu0 }
 0x18c   : > { %v2994_v17 = vpop.f32.mrb[75].mxu1  ;;  %v3058_v24 = vpop.f32.mrb[75].mxu0 }
 0x18d   : > { %v4222_v18 = vadd.f32 %v2992_v63, %v1804_v20  ;;  %v4225_v13 = vadd.f32 %v3056_v10, %v4118_v33  ;;  %v2995_v35 = vadd.f32 %v2994_v17, %v2993_v8  ;;  %v3059_v27 = vadd.f32 %v3058_v24, %v3057_v37 }
 0x18e   : > { %v1815_v33 = vadd.f32 %v4017_v52, %v4024_v54 }
 0x18f   : > { %v4227_v22 = vadd.f32 %v2995_v35, %v1807_v9  ;;  %v4230_v28 = vadd.f32 %v3059_v27, %v4122_v53 }
 0x191   : > { %v2996_v42 = vpop.f32.mrb[76].mxu1  ;;  %v3060_v34 = vpop.f32.mrb[76].mxu0 }
 0x192   : > { %v2997_v40 = vpop.f32.mrb[77].mxu1  ;;  %v3061_v41 = vpop.f32.mrb[77].mxu0 }
 0x193   : > { %v2998_v4 = vadd.f32 %v2997_v40, %v2996_v42  ;;  %v3062_v38 = vadd.f32 %v3061_v41, %v3060_v34  ;;  %v2999_v51 = vpop.f32.mrb[78].mxu1  ;;  %v3063_v50 = vpop.f32.mrb[78].mxu0 }
 0x194   : > { %v3000_v43 = vpop.f32.mrb[79].mxu1  ;;  %v3064_v48 = vpop.f32.mrb[79].mxu0 }
 0x195   : > { %v4236_v45 = vadd.f32 %v2998_v4, %v1812_v36  ;;  %v4239_v53 = vadd.f32 %v3062_v38, %v4130_v58  ;;  %v3001_v61 = vadd.f32 %v3000_v43, %v2999_v51  ;;  %v3065_v11 = vadd.f32 %v3064_v48, %v3063_v50 }
 0x197   : > { %v4241_v56 = vadd.f32 %v3001_v61, %v1815_v33  ;;  %v4244_v44 = vadd.f32 %v3065_v11, %v4134_v1 }
 0x199   : > { %v3066_v3 = vpop.f32.mrb[80].mxu0  ;;  %v3130_v6 = vpop.f32.mrb[80].mxu1 }
 0x19a   : > { %v3067_v16 = vpop.f32.mrb[81].mxu0  ;;  %v3131_v7 = vpop.f32.mrb[81].mxu1 }
 0x19b   : > { %v3068_v20 = vadd.f32 %v3067_v16, %v3066_v3  ;;  %v3132_v52 = vadd.f32 %v3131_v7, %v3130_v6  ;;  %v3069_v54 = vpop.f32.mrb[82].mxu0  ;;  %v3133_v63 = vpop.f32.mrb[82].mxu1 }
 0x19c   : > { %v3070_v10 = vpop.f32.mrb[83].mxu0  ;;  %v3134_v8 = vpop.f32.mrb[83].mxu1 }
 0x19d   : > { %v4247_v58 = vadd.f32 %v3068_v20, %v4139_v23  ;;  %v3071_v37 = vadd.f32 %v3070_v10, %v3069_v54  ;;  %v3135_v9 = vadd.f32 %v3134_v8, %v3133_v63  ;;  %v4250_v17 = vadd.f32 %v3132_v52, %v4142_v5 }
 0x19f   : > { %v4253_v1 = vadd.f32 %v3071_v37, %v4144_v39  ;;  %v4256_v24 = vadd.f32 %v3135_v9, %v4147_v32 }
 0x1a1   : > { %v3072_v35 = vpop.f32.mrb[84].mxu0  ;;  %v3136_v27 = vpop.f32.mrb[84].mxu1 }
 0x1a2   : > { %v3073_v42 = vpop.f32.mrb[85].mxu0  ;;  %v3137_v34 = vpop.f32.mrb[85].mxu1 }
 0x1a3   : > { %v3074_v40 = vadd.f32 %v3073_v42, %v3072_v35  ;;  %v3138_v41 = vadd.f32 %v3137_v34, %v3136_v27  ;;  %v3075_v36 = vpop.f32.mrb[86].mxu0  ;;  %v3139_v23 = vpop.f32.mrb[86].mxu1 }
 0x1a4   : > { %v3076_v4 = vpop.f32.mrb[87].mxu0  ;;  %v3140_v38 = vpop.f32.mrb[87].mxu1 }
 0x1a5   : > { %v4259_v51 = vadd.f32 %v3074_v40, %v4152_v0  ;;  %v3077_v5 = vadd.f32 %v3076_v4, %v3075_v36  ;;  %v3141_v50 = vadd.f32 %v3140_v38, %v3139_v23  ;;  %v4262_v39 = vadd.f32 %v3138_v41, %v4155_v62 }
 0x1a7   : > { %v4265_v32 = vadd.f32 %v3077_v5, %v4157_v59  ;;  %v4268_v33 = vadd.f32 %v3141_v50, %v4160_v15 }
 0x1a9   : > { %v3078_v43 = vpop.f32.mrb[88].mxu0  ;;  %v3142_v48 = vpop.f32.mrb[88].mxu1 }
 0x1aa   : > { %v3079_v61 = vpop.f32.mrb[89].mxu0  ;;  %v3143_v11 = vpop.f32.mrb[89].mxu1 }
 0x1ab   : > { %v3080_v3 = vadd.f32 %v3079_v61, %v3078_v43  ;;  %v3144_v6 = vadd.f32 %v3143_v11, %v3142_v48  ;;  %v3081_v16 = vpop.f32.mrb[90].mxu0  ;;  %v3145_v0 = vpop.f32.mrb[90].mxu1 }
 0x1ac   : > { %v3082_v7 = vpop.f32.mrb[91].mxu0  ;;  %v3146_v20 = vpop.f32.mrb[91].mxu1 }
 0x1ad   : > { %v4271_v52 = vadd.f32 %v3080_v3, %v4166_v26  ;;  %v3083_v62 = vadd.f32 %v3082_v7, %v3081_v16  ;;  %v3147_v54 = vadd.f32 %v3146_v20, %v3145_v0  ;;  %v4274_v59 = vadd.f32 %v3144_v6, %v4169_v14 }
 0x1af   : > { %v4277_v15 = vadd.f32 %v3083_v62, %v4171_v31  ;;  %v4280_v63 = vadd.f32 %v3147_v54, %v4174_v25 }
 0x1b1   : > { %v3084_v10 = vpop.f32.mrb[92].mxu0  ;;  %v3148_v8 = vpop.f32.mrb[92].mxu1 }
 0x1b2   : > { %v3085_v37 = vpop.f32.mrb[93].mxu0  ;;  %v3149_v9 = vpop.f32.mrb[93].mxu1 }
 0x1b3   : > { %v3086_v35 = vadd.f32 %v3085_v37, %v3084_v10  ;;  %v3150_v27 = vadd.f32 %v3149_v9, %v3148_v8  ;;  %v3087_v42 = vpop.f32.mrb[94].mxu0  ;;  %v3151_v26 = vpop.f32.mrb[94].mxu1 }
 0x1b4   : > { %v3088_v34 = vpop.f32.mrb[95].mxu0  ;;  %v3152_v40 = vpop.f32.mrb[95].mxu1 }
 0x1b5   : > { %v4283_v41 = vadd.f32 %v3086_v35, %v4180_v21  ;;  %v3089_v14 = vadd.f32 %v3088_v34, %v3087_v42  ;;  %v3153_v36 = vadd.f32 %v3152_v40, %v3151_v26  ;;  %v4286_v31 = vadd.f32 %v3150_v27, %v4183_v30 }
 0x1b7   : > { %v4289_v25 = vadd.f32 %v3089_v14, %v4185_v57  ;;  %v4292_v23 = vadd.f32 %v3153_v36, %v4188_v49 }
 0x1b9   : > { %v3090_v4 = vpop.f32.mrb[96].mxu0  ;;  %v3154_v38 = vpop.f32.mrb[96].mxu1 }
 0x1ba   : > { %v3091_v5 = vpop.f32.mrb[97].mxu0  ;;  %v3155_v50 = vpop.f32.mrb[97].mxu1 }
 0x1bb   : > { %v3092_v43 = vadd.f32 %v3091_v5, %v3090_v4  ;;  %v3156_v48 = vadd.f32 %v3155_v50, %v3154_v38  ;;  %v3093_v61 = vpop.f32.mrb[98].mxu0  ;;  %v3157_v21 = vpop.f32.mrb[98].mxu1 }
 0x1bc   : > { %v3094_v11 = vpop.f32.mrb[99].mxu0  ;;  %v3158_v3 = vpop.f32.mrb[99].mxu1 }
 0x1bd   : > { %v4295_v6 = vadd.f32 %v3092_v43, %v4194_v19  ;;  %v3095_v30 = vadd.f32 %v3094_v11, %v3093_v61  ;;  %v3159_v16 = vadd.f32 %v3158_v3, %v3157_v21  ;;  %v4298_v57 = vadd.f32 %v3156_v48, %v4197_v46 }
 0x1bf   : > { %v4301_v49 = vadd.f32 %v3095_v30, %v4199_v29  ;;  %v4304_v0 = vadd.f32 %v3159_v16, %v4202_v60 }
 0x1c1   : > { %v3096_v7 = vpop.f32.mrb[100].mxu0  ;;  %v3160_v20 = vpop.f32.mrb[100].mxu1 }
 0x1c2   : > { %v3097_v62 = vpop.f32.mrb[101].mxu0  ;;  %v3161_v54 = vpop.f32.mrb[101].mxu1 }
 0x1c3   : > { %v3098_v10 = vadd.f32 %v3097_v62, %v3096_v7  ;;  %v3162_v8 = vadd.f32 %v3161_v54, %v3160_v20  ;;  %v3099_v37 = vpop.f32.mrb[102].mxu0  ;;  %v3163_v19 = vpop.f32.mrb[102].mxu1 }
 0x1c4   : > { %v3100_v9 = vpop.f32.mrb[103].mxu0  ;;  %v3164_v35 = vpop.f32.mrb[103].mxu1 }
 0x1c5   : > { %v4307_v27 = vadd.f32 %v3098_v10, %v4208_v47  ;;  %v3101_v46 = vadd.f32 %v3100_v9, %v3099_v37  ;;  %v3165_v42 = vadd.f32 %v3164_v35, %v3163_v19  ;;  %v4310_v29 = vadd.f32 %v3162_v8, %v4211_v55 }
 0x1c7   : > { %v4313_v60 = vadd.f32 %v3101_v46, %v4213_v2  ;;  %v4316_v26 = vadd.f32 %v3165_v42, %v4216_v12 }
 0x1c9   : > { %v3102_v34 = vpop.f32.mrb[104].mxu0  ;;  %v3166_v40 = vpop.f32.mrb[104].mxu1 }
 0x1ca   : > { %v3103_v14 = vpop.f32.mrb[105].mxu0  ;;  %v3167_v36 = vpop.f32.mrb[105].mxu1 }
 0x1cb   : > { %v3104_v4 = vadd.f32 %v3103_v14, %v3102_v34  ;;  %v3168_v38 = vadd.f32 %v3167_v36, %v3166_v40  ;;  %v3105_v5 = vpop.f32.mrb[106].mxu0  ;;  %v3169_v47 = vpop.f32.mrb[106].mxu1 }
 0x1cc   : > { %v3106_v50 = vpop.f32.mrb[107].mxu0  ;;  %v3170_v43 = vpop.f32.mrb[107].mxu1 }
 0x1cd   : > { %v4319_v48 = vadd.f32 %v3104_v4, %v4222_v18  ;;  %v3107_v55 = vadd.f32 %v3106_v50, %v3105_v5  ;;  %v3171_v61 = vadd.f32 %v3170_v43, %v3169_v47  ;;  %v4322_v2 = vadd.f32 %v3168_v38, %v4225_v13 }
 0x1cf   : > { %v4325_v12 = vadd.f32 %v3107_v55, %v4227_v22  ;;  %v4328_v21 = vadd.f32 %v3171_v61, %v4230_v28 }
 0x1d1   : > { %v3108_v11 = vpop.f32.mrb[108].mxu0  ;;  %v3172_v3 = vpop.f32.mrb[108].mxu1 }
 0x1d2   : > { %v3109_v30 = vpop.f32.mrb[109].mxu0  ;;  %v3173_v16 = vpop.f32.mrb[109].mxu1 }
 0x1d3   : > { %v3110_v7 = vadd.f32 %v3109_v30, %v3108_v11  ;;  %v3174_v20 = vadd.f32 %v3173_v16, %v3172_v3  ;;  %v3111_v18 = vpop.f32.mrb[110].mxu0  ;;  %v3175_v62 = vpop.f32.mrb[110].mxu1 }
 0x1d4   : > { %v3112_v54 = vpop.f32.mrb[111].mxu0  ;;  %v3176_v10 = vpop.f32.mrb[111].mxu1 }
 0x1d5   : > { %v4331_v13 = vadd.f32 %v3110_v7, %v4236_v45  ;;  %v3113_v8 = vadd.f32 %v3112_v54, %v3111_v18  ;;  %v3177_v22 = vadd.f32 %v3176_v10, %v3175_v62  ;;  %v4334_v37 = vadd.f32 %v3174_v20, %v4239_v53 }
 0x1d7   : > { %v4338_v28 = vadd.f32 %v3113_v8, %v4241_v56  ;;  %v4341_v19 = vadd.f32 %v3177_v22, %v4244_v44 }
 0x1d9   : > { %v3178_v9 = vpop.f32.mrb[112].mxu1  ;;  %v3268_v45 = vpop.f32.mrb[112].mxu0 }
 0x1da   : > { %v2344_v53 = vadd.f32 %v3268_v45, %v4262_v39  ;;  %v3179_v35 = vpop.f32.mrb[113].mxu1  ;;  %v2335_v46 = vpop.f32.mrb[113].mxu0 }
 0x1db   : > { %v3180_v56 = vadd.f32 %v3179_v35, %v3178_v9  ;;  %v2336_v42 = vadd.f32 %v2335_v46, %v4250_v17  ;;  %v3181_v44 = vpop.f32.mrb[114].mxu1  ;;  %v3269_v34 = vpop.f32.mrb[114].mxu0 }
 0x1dc   : > { %2464 = vst [vmem:[%s4346_s22 + $0x10] sm:$0xff] %v2344_v53  ;;  %v2347_v40 = vadd.f32 %v3269_v34, %v4268_v33  ;;  %v3182_v14 = vpop.f32.mrb[115].mxu1  ;;  %v2338_v36 = vpop.f32.mrb[115].mxu0 }
 0x1dd   : > { %2462 = vst [vmem:[%s4346_s22] sm:$0xff] %v2336_v42  ;;  %v3183_v4 = vadd.f32 %v3182_v14, %v3181_v44  ;;  %v2339_v38 = vadd.f32 %v2338_v36, %v4256_v24  ;;  %v4355_v39 = vadd.f32 %v3180_v56, %v4247_v58 }
 0x1de   : > { %2465 = vst [vmem:[%s4346_s22 + $0x18] sm:$0xff] %v2347_v40 }
 0x1df   : > { %2463 = vst [vmem:[%s4346_s22 + $0x8] sm:$0xff] %v2339_v38  ;;  %v4360_v17 = vadd.f32 %v3183_v4, %v4253_v1 }
 0x1e1   : > { %v3184_v5 = vpop.f32.mrb[116].mxu1  ;;  %v3272_v47 = vpop.f32.mrb[116].mxu0 }
 0x1e2   : > { %v2360_v33 = vadd.f32 %v3272_v47, %v4286_v31  ;;  %v3185_v50 = vpop.f32.mrb[117].mxu1  ;;  %v2351_v43 = vpop.f32.mrb[117].mxu0 }
 0x1e3   : > { %v3186_v55 = vadd.f32 %v3185_v50, %v3184_v5  ;;  %v2352_v24 = vadd.f32 %v2351_v43, %v4274_v59  ;;  %v3187_v61 = vpop.f32.mrb[118].mxu1  ;;  %v3273_v58 = vpop.f32.mrb[118].mxu0 }
 0x1e4   : > { %2468 = vst [vmem:[%s4346_s22 + $0x30] sm:$0xff] %v2360_v33  ;;  %v2363_v11 = vadd.f32 %v3273_v58, %v4292_v23  ;;  %v3188_v3 = vpop.f32.mrb[119].mxu1  ;;  %v2354_v30 = vpop.f32.mrb[119].mxu0 }
 0x1e5   : > { %2466 = vst [vmem:[%s4346_s22 + $0x20] sm:$0xff] %v2352_v24  ;;  %v3189_v1 = vadd.f32 %v3188_v3, %v3187_v61  ;;  %v2355_v16 = vadd.f32 %v2354_v30, %v4280_v63  ;;  %v2247_v31 = vadd.f32 %v3186_v55, %v4259_v51 }
 0x1e6   : > { %2469 = vst [vmem:[%s4346_s22 + $0x38] sm:$0xff] %v2363_v11 }
 0x1e7   : > { %2467 = vst [vmem:[%s4346_s22 + $0x28] sm:$0xff] %v2355_v16  ;;  %v2250_v7 = vadd.f32 %v3189_v1, %v4265_v32 }
 0x1e9   : > { %v3190_v59 = vpop.f32.mrb[120].mxu1  ;;  %v3276_v20 = vpop.f32.mrb[120].mxu0 }
 0x1ea   : > { %v2376_v18 = vadd.f32 %v3276_v20, %v4310_v29  ;;  %v3191_v23 = vpop.f32.mrb[121].mxu1  ;;  %v2367_v62 = vpop.f32.mrb[121].mxu0 }
 0x1eb   : > { %v3192_v54 = vadd.f32 %v3191_v23, %v3190_v59  ;;  %v2368_v10 = vadd.f32 %v2367_v62, %v4298_v57  ;;  %v3193_v8 = vpop.f32.mrb[122].mxu1  ;;  %v3277_v63 = vpop.f32.mrb[122].mxu0 }
 0x1ec   : > { %2472 = vst [vmem:[%s4346_s22 + $0x50] sm:$0xff] %v2376_v18  ;;  %v2379_v51 = vadd.f32 %v3277_v63, %v4316_v26  ;;  %v3194_v22 = vpop.f32.mrb[123].mxu1  ;;  %v2370_v9 = vpop.f32.mrb[123].mxu0 }
 0x1ed   : > { %2470 = vst [vmem:[%s4346_s22 + $0x40] sm:$0xff] %v2368_v10  ;;  %v3195_v32 = vadd.f32 %v3194_v22, %v3193_v8  ;;  %v2371_v45 = vadd.f32 %v2370_v9, %v4304_v0  ;;  %v2255_v29 = vadd.f32 %v3192_v54, %v4271_v52 }
 0x1ee   : > { %2473 = vst [vmem:[%s4346_s22 + $0x58] sm:$0xff] %v2379_v51 }
 0x1ef   : > { %2471 = vst [vmem:[%s4346_s22 + $0x48] sm:$0xff] %v2371_v45  ;;  %v2258_v53 = vadd.f32 %v3195_v32, %v4277_v15 }
 0x1f1   : > { %v3196_v57 = vpop.f32.mrb[124].mxu1  ;;  %v3280_v35 = vpop.f32.mrb[124].mxu0 }
 0x1f2   : > { %v2392_v46 = vadd.f32 %v3280_v35, %v4334_v37  ;;  %v3197_v26 = vpop.f32.mrb[125].mxu1  ;;  %v2383_v56 = vpop.f32.mrb[125].mxu0 }
 0x1f3   : > { %v3198_v42 = vadd.f32 %v3197_v26, %v3196_v57  ;;  %v2384_v44 = vadd.f32 %v2383_v56, %v4322_v2  ;;  %v3199_v34 = vpop.f32.mrb[126].mxu1  ;;  %v3281_v0 = vpop.f32.mrb[126].mxu0 }
 0x1f4   : > { %2476 = vst [vmem:[%s4346_s22 + $0x70] sm:$0xff] %v2392_v46  ;;  %v2395_v52 = vadd.f32 %v3281_v0, %v4341_v19  ;;  %v3200_v40 = vpop.f32.mrb[127].mxu1  ;;  %v2386_v14 = vpop.f32.mrb[127].mxu0 }
 0x1f5   : > { %2474 = vst [vmem:[%s4346_s22 + $0x60] sm:$0xff] %v2384_v44  ;;  %v3201_v15 = vadd.f32 %v3200_v40, %v3199_v34  ;;  %v2387_v36 = vadd.f32 %v2386_v14, %v4328_v21  ;;  %v2263_v37 = vadd.f32 %v3198_v42, %v4283_v41 }
 0x1f6   : > { %2477 = vst [vmem:[%s4346_s22 + $0x78] sm:$0xff] %v2395_v52 }
 0x1f7   : > { %2475 = vst [vmem:[%s4346_s22 + $0x68] sm:$0xff] %v2387_v36  ;;  %v2266_v4 = vadd.f32 %v3201_v15, %v4289_v25 }
 0x1f9   : > { %v3202_v2 = vpop.f32.mrb[128].mxu1  ;;  %v3284_v38 = vpop.f32.mrb[128].mxu0 }
 0x1fa   : > { %v2408_v5 = vadd.f32 %v3284_v38, %v2247_v31  ;;  %v3203_v19 = vpop.f32.mrb[129].mxu1  ;;  %v2399_v47 = vpop.f32.mrb[129].mxu0 }
 0x1fb   : > { %v3204_v33 = vadd.f32 %v3203_v19, %v3202_v2  ;;  %v2400_v50 = vadd.f32 %v2399_v47, %v4355_v39  ;;  %v3205_v43 = vpop.f32.mrb[130].mxu1  ;;  %v3285_v55 = vpop.f32.mrb[130].mxu0 }
 0x1fc   : > { %2480 = vst [vmem:[%s4346_s22 + $0x90] sm:$0xff] %v2408_v5  ;;  %v2411_v21 = vadd.f32 %v3285_v55, %v2250_v7  ;;  %v3206_v41 = vpop.f32.mrb[131].mxu1  ;;  %v2402_v24 = vpop.f32.mrb[131].mxu0 }
 0x1fd   : > { %2478 = vst [vmem:[%s4346_s22 + $0x80] sm:$0xff] %v2400_v50  ;;  %v3207_v61 = vadd.f32 %v3206_v41, %v3205_v43  ;;  %v2403_v25 = vadd.f32 %v2402_v24, %v4360_v17  ;;  %v2271_v58 = vadd.f32 %v3204_v33, %v4295_v6 }
 0x1fe   : > { %2481 = vst [vmem:[%s4346_s22 + $0x98] sm:$0xff] %v2411_v21 }
 0x1ff   : > { %2479 = vst [vmem:[%s4346_s22 + $0x88] sm:$0xff] %v2403_v25  ;;  %v2274_v11 = vadd.f32 %v3207_v61, %v4301_v49 }
 0x201   : > { %v3208_v3 = vpop.f32.mrb[132].mxu1  ;;  %v3288_v39 = vpop.f32.mrb[132].mxu0 }
 0x202   : > { %v2424_v30 = vadd.f32 %v3288_v39, %v2263_v37  ;;  %v3209_v1 = vpop.f32.mrb[133].mxu1  ;;  %v2415_v16 = vpop.f32.mrb[133].mxu0 }
 0x203   : > { %v3210_v31 = vadd.f32 %v3209_v1, %v3208_v3  ;;  %v2416_v7 = vadd.f32 %v2415_v16, %v2255_v29  ;;  %v3211_v59 = vpop.f32.mrb[134].mxu1  ;;  %v3289_v20 = vpop.f32.mrb[134].mxu0 }
 0x204   : > { %2484 = vst [vmem:[%s4346_s22 + $0xb0] sm:$0xff] %v2424_v30  ;;  %v2427_v17 = vadd.f32 %v3289_v20, %v2266_v4  ;;  %v3212_v18 = vpop.f32.mrb[135].mxu1  ;;  %v2418_v6 = vpop.f32.mrb[135].mxu0 }
 0x205   : > { %2482 = vst [vmem:[%s4346_s22 + $0xa0] sm:$0xff] %v2416_v7  ;;  %v3213_v23 = vadd.f32 %v3212_v18, %v3211_v59  ;;  %v2419_v62 = vadd.f32 %v2418_v6, %v2258_v53  ;;  %v2279_v49 = vadd.f32 %v3210_v31, %v4307_v27 }
 0x206   : > { %2485 = vst [vmem:[%s4346_s22 + $0xb8] sm:$0xff] %v2427_v17 }
 0x207   : > { %2483 = vst [vmem:[%s4346_s22 + $0xa8] sm:$0xff] %v2419_v62  ;;  %v2282_v54 = vadd.f32 %v3213_v23, %v4313_v60 }
 0x209   : > { %v3214_v10 = vpop.f32.mrb[136].mxu1  ;;  %v3292_v8 = vpop.f32.mrb[136].mxu0 }
 0x20a   : > { %v2440_v63 = vadd.f32 %v3292_v8, %v2279_v49  ;;  %v3215_v51 = vpop.f32.mrb[137].mxu1  ;;  %v2431_v22 = vpop.f32.mrb[137].mxu0 }
 0x20b   : > { %v3216_v9 = vadd.f32 %v3215_v51, %v3214_v10  ;;  %v2432_v32 = vadd.f32 %v2431_v22, %v2271_v58  ;;  %v3217_v45 = vpop.f32.mrb[138].mxu1  ;;  %v3293_v29 = vpop.f32.mrb[138].mxu0 }
 0x20c   : > { %2488 = vst [vmem:[%s4346_s22 + $0xd0] sm:$0xff] %v2440_v63  ;;  %v2443_v53 = vadd.f32 %v3293_v29, %v2282_v54  ;;  %v3218_v57 = vpop.f32.mrb[139].mxu1  ;;  %v2434_v27 = vpop.f32.mrb[139].mxu0 }
 0x20d   : > { %2486 = vst [vmem:[%s4346_s22 + $0xc0] sm:$0xff] %v2432_v32  ;;  %v3219_v35 = vadd.f32 %v3218_v57, %v3217_v45  ;;  %v2435_v46 = vadd.f32 %v2434_v27, %v2274_v11  ;;  %v2287_v60 = vadd.f32 %v3216_v9, %v4319_v48 }
 0x20e   : > { %2489 = vst [vmem:[%s4346_s22 + $0xd8] sm:$0xff] %v2443_v53 }
 0x20f   : > { %2487 = vst [vmem:[%s4346_s22 + $0xc8] sm:$0xff] %v2435_v46  ;;  %v2290_v26 = vadd.f32 %v3219_v35, %v4325_v12 }
 0x211   : > { %v3220_v56 = vpop.f32.mrb[140].mxu1  ;;  %v3296_v42 = vpop.f32.mrb[140].mxu0 }
 0x212   : > { %v3221_v44 = vpop.f32.mrb[141].mxu1  ;;  %v2447_v34 = vpop.f32.mrb[141].mxu0 }
 0x213   : > { %v3222_v0 = vadd.f32 %v3221_v44, %v3220_v56  ;;  %v2448_v52 = vadd.f32 %v2447_v34, %v2287_v60  ;;  %v3223_v40 = vpop.f32.mrb[142].mxu1  ;;  %v3297_v14 = vpop.f32.mrb[142].mxu0 }
 0x214   : > { %v3224_v15 = vpop.f32.mrb[143].mxu1  ;;  %v2450_v36 = vpop.f32.mrb[143].mxu0 }
 0x215   : > { %v2295_v37 = vadd.f32 %v3222_v0, %v4331_v13  ;;  %2490 = vst [vmem:[%s4346_s22 + $0xe0] sm:$0xff] %v2448_v52  ;;  %v3225_v48 = vadd.f32 %v3224_v15, %v3223_v40  ;;  %v2451_v4 = vadd.f32 %v2450_v36, %v2290_v26 }
 0x217   : > { %v2456_v2 = vadd.f32 %v3296_v42, %v2295_v37  ;;  %v2298_v12 = vadd.f32 %v3225_v48, %v4338_v28  ;;  %2491 = vst [vmem:[%s4346_s22 + $0xe8] sm:$0xff] %v2451_v4 }
 0x219   : > { %2492 = vst [vmem:[%s4346_s22 + $0xf0] sm:$0xff] %v2456_v2  ;;  %v2459_v38 = vadd.f32 %v3297_v14, %v2298_v12 }
 0x21b   : > { %2493 = vst [vmem:[%s4346_s22 + $0xf8] sm:$0xff] %v2459_v38 }
 0x21c PF: > { %s13_s12 = sadd.s32 1, %s3609_s12  }
 0x21d   : > { %p10_p4 = scmp.ge.s32.totalorder %s13_s12, 4  }
 0x21f   :  { %12 = sbr.rel (!%p10_p4) target bundleno = 1 (0x1), region = 62 }

</bundles_post_ra>
